<compile_context>
chip_gen: v6e
topology: v6e:2x2x1
jax: 0.10.0
libtpu: 0.0.40
codegen_flags: <defaults>
</compile_context>

<pallas_src>
import functools

import jax
import jax.numpy as jnp
from jax.experimental import pallas as pl
from jax.experimental.pallas import tpu as pltpu


# ------------------------------- model config -------------------------------
D = 16                       # data_dim (must be even)
H = 32                       # hidden_dim
NUM_NET_LAYER = 6            # 1 input + 4 middle + 1 output linear per coupling MLP
NUM_COUPLING = 3
NUM_MID = NUM_NET_LAYER - 2  # 4

P = 128 // D                 # samples packed per 128-lane row (8)
L = P * D                    # packed data lane width  (128)
HP = P * H                   # packed hidden lane width (256)

# ---- weight slab layout (block-diagonal weights), shape (W_ROWS, HP) f32 ----
W_IN_OFF = 0                                          # NUM_COUPLING blocks of (L, HP)
W_MID_OFF = W_IN_OFF + NUM_COUPLING * L               # NUM_COUPLING*NUM_MID blocks of (HP, HP)
W_OUT_OFF = W_MID_OFF + NUM_COUPLING * NUM_MID * HP   # NUM_COUPLING blocks of (HP, L) (lanes L.. zero)
W_ROWS = W_OUT_OFF + NUM_COUPLING * HP                # 4224 (multiple of 8)

# ---- vector slab layout, shape (V_ROWS, HP) f32; unused lanes zero ----
V_MASK = 0                                  # lane-tiled masks            (1, L)
V_INVMASK = V_MASK + NUM_COUPLING           # lane-tiled 1 - masks        (1, L)
V_BIN = V_INVMASK + NUM_COUPLING            # lane-tiled input biases     (1, HP)
V_BMID = V_BIN + NUM_COUPLING               # lane-tiled middle biases    (1, HP)
V_BOUT = V_BMID + NUM_COUPLING * NUM_MID    # lane-tiled output biases    (1, L)
V_SCALE = V_BOUT + NUM_COUPLING             # lane-tiled exp(log_scale)   (1, L)
V_LOGDET = V_SCALE + 1                      # sum(log_scale) broadcast    (1, L)
V_GSUM = 32                                 # group-sum matrix G          (L, L), 8-row aligned
V_ROWS = V_GSUM + L                         # 160 (multiple of 8)


def _leaky_relu(x, slope=0.2):
    return jnp.where(x >= 0, x, slope * x)


def _softplus(x):
    return jnp.logaddexp(x, 0.0)


# -------------------------------- Pallas kernel --------------------------------
def nice_fwd_kernel(x_ref, w_ref, v_ref, z_ref, ll_ref):
    z = x_ref[...]                                                    # (TR, L) — P samples per row

    # ---- 3 coupling layers, statically unrolled (18 block-diag MXU matmuls) ----
    for i in range(NUM_COUPLING):
        mask = v_ref[V_MASK + i: V_MASK + i + 1, 0:L]                 # (1, L)
        inv_mask = v_ref[V_INVMASK + i: V_INVMASK + i + 1, 0:L]       # (1, L) = 1 - mask (host-precomputed)
        b_in = v_ref[V_BIN + i: V_BIN + i + 1, :]                     # (1, HP)
        b_out = v_ref[V_BOUT + i: V_BOUT + i + 1, 0:L]                # (1, L)
        w_in = w_ref[W_IN_OFF + i * L: W_IN_OFF + (i + 1) * L, :]     # (L, HP) block-diag
        w_out = w_ref[W_OUT_OFF + i * HP: W_OUT_OFF + (i + 1) * HP, 0:L]   # (HP, L) block-diag

        x1 = z * mask                                                 # masked half fed to the MLP
        h = jnp.dot(x1, w_in, preferred_element_type=jnp.float32) + b_in
        h = _leaky_relu(h)
        for j in range(NUM_MID):
            k = i * NUM_MID + j
            w_mid = w_ref[W_MID_OFF + k * HP: W_MID_OFF + (k + 1) * HP, :]   # (HP, HP) block-diag
            b_mid = v_ref[V_BMID + k: V_BMID + k + 1, :]                     # (1, HP)
            h = jnp.dot(h, w_mid, preferred_element_type=jnp.float32) + b_mid
            h = _leaky_relu(h)
        t = jnp.dot(h, w_out, preferred_element_type=jnp.float32) + b_out    # (TR, L)

        # y = x1 + (x2 + MLP(x1) * (1 - mask)) == z + t * (1 - mask)
        z = z + t * inv_mask

    # ---- scaling layer (exp(log_scale) precomputed on host) ----
    scale = v_ref[V_SCALE: V_SCALE + 1, 0:L]                          # (1, L)
    logdet = v_ref[V_LOGDET: V_LOGDET + 1, 0:L]                       # (1, L), every lane = sum(log_scale)
    z = scale * z

    # ---- logistic prior log-prob + per-sample (16-lane-group) reduction via MXU ----
    log_prob = -(_softplus(z) + _softplus(-z))                        # (TR, L)
    gsum = v_ref[V_GSUM: V_GSUM + L, 0:L]                             # (L, L) group-sum broadcast matrix
    ll = jnp.dot(log_prob, gsum, preferred_element_type=jnp.float32) + logdet

    z_ref[...] = z                                                    # lane-dense stores
    ll_ref[...] = ll                                                  # every lane of a sample group = its ll


# --------------------------------- host wrapper ---------------------------------
@functools.partial(jax.jit, static_argnames=("tr",))
def _nice_forward_rows(x_rows, wslab, vslab, *, tr):
    r = x_rows.shape[0]
    grid = (r // tr,)
    zb, llb = pl.pallas_call(
        nice_fwd_kernel,
        out_shape=(
            jax.ShapeDtypeStruct((r, L), jnp.float32),
            jax.ShapeDtypeStruct((r, L), jnp.float32),
        ),
        grid=grid,
        in_specs=[
            pl.BlockSpec((tr, L), lambda b: (b, 0)),
            pl.BlockSpec((W_ROWS, HP), lambda b: (0, 0)),   # weights: same block every step -> VMEM-resident
            pl.BlockSpec((V_ROWS, HP), lambda b: (0, 0)),   # vectors: same block every step -> VMEM-resident
        ],
        out_specs=(
            pl.BlockSpec((tr, L), lambda b: (b, 0)),
            pl.BlockSpec((tr, L), lambda b: (b, 0)),
        ),
        compiler_params=pltpu.CompilerParams(
            dimension_semantics=("parallel",),              # batch tiles independent -> both TCs on v7x
            vmem_limit_bytes=48 * 1024 * 1024,
        ),
    )(x_rows, wslab, vslab)
    return zb, llb


def nice_forward(x, packed, tr=128):
    """x: (B, D) f32;  packed: (weight_slab, vector_slab).  Returns (z, log_likelihood)."""
    wslab, vslab = packed
    b = x.shape[0]
    samples_per_tile = tr * P
    b_pad = ((b + samples_per_tile - 1) // samples_per_tile) * samples_per_tile
    x_pad = jnp.pad(x, ((0, b_pad - b), (0, 0)))
    x_rows = x_pad.reshape(b_pad // P, L)                   # P samples per 128-lane row
    z_rows, ll_rows = _nice_forward_rows(x_rows, wslab, vslab, tr=tr)
    z = z_rows.reshape(b_pad, D)[:b]
    ll = ll_rows.reshape(b_pad, D)[:b, 0]
    return z, ll


# --------------------------- deterministic raw params ---------------------------
def make_params(key):
    keys = jax.random.split(key, 8)

    # masks: mask[::2] = 1; orientation (i % 2 == 0) flips it.
    base = jnp.zeros((D,), jnp.float32).at[::2].set(1.0)
    masks = []
    for i in range(NUM_COUPLING):
        m = 1.0 - base if (i % 2 == 0) else base
        masks.append(m)
    masks = jnp.stack(masks).reshape(NUM_COUPLING, 1, D)

    def init(k, shape, fan_in):
        bound = 1.0 / jnp.sqrt(fan_in)
        return jax.random.uniform(k, shape, jnp.float32, -bound, bound)

    win = init(keys[0], (NUM_COUPLING, D, H), D)
    bin_ = init(keys[1], (NUM_COUPLING, 1, H), D)
    wmid = init(keys[2], (NUM_COUPLING * NUM_MID, H, H), H)
    bmid = init(keys[3], (NUM_COUPLING * NUM_MID, 1, H), H)
    wout = init(keys[4], (NUM_COUPLING, H, D), H)
    bout = init(keys[5], (NUM_COUPLING, 1, D), H)
    log_scale = jax.random.normal(keys[6], (1, D), jnp.float32)   # nn.Parameter(torch.randn(1, D))

    return masks, win, bin_, wmid, bmid, wout, bout, log_scale


# ------------------------ pack raw params into the 2 slabs ------------------------
def pack_params(params):
    masks, win, bin_, wmid, bmid, wout, bout, log_scale = params
    eye = jnp.eye(P, dtype=jnp.float32)

    def block_diag(w):                         # (n, a, b) -> (n, P*a, P*b)
        n, a, b_ = w.shape
        return jnp.einsum("pq,nab->npaqb", eye, w).reshape(n, P * a, P * b_)

    def lane_tile(a):                          # (n, d) -> (n, P*d)
        return jnp.tile(a, (1, P))

    def pad_lanes(a):                          # (n, k) -> (n, HP), zero-padded lanes
        return jnp.pad(a, ((0, 0), (0, HP - a.shape[1])))

    # weight slab: block-diagonal weights, (W_ROWS, HP)
    win_bd = block_diag(win)                   # (3, L, HP)
    wmid_bd = block_diag(wmid)                 # (12, HP, HP)
    wout_bd = block_diag(wout)                 # (3, HP, L)
    wslab = jnp.concatenate(
        [
            win_bd.reshape(NUM_COUPLING * L, HP),
            wmid_bd.reshape(NUM_COUPLING * NUM_MID * HP, HP),
            pad_lanes(wout_bd.reshape(NUM_COUPLING * HP, L)),
        ],
        axis=0,
    )
    assert wslab.shape == (W_ROWS, HP)

    # vector slab: lane-tiled masks / 1-masks / biases / exp(log_scale) / sum(log_scale) / group-sum matrix
    m2 = masks.reshape(NUM_COUPLING, D)
    rows = jnp.concatenate(
        [
            pad_lanes(lane_tile(m2)),                                # masks
            pad_lanes(lane_tile(1.0 - m2)),                          # 1 - masks (host-precomputed)
            lane_tile(bin_.reshape(NUM_COUPLING, H)),                # input biases
            lane_tile(bmid.reshape(NUM_COUPLING * NUM_MID, H)),      # middle biases
            pad_lanes(lane_tile(bout.reshape(NUM_COUPLING, D))),     # output biases
            pad_lanes(lane_tile(jnp.exp(log_scale))),                # exp(log_scale)
            pad_lanes(jnp.full((1, L), jnp.sum(log_scale), jnp.float32)),  # sum(log_scale)
        ],
        axis=0,
    )
    assert rows.shape[0] == V_LOGDET + 1
    rows = jnp.pad(rows, ((0, V_GSUM - rows.shape[0]), (0, 0)))

    lane_group = jnp.arange(L) // D
    gsum = (lane_group[:, None] == lane_group[None, :]).astype(jnp.float32)   # (L, L)
    vslab = jnp.concatenate([rows, pad_lanes(gsum)], axis=0)
    assert vslab.shape == (V_ROWS, HP)
    return wslab, vslab


# ------------------------------ pure-JAX reference ------------------------------
def nice_forward_ref(x, params):
    masks, win, bin_, wmid, bmid, wout, bout, log_scale = params
    z = x
    for i in range(NUM_COUPLING):
        mask = masks[i]
        x1 = mask * z
        h = _leaky_relu(x1 @ win[i] + bin_[i])
        for j in range(NUM_MID):
            k = i * NUM_MID + j
            h = _leaky_relu(h @ wmid[k] + bmid[k])
        t = h @ wout[i] + bout[i]
        z = z + t * (1.0 - mask)
    z = jnp.exp(log_scale) * z
    logdet = jnp.sum(log_scale)
    lp = -(_softplus(z) + _softplus(-z))
    return z, jnp.sum(lp, axis=1) + logdet


if __name__ == "__main__":
    key = jax.random.PRNGKey(0)
    kx, kp = jax.random.split(key)

    B = 500   # not a multiple of the per-tile sample count -> exercises padding path
    x = jax.random.normal(kx, (B, D), jnp.float32)
    params = make_params(kp)
    packed = pack_params(params)

    z, ll = nice_forward(x, packed)
    jax.block_until_ready((z, ll))

    z_ref, ll_ref = nice_forward_ref(x, params)
    assert z.shape == (B, D) and ll.shape == (B,)
    assert jnp.allclose(z, z_ref, atol=1e-4, rtol=1e-4), float(jnp.max(jnp.abs(z - z_ref)))
    assert jnp.allclose(ll, ll_ref, atol=1e-4, rtol=1e-4), float(jnp.max(jnp.abs(ll - ll_ref)))

    print("KERNEL_OK")
</pallas_src>

<mosaic_0001>
module attributes {stable_mosaic.version = 11 : i64} {
  func.func @nice_fwd_kernel(%arg0: i32, %arg1: memref<128x128xf32, #tpu.memory_space<vmem>>, %arg2: memref<4224x256xf32, #tpu.memory_space<vmem>>, %arg3: memref<160x256xf32, #tpu.memory_space<vmem>>, %arg4: memref<128x128xf32, #tpu.memory_space<vmem>>, %arg5: memref<128x128xf32, #tpu.memory_space<vmem>>) attributes {dimension_semantics = [#tpu.dimension_semantics<parallel>], iteration_bounds = array<i64: 1>, scalar_prefetch = 0 : i64, scratch_operands = 0 : i64, tpu.core_type = #tpu.core_type<tc>, window_params = [{transform_indices = @transform_0, window_bounds = array<i64: 128, 128>}, {pipeline_mode = #tpu.pipeline_mode<synchronous>, transform_indices = @transform_1, window_bounds = array<i64: 4224, 256>}, {pipeline_mode = #tpu.pipeline_mode<synchronous>, transform_indices = @transform_2, window_bounds = array<i64: 160, 256>}, {transform_indices = @transform_3, window_bounds = array<i64: 128, 128>}, {transform_indices = @transform_4, window_bounds = array<i64: 128, 128>}]} {
    %c0 = arith.constant 0 : index
    %c0_0 = arith.constant 0 : index
    %0 = vector.load %arg1[%c0, %c0_0] : memref<128x128xf32, #tpu.memory_space<vmem>>, vector<128x128xf32>
    %c0_1 = arith.constant 0 : index
    %c0_2 = arith.constant 0 : index
    %1 = vector.load %arg3[%c0_1, %c0_2] : memref<160x256xf32, #tpu.memory_space<vmem>>, vector<1x128xf32>
    %c3 = arith.constant 3 : index
    %c0_3 = arith.constant 0 : index
    %2 = vector.load %arg3[%c3, %c0_3] : memref<160x256xf32, #tpu.memory_space<vmem>>, vector<1x128xf32>
    %c6 = arith.constant 6 : index
    %c0_4 = arith.constant 0 : index
    %3 = vector.load %arg3[%c6, %c0_4] : memref<160x256xf32, #tpu.memory_space<vmem>>, vector<1x256xf32>
    %c21 = arith.constant 21 : index
    %c0_5 = arith.constant 0 : index
    %4 = vector.load %arg3[%c21, %c0_5] : memref<160x256xf32, #tpu.memory_space<vmem>>, vector<1x128xf32>
    %c0_6 = arith.constant 0 : index
    %c0_7 = arith.constant 0 : index
    %5 = vector.load %arg2[%c0_6, %c0_7] : memref<4224x256xf32, #tpu.memory_space<vmem>>, vector<128x256xf32>
    %c3456 = arith.constant 3456 : index
    %c0_8 = arith.constant 0 : index
    %6 = vector.load %arg2[%c3456, %c0_8] : memref<4224x256xf32, #tpu.memory_space<vmem>>, vector<256x128xf32>
    %7 = vector.broadcast %1 : vector<1x128xf32> to vector<128x128xf32>
    %8 = arith.mulf %0, %7 : vector<128x128xf32>
    %cst = arith.constant dense<0.000000e+00> : vector<128x256xf32>
    %9 = tpu.matmul %8, %5, %cst {dimension_numbers = #tpu.dot_dimension_numbers<[1], [0], [0], [1], [0, 0, 1, 1], [], []>} : vector<128x128xf32>, vector<128x256xf32>, vector<128x256xf32> -> vector<128x256xf32>
    %10 = vector.broadcast %3 : vector<1x256xf32> to vector<128x256xf32>
    %11 = arith.addf %9, %10 : vector<128x256xf32>
    %cst_9 = arith.constant 0.000000e+00 : f32
    %12 = vector.broadcast %cst_9 : f32 to vector<128x256xf32>
    %13 = arith.cmpf oge, %11, %12 : vector<128x256xf32>
    %cst_10 = arith.constant 2.000000e-01 : f32
    %14 = vector.broadcast %cst_10 : f32 to vector<128x256xf32>
    %15 = arith.mulf %14, %11 : vector<128x256xf32>
    %16 = arith.select %13, %11, %15 : vector<128x256xi1>, vector<128x256xf32>
    %c384 = arith.constant 384 : index
    %c0_11 = arith.constant 0 : index
    %17 = vector.load %arg2[%c384, %c0_11] : memref<4224x256xf32, #tpu.memory_space<vmem>>, vector<256x256xf32>
    %c9 = arith.constant 9 : index
    %c0_12 = arith.constant 0 : index
    %18 = vector.load %arg3[%c9, %c0_12] : memref<160x256xf32, #tpu.memory_space<vmem>>, vector<1x256xf32>
    %cst_13 = arith.constant dense<0.000000e+00> : vector<128x256xf32>
    %19 = tpu.matmul %16, %17, %cst_13 {dimension_numbers = #tpu.dot_dimension_numbers<[1], [0], [0], [1], [0, 0, 1, 1], [], []>} : vector<128x256xf32>, vector<256x256xf32>, vector<128x256xf32> -> vector<128x256xf32>
    %20 = vector.broadcast %18 : vector<1x256xf32> to vector<128x256xf32>
    %21 = arith.addf %19, %20 : vector<128x256xf32>
    %cst_14 = arith.constant 0.000000e+00 : f32
    %22 = vector.broadcast %cst_14 : f32 to vector<128x256xf32>
    %23 = arith.cmpf oge, %21, %22 : vector<128x256xf32>
    %cst_15 = arith.constant 2.000000e-01 : f32
    %24 = vector.broadcast %cst_15 : f32 to vector<128x256xf32>
    %25 = arith.mulf %24, %21 : vector<128x256xf32>
    %26 = arith.select %23, %21, %25 : vector<128x256xi1>, vector<128x256xf32>
    %c640 = arith.constant 640 : index
    %c0_16 = arith.constant 0 : index
    %27 = vector.load %arg2[%c640, %c0_16] : memref<4224x256xf32, #tpu.memory_space<vmem>>, vector<256x256xf32>
    %c10 = arith.constant 10 : index
    %c0_17 = arith.constant 0 : index
    %28 = vector.load %arg3[%c10, %c0_17] : memref<160x256xf32, #tpu.memory_space<vmem>>, vector<1x256xf32>
    %cst_18 = arith.constant dense<0.000000e+00> : vector<128x256xf32>
    %29 = tpu.matmul %26, %27, %cst_18 {dimension_numbers = #tpu.dot_dimension_numbers<[1], [0], [0], [1], [0, 0, 1, 1], [], []>} : vector<128x256xf32>, vector<256x256xf32>, vector<128x256xf32> -> vector<128x256xf32>
    %30 = vector.broadcast %28 : vector<1x256xf32> to vector<128x256xf32>
    %31 = arith.addf %29, %30 : vector<128x256xf32>
    %cst_19 = arith.constant 0.000000e+00 : f32
    %32 = vector.broadcast %cst_19 : f32 to vector<128x256xf32>
    %33 = arith.cmpf oge, %31, %32 : vector<128x256xf32>
    %cst_20 = arith.constant 2.000000e-01 : f32
    %34 = vector.broadcast %cst_20 : f32 to vector<128x256xf32>
    %35 = arith.mulf %34, %31 : vector<128x256xf32>
    %36 = arith.select %33, %31, %35 : vector<128x256xi1>, vector<128x256xf32>
    %c896 = arith.constant 896 : index
    %c0_21 = arith.constant 0 : index
    %37 = vector.load %arg2[%c896, %c0_21] : memref<4224x256xf32, #tpu.memory_space<vmem>>, vector<256x256xf32>
    %c11 = arith.constant 11 : index
    %c0_22 = arith.constant 0 : index
    %38 = vector.load %arg3[%c11, %c0_22] : memref<160x256xf32, #tpu.memory_space<vmem>>, vector<1x256xf32>
    %cst_23 = arith.constant dense<0.000000e+00> : vector<128x256xf32>
    %39 = tpu.matmul %36, %37, %cst_23 {dimension_numbers = #tpu.dot_dimension_numbers<[1], [0], [0], [1], [0, 0, 1, 1], [], []>} : vector<128x256xf32>, vector<256x256xf32>, vector<128x256xf32> -> vector<128x256xf32>
    %40 = vector.broadcast %38 : vector<1x256xf32> to vector<128x256xf32>
    %41 = arith.addf %39, %40 : vector<128x256xf32>
    %cst_24 = arith.constant 0.000000e+00 : f32
    %42 = vector.broadcast %cst_24 : f32 to vector<128x256xf32>
    %43 = arith.cmpf oge, %41, %42 : vector<128x256xf32>
    %cst_25 = arith.constant 2.000000e-01 : f32
    %44 = vector.broadcast %cst_25 : f32 to vector<128x256xf32>
    %45 = arith.mulf %44, %41 : vector<128x256xf32>
    %46 = arith.select %43, %41, %45 : vector<128x256xi1>, vector<128x256xf32>
    %c1152 = arith.constant 1152 : index
    %c0_26 = arith.constant 0 : index
    %47 = vector.load %arg2[%c1152, %c0_26] : memref<4224x256xf32, #tpu.memory_space<vmem>>, vector<256x256xf32>
    %c12 = arith.constant 12 : index
    %c0_27 = arith.constant 0 : index
    %48 = vector.load %arg3[%c12, %c0_27] : memref<160x256xf32, #tpu.memory_space<vmem>>, vector<1x256xf32>
    %cst_28 = arith.constant dense<0.000000e+00> : vector<128x256xf32>
    %49 = tpu.matmul %46, %47, %cst_28 {dimension_numbers = #tpu.dot_dimension_numbers<[1], [0], [0], [1], [0, 0, 1, 1], [], []>} : vector<128x256xf32>, vector<256x256xf32>, vector<128x256xf32> -> vector<128x256xf32>
    %50 = vector.broadcast %48 : vector<1x256xf32> to vector<128x256xf32>
    %51 = arith.addf %49, %50 : vector<128x256xf32>
    %cst_29 = arith.constant 0.000000e+00 : f32
    %52 = vector.broadcast %cst_29 : f32 to vector<128x256xf32>
    %53 = arith.cmpf oge, %51, %52 : vector<128x256xf32>
    %cst_30 = arith.constant 2.000000e-01 : f32
    %54 = vector.broadcast %cst_30 : f32 to vector<128x256xf32>
    %55 = arith.mulf %54, %51 : vector<128x256xf32>
    %56 = arith.select %53, %51, %55 : vector<128x256xi1>, vector<128x256xf32>
    %cst_31 = arith.constant dense<0.000000e+00> : vector<128x128xf32>
    %57 = tpu.matmul %56, %6, %cst_31 {dimension_numbers = #tpu.dot_dimension_numbers<[1], [0], [0], [1], [0, 0, 1, 1], [], []>} : vector<128x256xf32>, vector<256x128xf32>, vector<128x128xf32> -> vector<128x128xf32>
    %58 = vector.broadcast %4 : vector<1x128xf32> to vector<128x128xf32>
    %59 = arith.addf %57, %58 : vector<128x128xf32>
    %60 = vector.broadcast %2 : vector<1x128xf32> to vector<128x128xf32>
    %61 = arith.mulf %59, %60 : vector<128x128xf32>
    %62 = arith.addf %0, %61 : vector<128x128xf32>
    %c1 = arith.constant 1 : index
    %c0_32 = arith.constant 0 : index
    %63 = vector.load %arg3[%c1, %c0_32] : memref<160x256xf32, #tpu.memory_space<vmem>>, vector<1x128xf32>
    %c4 = arith.constant 4 : index
    %c0_33 = arith.constant 0 : index
    %64 = vector.load %arg3[%c4, %c0_33] : memref<160x256xf32, #tpu.memory_space<vmem>>, vector<1x128xf32>
    %c7 = arith.constant 7 : index
    %c0_34 = arith.constant 0 : index
    %65 = vector.load %arg3[%c7, %c0_34] : memref<160x256xf32, #tpu.memory_space<vmem>>, vector<1x256xf32>
    %c22 = arith.constant 22 : index
    %c0_35 = arith.constant 0 : index
    %66 = vector.load %arg3[%c22, %c0_35] : memref<160x256xf32, #tpu.memory_space<vmem>>, vector<1x128xf32>
    %c128 = arith.constant 128 : index
    %c0_36 = arith.constant 0 : index
    %67 = vector.load %arg2[%c128, %c0_36] : memref<4224x256xf32, #tpu.memory_space<vmem>>, vector<128x256xf32>
    %c3712 = arith.constant 3712 : index
    %c0_37 = arith.constant 0 : index
    %68 = vector.load %arg2[%c3712, %c0_37] : memref<4224x256xf32, #tpu.memory_space<vmem>>, vector<256x128xf32>
    %69 = vector.broadcast %63 : vector<1x128xf32> to vector<128x128xf32>
    %70 = arith.mulf %62, %69 : vector<128x128xf32>
    %cst_38 = arith.constant dense<0.000000e+00> : vector<128x256xf32>
    %71 = tpu.matmul %70, %67, %cst_38 {dimension_numbers = #tpu.dot_dimension_numbers<[1], [0], [0], [1], [0, 0, 1, 1], [], []>} : vector<128x128xf32>, vector<128x256xf32>, vector<128x256xf32> -> vector<128x256xf32>
    %72 = vector.broadcast %65 : vector<1x256xf32> to vector<128x256xf32>
    %73 = arith.addf %71, %72 : vector<128x256xf32>
    %cst_39 = arith.constant 0.000000e+00 : f32
    %74 = vector.broadcast %cst_39 : f32 to vector<128x256xf32>
    %75 = arith.cmpf oge, %73, %74 : vector<128x256xf32>
    %cst_40 = arith.constant 2.000000e-01 : f32
    %76 = vector.broadcast %cst_40 : f32 to vector<128x256xf32>
    %77 = arith.mulf %76, %73 : vector<128x256xf32>
    %78 = arith.select %75, %73, %77 : vector<128x256xi1>, vector<128x256xf32>
    %c1408 = arith.constant 1408 : index
    %c0_41 = arith.constant 0 : index
    %79 = vector.load %arg2[%c1408, %c0_41] : memref<4224x256xf32, #tpu.memory_space<vmem>>, vector<256x256xf32>
    %c13 = arith.constant 13 : index
    %c0_42 = arith.constant 0 : index
    %80 = vector.load %arg3[%c13, %c0_42] : memref<160x256xf32, #tpu.memory_space<vmem>>, vector<1x256xf32>
    %cst_43 = arith.constant dense<0.000000e+00> : vector<128x256xf32>
    %81 = tpu.matmul %78, %79, %cst_43 {dimension_numbers = #tpu.dot_dimension_numbers<[1], [0], [0], [1], [0, 0, 1, 1], [], []>} : vector<128x256xf32>, vector<256x256xf32>, vector<128x256xf32> -> vector<128x256xf32>
    %82 = vector.broadcast %80 : vector<1x256xf32> to vector<128x256xf32>
    %83 = arith.addf %81, %82 : vector<128x256xf32>
    %cst_44 = arith.constant 0.000000e+00 : f32
    %84 = vector.broadcast %cst_44 : f32 to vector<128x256xf32>
    %85 = arith.cmpf oge, %83, %84 : vector<128x256xf32>
    %cst_45 = arith.constant 2.000000e-01 : f32
    %86 = vector.broadcast %cst_45 : f32 to vector<128x256xf32>
    %87 = arith.mulf %86, %83 : vector<128x256xf32>
    %88 = arith.select %85, %83, %87 : vector<128x256xi1>, vector<128x256xf32>
    %c1664 = arith.constant 1664 : index
    %c0_46 = arith.constant 0 : index
    %89 = vector.load %arg2[%c1664, %c0_46] : memref<4224x256xf32, #tpu.memory_space<vmem>>, vector<256x256xf32>
    %c14 = arith.constant 14 : index
    %c0_47 = arith.constant 0 : index
    %90 = vector.load %arg3[%c14, %c0_47] : memref<160x256xf32, #tpu.memory_space<vmem>>, vector<1x256xf32>
    %cst_48 = arith.constant dense<0.000000e+00> : vector<128x256xf32>
    %91 = tpu.matmul %88, %89, %cst_48 {dimension_numbers = #tpu.dot_dimension_numbers<[1], [0], [0], [1], [0, 0, 1, 1], [], []>} : vector<128x256xf32>, vector<256x256xf32>, vector<128x256xf32> -> vector<128x256xf32>
    %92 = vector.broadcast %90 : vector<1x256xf32> to vector<128x256xf32>
    %93 = arith.addf %91, %92 : vector<128x256xf32>
    %cst_49 = arith.constant 0.000000e+00 : f32
    %94 = vector.broadcast %cst_49 : f32 to vector<128x256xf32>
    %95 = arith.cmpf oge, %93, %94 : vector<128x256xf32>
    %cst_50 = arith.constant 2.000000e-01 : f32
    %96 = vector.broadcast %cst_50 : f32 to vector<128x256xf32>
    %97 = arith.mulf %96, %93 : vector<128x256xf32>
    %98 = arith.select %95, %93, %97 : vector<128x256xi1>, vector<128x256xf32>
    %c1920 = arith.constant 1920 : index
    %c0_51 = arith.constant 0 : index
    %99 = vector.load %arg2[%c1920, %c0_51] : memref<4224x256xf32, #tpu.memory_space<vmem>>, vector<256x256xf32>
    %c15 = arith.constant 15 : index
    %c0_52 = arith.constant 0 : index
    %100 = vector.load %arg3[%c15, %c0_52] : memref<160x256xf32, #tpu.memory_space<vmem>>, vector<1x256xf32>
    %cst_53 = arith.constant dense<0.000000e+00> : vector<128x256xf32>
    %101 = tpu.matmul %98, %99, %cst_53 {dimension_numbers = #tpu.dot_dimension_numbers<[1], [0], [0], [1], [0, 0, 1, 1], [], []>} : vector<128x256xf32>, vector<256x256xf32>, vector<128x256xf32> -> vector<128x256xf32>
    %102 = vector.broadcast %100 : vector<1x256xf32> to vector<128x256xf32>
    %103 = arith.addf %101, %102 : vector<128x256xf32>
    %cst_54 = arith.constant 0.000000e+00 : f32
    %104 = vector.broadcast %cst_54 : f32 to vector<128x256xf32>
    %105 = arith.cmpf oge, %103, %104 : vector<128x256xf32>
    %cst_55 = arith.constant 2.000000e-01 : f32
    %106 = vector.broadcast %cst_55 : f32 to vector<128x256xf32>
    %107 = arith.mulf %106, %103 : vector<128x256xf32>
    %108 = arith.select %105, %103, %107 : vector<128x256xi1>, vector<128x256xf32>
    %c2176 = arith.constant 2176 : index
    %c0_56 = arith.constant 0 : index
    %109 = vector.load %arg2[%c2176, %c0_56] : memref<4224x256xf32, #tpu.memory_space<vmem>>, vector<256x256xf32>
    %c16 = arith.constant 16 : index
    %c0_57 = arith.constant 0 : index
    %110 = vector.load %arg3[%c16, %c0_57] : memref<160x256xf32, #tpu.memory_space<vmem>>, vector<1x256xf32>
    %cst_58 = arith.constant dense<0.000000e+00> : vector<128x256xf32>
    %111 = tpu.matmul %108, %109, %cst_58 {dimension_numbers = #tpu.dot_dimension_numbers<[1], [0], [0], [1], [0, 0, 1, 1], [], []>} : vector<128x256xf32>, vector<256x256xf32>, vector<128x256xf32> -> vector<128x256xf32>
    %112 = vector.broadcast %110 : vector<1x256xf32> to vector<128x256xf32>
    %113 = arith.addf %111, %112 : vector<128x256xf32>
    %cst_59 = arith.constant 0.000000e+00 : f32
    %114 = vector.broadcast %cst_59 : f32 to vector<128x256xf32>
    %115 = arith.cmpf oge, %113, %114 : vector<128x256xf32>
    %cst_60 = arith.constant 2.000000e-01 : f32
    %116 = vector.broadcast %cst_60 : f32 to vector<128x256xf32>
    %117 = arith.mulf %116, %113 : vector<128x256xf32>
    %118 = arith.select %115, %113, %117 : vector<128x256xi1>, vector<128x256xf32>
    %cst_61 = arith.constant dense<0.000000e+00> : vector<128x128xf32>
    %119 = tpu.matmul %118, %68, %cst_61 {dimension_numbers = #tpu.dot_dimension_numbers<[1], [0], [0], [1], [0, 0, 1, 1], [], []>} : vector<128x256xf32>, vector<256x128xf32>, vector<128x128xf32> -> vector<128x128xf32>
    %120 = vector.broadcast %66 : vector<1x128xf32> to vector<128x128xf32>
    %121 = arith.addf %119, %120 : vector<128x128xf32>
    %122 = vector.broadcast %64 : vector<1x128xf32> to vector<128x128xf32>
    %123 = arith.mulf %121, %122 : vector<128x128xf32>
    %124 = arith.addf %62, %123 : vector<128x128xf32>
    %c2 = arith.constant 2 : index
    %c0_62 = arith.constant 0 : index
    %125 = vector.load %arg3[%c2, %c0_62] : memref<160x256xf32, #tpu.memory_space<vmem>>, vector<1x128xf32>
    %c5 = arith.constant 5 : index
    %c0_63 = arith.constant 0 : index
    %126 = vector.load %arg3[%c5, %c0_63] : memref<160x256xf32, #tpu.memory_space<vmem>>, vector<1x128xf32>
    %c8 = arith.constant 8 : index
    %c0_64 = arith.constant 0 : index
    %127 = vector.load %arg3[%c8, %c0_64] : memref<160x256xf32, #tpu.memory_space<vmem>>, vector<1x256xf32>
    %c23 = arith.constant 23 : index
    %c0_65 = arith.constant 0 : index
    %128 = vector.load %arg3[%c23, %c0_65] : memref<160x256xf32, #tpu.memory_space<vmem>>, vector<1x128xf32>
    %c256 = arith.constant 256 : index
    %c0_66 = arith.constant 0 : index
    %129 = vector.load %arg2[%c256, %c0_66] : memref<4224x256xf32, #tpu.memory_space<vmem>>, vector<128x256xf32>
    %c3968 = arith.constant 3968 : index
    %c0_67 = arith.constant 0 : index
    %130 = vector.load %arg2[%c3968, %c0_67] : memref<4224x256xf32, #tpu.memory_space<vmem>>, vector<256x128xf32>
    %131 = vector.broadcast %125 : vector<1x128xf32> to vector<128x128xf32>
    %132 = arith.mulf %124, %131 : vector<128x128xf32>
    %cst_68 = arith.constant dense<0.000000e+00> : vector<128x256xf32>
    %133 = tpu.matmul %132, %129, %cst_68 {dimension_numbers = #tpu.dot_dimension_numbers<[1], [0], [0], [1], [0, 0, 1, 1], [], []>} : vector<128x128xf32>, vector<128x256xf32>, vector<128x256xf32> -> vector<128x256xf32>
    %134 = vector.broadcast %127 : vector<1x256xf32> to vector<128x256xf32>
    %135 = arith.addf %133, %134 : vector<128x256xf32>
    %cst_69 = arith.constant 0.000000e+00 : f32
    %136 = vector.broadcast %cst_69 : f32 to vector<128x256xf32>
    %137 = arith.cmpf oge, %135, %136 : vector<128x256xf32>
    %cst_70 = arith.constant 2.000000e-01 : f32
    %138 = vector.broadcast %cst_70 : f32 to vector<128x256xf32>
    %139 = arith.mulf %138, %135 : vector<128x256xf32>
    %140 = arith.select %137, %135, %139 : vector<128x256xi1>, vector<128x256xf32>
    %c2432 = arith.constant 2432 : index
    %c0_71 = arith.constant 0 : index
    %141 = vector.load %arg2[%c2432, %c0_71] : memref<4224x256xf32, #tpu.memory_space<vmem>>, vector<256x256xf32>
    %c17 = arith.constant 17 : index
    %c0_72 = arith.constant 0 : index
    %142 = vector.load %arg3[%c17, %c0_72] : memref<160x256xf32, #tpu.memory_space<vmem>>, vector<1x256xf32>
    %cst_73 = arith.constant dense<0.000000e+00> : vector<128x256xf32>
    %143 = tpu.matmul %140, %141, %cst_73 {dimension_numbers = #tpu.dot_dimension_numbers<[1], [0], [0], [1], [0, 0, 1, 1], [], []>} : vector<128x256xf32>, vector<256x256xf32>, vector<128x256xf32> -> vector<128x256xf32>
    %144 = vector.broadcast %142 : vector<1x256xf32> to vector<128x256xf32>
    %145 = arith.addf %143, %144 : vector<128x256xf32>
    %cst_74 = arith.constant 0.000000e+00 : f32
    %146 = vector.broadcast %cst_74 : f32 to vector<128x256xf32>
    %147 = arith.cmpf oge, %145, %146 : vector<128x256xf32>
    %cst_75 = arith.constant 2.000000e-01 : f32
    %148 = vector.broadcast %cst_75 : f32 to vector<128x256xf32>
    %149 = arith.mulf %148, %145 : vector<128x256xf32>
    %150 = arith.select %147, %145, %149 : vector<128x256xi1>, vector<128x256xf32>
    %c2688 = arith.constant 2688 : index
    %c0_76 = arith.constant 0 : index
    %151 = vector.load %arg2[%c2688, %c0_76] : memref<4224x256xf32, #tpu.memory_space<vmem>>, vector<256x256xf32>
    %c18 = arith.constant 18 : index
    %c0_77 = arith.constant 0 : index
    %152 = vector.load %arg3[%c18, %c0_77] : memref<160x256xf32, #tpu.memory_space<vmem>>, vector<1x256xf32>
    %cst_78 = arith.constant dense<0.000000e+00> : vector<128x256xf32>
    %153 = tpu.matmul %150, %151, %cst_78 {dimension_numbers = #tpu.dot_dimension_numbers<[1], [0], [0], [1], [0, 0, 1, 1], [], []>} : vector<128x256xf32>, vector<256x256xf32>, vector<128x256xf32> -> vector<128x256xf32>
    %154 = vector.broadcast %152 : vector<1x256xf32> to vector<128x256xf32>
    %155 = arith.addf %153, %154 : vector<128x256xf32>
    %cst_79 = arith.constant 0.000000e+00 : f32
    %156 = vector.broadcast %cst_79 : f32 to vector<128x256xf32>
    %157 = arith.cmpf oge, %155, %156 : vector<128x256xf32>
    %cst_80 = arith.constant 2.000000e-01 : f32
    %158 = vector.broadcast %cst_80 : f32 to vector<128x256xf32>
    %159 = arith.mulf %158, %155 : vector<128x256xf32>
    %160 = arith.select %157, %155, %159 : vector<128x256xi1>, vector<128x256xf32>
    %c2944 = arith.constant 2944 : index
    %c0_81 = arith.constant 0 : index
    %161 = vector.load %arg2[%c2944, %c0_81] : memref<4224x256xf32, #tpu.memory_space<vmem>>, vector<256x256xf32>
    %c19 = arith.constant 19 : index
    %c0_82 = arith.constant 0 : index
    %162 = vector.load %arg3[%c19, %c0_82] : memref<160x256xf32, #tpu.memory_space<vmem>>, vector<1x256xf32>
    %cst_83 = arith.constant dense<0.000000e+00> : vector<128x256xf32>
    %163 = tpu.matmul %160, %161, %cst_83 {dimension_numbers = #tpu.dot_dimension_numbers<[1], [0], [0], [1], [0, 0, 1, 1], [], []>} : vector<128x256xf32>, vector<256x256xf32>, vector<128x256xf32> -> vector<128x256xf32>
    %164 = vector.broadcast %162 : vector<1x256xf32> to vector<128x256xf32>
    %165 = arith.addf %163, %164 : vector<128x256xf32>
    %cst_84 = arith.constant 0.000000e+00 : f32
    %166 = vector.broadcast %cst_84 : f32 to vector<128x256xf32>
    %167 = arith.cmpf oge, %165, %166 : vector<128x256xf32>
    %cst_85 = arith.constant 2.000000e-01 : f32
    %168 = vector.broadcast %cst_85 : f32 to vector<128x256xf32>
    %169 = arith.mulf %168, %165 : vector<128x256xf32>
    %170 = arith.select %167, %165, %169 : vector<128x256xi1>, vector<128x256xf32>
    %c3200 = arith.constant 3200 : index
    %c0_86 = arith.constant 0 : index
    %171 = vector.load %arg2[%c3200, %c0_86] : memref<4224x256xf32, #tpu.memory_space<vmem>>, vector<256x256xf32>
    %c20 = arith.constant 20 : index
    %c0_87 = arith.constant 0 : index
    %172 = vector.load %arg3[%c20, %c0_87] : memref<160x256xf32, #tpu.memory_space<vmem>>, vector<1x256xf32>
    %cst_88 = arith.constant dense<0.000000e+00> : vector<128x256xf32>
    %173 = tpu.matmul %170, %171, %cst_88 {dimension_numbers = #tpu.dot_dimension_numbers<[1], [0], [0], [1], [0, 0, 1, 1], [], []>} : vector<128x256xf32>, vector<256x256xf32>, vector<128x256xf32> -> vector<128x256xf32>
    %174 = vector.broadcast %172 : vector<1x256xf32> to vector<128x256xf32>
    %175 = arith.addf %173, %174 : vector<128x256xf32>
    %cst_89 = arith.constant 0.000000e+00 : f32
    %176 = vector.broadcast %cst_89 : f32 to vector<128x256xf32>
    %177 = arith.cmpf oge, %175, %176 : vector<128x256xf32>
    %cst_90 = arith.constant 2.000000e-01 : f32
    %178 = vector.broadcast %cst_90 : f32 to vector<128x256xf32>
    %179 = arith.mulf %178, %175 : vector<128x256xf32>
    %180 = arith.select %177, %175, %179 : vector<128x256xi1>, vector<128x256xf32>
    %cst_91 = arith.constant dense<0.000000e+00> : vector<128x128xf32>
    %181 = tpu.matmul %180, %130, %cst_91 {dimension_numbers = #tpu.dot_dimension_numbers<[1], [0], [0], [1], [0, 0, 1, 1], [], []>} : vector<128x256xf32>, vector<256x128xf32>, vector<128x128xf32> -> vector<128x128xf32>
    %182 = vector.broadcast %128 : vector<1x128xf32> to vector<128x128xf32>
    %183 = arith.addf %181, %182 : vector<128x128xf32>
    %184 = vector.broadcast %126 : vector<1x128xf32> to vector<128x128xf32>
    %185 = arith.mulf %183, %184 : vector<128x128xf32>
    %186 = arith.addf %124, %185 : vector<128x128xf32>
    %c24 = arith.constant 24 : index
    %c0_92 = arith.constant 0 : index
    %187 = vector.load %arg3[%c24, %c0_92] : memref<160x256xf32, #tpu.memory_space<vmem>>, vector<1x128xf32>
    %c25 = arith.constant 25 : index
    %c0_93 = arith.constant 0 : index
    %188 = vector.load %arg3[%c25, %c0_93] : memref<160x256xf32, #tpu.memory_space<vmem>>, vector<1x128xf32>
    %189 = vector.broadcast %187 : vector<1x128xf32> to vector<128x128xf32>
    %190 = arith.mulf %189, %186 : vector<128x128xf32>
    %cst_94 = arith.constant 0.000000e+00 : f32
    %191 = vector.broadcast %cst_94 : f32 to vector<128x128xf32>
    %192 = arith.maximumf %190, %191 : vector<128x128xf32>
    %193 = vector.broadcast %cst_94 : f32 to vector<128x128xf32>
    %194 = arith.subf %190, %193 : vector<128x128xf32>
    %195 = arith.cmpf one, %194, %194 : vector<128x128xf32>
    %196 = vector.broadcast %cst_94 : f32 to vector<128x128xf32>
    %197 = arith.addf %190, %196 : vector<128x128xf32>
    %198 = math.absf %194 : vector<128x128xf32>
    %cst_95 = arith.constant 0.000000e+00 : f32
    %199 = vector.broadcast %cst_95 : f32 to vector<128x128xf32>
    %200 = arith.subf %199, %198 : vector<128x128xf32>
    %201 = math.exp %200 : vector<128x128xf32>
    %202 = math.log1p %201 : vector<128x128xf32>
    %203 = arith.addf %192, %202 : vector<128x128xf32>
    %204 = arith.select %195, %197, %203 : vector<128x128xi1>, vector<128x128xf32>
    %cst_96 = arith.constant 0.000000e+00 : f32
    %205 = vector.broadcast %cst_96 : f32 to vector<128x128xf32>
    %206 = arith.subf %205, %190 : vector<128x128xf32>
    %cst_97 = arith.constant 0.000000e+00 : f32
    %207 = vector.broadcast %cst_97 : f32 to vector<128x128xf32>
    %208 = arith.maximumf %206, %207 : vector<128x128xf32>
    %209 = vector.broadcast %cst_97 : f32 to vector<128x128xf32>
    %210 = arith.subf %206, %209 : vector<128x128xf32>
    %211 = arith.cmpf one, %210, %210 : vector<128x128xf32>
    %212 = vector.broadcast %cst_97 : f32 to vector<128x128xf32>
    %213 = arith.addf %206, %212 : vector<128x128xf32>
    %214 = math.absf %210 : vector<128x128xf32>
    %cst_98 = arith.constant 0.000000e+00 : f32
    %215 = vector.broadcast %cst_98 : f32 to vector<128x128xf32>
    %216 = arith.subf %215, %214 : vector<128x128xf32>
    %217 = math.exp %216 : vector<128x128xf32>
    %218 = math.log1p %217 : vector<128x128xf32>
    %219 = arith.addf %208, %218 : vector<128x128xf32>
    %220 = arith.select %211, %213, %219 : vector<128x128xi1>, vector<128x128xf32>
    %221 = arith.addf %204, %220 : vector<128x128xf32>
    %cst_99 = arith.constant 0.000000e+00 : f32
    %222 = vector.broadcast %cst_99 : f32 to vector<128x128xf32>
    %223 = arith.subf %222, %221 : vector<128x128xf32>
    %c32 = arith.constant 32 : index
    %c0_100 = arith.constant 0 : index
    %224 = vector.load %arg3[%c32, %c0_100] : memref<160x256xf32, #tpu.memory_space<vmem>>, vector<128x128xf32>
    %cst_101 = arith.constant dense<0.000000e+00> : vector<128x128xf32>
    %225 = tpu.matmul %223, %224, %cst_101 {dimension_numbers = #tpu.dot_dimension_numbers<[1], [0], [0], [1], [0, 0, 1, 1], [], []>} : vector<128x128xf32>, vector<128x128xf32>, vector<128x128xf32> -> vector<128x128xf32>
    %226 = vector.broadcast %188 : vector<1x128xf32> to vector<128x128xf32>
    %227 = arith.addf %225, %226 : vector<128x128xf32>
    %c0_102 = arith.constant 0 : index
    %c0_103 = arith.constant 0 : index
    %228 = vector.load %arg4[%c0_102, %c0_103] : memref<128x128xf32, #tpu.memory_space<vmem>>, vector<128x128xf32>
    tpu.vector_store %arg4[%c0_102, %c0_103], %190 {strides = array<i32>} : memref<128x128xf32, #tpu.memory_space<vmem>>, vector<128x128xf32>,
    %c0_104 = arith.constant 0 : index
    %c0_105 = arith.constant 0 : index
    %229 = vector.load %arg5[%c0_104, %c0_105] : memref<128x128xf32, #tpu.memory_space<vmem>>, vector<128x128xf32>
    tpu.vector_store %arg5[%c0_104, %c0_105], %227 {strides = array<i32>} : memref<128x128xf32, #tpu.memory_space<vmem>>, vector<128x128xf32>,
    return
  }
  func.func @transform_0(%arg0: i32) -> (i32, i32) {
    %c0_i32 = arith.constant 0 : i32
    %c0_i32_0 = arith.constant 0 : i32
    return %arg0, %c0_i32 : i32, i32
  }
  func.func @transform_1(%arg0: i32) -> (i32, i32) {
    %c0_i32 = arith.constant 0 : i32
    %c0_i32_0 = arith.constant 0 : i32
    %c0_i32_1 = arith.constant 0 : i32
    return %c0_i32, %c0_i32_0 : i32, i32
  }
  func.func @transform_2(%arg0: i32) -> (i32, i32) {
    %c0_i32 = arith.constant 0 : i32
    %c0_i32_0 = arith.constant 0 : i32
    %c0_i32_1 = arith.constant 0 : i32
    return %c0_i32, %c0_i32_0 : i32, i32
  }
  func.func @transform_3(%arg0: i32) -> (i32, i32) {
    %c0_i32 = arith.constant 0 : i32
    %c0_i32_0 = arith.constant 0 : i32
    return %arg0, %c0_i32 : i32, i32
  }
  func.func @transform_4(%arg0: i32) -> (i32, i32) {
    %c0_i32 = arith.constant 0 : i32
    %c0_i32_0 = arith.constant 0 : i32
    return %arg0, %c0_i32 : i32, i32
  }
}

</mosaic_0001>

<bundles_post_ra>
// kernel: _nice_forward_rows.1
= control target key start
LH: loop header
LB: loop body
LE: loop exit
PB: predicated region body
PF: predicated region fallthrough
CT: control target
= control target key end

     0   :  { %10 = vsyncpa [#allocation3], 0  ;;  %s8712_s0 = inlined_call_operand.hbm [shape: f32[128,128], index: 0, kind: input, shape index: {}]   ;;  %s8713_s1 = inlined_call_operand.hbm [shape: f32[4224,256], index: 1, kind: input, shape index: {}]   ;;  %s8714_s2 = inlined_call_operand.hbm [shape: f32[160,256], index: 2, kind: input, shape index: {}]   ;;  %s8715_s3 = inlined_call_operand.hbm [shape: f32[128,128], index: 3, kind: output, shape index: {0}]   ;;  %s8716_s4 = inlined_call_operand.hbm [shape: f32[128,128], index: 4, kind: output, shape index: {1}]  }
   0x1   :  { %11 = vsyncpa [#allocation6], 0 }
   0x2   :  { %12 = vsyncpa [#allocation4], 0 }
   0x3   :  { %13 = vsyncpa [#allocation10], 0  ;;  %s7137_s15 = smov [#allocation5]  }
   0x4   :  { %s31_s16 = sshll.u32 %s7137_s15, 4  ;;  %s32_s16 = int_to_ptr.vmem [resolvable:$true] %s31_s16 }
   0x5   :  { %s7037_s17 = scalar_lea.vmem %s32_s16, 135168  ;;  %p7042_p1 = scmp.lt.s32.totalorder %s32_s16, %s32_s16 }
   0x6   :  { %p7038_p0 = scmp.ne.s32.totalorder %s32_s16, %s7037_s17  ;;  %p7043_p2 = scmp.lt.s32.totalorder %s7037_s17, %s7037_s17 }
   0x8   :  { %p7044_p3 = por %p7043_p2, %p7042_p1 }
   0xa   :  { %p7045_p4 = pnand %p7044_p3, %p7038_p0 }
   0xc   :  { %7048 = shalt.err (!%p7045_p4)
}
   0xd   :  { %s7138_s18 = smov 256   ;;  %s7139_s19 = smov 16  }
   0xe   :  { %37 = dma.hbm_to_vmem [thread:$0]  %s8713_s1, 135168, %s32_s16, [#allocation6], %s7138_s18, %s7138_s18, %s7139_s19  }
   0xf   :  { %s7140_s22 = smov [#allocation2]  }
  0x10   :  { %s19_s23 = sshll.u32 %s7140_s22, 4  ;;  %s20_s23 = int_to_ptr.vmem [resolvable:$true] %s19_s23 }
  0x11   :  { %s7057_s24 = scalar_lea.vmem %s20_s23, 2048  ;;  %p7062_p6 = scmp.lt.s32.totalorder %s20_s23, %s20_s23 }
  0x12   :  { %p7058_p5 = scmp.ne.s32.totalorder %s20_s23, %s7057_s24  ;;  %p7063_p7 = scmp.lt.s32.totalorder %s7057_s24, %s7057_s24 }
  0x14   :  { %p7064_p8 = por %p7063_p7, %p7062_p6 }
  0x16   :  { %p7065_p9 = pnand %p7064_p8, %p7058_p5 }
  0x18   :  { %7068 = shalt.err (!%p7065_p9)
}
  0x19   :  { %s7141_s25 = smov 128   ;;  %s7142_s26 = smov 8  }
  0x1a   :  { %25 = dma.hbm_to_vmem [thread:$0]  %s8712_s0, 2048, %s20_s23, [#allocation3], %s7141_s25, %s7141_s25, %s7142_s26  }
  0x1b   :  { %s7143_s1 = smov [#allocation7]  }
  0x1c   :  { %s43_s29 = sshll.u32 %s7143_s1, 4  ;;  %s44_s29 = int_to_ptr.vmem [resolvable:$true] %s43_s29 }
  0x1d   :  { %s7077_s30 = scalar_lea.vmem %s44_s29, 5120  ;;  %p7082_p11 = scmp.lt.s32.totalorder %s44_s29, %s44_s29 }
  0x1e   :  { %p7078_p10 = scmp.ne.s32.totalorder %s44_s29, %s7077_s30  ;;  %p7083_p12 = scmp.lt.s32.totalorder %s7077_s30, %s7077_s30 }
  0x20   :  { %p7084_p13 = por %p7083_p12, %p7082_p11 }
  0x22   :  { %p7085_p0 = pnand %p7084_p13, %p7078_p10 }
  0x24   :  { %7088 = shalt.err (!%p7085_p0)
}
  0x25   :  { %49 = dma.hbm_to_vmem [thread:$0]  %s8714_s2, 5120, %s44_s29, [#allocation6], %s7138_s18, %s7138_s18, %s7139_s19  }
  0x26   :  { %7129 = dma.done.wait [#allocation3], 2048  }
  0x27   :  { %7130 = vsyncadd [#allocation3], 4294965248 }
  0x28   :  { %7131 = dma.done.wait [#allocation6], 140288  }
  0x29   :  { %7132 = vsyncadd [#allocation6], 4294827008  ;;  %v7144_v0 = vmov 0.0   ;;  %v111_v1 = vld [vmem:[#allocation5 + $0xf8] sm:$0xff]  ;;  %v110_v2 = vld [vmem:[#allocation5 + $0xf0] sm:$0xff]  ;;  %s7145_s0 = smov [#allocation8]  }
  0x2a   :  { %235 = vmatprep.mubr.f32.mxu0 %v7144_v0  ;;  %v109_v3 = vld [vmem:[#allocation5 + $0xe8] sm:$0xff]  ;;  %171 = vmatprep.subr.mxu0 %v111_v1  ;;  %v108_v4 = vld [vmem:[#allocation5 + $0xe0] sm:$0xff]  ;;  %v107_v5 = vld [vmem:[#allocation5 + $0xd8] sm:$0xff]  ;;  %s6513_s2 = sshll.u32 %s7145_s0, 4  ;;  %s6514_s2 = int_to_ptr.vmem [resolvable:$true] %s6513_s2 }
  0x2b   :  { %172 = vmatpush1.msra.mxu0 %v110_v2  ;;  %v106_v6 = vld [vmem:[#allocation5 + $0xd0] sm:$0xff]  ;;  %v105_v7 = vld [vmem:[#allocation5 + $0xc8] sm:$0xff]  ;;  %v104_v8 = vld [vmem:[#allocation5 + $0xc0] sm:$0xff]  ;;  %s7089_s7 = scalar_lea.vmem %s6514_s2, 2048  ;;  %p7094_p2 = scmp.lt.s32.totalorder %s6514_s2, %s6514_s2 }
  0x2c   :  { %173 = vmatprep.subr.mxu0 %v109_v3  ;;  %v103_v9 = vld [vmem:[#allocation5 + $0xb8] sm:$0xff]  ;;  %v102_v10 = vld [vmem:[#allocation5 + $0xb0] sm:$0xff]  ;;  %v101_v11 = vld [vmem:[#allocation5 + $0xa8] sm:$0xff]  ;;  %p7090_p1 = scmp.ne.s32.totalorder %s6514_s2, %s7089_s7  ;;  %p7095_p3 = scmp.lt.s32.totalorder %s7089_s7, %s7089_s7 }
  0x2d   :  { %174 = vmatpush1.msra.mxu0 %v108_v4  ;;  %v100_v12 = vld [vmem:[#allocation5 + $0xa0] sm:$0xff]  ;;  %v99_v13 = vld [vmem:[#allocation5 + $0x98] sm:$0xff]  ;;  %v98_v14 = vld [vmem:[#allocation5 + $0x90] sm:$0xff] }
  0x2e   :  { %175 = vmatprep.subr.mxu0 %v107_v5  ;;  %v97_v15 = vld [vmem:[#allocation5 + $0x88] sm:$0xff]  ;;  %v96_v16 = vld [vmem:[#allocation5 + $0x80] sm:$0xff]  ;;  %v95_v17 = vld [vmem:[#allocation5 + $0x78] sm:$0xff]  ;;  %p7096_p4 = por %p7095_p3, %p7094_p2 }
  0x2f   :  { %176 = vmatpush1.msra.mxu0 %v106_v6  ;;  %v94_v18 = vld [vmem:[#allocation5 + $0x70] sm:$0xff]  ;;  %v93_v19 = vld [vmem:[#allocation5 + $0x68] sm:$0xff]  ;;  %v459_v20 = vld [vmem:[#allocation5 + $0x3f8] sm:$0xff] }
  0x30   :  { %177 = vmatprep.subr.mxu0 %v105_v7  ;;  %v458_v21 = vld [vmem:[#allocation5 + $0x3f0] sm:$0xff]  ;;  %v92_v22 = vld [vmem:[#allocation5 + $0x60] sm:$0xff]  ;;  %505 = vmatprep.subr.mxu1 %v459_v20  ;;  %v457_v23 = vld [vmem:[#allocation5 + $0x3e8] sm:$0xff]  ;;  %p7097_p5 = pnand %p7096_p4, %p7090_p1 }
  0x31   :  { %178 = vmatpush1.msra.mxu0 %v104_v8  ;;  %v456_v24 = vld [vmem:[#allocation5 + $0x3e0] sm:$0xff]  ;;  %v91_v25 = vld [vmem:[#allocation5 + $0x58] sm:$0xff]  ;;  %506 = vmatpush1.msra.mxu1 %v458_v21  ;;  %v90_v27 = vld [vmem:[#allocation5 + $0x50] sm:$0xff] }
  0x32   :  { %179 = vmatprep.subr.mxu0 %v103_v9  ;;  %v455_v26 = vld [vmem:[#allocation5 + $0x3d8] sm:$0xff]  ;;  %507 = vmatprep.subr.mxu1 %v457_v23  ;;  %v454_v28 = vld [vmem:[#allocation5 + $0x3d0] sm:$0xff]  ;;  %v89_v29 = vld [vmem:[#allocation5 + $0x48] sm:$0xff] }
  0x33   :  { %180 = vmatpush1.msra.mxu0 %v102_v10  ;;  %508 = vmatpush1.msra.mxu1 %v456_v24  ;;  %v453_v30 = vld [vmem:[#allocation5 + $0x3c8] sm:$0xff]  ;;  %v88_v31 = vld [vmem:[#allocation5 + $0x40] sm:$0xff]  ;;  %v87_v33 = vld [vmem:[#allocation5 + $0x38] sm:$0xff] }
  0x34   :  { %181 = vmatprep.subr.mxu0 %v101_v11  ;;  %509 = vmatprep.subr.mxu1 %v455_v26  ;;  %v452_v32 = vld [vmem:[#allocation5 + $0x3c0] sm:$0xff]  ;;  %v451_v34 = vld [vmem:[#allocation5 + $0x3b8] sm:$0xff]  ;;  %v86_v35 = vld [vmem:[#allocation5 + $0x30] sm:$0xff] }
  0x35   :  { %182 = vmatpush1.msra.mxu0 %v100_v12  ;;  %510 = vmatpush1.msra.mxu1 %v454_v28  ;;  %v450_v36 = vld [vmem:[#allocation5 + $0x3b0] sm:$0xff]  ;;  %v85_v37 = vld [vmem:[#allocation5 + $0x28] sm:$0xff]  ;;  %v84_v39 = vld [vmem:[#allocation5 + $0x20] sm:$0xff] }
  0x36   :  { %183 = vmatprep.subr.mxu0 %v99_v13  ;;  %511 = vmatprep.subr.mxu1 %v453_v30  ;;  %v449_v38 = vld [vmem:[#allocation5 + $0x3a8] sm:$0xff]  ;;  %v83_v40 = vld [vmem:[#allocation5 + $0x18] sm:$0xff]  ;;  %v448_v41 = vld [vmem:[#allocation5 + $0x3a0] sm:$0xff] }
  0x37   :  { %184 = vmatpush1.msra.mxu0 %v98_v14  ;;  %512 = vmatpush1.msra.mxu1 %v452_v32  ;;  %v59_v42 = vld [vmem:[#allocation2] sm:$0xff]  ;;  %v447_v44 = vld [vmem:[#allocation5 + $0x398] sm:$0xff]  ;;  %v82_v45 = vld [vmem:[#allocation5 + $0x10] sm:$0xff] }
  0x38   :  { %185 = vmatprep.subr.mxu0 %v97_v15  ;;  %513 = vmatprep.subr.mxu1 %v451_v34  ;;  %v7185_v43 = vld [vmem:[#allocation7] ss:$0 sm:$0xff]  ;;  %v446_v46 = vld [vmem:[#allocation5 + $0x390] sm:$0xff]  ;;  %v81_v47 = vld [vmem:[#allocation5 + $0x8] sm:$0xff] }
  0x39   :  { %186 = vmatpush1.msra.mxu0 %v96_v16  ;;  %514 = vmatpush1.msra.mxu1 %v450_v36  ;;  %v445_v48 = vld [vmem:[#allocation5 + $0x388] sm:$0xff]  ;;  %v80_v49 = vld [vmem:[#allocation5] sm:$0xff]  ;;  %v144_v50 = vmul.f32 %v7185_v43, %v59_v42  ;;  %v443_v53 = vld [vmem:[#allocation5 + $0x378] sm:$0xff] }
  0x3a   :  { %187 = vmatprep.subr.mxu0 %v95_v17  ;;  %515 = vmatprep.subr.mxu1 %v449_v38  ;;  %v444_v51 = vld [vmem:[#allocation5 + $0x380] sm:$0xff]  ;;  %v60_v52 = vld [vmem:[#allocation2 + $0x8] sm:$0xff]  ;;  %v442_v54 = vld [vmem:[#allocation5 + $0x370] sm:$0xff] }
  0x3b   :  { %188 = vmatpush1.msra.mxu0 %v94_v18  ;;  %516 = vmatpush1.msra.mxu1 %v448_v41  ;;  %v441_v55 = vld [vmem:[#allocation5 + $0x368] sm:$0xff]  ;;  %v145_v56 = vmul.f32 %v7185_v43, %v60_v52  ;;  %v440_v57 = vld [vmem:[#allocation5 + $0x360] sm:$0xff]  ;;  %v61_v58 = vld [vmem:[#allocation2 + $0x10] sm:$0xff] }
  0x3c   :  { %189 = vmatprep.subr.mxu0 %v93_v19  ;;  %517 = vmatprep.subr.mxu1 %v447_v44  ;;  %v439_v59 = vld [vmem:[#allocation5 + $0x358] sm:$0xff]  ;;  %v438_v60 = vld [vmem:[#allocation5 + $0x350] sm:$0xff]  ;;  %v437_v61 = vld [vmem:[#allocation5 + $0x348] sm:$0xff]  ;;  %v146_v62 = vmul.f32 %v7185_v43, %v61_v58 }
  0x3d   :  { %190 = vmatpush1.msra.mxu0 %v92_v22  ;;  %518 = vmatpush1.msra.mxu1 %v446_v46  ;;  %v436_v63 = vld [vmem:[#allocation5 + $0x340] sm:$0xff]  ;;  %v62_v1 = vld [vmem:[#allocation2 + $0x18] sm:$0xff]  ;;  %v434_v3 = vld [vmem:[#allocation5 + $0x330] sm:$0xff] }
  0x3e   :  { %191 = vmatprep.subr.mxu0 %v91_v25  ;;  %519 = vmatprep.subr.mxu1 %v445_v48  ;;  %v435_v2 = vld [vmem:[#allocation5 + $0x338] sm:$0xff]  ;;  %v433_v4 = vld [vmem:[#allocation5 + $0x328] sm:$0xff]  ;;  %v147_v5 = vmul.f32 %v7185_v43, %v62_v1  ;;  %v432_v6 = vld [vmem:[#allocation5 + $0x320] sm:$0xff] }
  0x3f   :  { %192 = vmatpush1.msra.mxu0 %v90_v27  ;;  %520 = vmatpush1.msra.mxu1 %v444_v51  ;;  %v63_v7 = vld [vmem:[#allocation2 + $0x20] sm:$0xff]  ;;  %v431_v8 = vld [vmem:[#allocation5 + $0x318] sm:$0xff]  ;;  %v430_v9 = vld [vmem:[#allocation5 + $0x310] sm:$0xff] }
  0x40   :  { %193 = vmatprep.subr.mxu0 %v89_v29  ;;  %521 = vmatprep.subr.mxu1 %v443_v53  ;;  %v429_v10 = vld [vmem:[#allocation5 + $0x308] sm:$0xff]  ;;  %v148_v11 = vmul.f32 %v7185_v43, %v63_v7  ;;  %v428_v12 = vld [vmem:[#allocation5 + $0x300] sm:$0xff]  ;;  %v491_v14 = vld [vmem:[#allocation5 + $0x4f8] sm:$0xff] }
  0x41   :  { %194 = vmatpush1.msra.mxu0 %v88_v31  ;;  %522 = vmatpush1.msra.mxu1 %v442_v54  ;;  %v64_v13 = vld [vmem:[#allocation2 + $0x28] sm:$0xff]  ;;  %v490_v15 = vld [vmem:[#allocation5 + $0x4f0] sm:$0xff]  ;;  %v488_v18 = vld [vmem:[#allocation5 + $0x4e0] sm:$0xff] }
  0x42   :  { %195 = vmatprep.subr.mxu0 %v87_v33  ;;  %523 = vmatprep.subr.mxu1 %v441_v55  ;;  %v489_v16 = vld [vmem:[#allocation5 + $0x4e8] sm:$0xff]  ;;  %v149_v17 = vmul.f32 %v7185_v43, %v64_v13  ;;  %v65_v19 = vld [vmem:[#allocation2 + $0x30] sm:$0xff]  ;;  %v487_v20 = vld [vmem:[#allocation5 + $0x4d8] sm:$0xff] }
  0x43   :  { %196 = vmatpush1.msra.mxu0 %v86_v35  ;;  %524 = vmatpush1.msra.mxu1 %v440_v57  ;;  %v486_v21 = vld [vmem:[#allocation5 + $0x4d0] sm:$0xff]  ;;  %v485_v22 = vld [vmem:[#allocation5 + $0x4c8] sm:$0xff]  ;;  %v150_v23 = vmul.f32 %v7185_v43, %v65_v19  ;;  %v484_v24 = vld [vmem:[#allocation5 + $0x4c0] sm:$0xff] }
  0x44   :  { %197 = vmatprep.subr.mxu0 %v85_v37  ;;  %525 = vmatprep.subr.mxu1 %v439_v59  ;;  %v66_v25 = vld [vmem:[#allocation2 + $0x38] sm:$0xff]  ;;  %v482_v27 = vld [vmem:[#allocation5 + $0x4b0] sm:$0xff]  ;;  %v481_v28 = vld [vmem:[#allocation5 + $0x4a8] sm:$0xff] }
  0x45   :  { %198 = vmatpush1.msra.mxu0 %v84_v39  ;;  %526 = vmatpush1.msra.mxu1 %v438_v60  ;;  %v483_v26 = vld [vmem:[#allocation5 + $0x4b8] sm:$0xff]  ;;  %v151_v29 = vmul.f32 %v7185_v43, %v66_v25  ;;  %v480_v30 = vld [vmem:[#allocation5 + $0x4a0] sm:$0xff]  ;;  %v478_v33 = vld [vmem:[#allocation5 + $0x490] sm:$0xff] }
  0x46   :  { %199 = vmatprep.subr.mxu0 %v83_v40  ;;  %527 = vmatprep.subr.mxu1 %v437_v61  ;;  %v67_v31 = vld [vmem:[#allocation2 + $0x40] sm:$0xff]  ;;  %v479_v32 = vld [vmem:[#allocation5 + $0x498] sm:$0xff]  ;;  %v477_v34 = vld [vmem:[#allocation5 + $0x488] sm:$0xff] }
  0x47   :  { %200 = vmatpush1.msra.mxu0 %v82_v45  ;;  %528 = vmatpush1.msra.mxu1 %v436_v63  ;;  %v152_v35 = vmul.f32 %v7185_v43, %v67_v31  ;;  %v476_v36 = vld [vmem:[#allocation5 + $0x480] sm:$0xff]  ;;  %v68_v37 = vld [vmem:[#allocation2 + $0x48] sm:$0xff]  ;;  %v475_v38 = vld [vmem:[#allocation5 + $0x478] sm:$0xff] }
  0x48   :  { %201 = vmatprep.subr.mxu0 %v81_v47  ;;  %529 = vmatprep.subr.mxu1 %v435_v2  ;;  %v474_v39 = vld [vmem:[#allocation5 + $0x470] sm:$0xff]  ;;  %v473_v40 = vld [vmem:[#allocation5 + $0x468] sm:$0xff]  ;;  %v153_v41 = vmul.f32 %v7185_v43, %v68_v37  ;;  %v472_v42 = vld [vmem:[#allocation5 + $0x460] sm:$0xff] }
  0x49   :  { %202 = vmatpush1.msra.mxu0 %v80_v49  ;;  %530 = vmatpush1.msra.mxu1 %v434_v3  ;;  %v69_v44 = vld [vmem:[#allocation2 + $0x50] sm:$0xff]  ;;  %v471_v45 = vld [vmem:[#allocation5 + $0x458] sm:$0xff]  ;;  %v469_v47 = vld [vmem:[#allocation5 + $0x448] sm:$0xff] }
  0x4a   :  { %236 = vmatmul.mubr.f32.vlgmr.msra.gmra.mxu0 %v144_v50  ;;  %531 = vmatprep.subr.mxu1 %v433_v4  ;;  %v470_v46 = vld [vmem:[#allocation5 + $0x450] sm:$0xff]  ;;  %v154_v48 = vmul.f32 %v7185_v43, %v69_v44  ;;  %v70_v49 = vld [vmem:[#allocation2 + $0x58] sm:$0xff]  ;;  %v71_v51 = vld [vmem:[#allocation2 + $0x60] sm:$0xff] }
  0x4b   :  { %241 = vmatprep.mubr.f32.mxu0 %v7144_v0  ;;  %532 = vmatpush1.msra.mxu1 %v432_v6  ;;  %v155_v50 = vmul.f32 %v7185_v43, %v70_v49  ;;  %v156_v52 = vmul.f32 %v7185_v43, %v71_v51  ;;  %v72_v53 = vld [vmem:[#allocation2 + $0x68] sm:$0xff]  ;;  %v73_v55 = vld [vmem:[#allocation2 + $0x70] sm:$0xff]  ;;  %v74_v57 = vld [vmem:[#allocation2 + $0x78] sm:$0xff]  ;;  %v161_v51 = vlaneseq }
  0x4c   :  { %533 = vmatprep.subr.mxu1 %v431_v8  ;;  %v157_v54 = vmul.f32 %v7185_v43, %v72_v53  ;;  %v159_v58 = vmul.f32 %v7185_v43, %v74_v57  ;;  %v468_v59 = vld [vmem:[#allocation5 + $0x440] sm:$0xff]  ;;  %v467_v60 = vld [vmem:[#allocation5 + $0x438] sm:$0xff]  ;;  %v466_v61 = vld [vmem:[#allocation5 + $0x430] sm:$0xff] }
  0x4d   :  { %534 = vmatpush1.msra.mxu1 %v430_v9  ;;  %v464_v63 = vld [vmem:[#allocation5 + $0x420] sm:$0xff]  ;;  %v463_v1 = vld [vmem:[#allocation5 + $0x418] sm:$0xff]  ;;  %v462_v2 = vld [vmem:[#allocation5 + $0x410] sm:$0xff] }
  0x4e   :  { %242 = vmatmul.mubr.f32.gmra.mxu0 %v145_v56  ;;  %535 = vmatprep.subr.mxu1 %v429_v10  ;;  %v158_v56 = vmul.f32 %v7185_v43, %v73_v55  ;;  %v461_v3 = vld [vmem:[#allocation5 + $0x408] sm:$0xff]  ;;  %v460_v43 = vld [vmem:[#allocation5 + $0x400] sm:$0xff]  ;;  %v793_v4 = vld [vmem:[#allocation5 + $0x5f8] sm:$0xff] }
  0x4f   :  { %247 = vmatprep.mubr.f32.mxu0 %v7144_v0  ;;  %536 = vmatpush1.msra.mxu1 %v428_v12  ;;  %v791_v6 = vld [vmem:[#allocation5 + $0x5e8] sm:$0xff]  ;;  %v790_v7 = vld [vmem:[#allocation5 + $0x5e0] sm:$0xff]  ;;  %v789_v8 = vld [vmem:[#allocation5 + $0x5d8] sm:$0xff] }
  0x50   :  { %537 = vmatprep.subr.mxu1 %v491_v14  ;;  %839 = vmatprep.subr.mxu0 %v793_v4  ;;  %v788_v9 = vld [vmem:[#allocation5 + $0x5d0] sm:$0xff]  ;;  %v787_v10 = vld [vmem:[#allocation5 + $0x5c8] sm:$0xff]  ;;  %v785_v12 = vld [vmem:[#allocation5 + $0x5b8] sm:$0xff] }
  0x51   :  { %538 = vmatpush2.msra.mxu1 %v490_v15  ;;  %v784_v13 = vld [vmem:[#allocation5 + $0x5b0] sm:$0xff]  ;;  %v783_v14 = vld [vmem:[#allocation5 + $0x5a8] sm:$0xff]  ;;  %v782_v15 = vld [vmem:[#allocation5 + $0x5a0] sm:$0xff] }
  0x52   :  { %248 = vmatmul.mubr.f32.gmra.mxu0 %v146_v62  ;;  %539 = vmatprep.subr.mxu1 %v489_v16  ;;  %v465_v62 = vld [vmem:[#allocation5 + $0x428] sm:$0xff]  ;;  %v781_v16 = vld [vmem:[#allocation5 + $0x598] sm:$0xff]  ;;  %v778_v19 = vld [vmem:[#allocation5 + $0x580] sm:$0xff] }
  0x53   :  { %253 = vmatprep.mubr.f32.mxu0 %v7144_v0  ;;  %540 = vmatpush2.msra.mxu1 %v488_v18  ;;  %v779_v18 = vld [vmem:[#allocation5 + $0x588] sm:$0xff]  ;;  %v772_v25 = vld [vmem:[#allocation5 + $0x550] sm:$0xff]  ;;  %v766_v31 = vld [vmem:[#allocation5 + $0x520] sm:$0xff] }
  0x54   :  { %541 = vmatprep.subr.mxu1 %v487_v20  ;;  %v777_v20 = vld [vmem:[#allocation5 + $0x578] sm:$0xff]  ;;  %v824_v37 = vld [vmem:[#allocation5 + $0x6f0] sm:$0xff]  ;;  %v818_v44 = vld [vmem:[#allocation5 + $0x6c0] sm:$0xff] }
  0x55   :  { %542 = vmatpush2.msra.mxu1 %v486_v21  ;;  %v776_v21 = vld [vmem:[#allocation5 + $0x570] sm:$0xff]  ;;  %v813_v49 = vld [vmem:[#allocation5 + $0x698] sm:$0xff]  ;;  %v810_v53 = vld [vmem:[#allocation5 + $0x680] sm:$0xff] }
  0x56   :  { %254 = vmatmul.mubr.f32.gmra.mxu0 %v147_v5  ;;  %543 = vmatprep.subr.mxu1 %v485_v22  ;;  %v792_v5 = vld [vmem:[#allocation5 + $0x5f0] sm:$0xff]  ;;  %v775_v22 = vld [vmem:[#allocation5 + $0x568] sm:$0xff] }
  0x57   :  { %259 = vmatprep.mubr.f32.mxu0 %v7144_v0  ;;  %544 = vmatpush2.msra.mxu1 %v484_v24  ;;  %v773_v24 = vld [vmem:[#allocation5 + $0x558] sm:$0xff]  ;;  %v808_v55 = vld [vmem:[#allocation5 + $0x670] sm:$0xff]  ;;  %v807_v57 = vld [vmem:[#allocation5 + $0x668] sm:$0xff] }
  0x58   :  { %545 = vmatprep.subr.mxu1 %v483_v26  ;;  %840 = vmatpush1.msra.mxu0 %v792_v5  ;;  %v771_v26 = vld [vmem:[#allocation5 + $0x548] sm:$0xff] }
  0x59   :  { %546 = vmatpush2.msra.mxu1 %v482_v27  ;;  %841 = vmatprep.subr.mxu0 %v791_v6  ;;  %v770_v27 = vld [vmem:[#allocation5 + $0x540] sm:$0xff] }
  0x5a   :  { %260 = vmatmul.mubr.f32.gmra.mxu0 %v148_v11  ;;  %547 = vmatprep.subr.mxu1 %v481_v28  ;;  %v786_v11 = vld [vmem:[#allocation5 + $0x5c0] sm:$0xff]  ;;  %v769_v28 = vld [vmem:[#allocation5 + $0x538] sm:$0xff] }
  0x5b   :  { %265 = vmatprep.mubr.f32.mxu0 %v7144_v0  ;;  %548 = vmatpush2.msra.mxu1 %v480_v30  ;;  %v767_v30 = vld [vmem:[#allocation5 + $0x528] sm:$0xff] }
  0x5c   :  { %549 = vmatprep.subr.mxu1 %v479_v32  ;;  %842 = vmatpush1.msra.mxu0 %v790_v7  ;;  %v765_v32 = vld [vmem:[#allocation5 + $0x518] sm:$0xff] }
  0x5d   :  { %550 = vmatpush2.msra.mxu1 %v478_v33  ;;  %843 = vmatprep.subr.mxu0 %v789_v8  ;;  %v764_v33 = vld [vmem:[#allocation5 + $0x510] sm:$0xff] }
  0x5e   :  { %266 = vmatmul.mubr.f32.gmra.mxu0 %v149_v17  ;;  %551 = vmatprep.subr.mxu1 %v477_v34  ;;  %v780_v17 = vld [vmem:[#allocation5 + $0x590] sm:$0xff]  ;;  %v763_v34 = vld [vmem:[#allocation5 + $0x508] sm:$0xff] }
  0x5f   :  { %271 = vmatprep.mubr.f32.mxu0 %v7144_v0  ;;  %552 = vmatpush2.msra.mxu1 %v476_v36  ;;  %v825_v36 = vld [vmem:[#allocation5 + $0x6f8] sm:$0xff] }
  0x60   :  { %553 = vmatprep.subr.mxu1 %v475_v38  ;;  %844 = vmatpush1.msra.mxu0 %v788_v9  ;;  %v823_v38 = vld [vmem:[#allocation5 + $0x6e8] sm:$0xff] }
  0x61   :  { %554 = vmatpush2.msra.mxu1 %v474_v39  ;;  %845 = vmatprep.subr.mxu0 %v787_v10  ;;  %v822_v39 = vld [vmem:[#allocation5 + $0x6e0] sm:$0xff] }
  0x62   :  { %272 = vmatmul.mubr.f32.gmra.mxu0 %v150_v23  ;;  %555 = vmatprep.subr.mxu1 %v473_v40  ;;  %v774_v23 = vld [vmem:[#allocation5 + $0x560] sm:$0xff]  ;;  %v821_v40 = vld [vmem:[#allocation5 + $0x6d8] sm:$0xff] }
  0x63   :  { %277 = vmatprep.mubr.f32.mxu0 %v7144_v0  ;;  %556 = vmatpush2.msra.mxu1 %v472_v42  ;;  %v819_v42 = vld [vmem:[#allocation5 + $0x6c8] sm:$0xff] }
  0x64   :  { %557 = vmatprep.subr.mxu1 %v471_v45  ;;  %846 = vmatpush1.msra.mxu0 %v786_v11  ;;  %v817_v45 = vld [vmem:[#allocation5 + $0x6b8] sm:$0xff] }
  0x65   :  { %558 = vmatpush2.msra.mxu1 %v470_v46  ;;  %847 = vmatprep.subr.mxu0 %v785_v12  ;;  %v816_v46 = vld [vmem:[#allocation5 + $0x6b0] sm:$0xff] }
  0x66   :  { %278 = vmatmul.mubr.f32.gmra.mxu0 %v151_v29  ;;  %559 = vmatprep.subr.mxu1 %v469_v47  ;;  %v768_v29 = vld [vmem:[#allocation5 + $0x530] sm:$0xff]  ;;  %v815_v47 = vld [vmem:[#allocation5 + $0x6a8] sm:$0xff] }
  0x67   :  { %283 = vmatprep.mubr.f32.mxu0 %v7144_v0  ;;  %560 = vmatpush2.msra.mxu1 %v468_v59  ;;  %v805_v59 = vld [vmem:[#allocation5 + $0x658] sm:$0xff] }
  0x68   :  { %561 = vmatprep.subr.mxu1 %v467_v60  ;;  %848 = vmatpush1.msra.mxu0 %v784_v13  ;;  %v804_v60 = vld [vmem:[#allocation5 + $0x650] sm:$0xff] }
  0x69   :  { %562 = vmatpush2.msra.mxu1 %v466_v61  ;;  %849 = vmatprep.subr.mxu0 %v783_v14 }
  0x6a   :  { %284 = vmatmul.mubr.f32.gmra.mxu0 %v152_v35  ;;  %563 = vmatprep.subr.mxu1 %v465_v62  ;;  %v762_v35 = vld [vmem:[#allocation5 + $0x500] sm:$0xff]  ;;  %v803_v62 = vld [vmem:[#allocation5 + $0x648] sm:$0xff] }
  0x6b   :  { %289 = vmatprep.mubr.f32.mxu0 %v7144_v0  ;;  %564 = vmatpush2.msra.mxu1 %v464_v63  ;;  %v78_v63 = vld [vmem:[#allocation7 + $0x6] ss:$8 sm:$0x3] }
  0x6c   :  { %565 = vmatprep.subr.mxu1 %v463_v1  ;;  %850 = vmatpush1.msra.mxu0 %v782_v15  ;;  %v802_v1 = vld [vmem:[#allocation5 + $0x640] sm:$0xff] }
  0x6d   :  { %566 = vmatpush2.msra.mxu1 %v462_v2  ;;  %851 = vmatprep.subr.mxu0 %v781_v16 }
  0x6e   :  { %290 = vmatmul.mubr.f32.gmra.mxu0 %v153_v41  ;;  %567 = vmatprep.subr.mxu1 %v461_v3  ;;  %v820_v41 = vld [vmem:[#allocation5 + $0x6d0] sm:$0xff] }
  0x6f   :  { %295 = vmatprep.mubr.f32.mxu0 %v7144_v0  ;;  %568 = vmatpush2.msra.mxu1 %v460_v43 }
  0x70   :  { %852 = vmatpush1.msra.mxu0 %v780_v17 }
  0x71   :  { %853 = vmatprep.subr.mxu0 %v779_v18 }
  0x72   :  { %296 = vmatmul.mubr.f32.gmra.mxu0 %v154_v48  ;;  %v814_v48 = vld [vmem:[#allocation5 + $0x6a0] sm:$0xff] }
  0x73   :  { %301 = vmatprep.mubr.f32.mxu0 %v7144_v0  ;;  %854 = vmatpush1.msra.mxu0 %v778_v19 }
  0x74   :  { %855 = vmatprep.subr.mxu0 %v777_v20 }
  0x75   :  { %856 = vmatpush1.msra.mxu0 %v776_v21 }
  0x76   :  { %302 = vmatmul.mubr.f32.gmra.mxu0 %v155_v50  ;;  %857 = vmatprep.subr.mxu0 %v775_v22  ;;  %v812_v50 = vld [vmem:[#allocation5 + $0x690] sm:$0xff] }
  0x77   :  { %307 = vmatprep.mubr.f32.mxu0 %v7144_v0  ;;  %858 = vmatpush1.msra.mxu0 %v774_v23 }
  0x78   :  { %859 = vmatprep.subr.mxu0 %v773_v24 }
  0x79   :  { %860 = vmatpush1.msra.mxu0 %v772_v25 }
  0x7a   :  { %308 = vmatmul.mubr.f32.gmra.mxu0 %v156_v52  ;;  %861 = vmatprep.subr.mxu0 %v771_v26  ;;  %v811_v52 = vld [vmem:[#allocation5 + $0x688] sm:$0xff] }
  0x7b   :  { %313 = vmatprep.mubr.f32.mxu0 %v7144_v0  ;;  %862 = vmatpush1.msra.mxu0 %v770_v27 }
  0x7c   :  { %863 = vmatprep.subr.mxu0 %v769_v28 }
  0x7d   :  { %864 = vmatpush1.msra.mxu0 %v768_v29 }
  0x7e   :  { %314 = vmatmul.mubr.f32.gmra.mxu0 %v157_v54  ;;  %865 = vmatprep.subr.mxu0 %v767_v30  ;;  %v809_v54 = vld [vmem:[#allocation5 + $0x678] sm:$0xff] }
  0x7f   :  { %319 = vmatprep.mubr.f32.mxu0 %v7144_v0  ;;  %866 = vmatpush1.msra.mxu0 %v766_v31 }
  0x80   :  { %867 = vmatprep.subr.mxu0 %v765_v32 }
  0x81   :  { %868 = vmatpush1.msra.mxu0 %v764_v33 }
  0x82   :  { %320 = vmatmul.mubr.f32.gmra.mxu0 %v158_v56  ;;  %869 = vmatprep.subr.mxu0 %v763_v34  ;;  %v162_v56 = vshrl.u32 %v161_v51, 7 }
  0x83   :  { %325 = vmatprep.mubr.f32.mxu0 %v7144_v0  ;;  %870 = vmatpush1.msra.mxu0 %v762_v35 }
  0x84   :  { %871 = vmatprep.subr.mxu0 %v825_v36  ;;  %v7218_v61 = vsub.s32 0, %v162_v56  ;;  %v7220_v2 = vsub.s32 1, %v162_v56 }
  0x85   :  { %872 = vmatpush2.msra.mxu0 %v824_v37 }
  0x86   :  { %326 = vmatmul.mubr.f32.gmra.mxu0 %v159_v58  ;;  %873 = vmatprep.subr.mxu0 %v823_v38  ;;  %v806_v58 = vld [vmem:[#allocation5 + $0x660] sm:$0xff]  ;;  %v7223_v3 = vrot.slane %v78_v63, %v7218_v61  ;;  %v7226_v43 = vrot.slane %v78_v63, %v7220_v2 }
  0x87   :  { %874 = vmatpush2.msra.mxu0 %v822_v39 }
  0x88   :  { %875 = vmatprep.subr.mxu0 %v821_v40 }
  0x89   :  { %876 = vmatpush2.msra.mxu0 %v820_v41 }
  0x8a   :  { %877 = vmatprep.subr.mxu0 %v819_v42 }
  0x8b   :  { %878 = vmatpush2.msra.mxu0 %v818_v44 }
  0x8c   :  { %879 = vmatprep.subr.mxu0 %v817_v45 }
  0x8d   :  { %880 = vmatpush2.msra.mxu0 %v816_v46 }
  0x8e   :  { %881 = vmatprep.subr.mxu0 %v815_v47 }
  0x8f   :  { %882 = vmatpush2.msra.mxu0 %v814_v48 }
  0x90   :  { %883 = vmatprep.subr.mxu0 %v813_v49 }
  0x91   :  { %884 = vmatpush2.msra.mxu0 %v812_v50 }
  0x92   :  { %885 = vmatprep.subr.mxu0 %v811_v52 }
  0x93   :  { %886 = vmatpush2.msra.mxu0 %v810_v53 }
  0x94   :  { %887 = vmatprep.subr.mxu0 %v809_v54 }
  0x95   :  { %888 = vmatpush2.msra.mxu0 %v808_v55 }
  0x96   :  { %889 = vmatprep.subr.mxu0 %v807_v57 }
  0x97   :  { %890 = vmatpush2.msra.mxu0 %v806_v58 }
  0x98   :  { %891 = vmatprep.subr.mxu0 %v805_v59 }
  0x99   :  { %892 = vmatpush2.msra.mxu0 %v804_v60 }
  0x9a   :  { %893 = vmatprep.subr.mxu0 %v803_v62 }
  0x9b   :  { %894 = vmatpush2.msra.mxu0 %v802_v1 }
 0x10a   :  { %v237_v4 = vpop.f32.mrf.mxu0 }
 0x10b   :  { %v238_v5 = vadd.f32 %v237_v4, %v7223_v3 }
 0x10c   :  { %v239_v6 = vpop.f32.mrf.mxu0 }
 0x10d   :  { %v240_v7 = vadd.f32 %v239_v6, %v7226_v43  ;;  %v364_v8 = vmul.f32 0.2, %v238_v5  ;;  %vm332_vm1 = vcmp.ge.f32.partialorder %v238_v5, 0.0 }
 0x10e   :  { %v243_v9 = vpop.f32.mrf.mxu0 }
 0x10f   :  { %v244_v10 = vadd.f32 %v243_v9, %v7223_v3  ;;  %vm333_vm0 = vcmp.ge.f32.partialorder %v240_v7, 0.0  ;;  %v365_v11 = vmul.f32 0.2, %v240_v7  ;;  %v396_v17 = vsel %vm332_vm1, %v238_v5, %v364_v8 }
 0x110   :  { %v245_v12 = vpop.f32.mrf.mxu0 }
 0x111   :  { %v246_v13 = vadd.f32 %v245_v12, %v7226_v43  ;;  %v397_v14 = vsel %vm333_vm0, %v240_v7, %v365_v11  ;;  %v366_v15 = vmul.f32 0.2, %v244_v10  ;;  %vm334_vm3 = vcmp.ge.f32.partialorder %v244_v10, 0.0 }
 0x112   :  { %v249_v16 = vpop.f32.mrf.mxu0  ;;  %569 = vmatprep.mubr.f32.mxu1 %v397_v14 }
 0x113   :  { %v250_v18 = vadd.f32 %v249_v16, %v7223_v3  ;;  %570 = vmatmul.mubr.f32.vlgmr.msra.gmra.mxu1 %v396_v17  ;;  %vm335_vm2 = vcmp.ge.f32.partialorder %v246_v13, 0.0  ;;  %v367_v19 = vmul.f32 0.2, %v246_v13  ;;  %v398_v25 = vsel %vm334_vm3, %v244_v10, %v366_v15 }
 0x114   :  { %v251_v20 = vpop.f32.mrf.mxu0 }
 0x115   :  { %v252_v21 = vadd.f32 %v251_v20, %v7226_v43  ;;  %v399_v22 = vsel %vm335_vm2, %v246_v13, %v367_v19  ;;  %v368_v23 = vmul.f32 0.2, %v250_v18  ;;  %vm336_vm5 = vcmp.ge.f32.partialorder %v250_v18, 0.0 }
 0x116   :  { %v255_v24 = vpop.f32.mrf.mxu0  ;;  %575 = vmatprep.mubr.f32.mxu1 %v399_v22 }
 0x117   :  { %v256_v26 = vadd.f32 %v255_v24, %v7223_v3  ;;  %576 = vmatmul.mubr.f32.gmra.mxu1 %v398_v25  ;;  %vm337_vm4 = vcmp.ge.f32.partialorder %v252_v21, 0.0  ;;  %v369_v27 = vmul.f32 0.2, %v252_v21  ;;  %v400_v33 = vsel %vm336_vm5, %v250_v18, %v368_v23 }
 0x118   :  { %v257_v28 = vpop.f32.mrf.mxu0 }
 0x119   :  { %v258_v29 = vadd.f32 %v257_v28, %v7226_v43  ;;  %v401_v30 = vsel %vm337_vm4, %v252_v21, %v369_v27  ;;  %v370_v31 = vmul.f32 0.2, %v256_v26  ;;  %vm338_vm7 = vcmp.ge.f32.partialorder %v256_v26, 0.0 }
 0x11a   :  { %v261_v32 = vpop.f32.mrf.mxu0  ;;  %581 = vmatprep.mubr.f32.mxu1 %v401_v30 }
 0x11b   :  { %v262_v34 = vadd.f32 %v261_v32, %v7223_v3  ;;  %582 = vmatmul.mubr.f32.gmra.mxu1 %v400_v33  ;;  %vm339_vm6 = vcmp.ge.f32.partialorder %v258_v29, 0.0  ;;  %v371_v35 = vmul.f32 0.2, %v258_v29  ;;  %v402_v41 = vsel %vm338_vm7, %v256_v26, %v370_v31 }
 0x11c   :  { %v263_v36 = vpop.f32.mrf.mxu0 }
 0x11d   :  { %v264_v37 = vadd.f32 %v263_v36, %v7226_v43  ;;  %v403_v38 = vsel %vm339_vm6, %v258_v29, %v371_v35  ;;  %v372_v39 = vmul.f32 0.2, %v262_v34  ;;  %vm340_vm9 = vcmp.ge.f32.partialorder %v262_v34, 0.0 }
 0x11e   :  { %v267_v40 = vpop.f32.mrf.mxu0  ;;  %587 = vmatprep.mubr.f32.mxu1 %v403_v38 }
 0x11f   :  { %v268_v42 = vadd.f32 %v267_v40, %v7223_v3  ;;  %588 = vmatmul.mubr.f32.gmra.mxu1 %v402_v41  ;;  %vm341_vm8 = vcmp.ge.f32.partialorder %v264_v37, 0.0  ;;  %v373_v44 = vmul.f32 0.2, %v264_v37  ;;  %v404_v50 = vsel %vm340_vm9, %v262_v34, %v372_v39 }
 0x120   :  { %v269_v45 = vpop.f32.mrf.mxu0 }
 0x121   :  { %v270_v46 = vadd.f32 %v269_v45, %v7226_v43  ;;  %v405_v47 = vsel %vm341_vm8, %v264_v37, %v373_v44  ;;  %v374_v48 = vmul.f32 0.2, %v268_v42  ;;  %vm342_vm11 = vcmp.ge.f32.partialorder %v268_v42, 0.0 }
 0x122   :  { %v273_v49 = vpop.f32.mrf.mxu0  ;;  %593 = vmatprep.mubr.f32.mxu1 %v405_v47 }
 0x123   :  { %v274_v51 = vadd.f32 %v273_v49, %v7223_v3  ;;  %594 = vmatmul.mubr.f32.gmra.mxu1 %v404_v50  ;;  %vm343_vm10 = vcmp.ge.f32.partialorder %v270_v46, 0.0  ;;  %v375_v52 = vmul.f32 0.2, %v270_v46  ;;  %v406_v58 = vsel %vm342_vm11, %v268_v42, %v374_v48 }
 0x124   :  { %v275_v53 = vpop.f32.mrf.mxu0 }
 0x125   :  { %v276_v54 = vadd.f32 %v275_v53, %v7226_v43  ;;  %v407_v55 = vsel %vm343_vm10, %v270_v46, %v375_v52  ;;  %v376_v56 = vmul.f32 0.2, %v274_v51  ;;  %vm344_vm13 = vcmp.ge.f32.partialorder %v274_v51, 0.0 }
 0x126   :  { %v279_v57 = vpop.f32.mrf.mxu0  ;;  %599 = vmatprep.mubr.f32.mxu1 %v407_v55 }
 0x127   :  { %v280_v59 = vadd.f32 %v279_v57, %v7223_v3  ;;  %600 = vmatmul.mubr.f32.gmra.mxu1 %v406_v58  ;;  %vm345_vm12 = vcmp.ge.f32.partialorder %v276_v54, 0.0  ;;  %v377_v60 = vmul.f32 0.2, %v276_v54  ;;  %v408_v6 = vsel %vm344_vm13, %v274_v51, %v376_v56 }
 0x128   :  { %v281_v62 = vpop.f32.mrf.mxu0 }
 0x129   :  { %v282_v63 = vadd.f32 %v281_v62, %v7226_v43  ;;  %v409_v1 = vsel %vm345_vm12, %v276_v54, %v377_v60  ;;  %v378_v4 = vmul.f32 0.2, %v280_v59  ;;  %vm346_vm15 = vcmp.ge.f32.partialorder %v280_v59, 0.0 }
 0x12a   :  { %v285_v5 = vpop.f32.mrf.mxu0  ;;  %605 = vmatprep.mubr.f32.mxu1 %v409_v1 }
 0x12b   :  { %v286_v7 = vadd.f32 %v285_v5, %v7223_v3  ;;  %606 = vmatmul.mubr.f32.gmra.mxu1 %v408_v6  ;;  %vm347_vm14 = vcmp.ge.f32.partialorder %v282_v63, 0.0  ;;  %v379_v8 = vmul.f32 0.2, %v282_v63  ;;  %v410_v14 = vsel %vm346_vm15, %v280_v59, %v378_v4 }
 0x12c   :  { %v287_v9 = vpop.f32.mrf.mxu0 }
 0x12d   :  { %v288_v10 = vadd.f32 %v287_v9, %v7226_v43  ;;  %v411_v11 = vsel %vm347_vm14, %v282_v63, %v379_v8  ;;  %v380_v12 = vmul.f32 0.2, %v286_v7  ;;  %vm348_vm1 = vcmp.ge.f32.partialorder %v286_v7, 0.0 }
 0x12e   :  { %v291_v13 = vpop.f32.mrf.mxu0  ;;  %611 = vmatprep.mubr.f32.mxu1 %v411_v11 }
 0x12f   :  { %v292_v15 = vadd.f32 %v291_v13, %v7223_v3  ;;  %612 = vmatmul.mubr.f32.gmra.mxu1 %v410_v14  ;;  %vm349_vm0 = vcmp.ge.f32.partialorder %v288_v10, 0.0  ;;  %v381_v16 = vmul.f32 0.2, %v288_v10  ;;  %v412_v22 = vsel %vm348_vm1, %v286_v7, %v380_v12  ;;  %v800_v14 = vld [vmem:[#allocation5 + $0x630] sm:$0xff] }
 0x130   :  { %v293_v17 = vpop.f32.mrf.mxu0 }
 0x131   :  { %v294_v18 = vadd.f32 %v293_v17, %v7226_v43  ;;  %v413_v19 = vsel %vm349_vm0, %v288_v10, %v381_v16  ;;  %v382_v20 = vmul.f32 0.2, %v292_v15  ;;  %vm350_vm3 = vcmp.ge.f32.partialorder %v292_v15, 0.0  ;;  %v798_v16 = vld [vmem:[#allocation5 + $0x620] sm:$0xff]  ;;  %v796_v17 = vld [vmem:[#allocation5 + $0x610] sm:$0xff] }
 0x132   :  { %v297_v21 = vpop.f32.mrf.mxu0  ;;  %617 = vmatprep.mubr.f32.mxu1 %v413_v19  ;;  %v794_v19 = vld [vmem:[#allocation5 + $0x600] sm:$0xff] }
 0x133   :  { %v298_v23 = vadd.f32 %v297_v21, %v7223_v3  ;;  %618 = vmatmul.mubr.f32.gmra.mxu1 %v412_v22  ;;  %vm351_vm2 = vcmp.ge.f32.partialorder %v294_v18, 0.0  ;;  %v383_v24 = vmul.f32 0.2, %v294_v18  ;;  %v414_v30 = vsel %vm350_vm3, %v292_v15, %v382_v20  ;;  %v799_v15 = vld [vmem:[#allocation5 + $0x628] sm:$0xff]  ;;  %v1127_v20 = vld [vmem:[#allocation5 + $0x7f8] sm:$0xff]  ;;  %v1126_v21 = vld [vmem:[#allocation5 + $0x7f0] sm:$0xff] }
 0x134   :  { %v299_v25 = vpop.f32.mrf.mxu0  ;;  %v1125_v22 = vld [vmem:[#allocation5 + $0x7e8] sm:$0xff]  ;;  %1173 = vmatprep.subr.mxu1 %v1127_v20 }
 0x135   :  { %v300_v26 = vadd.f32 %v299_v25, %v7226_v43  ;;  %v415_v27 = vsel %vm351_vm2, %v294_v18, %v383_v24  ;;  %v384_v28 = vmul.f32 0.2, %v298_v23  ;;  %vm352_vm5 = vcmp.ge.f32.partialorder %v298_v23, 0.0  ;;  %v795_v18 = vld [vmem:[#allocation5 + $0x608] sm:$0xff]  ;;  %1174 = vmatpush1.msra.mxu1 %v1126_v21  ;;  %v1123_v24 = vld [vmem:[#allocation5 + $0x7d8] sm:$0xff]  ;;  %v1122_v25 = vld [vmem:[#allocation5 + $0x7d0] sm:$0xff] }
 0x136   :  { %v303_v29 = vpop.f32.mrf.mxu0  ;;  %623 = vmatprep.mubr.f32.mxu1 %v415_v27  ;;  %1175 = vmatprep.subr.mxu1 %v1125_v22  ;;  %v1120_v27 = vld [vmem:[#allocation5 + $0x7c0] sm:$0xff] }
 0x137   :  { %v304_v31 = vadd.f32 %v303_v29, %v7223_v3  ;;  %624 = vmatmul.mubr.f32.gmra.mxu1 %v414_v30  ;;  %vm353_vm4 = vcmp.ge.f32.partialorder %v300_v26, 0.0  ;;  %v385_v32 = vmul.f32 0.2, %v300_v26  ;;  %v416_v38 = vsel %vm352_vm5, %v298_v23, %v384_v28  ;;  %v1124_v23 = vld [vmem:[#allocation5 + $0x7e0] sm:$0xff]  ;;  %v1119_v28 = vld [vmem:[#allocation5 + $0x7b8] sm:$0xff]  ;;  %v1118_v29 = vld [vmem:[#allocation5 + $0x7b0] sm:$0xff] }
 0x138   :  { %v305_v33 = vpop.f32.mrf.mxu0  ;;  %1176 = vmatpush1.msra.mxu1 %v1124_v23  ;;  %v1117_v30 = vld [vmem:[#allocation5 + $0x7a8] sm:$0xff] }
 0x139   :  { %v306_v34 = vadd.f32 %v305_v33, %v7226_v43  ;;  %v417_v35 = vsel %vm353_vm4, %v300_v26, %v385_v32  ;;  %v386_v36 = vmul.f32 0.2, %v304_v31  ;;  %vm354_vm7 = vcmp.ge.f32.partialorder %v304_v31, 0.0  ;;  %v1121_v26 = vld [vmem:[#allocation5 + $0x7c8] sm:$0xff]  ;;  %1177 = vmatprep.subr.mxu1 %v1123_v24  ;;  %v1115_v32 = vld [vmem:[#allocation5 + $0x798] sm:$0xff]  ;;  %v1114_v33 = vld [vmem:[#allocation5 + $0x790] sm:$0xff] }
 0x13a   :  { %v309_v37 = vpop.f32.mrf.mxu0  ;;  %629 = vmatprep.mubr.f32.mxu1 %v417_v35  ;;  %1178 = vmatpush1.msra.mxu1 %v1122_v25  ;;  %v1112_v35 = vld [vmem:[#allocation5 + $0x780] sm:$0xff] }
 0x13b   :  { %v310_v39 = vadd.f32 %v309_v37, %v7223_v3  ;;  %630 = vmatmul.mubr.f32.gmra.mxu1 %v416_v38  ;;  %vm355_vm6 = vcmp.ge.f32.partialorder %v306_v34, 0.0  ;;  %v387_v40 = vmul.f32 0.2, %v306_v34  ;;  %v418_v47 = vsel %vm354_vm7, %v304_v31, %v386_v36  ;;  %1179 = vmatprep.subr.mxu1 %v1121_v26  ;;  %v1116_v31 = vld [vmem:[#allocation5 + $0x7a0] sm:$0xff]  ;;  %v1111_v36 = vld [vmem:[#allocation5 + $0x778] sm:$0xff]  ;;  %v1110_v37 = vld [vmem:[#allocation5 + $0x770] sm:$0xff] }
 0x13c   :  { %v311_v41 = vpop.f32.mrf.mxu0  ;;  %1180 = vmatpush1.msra.mxu1 %v1120_v27  ;;  %v1109_v38 = vld [vmem:[#allocation5 + $0x768] sm:$0xff] }
 0x13d   :  { %v312_v42 = vadd.f32 %v311_v41, %v7226_v43  ;;  %v419_v44 = vsel %vm355_vm6, %v306_v34, %v387_v40  ;;  %v388_v45 = vmul.f32 0.2, %v310_v39  ;;  %vm356_vm9 = vcmp.ge.f32.partialorder %v310_v39, 0.0  ;;  %1181 = vmatprep.subr.mxu1 %v1119_v28  ;;  %v1113_v34 = vld [vmem:[#allocation5 + $0x788] sm:$0xff]  ;;  %v1107_v40 = vld [vmem:[#allocation5 + $0x758] sm:$0xff]  ;;  %v1106_v41 = vld [vmem:[#allocation5 + $0x750] sm:$0xff] }
 0x13e   :  { %v315_v46 = vpop.f32.mrf.mxu0  ;;  %635 = vmatprep.mubr.f32.mxu1 %v419_v44  ;;  %1182 = vmatpush1.msra.mxu1 %v1118_v29  ;;  %v1104_v44 = vld [vmem:[#allocation5 + $0x740] sm:$0xff] }
 0x13f   :  { %v316_v48 = vadd.f32 %v315_v46, %v7223_v3  ;;  %636 = vmatmul.mubr.f32.gmra.mxu1 %v418_v47  ;;  %vm357_vm8 = vcmp.ge.f32.partialorder %v312_v42, 0.0  ;;  %v389_v49 = vmul.f32 0.2, %v312_v42  ;;  %v420_v55 = vsel %vm356_vm9, %v310_v39, %v388_v45  ;;  %1183 = vmatprep.subr.mxu1 %v1117_v30  ;;  %v1108_v39 = vld [vmem:[#allocation5 + $0x760] sm:$0xff]  ;;  %v1103_v45 = vld [vmem:[#allocation5 + $0x738] sm:$0xff]  ;;  %v1102_v46 = vld [vmem:[#allocation5 + $0x730] sm:$0xff] }
 0x140   :  { %v317_v50 = vpop.f32.mrf.mxu0  ;;  %1184 = vmatpush1.msra.mxu1 %v1116_v31  ;;  %v1101_v47 = vld [vmem:[#allocation5 + $0x728] sm:$0xff] }
 0x141   :  { %v318_v51 = vadd.f32 %v317_v50, %v7226_v43  ;;  %v421_v52 = vsel %vm357_vm8, %v312_v42, %v389_v49  ;;  %v390_v53 = vmul.f32 0.2, %v316_v48  ;;  %vm358_vm11 = vcmp.ge.f32.partialorder %v316_v48, 0.0  ;;  %1185 = vmatprep.subr.mxu1 %v1115_v32  ;;  %v1105_v42 = vld [vmem:[#allocation5 + $0x748] sm:$0xff]  ;;  %v1099_v49 = vld [vmem:[#allocation5 + $0x718] sm:$0xff]  ;;  %v1098_v50 = vld [vmem:[#allocation5 + $0x710] sm:$0xff] }
 0x142   :  { %v321_v54 = vpop.f32.mrf.mxu0  ;;  %641 = vmatprep.mubr.f32.mxu1 %v421_v52  ;;  %1186 = vmatpush1.msra.mxu1 %v1114_v33  ;;  %v1096_v52 = vld [vmem:[#allocation5 + $0x700] sm:$0xff] }
 0x143   :  { %v322_v56 = vadd.f32 %v321_v54, %v7223_v3  ;;  %642 = vmatmul.mubr.f32.gmra.mxu1 %v420_v55  ;;  %vm359_vm10 = vcmp.ge.f32.partialorder %v318_v51, 0.0  ;;  %v391_v57 = vmul.f32 0.2, %v318_v51  ;;  %v422_v1 = vsel %vm358_vm11, %v316_v48, %v390_v53  ;;  %1187 = vmatprep.subr.mxu1 %v1113_v34  ;;  %v1100_v48 = vld [vmem:[#allocation5 + $0x720] sm:$0xff]  ;;  %v1159_v53 = vld [vmem:[#allocation5 + $0x8f8] sm:$0xff]  ;;  %v1158_v54 = vld [vmem:[#allocation5 + $0x8f0] sm:$0xff] }
 0x144   :  { %v323_v58 = vpop.f32.mrf.mxu0  ;;  %1188 = vmatpush1.msra.mxu1 %v1112_v35  ;;  %v1157_v55 = vld [vmem:[#allocation5 + $0x8e8] sm:$0xff] }
 0x145   :  { %v324_v59 = vadd.f32 %v323_v58, %v7226_v43  ;;  %v423_v60 = vsel %vm359_vm10, %v318_v51, %v391_v57  ;;  %v392_v62 = vmul.f32 0.2, %v322_v56  ;;  %vm360_vm13 = vcmp.ge.f32.partialorder %v322_v56, 0.0  ;;  %1189 = vmatprep.subr.mxu1 %v1111_v36  ;;  %v1097_v51 = vld [vmem:[#allocation5 + $0x708] sm:$0xff]  ;;  %v1155_v57 = vld [vmem:[#allocation5 + $0x8d8] sm:$0xff]  ;;  %v1154_v58 = vld [vmem:[#allocation5 + $0x8d0] sm:$0xff] }
 0x146   :  { %v327_v63 = vpop.f32.mrf.mxu0  ;;  %647 = vmatprep.mubr.f32.mxu1 %v423_v60  ;;  %1190 = vmatpush1.msra.mxu1 %v1110_v37  ;;  %v1152_v60 = vld [vmem:[#allocation5 + $0x8c0] sm:$0xff] }
 0x147   :  { %v328_v4 = vadd.f32 %v327_v63, %v7223_v3  ;;  %648 = vmatmul.mubr.f32.gmra.mxu1 %v422_v1  ;;  %vm361_vm12 = vcmp.ge.f32.partialorder %v324_v59, 0.0  ;;  %v393_v5 = vmul.f32 0.2, %v324_v59  ;;  %v424_v10 = vsel %vm360_vm13, %v322_v56, %v392_v62  ;;  %v801_v3 = vld [vmem:[#allocation5 + $0x638] sm:$0xff]  ;;  %1191 = vmatprep.subr.mxu1 %v1109_v38  ;;  %v1156_v56 = vld [vmem:[#allocation5 + $0x8e0] sm:$0xff]  ;;  %v1150_v63 = vld [vmem:[#allocation5 + $0x8b0] sm:$0xff] }
 0x148   :  { %v329_v6 = vpop.f32.mrf.mxu0  ;;  %895 = vmatprep.subr.mxu0 %v801_v3  ;;  %1192 = vmatpush1.msra.mxu1 %v1108_v39  ;;  %v1151_v62 = vld [vmem:[#allocation5 + $0x8b8] sm:$0xff]  ;;  %v1149_v1 = vld [vmem:[#allocation5 + $0x8a8] sm:$0xff]  ;;  %v1138_v3 = vld [vmem:[#allocation5 + $0x850] sm:$0xff] }
 0x149   :  { %v330_v7 = vadd.f32 %v329_v6, %v7226_v43  ;;  %v425_v8 = vsel %vm361_vm12, %v324_v59, %v393_v5  ;;  %v394_v9 = vmul.f32 0.2, %v328_v4  ;;  %vm362_vm15 = vcmp.ge.f32.partialorder %v328_v4, 0.0  ;;  %896 = vmatpush2.msra.mxu0 %v800_v14  ;;  %v797_v43 = vld [vmem:[#allocation5 + $0x618] sm:$0xff]  ;;  %1193 = vmatprep.subr.mxu1 %v1107_v40  ;;  %v1153_v59 = vld [vmem:[#allocation5 + $0x8c8] sm:$0xff]  ;;  %v1146_v6 = vld [vmem:[#allocation5 + $0x890] sm:$0xff] }
 0x14a   :  { %653 = vmatprep.mubr.f32.mxu1 %v425_v8  ;;  %897 = vmatprep.subr.mxu0 %v799_v15  ;;  %v1147_v5 = vld [vmem:[#allocation5 + $0x898] sm:$0xff]  ;;  %v1144_v8 = vld [vmem:[#allocation5 + $0x880] sm:$0xff]  ;;  %v1137_v14 = vld [vmem:[#allocation5 + $0x848] sm:$0xff] }
 0x14b   :  { %654 = vmatmul.mubr.f32.gmra.mxu1 %v424_v10  ;;  %vm363_vm14 = vcmp.ge.f32.partialorder %v330_v7, 0.0  ;;  %v395_v11 = vmul.f32 0.2, %v330_v7  ;;  %v426_v13 = vsel %vm362_vm15, %v328_v4, %v394_v9  ;;  %898 = vmatpush2.msra.mxu0 %v798_v16  ;;  %v1148_v4 = vld [vmem:[#allocation5 + $0x8a0] sm:$0xff]  ;;  %v1143_v9 = vld [vmem:[#allocation5 + $0x878] sm:$0xff]  ;;  %v1142_v10 = vld [vmem:[#allocation5 + $0x870] sm:$0xff] }
 0x14c   :  { %899 = vmatprep.subr.mxu0 %v797_v43  ;;  %1194 = vmatpush1.msra.mxu1 %v1106_v41  ;;  %v493_v15 = vld [vmem:[#allocation7 + $0x11] ss:$8 sm:$0x3]  ;;  %v1136_v16 = vld [vmem:[#allocation5 + $0x840] sm:$0xff] }
 0x14d   :  { %v427_v12 = vsel %vm363_vm14, %v330_v7, %v395_v11  ;;  %900 = vmatpush2.msra.mxu0 %v796_v17  ;;  %1195 = vmatprep.subr.mxu1 %v1105_v42  ;;  %v1145_v7 = vld [vmem:[#allocation5 + $0x888] sm:$0xff]  ;;  %v7261_v43 = vrot.slane %v493_v15, %v7218_v61  ;;  %v7264_v17 = vrot.slane %v493_v15, %v7220_v2 }
 0x14e   :  { %659 = vmatprep.mubr.f32.mxu1 %v427_v12  ;;  %901 = vmatprep.subr.mxu0 %v795_v18  ;;  %v1141_v11 = vld [vmem:[#allocation5 + $0x868] sm:$0xff]  ;;  %v1140_v12 = vld [vmem:[#allocation5 + $0x860] sm:$0xff] }
 0x14f   :  { %660 = vmatmul.mubr.f32.gmra.mxu1 %v426_v13  ;;  %902 = vmatpush2.msra.mxu0 %v794_v19  ;;  %v1139_v13 = vld [vmem:[#allocation5 + $0x858] sm:$0xff] }
 0x150   :  { %1196 = vmatpush1.msra.mxu1 %v1104_v44 }
 0x151   :  { %1197 = vmatprep.subr.mxu1 %v1103_v45 }
 0x152   :  { %1198 = vmatpush1.msra.mxu1 %v1102_v46 }
 0x153   :  { %1199 = vmatprep.subr.mxu1 %v1101_v47 }
 0x154   :  { %1200 = vmatpush1.msra.mxu1 %v1100_v48 }
 0x155   :  { %1201 = vmatprep.subr.mxu1 %v1099_v49 }
 0x156   :  { %1202 = vmatpush1.msra.mxu1 %v1098_v50 }
 0x157   :  { %1203 = vmatprep.subr.mxu1 %v1097_v51 }
 0x158   :  { %1204 = vmatpush1.msra.mxu1 %v1096_v52 }
 0x159   :  { %1205 = vmatprep.subr.mxu1 %v1159_v53 }
 0x15a   :  { %1206 = vmatpush2.msra.mxu1 %v1158_v54 }
 0x15b   :  { %1207 = vmatprep.subr.mxu1 %v1157_v55 }
 0x15c   :  { %1208 = vmatpush2.msra.mxu1 %v1156_v56 }
 0x15d   :  { %1209 = vmatprep.subr.mxu1 %v1155_v57 }
 0x15e   :  { %1210 = vmatpush2.msra.mxu1 %v1154_v58 }
 0x15f   :  { %1211 = vmatprep.subr.mxu1 %v1153_v59 }
 0x160   :  { %1212 = vmatpush2.msra.mxu1 %v1152_v60 }
 0x161   :  { %1213 = vmatprep.subr.mxu1 %v1151_v62 }
 0x162   :  { %1214 = vmatpush2.msra.mxu1 %v1150_v63 }
 0x163   :  { %1215 = vmatprep.subr.mxu1 %v1149_v1 }
 0x164   :  { %1216 = vmatpush2.msra.mxu1 %v1148_v4 }
 0x165   :  { %1217 = vmatprep.subr.mxu1 %v1147_v5 }
 0x166   :  { %1218 = vmatpush2.msra.mxu1 %v1146_v6 }
 0x167   :  { %1219 = vmatprep.subr.mxu1 %v1145_v7 }
 0x168   :  { %1220 = vmatpush2.msra.mxu1 %v1144_v8 }
 0x169   :  { %1221 = vmatprep.subr.mxu1 %v1143_v9 }
 0x16a   :  { %1222 = vmatpush2.msra.mxu1 %v1142_v10 }
 0x16b   :  { %1223 = vmatprep.subr.mxu1 %v1141_v11 }
 0x16c   :  { %1224 = vmatpush2.msra.mxu1 %v1140_v12 }
 0x16d   :  { %1225 = vmatprep.subr.mxu1 %v1139_v13 }
 0x16e   :  { %1226 = vmatpush2.msra.mxu1 %v1138_v3 }
 0x16f   :  { %1227 = vmatprep.subr.mxu1 %v1137_v14 }
 0x170   :  { %1228 = vmatpush2.msra.mxu1 %v1136_v16 }
 0x1d3   :  { %v571_v18 = vpop.f32.mrf.mxu1 }
 0x1d4   :  { %v572_v19 = vadd.f32 %v571_v18, %v7261_v43 }
 0x1d5   :  { %v573_v20 = vpop.f32.mrf.mxu1 }
 0x1d6   :  { %v574_v21 = vadd.f32 %v573_v20, %v7264_v17  ;;  %v698_v22 = vmul.f32 0.2, %v572_v19  ;;  %vm666_vm0 = vcmp.ge.f32.partialorder %v572_v19, 0.0 }
 0x1d7   :  { %v577_v23 = vpop.f32.mrf.mxu1 }
 0x1d8   :  { %v578_v24 = vadd.f32 %v577_v23, %v7261_v43  ;;  %vm667_vm1 = vcmp.ge.f32.partialorder %v574_v21, 0.0  ;;  %v699_v25 = vmul.f32 0.2, %v574_v21  ;;  %v730_v29 = vsel %vm666_vm0, %v572_v19, %v698_v22 }
 0x1d9   :  { %v579_v26 = vpop.f32.mrf.mxu1 }
 0x1da   :  { %v580_v27 = vadd.f32 %v579_v26, %v7264_v17  ;;  %v731_v28 = vsel %vm667_vm1, %v574_v21, %v699_v25  ;;  %v700_v30 = vmul.f32 0.2, %v578_v24  ;;  %vm668_vm3 = vcmp.ge.f32.partialorder %v578_v24, 0.0 }
 0x1db   :  { %v583_v31 = vpop.f32.mrf.mxu1  ;;  %903 = vmatprep.mubr.f32.mxu0 %v731_v28 }
 0x1dc   :  { %v584_v32 = vadd.f32 %v583_v31, %v7261_v43  ;;  %904 = vmatmul.mubr.f32.vlgmr.msra.gmra.mxu0 %v730_v29  ;;  %vm669_vm2 = vcmp.ge.f32.partialorder %v580_v27, 0.0  ;;  %v701_v33 = vmul.f32 0.2, %v580_v27  ;;  %v732_v39 = vsel %vm668_vm3, %v578_v24, %v700_v30 }
 0x1dd   :  { %v585_v34 = vpop.f32.mrf.mxu1 }
 0x1de   :  { %v586_v35 = vadd.f32 %v585_v34, %v7264_v17  ;;  %v733_v36 = vsel %vm669_vm2, %v580_v27, %v701_v33  ;;  %v702_v37 = vmul.f32 0.2, %v584_v32  ;;  %vm670_vm5 = vcmp.ge.f32.partialorder %v584_v32, 0.0 }
 0x1df   :  { %v589_v38 = vpop.f32.mrf.mxu1  ;;  %909 = vmatprep.mubr.f32.mxu0 %v733_v36 }
 0x1e0   :  { %v590_v40 = vadd.f32 %v589_v38, %v7261_v43  ;;  %910 = vmatmul.mubr.f32.gmra.mxu0 %v732_v39  ;;  %vm671_vm4 = vcmp.ge.f32.partialorder %v586_v35, 0.0  ;;  %v703_v41 = vmul.f32 0.2, %v586_v35  ;;  %v734_v48 = vsel %vm670_vm5, %v584_v32, %v702_v37 }
 0x1e1   :  { %v591_v42 = vpop.f32.mrf.mxu1 }
 0x1e2   :  { %v592_v44 = vadd.f32 %v591_v42, %v7264_v17  ;;  %v735_v45 = vsel %vm671_vm4, %v586_v35, %v703_v41  ;;  %v704_v46 = vmul.f32 0.2, %v590_v40  ;;  %vm672_vm7 = vcmp.ge.f32.partialorder %v590_v40, 0.0 }
 0x1e3   :  { %v595_v47 = vpop.f32.mrf.mxu1  ;;  %915 = vmatprep.mubr.f32.mxu0 %v735_v45 }
 0x1e4   :  { %v596_v49 = vadd.f32 %v595_v47, %v7261_v43  ;;  %916 = vmatmul.mubr.f32.gmra.mxu0 %v734_v48  ;;  %vm673_vm6 = vcmp.ge.f32.partialorder %v592_v44, 0.0  ;;  %v705_v50 = vmul.f32 0.2, %v592_v44  ;;  %v736_v56 = vsel %vm672_vm7, %v590_v40, %v704_v46 }
 0x1e5   :  { %v597_v51 = vpop.f32.mrf.mxu1 }
 0x1e6   :  { %v598_v52 = vadd.f32 %v597_v51, %v7264_v17  ;;  %v737_v53 = vsel %vm673_vm6, %v592_v44, %v705_v50  ;;  %v706_v54 = vmul.f32 0.2, %v596_v49  ;;  %vm674_vm9 = vcmp.ge.f32.partialorder %v596_v49, 0.0 }
 0x1e7   :  { %v601_v55 = vpop.f32.mrf.mxu1  ;;  %921 = vmatprep.mubr.f32.mxu0 %v737_v53 }
 0x1e8   :  { %v602_v57 = vadd.f32 %v601_v55, %v7261_v43  ;;  %922 = vmatmul.mubr.f32.gmra.mxu0 %v736_v56  ;;  %vm675_vm8 = vcmp.ge.f32.partialorder %v598_v52, 0.0  ;;  %v707_v58 = vmul.f32 0.2, %v598_v52  ;;  %v738_v4 = vsel %vm674_vm9, %v596_v49, %v706_v54 }
 0x1e9   :  { %v603_v59 = vpop.f32.mrf.mxu1 }
 0x1ea   :  { %v604_v60 = vadd.f32 %v603_v59, %v7264_v17  ;;  %v739_v62 = vsel %vm675_vm8, %v598_v52, %v707_v58  ;;  %v708_v63 = vmul.f32 0.2, %v602_v57  ;;  %vm676_vm11 = vcmp.ge.f32.partialorder %v602_v57, 0.0 }
 0x1eb   :  { %v607_v1 = vpop.f32.mrf.mxu1  ;;  %927 = vmatprep.mubr.f32.mxu0 %v739_v62 }
 0x1ec   :  { %v608_v5 = vadd.f32 %v607_v1, %v7261_v43  ;;  %928 = vmatmul.mubr.f32.gmra.mxu0 %v738_v4  ;;  %vm677_vm10 = vcmp.ge.f32.partialorder %v604_v60, 0.0  ;;  %v709_v6 = vmul.f32 0.2, %v604_v60  ;;  %v740_v12 = vsel %vm676_vm11, %v602_v57, %v708_v63 }
 0x1ed   :  { %v609_v7 = vpop.f32.mrf.mxu1 }
 0x1ee   :  { %v610_v8 = vadd.f32 %v609_v7, %v7264_v17  ;;  %v741_v9 = vsel %vm677_vm10, %v604_v60, %v709_v6  ;;  %v710_v10 = vmul.f32 0.2, %v608_v5  ;;  %vm678_vm13 = vcmp.ge.f32.partialorder %v608_v5, 0.0 }
 0x1ef   :  { %v613_v11 = vpop.f32.mrf.mxu1  ;;  %933 = vmatprep.mubr.f32.mxu0 %v741_v9 }
 0x1f0   :  { %v614_v13 = vadd.f32 %v613_v11, %v7261_v43  ;;  %934 = vmatmul.mubr.f32.gmra.mxu0 %v740_v12  ;;  %vm679_vm12 = vcmp.ge.f32.partialorder %v610_v8, 0.0  ;;  %v711_v3 = vmul.f32 0.2, %v610_v8  ;;  %v742_v20 = vsel %vm678_vm13, %v608_v5, %v710_v10 }
 0x1f1   :  { %v615_v14 = vpop.f32.mrf.mxu1 }
 0x1f2   :  { %v616_v15 = vadd.f32 %v615_v14, %v7264_v17  ;;  %v743_v16 = vsel %vm679_vm12, %v610_v8, %v711_v3  ;;  %v712_v18 = vmul.f32 0.2, %v614_v13  ;;  %vm680_vm15 = vcmp.ge.f32.partialorder %v614_v13, 0.0 }
 0x1f3   :  { %v619_v19 = vpop.f32.mrf.mxu1  ;;  %939 = vmatprep.mubr.f32.mxu0 %v743_v16 }
 0x1f4   :  { %v620_v21 = vadd.f32 %v619_v19, %v7261_v43  ;;  %940 = vmatmul.mubr.f32.gmra.mxu0 %v742_v20  ;;  %vm681_vm14 = vcmp.ge.f32.partialorder %v616_v15, 0.0  ;;  %v713_v22 = vmul.f32 0.2, %v616_v15  ;;  %v744_v28 = vsel %vm680_vm15, %v614_v13, %v712_v18 }
 0x1f5   :  { %v621_v23 = vpop.f32.mrf.mxu1 }
 0x1f6   :  { %v622_v24 = vadd.f32 %v621_v23, %v7264_v17  ;;  %v745_v25 = vsel %vm681_vm14, %v616_v15, %v713_v22  ;;  %v714_v26 = vmul.f32 0.2, %v620_v21  ;;  %vm682_vm1 = vcmp.ge.f32.partialorder %v620_v21, 0.0 }
 0x1f7   :  { %v625_v27 = vpop.f32.mrf.mxu1  ;;  %945 = vmatprep.mubr.f32.mxu0 %v745_v25 }
 0x1f8   :  { %v626_v29 = vadd.f32 %v625_v27, %v7261_v43  ;;  %946 = vmatmul.mubr.f32.gmra.mxu0 %v744_v28  ;;  %vm683_vm0 = vcmp.ge.f32.partialorder %v622_v24, 0.0  ;;  %v715_v30 = vmul.f32 0.2, %v622_v24  ;;  %v746_v36 = vsel %vm682_vm1, %v620_v21, %v714_v26  ;;  %v1134_v28 = vld [vmem:[#allocation5 + $0x830] sm:$0xff] }
 0x1f9   :  { %v627_v31 = vpop.f32.mrf.mxu1 }
 0x1fa   :  { %v628_v32 = vadd.f32 %v627_v31, %v7264_v17  ;;  %v747_v33 = vsel %vm683_vm0, %v622_v24, %v715_v30  ;;  %v716_v34 = vmul.f32 0.2, %v626_v29  ;;  %vm684_vm3 = vcmp.ge.f32.partialorder %v626_v29, 0.0  ;;  %v1132_v30 = vld [vmem:[#allocation5 + $0x820] sm:$0xff]  ;;  %v1130_v31 = vld [vmem:[#allocation5 + $0x810] sm:$0xff] }
 0x1fb   :  { %v631_v35 = vpop.f32.mrf.mxu1  ;;  %951 = vmatprep.mubr.f32.mxu0 %v747_v33  ;;  %v1128_v33 = vld [vmem:[#allocation5 + $0x800] sm:$0xff] }
 0x1fc   :  { %v632_v37 = vadd.f32 %v631_v35, %v7261_v43  ;;  %952 = vmatmul.mubr.f32.gmra.mxu0 %v746_v36  ;;  %vm685_vm2 = vcmp.ge.f32.partialorder %v628_v32, 0.0  ;;  %v717_v38 = vmul.f32 0.2, %v628_v32  ;;  %v748_v45 = vsel %vm684_vm3, %v626_v29, %v716_v34  ;;  %v1133_v29 = vld [vmem:[#allocation5 + $0x828] sm:$0xff]  ;;  %v1461_v34 = vld [vmem:[#allocation5 + $0x9f8] sm:$0xff]  ;;  %v1460_v35 = vld [vmem:[#allocation5 + $0x9f0] sm:$0xff] }
 0x1fd   :  { %v633_v39 = vpop.f32.mrf.mxu1  ;;  %v1459_v36 = vld [vmem:[#allocation5 + $0x9e8] sm:$0xff]  ;;  %1507 = vmatprep.subr.mxu0 %v1461_v34 }
 0x1fe   :  { %v634_v40 = vadd.f32 %v633_v39, %v7264_v17  ;;  %v749_v41 = vsel %vm685_vm2, %v628_v32, %v717_v38  ;;  %v718_v42 = vmul.f32 0.2, %v632_v37  ;;  %vm686_vm5 = vcmp.ge.f32.partialorder %v632_v37, 0.0  ;;  %v1129_v32 = vld [vmem:[#allocation5 + $0x808] sm:$0xff]  ;;  %1508 = vmatpush1.msra.mxu0 %v1460_v35  ;;  %v1457_v38 = vld [vmem:[#allocation5 + $0x9d8] sm:$0xff]  ;;  %v1456_v39 = vld [vmem:[#allocation5 + $0x9d0] sm:$0xff] }
 0x1ff   :  { %v637_v44 = vpop.f32.mrf.mxu1  ;;  %957 = vmatprep.mubr.f32.mxu0 %v749_v41  ;;  %1509 = vmatprep.subr.mxu0 %v1459_v36  ;;  %v1454_v41 = vld [vmem:[#allocation5 + $0x9c0] sm:$0xff] }
 0x200   :  { %v638_v46 = vadd.f32 %v637_v44, %v7261_v43  ;;  %958 = vmatmul.mubr.f32.gmra.mxu0 %v748_v45  ;;  %vm687_vm4 = vcmp.ge.f32.partialorder %v634_v40, 0.0  ;;  %v719_v47 = vmul.f32 0.2, %v634_v40  ;;  %v750_v53 = vsel %vm686_vm5, %v632_v37, %v718_v42  ;;  %v1458_v37 = vld [vmem:[#allocation5 + $0x9e0] sm:$0xff]  ;;  %v1453_v42 = vld [vmem:[#allocation5 + $0x9b8] sm:$0xff]  ;;  %v1452_v44 = vld [vmem:[#allocation5 + $0x9b0] sm:$0xff] }
 0x201   :  { %v639_v48 = vpop.f32.mrf.mxu1  ;;  %1510 = vmatpush1.msra.mxu0 %v1458_v37  ;;  %v1451_v45 = vld [vmem:[#allocation5 + $0x9a8] sm:$0xff] }
 0x202   :  { %v640_v49 = vadd.f32 %v639_v48, %v7264_v17  ;;  %v751_v50 = vsel %vm687_vm4, %v634_v40, %v719_v47  ;;  %v720_v51 = vmul.f32 0.2, %v638_v46  ;;  %vm688_vm7 = vcmp.ge.f32.partialorder %v638_v46, 0.0  ;;  %v1455_v40 = vld [vmem:[#allocation5 + $0x9c8] sm:$0xff]  ;;  %1511 = vmatprep.subr.mxu0 %v1457_v38  ;;  %v1449_v47 = vld [vmem:[#allocation5 + $0x998] sm:$0xff]  ;;  %v1448_v48 = vld [vmem:[#allocation5 + $0x990] sm:$0xff] }
 0x203   :  { %v643_v52 = vpop.f32.mrf.mxu1  ;;  %963 = vmatprep.mubr.f32.mxu0 %v751_v50  ;;  %1512 = vmatpush1.msra.mxu0 %v1456_v39  ;;  %v1446_v50 = vld [vmem:[#allocation5 + $0x980] sm:$0xff] }
 0x204   :  { %v644_v54 = vadd.f32 %v643_v52, %v7261_v43  ;;  %964 = vmatmul.mubr.f32.gmra.mxu0 %v750_v53  ;;  %vm689_vm6 = vcmp.ge.f32.partialorder %v640_v49, 0.0  ;;  %v721_v55 = vmul.f32 0.2, %v640_v49  ;;  %v752_v62 = vsel %vm688_vm7, %v638_v46, %v720_v51  ;;  %1513 = vmatprep.subr.mxu0 %v1455_v40  ;;  %v1450_v46 = vld [vmem:[#allocation5 + $0x9a0] sm:$0xff]  ;;  %v1445_v51 = vld [vmem:[#allocation5 + $0x978] sm:$0xff]  ;;  %v1444_v52 = vld [vmem:[#allocation5 + $0x970] sm:$0xff] }
 0x205   :  { %v645_v56 = vpop.f32.mrf.mxu1  ;;  %1514 = vmatpush1.msra.mxu0 %v1454_v41  ;;  %v1443_v53 = vld [vmem:[#allocation5 + $0x968] sm:$0xff] }
 0x206   :  { %v646_v57 = vadd.f32 %v645_v56, %v7264_v17  ;;  %v753_v58 = vsel %vm689_vm6, %v640_v49, %v721_v55  ;;  %v722_v59 = vmul.f32 0.2, %v644_v54  ;;  %vm690_vm9 = vcmp.ge.f32.partialorder %v644_v54, 0.0  ;;  %1515 = vmatprep.subr.mxu0 %v1453_v42  ;;  %v1447_v49 = vld [vmem:[#allocation5 + $0x988] sm:$0xff]  ;;  %v1441_v55 = vld [vmem:[#allocation5 + $0x958] sm:$0xff]  ;;  %v1440_v56 = vld [vmem:[#allocation5 + $0x950] sm:$0xff] }
 0x207   :  { %v649_v60 = vpop.f32.mrf.mxu1  ;;  %969 = vmatprep.mubr.f32.mxu0 %v753_v58  ;;  %1516 = vmatpush1.msra.mxu0 %v1452_v44  ;;  %v1438_v58 = vld [vmem:[#allocation5 + $0x940] sm:$0xff] }
 0x208   :  { %v650_v63 = vadd.f32 %v649_v60, %v7261_v43  ;;  %970 = vmatmul.mubr.f32.gmra.mxu0 %v752_v62  ;;  %vm691_vm8 = vcmp.ge.f32.partialorder %v646_v57, 0.0  ;;  %v723_v1 = vmul.f32 0.2, %v646_v57  ;;  %v754_v9 = vsel %vm690_vm9, %v644_v54, %v722_v59  ;;  %1517 = vmatprep.subr.mxu0 %v1451_v45  ;;  %v1442_v54 = vld [vmem:[#allocation5 + $0x960] sm:$0xff]  ;;  %v1437_v59 = vld [vmem:[#allocation5 + $0x938] sm:$0xff]  ;;  %v1436_v60 = vld [vmem:[#allocation5 + $0x930] sm:$0xff] }
 0x209   :  { %v651_v4 = vpop.f32.mrf.mxu1  ;;  %1518 = vmatpush1.msra.mxu0 %v1450_v46  ;;  %v1435_v62 = vld [vmem:[#allocation5 + $0x928] sm:$0xff] }
 0x20a   :  { %v652_v5 = vadd.f32 %v651_v4, %v7264_v17  ;;  %v755_v6 = vsel %vm691_vm8, %v646_v57, %v723_v1  ;;  %v724_v7 = vmul.f32 0.2, %v650_v63  ;;  %vm692_vm11 = vcmp.ge.f32.partialorder %v650_v63, 0.0  ;;  %1519 = vmatprep.subr.mxu0 %v1449_v47  ;;  %v1439_v57 = vld [vmem:[#allocation5 + $0x948] sm:$0xff]  ;;  %v1433_v1 = vld [vmem:[#allocation5 + $0x918] sm:$0xff]  ;;  %v1432_v4 = vld [vmem:[#allocation5 + $0x910] sm:$0xff] }
 0x20b   :  { %v655_v8 = vpop.f32.mrf.mxu1  ;;  %975 = vmatprep.mubr.f32.mxu0 %v755_v6  ;;  %1520 = vmatpush1.msra.mxu0 %v1448_v48  ;;  %v1430_v6 = vld [vmem:[#allocation5 + $0x900] sm:$0xff] }
 0x20c   :  { %v656_v10 = vadd.f32 %v655_v8, %v7261_v43  ;;  %976 = vmatmul.mubr.f32.gmra.mxu0 %v754_v9  ;;  %vm693_vm10 = vcmp.ge.f32.partialorder %v652_v5, 0.0  ;;  %v725_v11 = vmul.f32 0.2, %v652_v5  ;;  %v756_v16 = vsel %vm692_vm11, %v650_v63, %v724_v7  ;;  %1521 = vmatprep.subr.mxu0 %v1447_v49  ;;  %v1434_v63 = vld [vmem:[#allocation5 + $0x920] sm:$0xff]  ;;  %v1493_v7 = vld [vmem:[#allocation5 + $0xaf8] sm:$0xff]  ;;  %v1492_v8 = vld [vmem:[#allocation5 + $0xaf0] sm:$0xff] }
 0x20d   :  { %v657_v12 = vpop.f32.mrf.mxu1  ;;  %1522 = vmatpush1.msra.mxu0 %v1446_v50  ;;  %v1491_v9 = vld [vmem:[#allocation5 + $0xae8] sm:$0xff] }
 0x20e   :  { %v658_v13 = vadd.f32 %v657_v12, %v7264_v17  ;;  %v757_v3 = vsel %vm693_vm10, %v652_v5, %v725_v11  ;;  %v726_v14 = vmul.f32 0.2, %v656_v10  ;;  %vm694_vm13 = vcmp.ge.f32.partialorder %v656_v10, 0.0  ;;  %1523 = vmatprep.subr.mxu0 %v1445_v51  ;;  %v1431_v5 = vld [vmem:[#allocation5 + $0x908] sm:$0xff]  ;;  %v1489_v11 = vld [vmem:[#allocation5 + $0xad8] sm:$0xff]  ;;  %v1488_v12 = vld [vmem:[#allocation5 + $0xad0] sm:$0xff] }
 0x20f   :  { %v661_v15 = vpop.f32.mrf.mxu1  ;;  %981 = vmatprep.mubr.f32.mxu0 %v757_v3  ;;  %1524 = vmatpush1.msra.mxu0 %v1444_v52  ;;  %v1486_v3 = vld [vmem:[#allocation5 + $0xac0] sm:$0xff] }
 0x210   :  { %v662_v18 = vadd.f32 %v661_v15, %v7261_v43  ;;  %982 = vmatmul.mubr.f32.gmra.mxu0 %v756_v16  ;;  %vm695_vm12 = vcmp.ge.f32.partialorder %v658_v13, 0.0  ;;  %v727_v19 = vmul.f32 0.2, %v658_v13  ;;  %v758_v24 = vsel %vm694_vm13, %v656_v10, %v726_v14  ;;  %v1135_v43 = vld [vmem:[#allocation5 + $0x838] sm:$0xff]  ;;  %1525 = vmatprep.subr.mxu0 %v1443_v53  ;;  %v1490_v10 = vld [vmem:[#allocation5 + $0xae0] sm:$0xff]  ;;  %v1484_v15 = vld [vmem:[#allocation5 + $0xab0] sm:$0xff] }
 0x211   :  { %v663_v20 = vpop.f32.mrf.mxu1  ;;  %1229 = vmatprep.subr.mxu1 %v1135_v43  ;;  %1526 = vmatpush1.msra.mxu0 %v1442_v54  ;;  %v1485_v14 = vld [vmem:[#allocation5 + $0xab8] sm:$0xff]  ;;  %v1483_v16 = vld [vmem:[#allocation5 + $0xaa8] sm:$0xff]  ;;  %v1472_v43 = vld [vmem:[#allocation5 + $0xa50] sm:$0xff] }
 0x212   :  { %v664_v21 = vadd.f32 %v663_v20, %v7264_v17  ;;  %v759_v22 = vsel %vm695_vm12, %v658_v13, %v727_v19  ;;  %v728_v23 = vmul.f32 0.2, %v662_v18  ;;  %vm696_vm15 = vcmp.ge.f32.partialorder %v662_v18, 0.0  ;;  %1230 = vmatpush2.msra.mxu1 %v1134_v28  ;;  %v1131_v17 = vld [vmem:[#allocation5 + $0x818] sm:$0xff]  ;;  %1527 = vmatprep.subr.mxu0 %v1441_v55  ;;  %v1487_v13 = vld [vmem:[#allocation5 + $0xac8] sm:$0xff]  ;;  %v1480_v20 = vld [vmem:[#allocation5 + $0xa90] sm:$0xff] }
 0x213   :  { %987 = vmatprep.mubr.f32.mxu0 %v759_v22  ;;  %1231 = vmatprep.subr.mxu1 %v1133_v29  ;;  %v1481_v19 = vld [vmem:[#allocation5 + $0xa98] sm:$0xff]  ;;  %v1478_v22 = vld [vmem:[#allocation5 + $0xa80] sm:$0xff]  ;;  %v1471_v28 = vld [vmem:[#allocation5 + $0xa48] sm:$0xff] }
 0x214   :  { %988 = vmatmul.mubr.f32.gmra.mxu0 %v758_v24  ;;  %vm697_vm14 = vcmp.ge.f32.partialorder %v664_v21, 0.0  ;;  %v729_v25 = vmul.f32 0.2, %v664_v21  ;;  %v760_v27 = vsel %vm696_vm15, %v662_v18, %v728_v23  ;;  %1232 = vmatpush2.msra.mxu1 %v1132_v30  ;;  %v1482_v18 = vld [vmem:[#allocation5 + $0xaa0] sm:$0xff]  ;;  %v1477_v23 = vld [vmem:[#allocation5 + $0xa78] sm:$0xff]  ;;  %v1476_v24 = vld [vmem:[#allocation5 + $0xa70] sm:$0xff] }
 0x215   :  { %1233 = vmatprep.subr.mxu1 %v1131_v17  ;;  %1528 = vmatpush1.msra.mxu0 %v1440_v56  ;;  %v827_v29 = vld [vmem:[#allocation7 + $0x12] ss:$8 sm:$0x3]  ;;  %v1470_v30 = vld [vmem:[#allocation5 + $0xa40] sm:$0xff] }
 0x216   :  { %v761_v26 = vsel %vm697_vm14, %v664_v21, %v729_v25  ;;  %1234 = vmatpush2.msra.mxu1 %v1130_v31  ;;  %1529 = vmatprep.subr.mxu0 %v1439_v57  ;;  %v1479_v21 = vld [vmem:[#allocation5 + $0xa88] sm:$0xff]  ;;  %v7299_v17 = vrot.slane %v827_v29, %v7218_v61  ;;  %v7302_v31 = vrot.slane %v827_v29, %v7220_v2 }
 0x217   :  { %993 = vmatprep.mubr.f32.mxu0 %v761_v26  ;;  %1235 = vmatprep.subr.mxu1 %v1129_v32  ;;  %v1475_v25 = vld [vmem:[#allocation5 + $0xa68] sm:$0xff]  ;;  %v1474_v26 = vld [vmem:[#allocation5 + $0xa60] sm:$0xff] }
 0x218   :  { %994 = vmatmul.mubr.f32.gmra.mxu0 %v760_v27  ;;  %1236 = vmatpush2.msra.mxu1 %v1128_v33  ;;  %v1473_v27 = vld [vmem:[#allocation5 + $0xa58] sm:$0xff] }
 0x219   :  { %1530 = vmatpush1.msra.mxu0 %v1438_v58 }
 0x21a   :  { %1531 = vmatprep.subr.mxu0 %v1437_v59 }
 0x21b   :  { %1532 = vmatpush1.msra.mxu0 %v1436_v60 }
 0x21c   :  { %1533 = vmatprep.subr.mxu0 %v1435_v62 }
 0x21d   :  { %1534 = vmatpush1.msra.mxu0 %v1434_v63 }
 0x21e   :  { %1535 = vmatprep.subr.mxu0 %v1433_v1 }
 0x21f   :  { %1536 = vmatpush1.msra.mxu0 %v1432_v4 }
 0x220   :  { %1537 = vmatprep.subr.mxu0 %v1431_v5 }
 0x221   :  { %1538 = vmatpush1.msra.mxu0 %v1430_v6 }
 0x222   :  { %1539 = vmatprep.subr.mxu0 %v1493_v7 }
 0x223   :  { %1540 = vmatpush2.msra.mxu0 %v1492_v8 }
 0x224   :  { %1541 = vmatprep.subr.mxu0 %v1491_v9 }
 0x225   :  { %1542 = vmatpush2.msra.mxu0 %v1490_v10 }
 0x226   :  { %1543 = vmatprep.subr.mxu0 %v1489_v11 }
 0x227   :  { %1544 = vmatpush2.msra.mxu0 %v1488_v12 }
 0x228   :  { %1545 = vmatprep.subr.mxu0 %v1487_v13 }
 0x229   :  { %1546 = vmatpush2.msra.mxu0 %v1486_v3 }
 0x22a   :  { %1547 = vmatprep.subr.mxu0 %v1485_v14 }
 0x22b   :  { %1548 = vmatpush2.msra.mxu0 %v1484_v15 }
 0x22c   :  { %1549 = vmatprep.subr.mxu0 %v1483_v16 }
 0x22d   :  { %1550 = vmatpush2.msra.mxu0 %v1482_v18 }
 0x22e   :  { %1551 = vmatprep.subr.mxu0 %v1481_v19 }
 0x22f   :  { %1552 = vmatpush2.msra.mxu0 %v1480_v20 }
 0x230   :  { %1553 = vmatprep.subr.mxu0 %v1479_v21 }
 0x231   :  { %1554 = vmatpush2.msra.mxu0 %v1478_v22 }
 0x232   :  { %1555 = vmatprep.subr.mxu0 %v1477_v23 }
 0x233   :  { %1556 = vmatpush2.msra.mxu0 %v1476_v24 }
 0x234   :  { %1557 = vmatprep.subr.mxu0 %v1475_v25 }
 0x235   :  { %1558 = vmatpush2.msra.mxu0 %v1474_v26 }
 0x236   :  { %1559 = vmatprep.subr.mxu0 %v1473_v27 }
 0x237   :  { %1560 = vmatpush2.msra.mxu0 %v1472_v43 }
 0x238   :  { %1561 = vmatprep.subr.mxu0 %v1471_v28 }
 0x239   :  { %1562 = vmatpush2.msra.mxu0 %v1470_v30 }
 0x29c   :  { %v905_v32 = vpop.f32.mrf.mxu0 }
 0x29d   :  { %v906_v33 = vadd.f32 %v905_v32, %v7299_v17 }
 0x29e   :  { %v907_v34 = vpop.f32.mrf.mxu0 }
 0x29f   :  { %v908_v35 = vadd.f32 %v907_v34, %v7302_v31  ;;  %v1032_v36 = vmul.f32 0.2, %v906_v33  ;;  %vm1000_vm0 = vcmp.ge.f32.partialorder %v906_v33, 0.0 }
 0x2a0   :  { %v911_v37 = vpop.f32.mrf.mxu0 }
 0x2a1   :  { %v912_v38 = vadd.f32 %v911_v37, %v7299_v17  ;;  %vm1001_vm1 = vcmp.ge.f32.partialorder %v908_v35, 0.0  ;;  %v1033_v39 = vmul.f32 0.2, %v908_v35  ;;  %v1064_v44 = vsel %vm1000_vm0, %v906_v33, %v1032_v36 }
 0x2a2   :  { %v913_v40 = vpop.f32.mrf.mxu0 }
 0x2a3   :  { %v914_v41 = vadd.f32 %v913_v40, %v7302_v31  ;;  %v1065_v42 = vsel %vm1001_vm1, %v908_v35, %v1033_v39  ;;  %v1034_v45 = vmul.f32 0.2, %v912_v38  ;;  %vm1002_vm3 = vcmp.ge.f32.partialorder %v912_v38, 0.0 }
 0x2a4   :  { %v917_v46 = vpop.f32.mrf.mxu0  ;;  %1237 = vmatprep.mubr.f32.mxu1 %v1065_v42 }
 0x2a5   :  { %v918_v47 = vadd.f32 %v917_v46, %v7299_v17  ;;  %1238 = vmatmul.mubr.f32.vlgmr.msra.gmra.mxu1 %v1064_v44  ;;  %vm1003_vm2 = vcmp.ge.f32.partialorder %v914_v41, 0.0  ;;  %v1035_v48 = vmul.f32 0.2, %v914_v41  ;;  %v1066_v54 = vsel %vm1002_vm3, %v912_v38, %v1034_v45 }
 0x2a6   :  { %v919_v49 = vpop.f32.mrf.mxu0 }
 0x2a7   :  { %v920_v50 = vadd.f32 %v919_v49, %v7302_v31  ;;  %v1067_v51 = vsel %vm1003_vm2, %v914_v41, %v1035_v48  ;;  %v1036_v52 = vmul.f32 0.2, %v918_v47  ;;  %vm1004_vm5 = vcmp.ge.f32.partialorder %v918_v47, 0.0 }
 0x2a8   :  { %v923_v53 = vpop.f32.mrf.mxu0  ;;  %1243 = vmatprep.mubr.f32.mxu1 %v1067_v51 }
 0x2a9   :  { %v924_v55 = vadd.f32 %v923_v53, %v7299_v17  ;;  %1244 = vmatmul.mubr.f32.gmra.mxu1 %v1066_v54  ;;  %vm1005_vm4 = vcmp.ge.f32.partialorder %v920_v50, 0.0  ;;  %v1037_v56 = vmul.f32 0.2, %v920_v50  ;;  %v1068_v63 = vsel %vm1004_vm5, %v918_v47, %v1036_v52 }
 0x2aa   :  { %v925_v57 = vpop.f32.mrf.mxu0 }
 0x2ab   :  { %v926_v58 = vadd.f32 %v925_v57, %v7302_v31  ;;  %v1069_v59 = vsel %vm1005_vm4, %v920_v50, %v1037_v56  ;;  %v1038_v60 = vmul.f32 0.2, %v924_v55  ;;  %vm1006_vm7 = vcmp.ge.f32.partialorder %v924_v55, 0.0 }
 0x2ac   :  { %v929_v62 = vpop.f32.mrf.mxu0  ;;  %1249 = vmatprep.mubr.f32.mxu1 %v1069_v59 }
 0x2ad   :  { %v930_v1 = vadd.f32 %v929_v62, %v7299_v17  ;;  %1250 = vmatmul.mubr.f32.gmra.mxu1 %v1068_v63  ;;  %vm1007_vm6 = vcmp.ge.f32.partialorder %v926_v58, 0.0  ;;  %v1039_v4 = vmul.f32 0.2, %v926_v58  ;;  %v1070_v10 = vsel %vm1006_vm7, %v924_v55, %v1038_v60 }
 0x2ae   :  { %v931_v5 = vpop.f32.mrf.mxu0 }
 0x2af   :  { %v932_v6 = vadd.f32 %v931_v5, %v7302_v31  ;;  %v1071_v7 = vsel %vm1007_vm6, %v926_v58, %v1039_v4  ;;  %v1040_v8 = vmul.f32 0.2, %v930_v1  ;;  %vm1008_vm9 = vcmp.ge.f32.partialorder %v930_v1, 0.0 }
 0x2b0   :  { %v935_v9 = vpop.f32.mrf.mxu0  ;;  %1255 = vmatprep.mubr.f32.mxu1 %v1071_v7 }
 0x2b1   :  { %v936_v11 = vadd.f32 %v935_v9, %v7299_v17  ;;  %1256 = vmatmul.mubr.f32.gmra.mxu1 %v1070_v10  ;;  %vm1009_vm8 = vcmp.ge.f32.partialorder %v932_v6, 0.0  ;;  %v1041_v12 = vmul.f32 0.2, %v932_v6  ;;  %v1072_v18 = vsel %vm1008_vm9, %v930_v1, %v1040_v8 }
 0x2b2   :  { %v937_v13 = vpop.f32.mrf.mxu0 }
 0x2b3   :  { %v938_v3 = vadd.f32 %v937_v13, %v7302_v31  ;;  %v1073_v14 = vsel %vm1009_vm8, %v932_v6, %v1041_v12  ;;  %v1042_v15 = vmul.f32 0.2, %v936_v11  ;;  %vm1010_vm11 = vcmp.ge.f32.partialorder %v936_v11, 0.0 }
 0x2b4   :  { %v941_v16 = vpop.f32.mrf.mxu0  ;;  %1261 = vmatprep.mubr.f32.mxu1 %v1073_v14 }
 0x2b5   :  { %v942_v19 = vadd.f32 %v941_v16, %v7299_v17  ;;  %1262 = vmatmul.mubr.f32.gmra.mxu1 %v1072_v18  ;;  %vm1011_vm10 = vcmp.ge.f32.partialorder %v938_v3, 0.0  ;;  %v1043_v20 = vmul.f32 0.2, %v938_v3  ;;  %v1074_v26 = vsel %vm1010_vm11, %v936_v11, %v1042_v15 }
 0x2b6   :  { %v943_v21 = vpop.f32.mrf.mxu0 }
 0x2b7   :  { %v944_v22 = vadd.f32 %v943_v21, %v7302_v31  ;;  %v1075_v23 = vsel %vm1011_vm10, %v938_v3, %v1043_v20  ;;  %v1044_v24 = vmul.f32 0.2, %v942_v19  ;;  %vm1012_vm13 = vcmp.ge.f32.partialorder %v942_v19, 0.0 }
 0x2b8   :  { %v947_v25 = vpop.f32.mrf.mxu0  ;;  %1267 = vmatprep.mubr.f32.mxu1 %v1075_v23 }
 0x2b9   :  { %v948_v27 = vadd.f32 %v947_v25, %v7299_v17  ;;  %1268 = vmatmul.mubr.f32.gmra.mxu1 %v1074_v26  ;;  %vm1013_vm12 = vcmp.ge.f32.partialorder %v944_v22, 0.0  ;;  %v1045_v43 = vmul.f32 0.2, %v944_v22  ;;  %v1076_v34 = vsel %vm1012_vm13, %v942_v19, %v1044_v24 }
 0x2ba   :  { %v949_v28 = vpop.f32.mrf.mxu0 }
 0x2bb   :  { %v950_v29 = vadd.f32 %v949_v28, %v7302_v31  ;;  %v1077_v30 = vsel %vm1013_vm12, %v944_v22, %v1045_v43  ;;  %v1046_v32 = vmul.f32 0.2, %v948_v27  ;;  %vm1014_vm15 = vcmp.ge.f32.partialorder %v948_v27, 0.0 }
 0x2bc   :  { %v953_v33 = vpop.f32.mrf.mxu0  ;;  %1273 = vmatprep.mubr.f32.mxu1 %v1077_v30 }
 0x2bd   :  { %v954_v35 = vadd.f32 %v953_v33, %v7299_v17  ;;  %1274 = vmatmul.mubr.f32.gmra.mxu1 %v1076_v34  ;;  %vm1015_vm14 = vcmp.ge.f32.partialorder %v950_v29, 0.0  ;;  %v1047_v36 = vmul.f32 0.2, %v950_v29  ;;  %v1078_v42 = vsel %vm1014_vm15, %v948_v27, %v1046_v32 }
 0x2be   :  { %v955_v37 = vpop.f32.mrf.mxu0 }
 0x2bf   :  { %v956_v38 = vadd.f32 %v955_v37, %v7302_v31  ;;  %v1079_v39 = vsel %vm1015_vm14, %v950_v29, %v1047_v36  ;;  %v1048_v40 = vmul.f32 0.2, %v954_v35  ;;  %vm1016_vm1 = vcmp.ge.f32.partialorder %v954_v35, 0.0 }
 0x2c0   :  { %v959_v41 = vpop.f32.mrf.mxu0  ;;  %1279 = vmatprep.mubr.f32.mxu1 %v1079_v39 }
 0x2c1   :  { %v960_v44 = vadd.f32 %v959_v41, %v7299_v17  ;;  %1280 = vmatmul.mubr.f32.gmra.mxu1 %v1078_v42  ;;  %vm1017_vm0 = vcmp.ge.f32.partialorder %v956_v38, 0.0  ;;  %v1049_v45 = vmul.f32 0.2, %v956_v38  ;;  %v1080_v51 = vsel %vm1016_vm1, %v954_v35, %v1048_v40  ;;  %v1468_v42 = vld [vmem:[#allocation5 + $0xa30] sm:$0xff] }
 0x2c2   :  { %v961_v46 = vpop.f32.mrf.mxu0 }
 0x2c3   :  { %v962_v47 = vadd.f32 %v961_v46, %v7302_v31  ;;  %v1081_v48 = vsel %vm1017_vm0, %v956_v38, %v1049_v45  ;;  %v1050_v49 = vmul.f32 0.2, %v960_v44  ;;  %vm1018_vm3 = vcmp.ge.f32.partialorder %v960_v44, 0.0  ;;  %v1466_v45 = vld [vmem:[#allocation5 + $0xa20] sm:$0xff]  ;;  %v1464_v46 = vld [vmem:[#allocation5 + $0xa10] sm:$0xff] }
 0x2c4   :  { %v965_v50 = vpop.f32.mrf.mxu0  ;;  %1285 = vmatprep.mubr.f32.mxu1 %v1081_v48  ;;  %v1462_v48 = vld [vmem:[#allocation5 + $0xa00] sm:$0xff] }
 0x2c5   :  { %v966_v52 = vadd.f32 %v965_v50, %v7299_v17  ;;  %1286 = vmatmul.mubr.f32.gmra.mxu1 %v1080_v51  ;;  %vm1019_vm2 = vcmp.ge.f32.partialorder %v962_v47, 0.0  ;;  %v1051_v53 = vmul.f32 0.2, %v962_v47  ;;  %v1082_v59 = vsel %vm1018_vm3, %v960_v44, %v1050_v49  ;;  %v1467_v44 = vld [vmem:[#allocation5 + $0xa28] sm:$0xff]  ;;  %v143_v49 = vld [vmem:[#allocation5 + $0x1cf0] sm:$0xff]  ;;  %v142_v51 = vld [vmem:[#allocation5 + $0x1ce0] sm:$0xff] }
 0x2c6   :  { %v967_v54 = vpop.f32.mrf.mxu0  ;;  %v127_v50 = vld [vmem:[#allocation5 + $0x1bf0] sm:$0xff]  ;;  %6542 = vmatprep.subr.mxu1 %v143_v49 }
 0x2c7   :  { %v968_v55 = vadd.f32 %v967_v54, %v7302_v31  ;;  %v1083_v56 = vsel %vm1019_vm2, %v962_v47, %v1051_v53  ;;  %v1052_v57 = vmul.f32 0.2, %v966_v52  ;;  %vm1020_vm5 = vcmp.ge.f32.partialorder %v966_v52, 0.0  ;;  %v1463_v47 = vld [vmem:[#allocation5 + $0xa08] sm:$0xff]  ;;  %6543 = vmatpush3.msra.mxu1 %v127_v50  ;;  %v141_v53 = vld [vmem:[#allocation5 + $0x1cd0] sm:$0xff] }
 0x2c8   :  { %v971_v58 = vpop.f32.mrf.mxu0  ;;  %1291 = vmatprep.mubr.f32.mxu1 %v1083_v56  ;;  %6544 = vmatprep.subr.mxu1 %v142_v51  ;;  %v125_v54 = vld [vmem:[#allocation5 + $0x1bd0] sm:$0xff]  ;;  %v124_v56 = vld [vmem:[#allocation5 + $0x1bc0] sm:$0xff] }
 0x2c9   :  { %v972_v60 = vadd.f32 %v971_v58, %v7299_v17  ;;  %1292 = vmatmul.mubr.f32.gmra.mxu1 %v1082_v59  ;;  %vm1021_vm4 = vcmp.ge.f32.partialorder %v968_v55, 0.0  ;;  %v1053_v62 = vmul.f32 0.2, %v968_v55  ;;  %v1084_v7 = vsel %vm1020_vm5, %v966_v52, %v1052_v57  ;;  %v126_v52 = vld [vmem:[#allocation5 + $0x1be0] sm:$0xff]  ;;  %v139_v57 = vld [vmem:[#allocation5 + $0x1cb0] sm:$0xff] }
 0x2ca   :  { %v973_v63 = vpop.f32.mrf.mxu0  ;;  %6545 = vmatpush3.msra.mxu1 %v126_v52  ;;  %v123_v58 = vld [vmem:[#allocation5 + $0x1bb0] sm:$0xff]  ;;  %v138_v59 = vld [vmem:[#allocation5 + $0x1ca0] sm:$0xff] }
 0x2cb   :  { %v974_v1 = vadd.f32 %v973_v63, %v7302_v31  ;;  %v1085_v4 = vsel %vm1021_vm4, %v968_v55, %v1053_v62  ;;  %v1054_v5 = vmul.f32 0.2, %v972_v60  ;;  %vm1022_vm7 = vcmp.ge.f32.partialorder %v972_v60, 0.0  ;;  %v140_v55 = vld [vmem:[#allocation5 + $0x1cc0] sm:$0xff]  ;;  %6546 = vmatprep.subr.mxu1 %v141_v53  ;;  %v137_v62 = vld [vmem:[#allocation5 + $0x1c90] sm:$0xff] }
 0x2cc   :  { %v977_v6 = vpop.f32.mrf.mxu0  ;;  %1297 = vmatprep.mubr.f32.mxu1 %v1085_v4  ;;  %6547 = vmatpush3.msra.mxu1 %v125_v54  ;;  %v121_v63 = vld [vmem:[#allocation5 + $0x1b90] sm:$0xff]  ;;  %v120_v4 = vld [vmem:[#allocation5 + $0x1b80] sm:$0xff] }
 0x2cd   :  { %v978_v8 = vadd.f32 %v977_v6, %v7299_v17  ;;  %1298 = vmatmul.mubr.f32.gmra.mxu1 %v1084_v7  ;;  %vm1023_vm6 = vcmp.ge.f32.partialorder %v974_v1, 0.0  ;;  %v1055_v9 = vmul.f32 0.2, %v974_v1  ;;  %v1086_v14 = vsel %vm1022_vm7, %v972_v60, %v1054_v5  ;;  %6548 = vmatprep.subr.mxu1 %v140_v55  ;;  %v122_v60 = vld [vmem:[#allocation5 + $0x1ba0] sm:$0xff]  ;;  %v135_v5 = vld [vmem:[#allocation5 + $0x1c70] sm:$0xff] }
 0x2ce   :  { %v979_v10 = vpop.f32.mrf.mxu0  ;;  %6549 = vmatpush3.msra.mxu1 %v124_v56  ;;  %v119_v6 = vld [vmem:[#allocation5 + $0x1b70] sm:$0xff]  ;;  %v134_v7 = vld [vmem:[#allocation5 + $0x1c60] sm:$0xff] }
 0x2cf   :  { %v980_v11 = vadd.f32 %v979_v10, %v7302_v31  ;;  %v1087_v12 = vsel %vm1023_vm6, %v974_v1, %v1055_v9  ;;  %v1056_v13 = vmul.f32 0.2, %v978_v8  ;;  %vm1024_vm9 = vcmp.ge.f32.partialorder %v978_v8, 0.0  ;;  %6550 = vmatprep.subr.mxu1 %v139_v57  ;;  %v136_v1 = vld [vmem:[#allocation5 + $0x1c80] sm:$0xff]  ;;  %v133_v9 = vld [vmem:[#allocation5 + $0x1c50] sm:$0xff] }
 0x2d0   :  { %v983_v3 = vpop.f32.mrf.mxu0  ;;  %1303 = vmatprep.mubr.f32.mxu1 %v1087_v12  ;;  %6551 = vmatpush3.msra.mxu1 %v123_v58  ;;  %v117_v10 = vld [vmem:[#allocation5 + $0x1b50] sm:$0xff]  ;;  %v116_v12 = vld [vmem:[#allocation5 + $0x1b40] sm:$0xff] }
 0x2d1   :  { %v984_v15 = vadd.f32 %v983_v3, %v7299_v17  ;;  %1304 = vmatmul.mubr.f32.gmra.mxu1 %v1086_v14  ;;  %vm1025_vm8 = vcmp.ge.f32.partialorder %v980_v11, 0.0  ;;  %v1057_v16 = vmul.f32 0.2, %v980_v11  ;;  %v1088_v23 = vsel %vm1024_vm9, %v978_v8, %v1056_v13  ;;  %6552 = vmatprep.subr.mxu1 %v138_v59  ;;  %v118_v8 = vld [vmem:[#allocation5 + $0x1b60] sm:$0xff]  ;;  %v131_v13 = vld [vmem:[#allocation5 + $0x1c30] sm:$0xff] }
 0x2d2   :  { %v985_v18 = vpop.f32.mrf.mxu0  ;;  %6553 = vmatpush3.msra.mxu1 %v122_v60  ;;  %v115_v3 = vld [vmem:[#allocation5 + $0x1b30] sm:$0xff]  ;;  %v130_v14 = vld [vmem:[#allocation5 + $0x1c20] sm:$0xff] }
 0x2d3   :  { %v986_v19 = vadd.f32 %v985_v18, %v7302_v31  ;;  %v1089_v20 = vsel %vm1025_vm8, %v980_v11, %v1057_v16  ;;  %v1058_v21 = vmul.f32 0.2, %v984_v15  ;;  %vm1026_vm11 = vcmp.ge.f32.partialorder %v984_v15, 0.0  ;;  %6554 = vmatprep.subr.mxu1 %v137_v62  ;;  %v132_v11 = vld [vmem:[#allocation5 + $0x1c40] sm:$0xff] }
 0x2d4   :  { %v989_v22 = vpop.f32.mrf.mxu0  ;;  %1309 = vmatprep.mubr.f32.mxu1 %v1089_v20  ;;  %6555 = vmatpush3.msra.mxu1 %v121_v63  ;;  %v1161_v16 = vld [vmem:[#allocation7 + $0x13] ss:$8 sm:$0x3] }
 0x2d5   :  { %v990_v24 = vadd.f32 %v989_v22, %v7299_v17  ;;  %1310 = vmatmul.mubr.f32.gmra.mxu1 %v1088_v23  ;;  %vm1027_vm10 = vcmp.ge.f32.partialorder %v986_v19, 0.0  ;;  %v1059_v25 = vmul.f32 0.2, %v986_v19  ;;  %v1090_v30 = vsel %vm1026_vm11, %v984_v15, %v1058_v21  ;;  %6556 = vmatprep.subr.mxu1 %v136_v1  ;;  %v114_v15 = vld [vmem:[#allocation5 + $0x1b20] sm:$0xff] }
 0x2d6   :  { %v991_v26 = vpop.f32.mrf.mxu0  ;;  %6557 = vmatpush3.msra.mxu1 %v120_v4  ;;  %v7337_v18 = vrot.slane %v1161_v16, %v7218_v61 }
 0x2d7   :  { %v992_v27 = vadd.f32 %v991_v26, %v7302_v31  ;;  %v1091_v43 = vsel %vm1027_vm10, %v986_v19, %v1059_v25  ;;  %v1060_v28 = vmul.f32 0.2, %v990_v24  ;;  %vm1028_vm13 = vcmp.ge.f32.partialorder %v990_v24, 0.0  ;;  %6558 = vmatprep.subr.mxu1 %v135_v5 }
 0x2d8   :  { %v995_v29 = vpop.f32.mrf.mxu0  ;;  %1315 = vmatprep.mubr.f32.mxu1 %v1091_v43  ;;  %6559 = vmatpush3.msra.mxu1 %v119_v6  ;;  %v7340_v19 = vrot.slane %v1161_v16, %v7220_v2 }
 0x2d9   :  { %v996_v32 = vadd.f32 %v995_v29, %v7299_v17  ;;  %1316 = vmatmul.mubr.f32.gmra.mxu1 %v1090_v30  ;;  %vm1029_vm12 = vcmp.ge.f32.partialorder %v992_v27, 0.0  ;;  %v1061_v33 = vmul.f32 0.2, %v992_v27  ;;  %v1092_v38 = vsel %vm1028_vm13, %v990_v24, %v1060_v28  ;;  %v1469_v17 = vld [vmem:[#allocation5 + $0xa38] sm:$0xff]  ;;  %6560 = vmatprep.subr.mxu1 %v134_v7 }
 0x2da   :  { %v997_v34 = vpop.f32.mrf.mxu0  ;;  %1563 = vmatprep.subr.mxu0 %v1469_v17  ;;  %6561 = vmatpush3.msra.mxu1 %v118_v8 }
 0x2db   :  { %v998_v35 = vadd.f32 %v997_v34, %v7302_v31  ;;  %v1093_v36 = vsel %vm1029_vm12, %v992_v27, %v1061_v33  ;;  %v1062_v37 = vmul.f32 0.2, %v996_v32  ;;  %vm1030_vm15 = vcmp.ge.f32.partialorder %v996_v32, 0.0  ;;  %1564 = vmatpush2.msra.mxu0 %v1468_v42  ;;  %v1465_v31 = vld [vmem:[#allocation5 + $0xa18] sm:$0xff]  ;;  %6562 = vmatprep.subr.mxu1 %v133_v9 }
 0x2dc   :  { %1321 = vmatprep.mubr.f32.mxu1 %v1093_v36  ;;  %1565 = vmatprep.subr.mxu0 %v1467_v44 }
 0x2dd   :  { %1322 = vmatmul.mubr.f32.gmra.mxu1 %v1092_v38  ;;  %vm1031_vm14 = vcmp.ge.f32.partialorder %v998_v35, 0.0  ;;  %v1063_v39 = vmul.f32 0.2, %v998_v35  ;;  %v1094_v41 = vsel %vm1030_vm15, %v996_v32, %v1062_v37  ;;  %1566 = vmatpush2.msra.mxu0 %v1466_v45 }
 0x2de   :  { %1567 = vmatprep.subr.mxu0 %v1465_v31  ;;  %6563 = vmatpush3.msra.mxu1 %v117_v10 }
 0x2df   :  { %v1095_v40 = vsel %vm1031_vm14, %v998_v35, %v1063_v39  ;;  %1568 = vmatpush2.msra.mxu0 %v1464_v46  ;;  %6564 = vmatprep.subr.mxu1 %v132_v11 }
 0x2e0   :  { %1327 = vmatprep.mubr.f32.mxu1 %v1095_v40  ;;  %1569 = vmatprep.subr.mxu0 %v1463_v47 }
 0x2e1   :  { %1328 = vmatmul.mubr.f32.gmra.mxu1 %v1094_v41  ;;  %1570 = vmatpush2.msra.mxu0 %v1462_v48 }
 0x2e2   :  { %6565 = vmatpush3.msra.mxu1 %v116_v12 }
 0x2e3   :  { %6566 = vmatprep.subr.mxu1 %v131_v13 }
 0x2e4   :  { %6567 = vmatpush3.msra.mxu1 %v115_v3 }
 0x2e5   :  { %6568 = vmatprep.subr.mxu1 %v130_v14 }
 0x2e6   :  { %6569 = vmatpush3.msra.mxu1 %v114_v15 }
 0x365   :  { %v1239_v20 = vpop.f32.mrf.mxu1 }
 0x366   :  { %v1240_v21 = vadd.f32 %v1239_v20, %v7337_v18 }
 0x367   :  { %v1241_v22 = vpop.f32.mrf.mxu1 }
 0x368   :  { %v1242_v23 = vadd.f32 %v1241_v22, %v7340_v19  ;;  %v1366_v24 = vmul.f32 0.2, %v1240_v21  ;;  %vm1334_vm0 = vcmp.ge.f32.partialorder %v1240_v21, 0.0 }
 0x369   :  { %v1245_v25 = vpop.f32.mrf.mxu1 }
 0x36a   :  { %v1246_v26 = vadd.f32 %v1245_v25, %v7337_v18  ;;  %vm1335_vm1 = vcmp.ge.f32.partialorder %v1242_v23, 0.0  ;;  %v1367_v27 = vmul.f32 0.2, %v1242_v23  ;;  %v1398_v30 = vsel %vm1334_vm0, %v1240_v21, %v1366_v24 }
 0x36b   :  { %v1247_v43 = vpop.f32.mrf.mxu1 }
 0x36c   :  { %v1248_v28 = vadd.f32 %v1247_v43, %v7340_v19  ;;  %v1399_v29 = vsel %vm1335_vm1, %v1242_v23, %v1367_v27  ;;  %v1368_v32 = vmul.f32 0.2, %v1246_v26  ;;  %vm1336_vm3 = vcmp.ge.f32.partialorder %v1246_v26, 0.0 }
 0x36d   :  { %v1251_v33 = vpop.f32.mrf.mxu1  ;;  %1571 = vmatprep.mubr.f32.mxu0 %v1399_v29 }
 0x36e   :  { %v1252_v34 = vadd.f32 %v1251_v33, %v7337_v18  ;;  %1572 = vmatmul.mubr.f32.vlgmr.msra.gmra.mxu0 %v1398_v30  ;;  %vm1337_vm2 = vcmp.ge.f32.partialorder %v1248_v28, 0.0  ;;  %v1369_v35 = vmul.f32 0.2, %v1248_v28  ;;  %v1400_v41 = vsel %vm1336_vm3, %v1246_v26, %v1368_v32 }
 0x36f   :  { %v1253_v36 = vpop.f32.mrf.mxu1 }
 0x370   :  { %v1254_v37 = vadd.f32 %v1253_v36, %v7340_v19  ;;  %v1401_v38 = vsel %vm1337_vm2, %v1248_v28, %v1369_v35  ;;  %v1370_v39 = vmul.f32 0.2, %v1252_v34  ;;  %vm1338_vm5 = vcmp.ge.f32.partialorder %v1252_v34, 0.0 }
 0x371   :  { %v1257_v40 = vpop.f32.mrf.mxu1  ;;  %1577 = vmatprep.mubr.f32.mxu0 %v1401_v38 }
 0x372   :  { %v1258_v17 = vadd.f32 %v1257_v40, %v7337_v18  ;;  %1578 = vmatmul.mubr.f32.gmra.mxu0 %v1400_v41  ;;  %vm1339_vm4 = vcmp.ge.f32.partialorder %v1254_v37, 0.0  ;;  %v1371_v42 = vmul.f32 0.2, %v1254_v37  ;;  %v1402_v48 = vsel %vm1338_vm5, %v1252_v34, %v1370_v39 }
 0x373   :  { %v1259_v44 = vpop.f32.mrf.mxu1 }
 0x374   :  { %v1260_v45 = vadd.f32 %v1259_v44, %v7340_v19  ;;  %v1403_v31 = vsel %vm1339_vm4, %v1254_v37, %v1371_v42  ;;  %v1372_v46 = vmul.f32 0.2, %v1258_v17  ;;  %vm1340_vm7 = vcmp.ge.f32.partialorder %v1258_v17, 0.0 }
 0x375   :  { %v1263_v47 = vpop.f32.mrf.mxu1  ;;  %1583 = vmatprep.mubr.f32.mxu0 %v1403_v31 }
 0x376   :  { %v1264_v49 = vadd.f32 %v1263_v47, %v7337_v18  ;;  %1584 = vmatmul.mubr.f32.gmra.mxu0 %v1402_v48  ;;  %vm1341_vm6 = vcmp.ge.f32.partialorder %v1260_v45, 0.0  ;;  %v1373_v50 = vmul.f32 0.2, %v1260_v45  ;;  %v1404_v56 = vsel %vm1340_vm7, %v1258_v17, %v1372_v46 }
 0x377   :  { %v1265_v51 = vpop.f32.mrf.mxu1 }
 0x378   :  { %v1266_v52 = vadd.f32 %v1265_v51, %v7340_v19  ;;  %v1405_v53 = vsel %vm1341_vm6, %v1260_v45, %v1373_v50  ;;  %v1374_v54 = vmul.f32 0.2, %v1264_v49  ;;  %vm1342_vm9 = vcmp.ge.f32.partialorder %v1264_v49, 0.0 }
 0x379   :  { %v1269_v55 = vpop.f32.mrf.mxu1  ;;  %1589 = vmatprep.mubr.f32.mxu0 %v1405_v53 }
 0x37a   :  { %v1270_v57 = vadd.f32 %v1269_v55, %v7337_v18  ;;  %1590 = vmatmul.mubr.f32.gmra.mxu0 %v1404_v56  ;;  %vm1343_vm8 = vcmp.ge.f32.partialorder %v1266_v52, 0.0  ;;  %v1375_v58 = vmul.f32 0.2, %v1266_v52  ;;  %v1406_v4 = vsel %vm1342_vm9, %v1264_v49, %v1374_v54 }
 0x37b   :  { %v1271_v59 = vpop.f32.mrf.mxu1 }
 0x37c   :  { %v1272_v60 = vadd.f32 %v1271_v59, %v7340_v19  ;;  %v1407_v62 = vsel %vm1343_vm8, %v1266_v52, %v1375_v58  ;;  %v1376_v63 = vmul.f32 0.2, %v1270_v57  ;;  %vm1344_vm11 = vcmp.ge.f32.partialorder %v1270_v57, 0.0 }
 0x37d   :  { %v1275_v1 = vpop.f32.mrf.mxu1  ;;  %1595 = vmatprep.mubr.f32.mxu0 %v1407_v62 }
 0x37e   :  { %v1276_v5 = vadd.f32 %v1275_v1, %v7337_v18  ;;  %1596 = vmatmul.mubr.f32.gmra.mxu0 %v1406_v4  ;;  %vm1345_vm10 = vcmp.ge.f32.partialorder %v1272_v60, 0.0  ;;  %v1377_v6 = vmul.f32 0.2, %v1272_v60  ;;  %v1408_v12 = vsel %vm1344_vm11, %v1270_v57, %v1376_v63 }
 0x37f   :  { %v1277_v7 = vpop.f32.mrf.mxu1 }
 0x380   :  { %v1278_v8 = vadd.f32 %v1277_v7, %v7340_v19  ;;  %v1409_v9 = vsel %vm1345_vm10, %v1272_v60, %v1377_v6  ;;  %v1378_v10 = vmul.f32 0.2, %v1276_v5  ;;  %vm1346_vm13 = vcmp.ge.f32.partialorder %v1276_v5, 0.0 }
 0x381   :  { %v1281_v11 = vpop.f32.mrf.mxu1  ;;  %1601 = vmatprep.mubr.f32.mxu0 %v1409_v9 }
 0x382   :  { %v1282_v13 = vadd.f32 %v1281_v11, %v7337_v18  ;;  %1602 = vmatmul.mubr.f32.gmra.mxu0 %v1408_v12  ;;  %vm1347_vm12 = vcmp.ge.f32.partialorder %v1278_v8, 0.0  ;;  %v1379_v3 = vmul.f32 0.2, %v1278_v8  ;;  %v1410_v22 = vsel %vm1346_vm13, %v1276_v5, %v1378_v10 }
 0x383   :  { %v1283_v14 = vpop.f32.mrf.mxu1 }
 0x384   :  { %v1284_v15 = vadd.f32 %v1283_v14, %v7340_v19  ;;  %v1411_v16 = vsel %vm1347_vm12, %v1278_v8, %v1379_v3  ;;  %v1380_v20 = vmul.f32 0.2, %v1282_v13  ;;  %vm1348_vm15 = vcmp.ge.f32.partialorder %v1282_v13, 0.0 }
 0x385   :  { %v1287_v21 = vpop.f32.mrf.mxu1  ;;  %1607 = vmatprep.mubr.f32.mxu0 %v1411_v16 }
 0x386   :  { %v1288_v23 = vadd.f32 %v1287_v21, %v7337_v18  ;;  %1608 = vmatmul.mubr.f32.gmra.mxu0 %v1410_v22  ;;  %vm1349_vm14 = vcmp.ge.f32.partialorder %v1284_v15, 0.0  ;;  %v1381_v24 = vmul.f32 0.2, %v1284_v15  ;;  %v1412_v29 = vsel %vm1348_vm15, %v1282_v13, %v1380_v20 }
 0x387   :  { %v1289_v25 = vpop.f32.mrf.mxu1 }
 0x388   :  { %v1290_v26 = vadd.f32 %v1289_v25, %v7340_v19  ;;  %v1413_v27 = vsel %vm1349_vm14, %v1284_v15, %v1381_v24  ;;  %v1382_v43 = vmul.f32 0.2, %v1288_v23  ;;  %vm1350_vm1 = vcmp.ge.f32.partialorder %v1288_v23, 0.0 }
 0x389   :  { %v1293_v28 = vpop.f32.mrf.mxu1  ;;  %1613 = vmatprep.mubr.f32.mxu0 %v1413_v27 }
 0x38a   :  { %v1294_v30 = vadd.f32 %v1293_v28, %v7337_v18  ;;  %1614 = vmatmul.mubr.f32.gmra.mxu0 %v1412_v29  ;;  %vm1351_vm0 = vcmp.ge.f32.partialorder %v1290_v26, 0.0  ;;  %v1383_v32 = vmul.f32 0.2, %v1290_v26  ;;  %v1414_v38 = vsel %vm1350_vm1, %v1288_v23, %v1382_v43  ;;  %v113_v29 = vld [vmem:[#allocation5 + $0x1b10] sm:$0xff] }
 0x38b   :  { %v1295_v33 = vpop.f32.mrf.mxu1 }
 0x38c   :  { %v1296_v34 = vadd.f32 %v1295_v33, %v7340_v19  ;;  %v1415_v35 = vsel %vm1351_vm0, %v1290_v26, %v1383_v32  ;;  %v1384_v36 = vmul.f32 0.2, %v1294_v30  ;;  %vm1352_vm3 = vcmp.ge.f32.partialorder %v1294_v30, 0.0  ;;  %v1977_v32 = vld [vmem:[#allocation5 + $0x1f8] sm:$0xff]  ;;  %v1976_v33 = vld [vmem:[#allocation5 + $0x1f0] sm:$0xff] }
 0x38d   :  { %v1299_v37 = vpop.f32.mrf.mxu1  ;;  %1619 = vmatprep.mubr.f32.mxu0 %v1415_v35  ;;  %2037 = vmatprep.subr.mxu0 %v1977_v32  ;;  %v1974_v35 = vld [vmem:[#allocation5 + $0x1e0] sm:$0xff] }
 0x38e   :  { %v1300_v39 = vadd.f32 %v1299_v37, %v7337_v18  ;;  %1620 = vmatmul.mubr.f32.gmra.mxu0 %v1414_v38  ;;  %vm1353_vm2 = vcmp.ge.f32.partialorder %v1296_v34, 0.0  ;;  %v1385_v40 = vmul.f32 0.2, %v1296_v34  ;;  %v1416_v31 = vsel %vm1352_vm3, %v1294_v30, %v1384_v36  ;;  %v128_v30 = vld [vmem:[#allocation5 + $0x1c00] sm:$0xff]  ;;  %v1973_v36 = vld [vmem:[#allocation5 + $0x1d8] sm:$0xff]  ;;  %v1972_v37 = vld [vmem:[#allocation5 + $0x1d0] sm:$0xff] }
 0x38f   :  { %v1301_v41 = vpop.f32.mrf.mxu1  ;;  %2038 = vmatpush1.msra.mxu0 %v1976_v33  ;;  %v1971_v38 = vld [vmem:[#allocation5 + $0x1c8] sm:$0xff] }
 0x390   :  { %v1302_v17 = vadd.f32 %v1301_v41, %v7340_v19  ;;  %v1417_v42 = vsel %vm1353_vm2, %v1296_v34, %v1385_v40  ;;  %v1386_v44 = vmul.f32 0.2, %v1300_v39  ;;  %vm1354_vm5 = vcmp.ge.f32.partialorder %v1300_v39, 0.0  ;;  %v1975_v34 = vld [vmem:[#allocation5 + $0x1e8] sm:$0xff]  ;;  %v1969_v40 = vld [vmem:[#allocation5 + $0x1b8] sm:$0xff]  ;;  %v1968_v41 = vld [vmem:[#allocation5 + $0x1b0] sm:$0xff] }
 0x391   :  { %v1305_v45 = vpop.f32.mrf.mxu1  ;;  %1625 = vmatprep.mubr.f32.mxu0 %v1417_v42  ;;  %2039 = vmatprep.subr.mxu0 %v1975_v34  ;;  %v1966_v42 = vld [vmem:[#allocation5 + $0x1a0] sm:$0xff] }
 0x392   :  { %v1306_v46 = vadd.f32 %v1305_v45, %v7337_v18  ;;  %1626 = vmatmul.mubr.f32.gmra.mxu0 %v1416_v31  ;;  %vm1355_vm4 = vcmp.ge.f32.partialorder %v1302_v17, 0.0  ;;  %v1387_v47 = vmul.f32 0.2, %v1302_v17  ;;  %v1418_v53 = vsel %vm1354_vm5, %v1300_v39, %v1386_v44  ;;  %v1970_v39 = vld [vmem:[#allocation5 + $0x1c0] sm:$0xff]  ;;  %v1965_v44 = vld [vmem:[#allocation5 + $0x198] sm:$0xff]  ;;  %v1964_v45 = vld [vmem:[#allocation5 + $0x190] sm:$0xff] }
 0x393   :  { %v1307_v48 = vpop.f32.mrf.mxu1  ;;  %2040 = vmatpush1.msra.mxu0 %v1974_v35  ;;  %v1963_v31 = vld [vmem:[#allocation5 + $0x188] sm:$0xff] }
 0x394   :  { %v1308_v49 = vadd.f32 %v1307_v48, %v7340_v19  ;;  %v1419_v50 = vsel %vm1355_vm4, %v1302_v17, %v1387_v47  ;;  %v1388_v51 = vmul.f32 0.2, %v1306_v46  ;;  %vm1356_vm7 = vcmp.ge.f32.partialorder %v1306_v46, 0.0  ;;  %2041 = vmatprep.subr.mxu0 %v1973_v36  ;;  %v1967_v17 = vld [vmem:[#allocation5 + $0x1a8] sm:$0xff]  ;;  %v1961_v47 = vld [vmem:[#allocation5 + $0x178] sm:$0xff]  ;;  %v1960_v48 = vld [vmem:[#allocation5 + $0x170] sm:$0xff] }
 0x395   :  { %v1311_v52 = vpop.f32.mrf.mxu1  ;;  %1631 = vmatprep.mubr.f32.mxu0 %v1419_v50  ;;  %2042 = vmatpush1.msra.mxu0 %v1972_v37  ;;  %v1958_v50 = vld [vmem:[#allocation5 + $0x160] sm:$0xff] }
 0x396   :  { %v1312_v54 = vadd.f32 %v1311_v52, %v7337_v18  ;;  %1632 = vmatmul.mubr.f32.gmra.mxu0 %v1418_v53  ;;  %vm1357_vm6 = vcmp.ge.f32.partialorder %v1308_v49, 0.0  ;;  %v1389_v55 = vmul.f32 0.2, %v1308_v49  ;;  %v1420_v62 = vsel %vm1356_vm7, %v1306_v46, %v1388_v51  ;;  %2043 = vmatprep.subr.mxu0 %v1971_v38  ;;  %v1962_v46 = vld [vmem:[#allocation5 + $0x180] sm:$0xff]  ;;  %v1957_v51 = vld [vmem:[#allocation5 + $0x158] sm:$0xff]  ;;  %v1956_v52 = vld [vmem:[#allocation5 + $0x150] sm:$0xff] }
 0x397   :  { %v1313_v56 = vpop.f32.mrf.mxu1  ;;  %2044 = vmatpush1.msra.mxu0 %v1970_v39  ;;  %v1955_v53 = vld [vmem:[#allocation5 + $0x148] sm:$0xff] }
 0x398   :  { %v1314_v57 = vadd.f32 %v1313_v56, %v7340_v19  ;;  %v1421_v58 = vsel %vm1357_vm6, %v1308_v49, %v1389_v55  ;;  %v1390_v59 = vmul.f32 0.2, %v1312_v54  ;;  %vm1358_vm9 = vcmp.ge.f32.partialorder %v1312_v54, 0.0  ;;  %2045 = vmatprep.subr.mxu0 %v1969_v40  ;;  %v1959_v49 = vld [vmem:[#allocation5 + $0x168] sm:$0xff]  ;;  %v1953_v55 = vld [vmem:[#allocation5 + $0x138] sm:$0xff]  ;;  %v1952_v56 = vld [vmem:[#allocation5 + $0x130] sm:$0xff] }
 0x399   :  { %v1317_v60 = vpop.f32.mrf.mxu1  ;;  %1637 = vmatprep.mubr.f32.mxu0 %v1421_v58  ;;  %2046 = vmatpush1.msra.mxu0 %v1968_v41 }
 0x39a   :  { %v1318_v63 = vadd.f32 %v1317_v60, %v7337_v18  ;;  %1638 = vmatmul.mubr.f32.gmra.mxu0 %v1420_v62  ;;  %vm1359_vm8 = vcmp.ge.f32.partialorder %v1314_v57, 0.0  ;;  %v1391_v1 = vmul.f32 0.2, %v1314_v57  ;;  %v1422_v9 = vsel %vm1358_vm9, %v1312_v54, %v1390_v59  ;;  %2047 = vmatprep.subr.mxu0 %v1967_v17  ;;  %v1954_v54 = vld [vmem:[#allocation5 + $0x140] sm:$0xff] }
 0x39b   :  { %v1319_v4 = vpop.f32.mrf.mxu1  ;;  %2048 = vmatpush1.msra.mxu0 %v1966_v42 }
 0x39c   :  { %v1320_v5 = vadd.f32 %v1319_v4, %v7340_v19  ;;  %v1423_v6 = vsel %vm1359_vm8, %v1314_v57, %v1391_v1  ;;  %v1392_v7 = vmul.f32 0.2, %v1318_v63  ;;  %vm1360_vm11 = vcmp.ge.f32.partialorder %v1318_v63, 0.0  ;;  %2049 = vmatprep.subr.mxu0 %v1965_v44  ;;  %v1495_v57 = vld [vmem:[#allocation7 + $0x14] ss:$8 sm:$0x3] }
 0x39d   :  { %v1323_v8 = vpop.f32.mrf.mxu1  ;;  %1643 = vmatprep.mubr.f32.mxu0 %v1423_v6  ;;  %2050 = vmatpush1.msra.mxu0 %v1964_v45  ;;  %v7376_v58 = vrot.slane %v1495_v57, %v7218_v61  ;;  %v7379_v59 = vrot.slane %v1495_v57, %v7220_v2 }
 0x39e   :  { %v1324_v10 = vadd.f32 %v1323_v8, %v7337_v18  ;;  %1644 = vmatmul.mubr.f32.gmra.mxu0 %v1422_v9  ;;  %vm1361_vm10 = vcmp.ge.f32.partialorder %v1320_v5, 0.0  ;;  %v1393_v11 = vmul.f32 0.2, %v1320_v5  ;;  %v1424_v16 = vsel %vm1360_vm11, %v1318_v63, %v1392_v7  ;;  %2051 = vmatprep.subr.mxu0 %v1963_v31 }
 0x39f   :  { %v1325_v12 = vpop.f32.mrf.mxu1  ;;  %2052 = vmatpush1.msra.mxu0 %v1962_v46 }
 0x3a0   :  { %v1326_v13 = vadd.f32 %v1325_v12, %v7340_v19  ;;  %v1425_v3 = vsel %vm1361_vm10, %v1320_v5, %v1393_v11  ;;  %v1394_v14 = vmul.f32 0.2, %v1324_v10  ;;  %vm1362_vm13 = vcmp.ge.f32.partialorder %v1324_v10, 0.0  ;;  %2053 = vmatprep.subr.mxu0 %v1961_v47 }
 0x3a1   :  { %v1329_v15 = vpop.f32.mrf.mxu1  ;;  %1649 = vmatprep.mubr.f32.mxu0 %v1425_v3  ;;  %2054 = vmatpush1.msra.mxu0 %v1960_v48 }
 0x3a2   :  { %v1330_v20 = vadd.f32 %v1329_v15, %v7337_v18  ;;  %1650 = vmatmul.mubr.f32.gmra.mxu0 %v1424_v16  ;;  %vm1363_vm12 = vcmp.ge.f32.partialorder %v1326_v13, 0.0  ;;  %v1395_v21 = vmul.f32 0.2, %v1326_v13  ;;  %v1426_v26 = vsel %vm1362_vm13, %v1324_v10, %v1394_v14  ;;  %v129_v18 = vld [vmem:[#allocation5 + $0x1c10] sm:$0xff]  ;;  %2055 = vmatprep.subr.mxu0 %v1959_v49 }
 0x3a3   :  { %v1331_v22 = vpop.f32.mrf.mxu1  ;;  %6570 = vmatprep.subr.mxu1 %v129_v18  ;;  %2056 = vmatpush1.msra.mxu0 %v1958_v50 }
 0x3a4   :  { %v1332_v23 = vadd.f32 %v1331_v22, %v7340_v19  ;;  %v1427_v24 = vsel %vm1363_vm12, %v1326_v13, %v1395_v21  ;;  %v1396_v25 = vmul.f32 0.2, %v1330_v20  ;;  %vm1364_vm15 = vcmp.ge.f32.partialorder %v1330_v20, 0.0  ;;  %6571 = vmatpush3.msra.mxu1 %v113_v29  ;;  %v112_v19 = vld [vmem:[#allocation5 + $0x1b00] sm:$0xff]  ;;  %2057 = vmatprep.subr.mxu0 %v1957_v51 }
 0x3a5   :  { %1655 = vmatprep.mubr.f32.mxu0 %v1427_v24  ;;  %6572 = vmatprep.subr.mxu1 %v128_v30 }
 0x3a6   :  { %1656 = vmatmul.mubr.f32.gmra.mxu0 %v1426_v26  ;;  %vm1365_vm14 = vcmp.ge.f32.partialorder %v1332_v23, 0.0  ;;  %v1397_v27 = vmul.f32 0.2, %v1332_v23  ;;  %v1428_v28 = vsel %vm1364_vm15, %v1330_v20, %v1396_v25  ;;  %6573 = vmatpush3.msra.mxu1 %v112_v19 }
 0x3a7   :  { %2058 = vmatpush1.msra.mxu0 %v1956_v52 }
 0x3a8   :  { %v1429_v43 = vsel %vm1365_vm14, %v1332_v23, %v1397_v27  ;;  %2059 = vmatprep.subr.mxu0 %v1955_v53 }
 0x3a9   :  { %1661 = vmatprep.mubr.f32.mxu0 %v1429_v43  ;;  %2060 = vmatpush1.msra.mxu0 %v1954_v54 }
 0x3aa   :  { %1662 = vmatmul.mubr.f32.gmra.mxu0 %v1428_v28  ;;  %2061 = vmatprep.subr.mxu0 %v1953_v55 }
 0x3ab   :  { %2101 = vmatprep.mubr.f32.mxu0 %v7144_v0  ;;  %2062 = vmatpush1.msra.mxu0 %v1952_v56 }
 0x42e   :  { %v1573_v60 = vpop.f32.mrf.mxu0 }
 0x42f   :  { %v1574_v62 = vadd.f32 %v1573_v60, %v7376_v58 }
 0x430   :  { %v1575_v63 = vpop.f32.mrf.mxu0 }
 0x431   :  { %v1576_v1 = vadd.f32 %v1575_v63, %v7379_v59  ;;  %v1700_v4 = vmul.f32 0.2, %v1574_v62  ;;  %vm1668_vm0 = vcmp.ge.f32.partialorder %v1574_v62, 0.0 }
 0x432   :  { %v1579_v5 = vpop.f32.mrf.mxu0 }
 0x433   :  { %v1580_v6 = vadd.f32 %v1579_v5, %v7376_v58  ;;  %vm1669_vm1 = vcmp.ge.f32.partialorder %v1576_v1, 0.0  ;;  %v1701_v7 = vmul.f32 0.2, %v1576_v1  ;;  %v1732_v11 = vsel %vm1668_vm0, %v1574_v62, %v1700_v4 }
 0x434   :  { %v1581_v8 = vpop.f32.mrf.mxu0 }
 0x435   :  { %v1582_v9 = vadd.f32 %v1581_v8, %v7379_v59  ;;  %v1733_v10 = vsel %vm1669_vm1, %v1576_v1, %v1701_v7  ;;  %v1702_v12 = vmul.f32 0.2, %v1580_v6  ;;  %vm1670_vm3 = vcmp.ge.f32.partialorder %v1580_v6, 0.0 }
 0x436   :  { %v1585_v13 = vpop.f32.mrf.mxu0  ;;  %1828 = vmatprep.mubr.f32.mxu1 %v1733_v10 }
 0x437   :  { %v1586_v3 = vadd.f32 %v1585_v13, %v7376_v58  ;;  %1829 = vmatmul.mubr.f32.vlgmr.msra.gmra.mxu1 %v1732_v11  ;;  %vm1671_vm2 = vcmp.ge.f32.partialorder %v1582_v9, 0.0  ;;  %v1703_v14 = vmul.f32 0.2, %v1582_v9  ;;  %v1734_v23 = vsel %vm1670_vm3, %v1580_v6, %v1702_v12 }
 0x438   :  { %v1587_v15 = vpop.f32.mrf.mxu0 }
 0x439   :  { %v1588_v16 = vadd.f32 %v1587_v15, %v7379_v59  ;;  %v1735_v20 = vsel %vm1671_vm2, %v1582_v9, %v1703_v14  ;;  %v1704_v21 = vmul.f32 0.2, %v1586_v3  ;;  %vm1672_vm5 = vcmp.ge.f32.partialorder %v1586_v3, 0.0 }
 0x43a   :  { %v1591_v22 = vpop.f32.mrf.mxu0  ;;  %1833 = vmatprep.mubr.f32.mxu1 %v1735_v20 }
 0x43b   :  { %v1592_v24 = vadd.f32 %v1591_v22, %v7376_v58  ;;  %1834 = vmatmul.mubr.f32.gmra.mxu1 %v1734_v23  ;;  %vm1673_vm4 = vcmp.ge.f32.partialorder %v1588_v16, 0.0  ;;  %v1705_v25 = vmul.f32 0.2, %v1588_v16  ;;  %v1736_v29 = vsel %vm1672_vm5, %v1586_v3, %v1704_v21 }
 0x43c   :  { %v1593_v26 = vpop.f32.mrf.mxu0 }
 0x43d   :  { %v1594_v27 = vadd.f32 %v1593_v26, %v7379_v59  ;;  %v1737_v43 = vsel %vm1673_vm4, %v1588_v16, %v1705_v25  ;;  %v1706_v28 = vmul.f32 0.2, %v1592_v24  ;;  %vm1674_vm7 = vcmp.ge.f32.partialorder %v1592_v24, 0.0 }
 0x43e   :  { %v1597_v18 = vpop.f32.mrf.mxu0  ;;  %1838 = vmatprep.mubr.f32.mxu1 %v1737_v43 }
 0x43f   :  { %v1598_v30 = vadd.f32 %v1597_v18, %v7376_v58  ;;  %1839 = vmatmul.mubr.f32.gmra.mxu1 %v1736_v29  ;;  %vm1675_vm6 = vcmp.ge.f32.partialorder %v1594_v27, 0.0  ;;  %v1707_v19 = vmul.f32 0.2, %v1594_v27  ;;  %v1738_v37 = vsel %vm1674_vm7, %v1592_v24, %v1706_v28 }
 0x440   :  { %v1599_v32 = vpop.f32.mrf.mxu0 }
 0x441   :  { %v1600_v33 = vadd.f32 %v1599_v32, %v7379_v59  ;;  %v1739_v34 = vsel %vm1675_vm6, %v1594_v27, %v1707_v19  ;;  %v1708_v35 = vmul.f32 0.2, %v1598_v30  ;;  %vm1676_vm9 = vcmp.ge.f32.partialorder %v1598_v30, 0.0 }
 0x442   :  { %v1603_v36 = vpop.f32.mrf.mxu0  ;;  %1843 = vmatprep.mubr.f32.mxu1 %v1739_v34 }
 0x443   :  { %v1604_v38 = vadd.f32 %v1603_v36, %v7376_v58  ;;  %1844 = vmatmul.mubr.f32.gmra.mxu1 %v1738_v37  ;;  %vm1677_vm8 = vcmp.ge.f32.partialorder %v1600_v33, 0.0  ;;  %v1709_v39 = vmul.f32 0.2, %v1600_v33  ;;  %v1740_v45 = vsel %vm1676_vm9, %v1598_v30, %v1708_v35 }
 0x444   :  { %v1605_v40 = vpop.f32.mrf.mxu0 }
 0x445   :  { %v1606_v41 = vadd.f32 %v1605_v40, %v7379_v59  ;;  %v1741_v17 = vsel %vm1677_vm8, %v1600_v33, %v1709_v39  ;;  %v1710_v42 = vmul.f32 0.2, %v1604_v38  ;;  %vm1678_vm11 = vcmp.ge.f32.partialorder %v1604_v38, 0.0 }
 0x446   :  { %v1609_v44 = vpop.f32.mrf.mxu0  ;;  %1848 = vmatprep.mubr.f32.mxu1 %v1741_v17 }
 0x447   :  { %v1610_v31 = vadd.f32 %v1609_v44, %v7376_v58  ;;  %1849 = vmatmul.mubr.f32.gmra.mxu1 %v1740_v45  ;;  %vm1679_vm10 = vcmp.ge.f32.partialorder %v1606_v41, 0.0  ;;  %v1711_v46 = vmul.f32 0.2, %v1606_v41  ;;  %v1742_v52 = vsel %vm1678_vm11, %v1604_v38, %v1710_v42 }
 0x448   :  { %v1611_v47 = vpop.f32.mrf.mxu0 }
 0x449   :  { %v1612_v48 = vadd.f32 %v1611_v47, %v7379_v59  ;;  %v1743_v49 = vsel %vm1679_vm10, %v1606_v41, %v1711_v46  ;;  %v1712_v50 = vmul.f32 0.2, %v1610_v31  ;;  %vm1680_vm13 = vcmp.ge.f32.partialorder %v1610_v31, 0.0 }
 0x44a   :  { %v1615_v51 = vpop.f32.mrf.mxu0  ;;  %1853 = vmatprep.mubr.f32.mxu1 %v1743_v49 }
 0x44b   :  { %v1616_v53 = vadd.f32 %v1615_v51, %v7376_v58  ;;  %1854 = vmatmul.mubr.f32.gmra.mxu1 %v1742_v52  ;;  %vm1681_vm12 = vcmp.ge.f32.partialorder %v1612_v48, 0.0  ;;  %v1713_v54 = vmul.f32 0.2, %v1612_v48  ;;  %v1744_v63 = vsel %vm1680_vm13, %v1610_v31, %v1712_v50 }
 0x44c   :  { %v1617_v55 = vpop.f32.mrf.mxu0 }
 0x44d   :  { %v1618_v56 = vadd.f32 %v1617_v55, %v7379_v59  ;;  %v1745_v57 = vsel %vm1681_vm12, %v1612_v48, %v1713_v54  ;;  %v1714_v60 = vmul.f32 0.2, %v1616_v53  ;;  %vm1682_vm15 = vcmp.ge.f32.partialorder %v1616_v53, 0.0 }
 0x44e   :  { %v1621_v62 = vpop.f32.mrf.mxu0  ;;  %1858 = vmatprep.mubr.f32.mxu1 %v1745_v57 }
 0x44f   :  { %v1622_v1 = vadd.f32 %v1621_v62, %v7376_v58  ;;  %1859 = vmatmul.mubr.f32.gmra.mxu1 %v1744_v63  ;;  %vm1683_vm14 = vcmp.ge.f32.partialorder %v1618_v56, 0.0  ;;  %v1715_v4 = vmul.f32 0.2, %v1618_v56  ;;  %v1746_v10 = vsel %vm1682_vm15, %v1616_v53, %v1714_v60 }
 0x450   :  { %v1623_v5 = vpop.f32.mrf.mxu0 }
 0x451   :  { %v1624_v6 = vadd.f32 %v1623_v5, %v7379_v59  ;;  %v1747_v7 = vsel %vm1683_vm14, %v1618_v56, %v1715_v4  ;;  %v1716_v8 = vmul.f32 0.2, %v1622_v1  ;;  %vm1684_vm1 = vcmp.ge.f32.partialorder %v1622_v1, 0.0 }
 0x452   :  { %v1627_v9 = vpop.f32.mrf.mxu0  ;;  %1863 = vmatprep.mubr.f32.mxu1 %v1747_v7 }
 0x453   :  { %v1628_v11 = vadd.f32 %v1627_v9, %v7376_v58  ;;  %1864 = vmatmul.mubr.f32.gmra.mxu1 %v1746_v10  ;;  %vm1685_vm0 = vcmp.ge.f32.partialorder %v1624_v6, 0.0  ;;  %v1717_v12 = vmul.f32 0.2, %v1624_v6  ;;  %v1748_v20 = vsel %vm1684_vm1, %v1622_v1, %v1716_v8  ;;  %v1950_v10 = vld [vmem:[#allocation5 + $0x120] sm:$0xff] }
 0x454   :  { %v1629_v13 = vpop.f32.mrf.mxu0 }
 0x455   :  { %v1630_v3 = vadd.f32 %v1629_v13, %v7379_v59  ;;  %v1749_v14 = vsel %vm1685_vm0, %v1624_v6, %v1717_v12  ;;  %v1718_v15 = vmul.f32 0.2, %v1628_v11  ;;  %vm1686_vm3 = vcmp.ge.f32.partialorder %v1628_v11, 0.0  ;;  %v1948_v12 = vld [vmem:[#allocation5 + $0x110] sm:$0xff]  ;;  %v1946_v13 = vld [vmem:[#allocation5 + $0x100] sm:$0xff] }
 0x456   :  { %v1633_v16 = vpop.f32.mrf.mxu0  ;;  %1868 = vmatprep.mubr.f32.mxu1 %v1749_v14  ;;  %v2324_v14 = vld [vmem:[#allocation5 + $0xbf0] sm:$0xff] }
 0x457   :  { %v1634_v21 = vadd.f32 %v1633_v16, %v7376_v58  ;;  %1869 = vmatmul.mubr.f32.gmra.mxu1 %v1748_v20  ;;  %vm1687_vm2 = vcmp.ge.f32.partialorder %v1630_v3, 0.0  ;;  %v1719_v22 = vmul.f32 0.2, %v1630_v3  ;;  %v1750_v43 = vsel %vm1686_vm3, %v1628_v11, %v1718_v15  ;;  %v1949_v11 = vld [vmem:[#allocation5 + $0x118] sm:$0xff]  ;;  %v2323_v15 = vld [vmem:[#allocation5 + $0xbe8] sm:$0xff]  ;;  %v2322_v16 = vld [vmem:[#allocation5 + $0xbe0] sm:$0xff] }
 0x458   :  { %v1635_v23 = vpop.f32.mrf.mxu0  ;;  %v2321_v20 = vld [vmem:[#allocation5 + $0xbd8] sm:$0xff] }
 0x459   :  { %v1636_v24 = vadd.f32 %v1635_v23, %v7379_v59  ;;  %v1751_v25 = vsel %vm1687_vm2, %v1630_v3, %v1719_v22  ;;  %v1720_v26 = vmul.f32 0.2, %v1634_v21  ;;  %vm1688_vm5 = vcmp.ge.f32.partialorder %v1634_v21, 0.0  ;;  %v2325_v3 = vld [vmem:[#allocation5 + $0xbf8] sm:$0xff]  ;;  %v2319_v22 = vld [vmem:[#allocation5 + $0xbc8] sm:$0xff]  ;;  %v2318_v23 = vld [vmem:[#allocation5 + $0xbc0] sm:$0xff] }
 0x45a   :  { %v1639_v27 = vpop.f32.mrf.mxu0  ;;  %1873 = vmatprep.mubr.f32.mxu1 %v1751_v25  ;;  %2371 = vmatprep.subr.mxu1 %v2325_v3  ;;  %v2316_v25 = vld [vmem:[#allocation5 + $0xbb0] sm:$0xff] }
 0x45b   :  { %v1640_v28 = vadd.f32 %v1639_v27, %v7376_v58  ;;  %1874 = vmatmul.mubr.f32.gmra.mxu1 %v1750_v43  ;;  %vm1689_vm4 = vcmp.ge.f32.partialorder %v1636_v24, 0.0  ;;  %v1721_v18 = vmul.f32 0.2, %v1636_v24  ;;  %v1752_v34 = vsel %vm1688_vm5, %v1634_v21, %v1720_v26  ;;  %v2320_v21 = vld [vmem:[#allocation5 + $0xbd0] sm:$0xff]  ;;  %v2315_v26 = vld [vmem:[#allocation5 + $0xba8] sm:$0xff]  ;;  %v2314_v27 = vld [vmem:[#allocation5 + $0xba0] sm:$0xff] }
 0x45c   :  { %v1641_v29 = vpop.f32.mrf.mxu0  ;;  %2372 = vmatpush1.msra.mxu1 %v2324_v14  ;;  %v2313_v43 = vld [vmem:[#allocation5 + $0xb98] sm:$0xff] }
 0x45d   :  { %v1642_v30 = vadd.f32 %v1641_v29, %v7379_v59  ;;  %v1753_v19 = vsel %vm1689_vm4, %v1636_v24, %v1721_v18  ;;  %v1722_v32 = vmul.f32 0.2, %v1640_v28  ;;  %vm1690_vm7 = vcmp.ge.f32.partialorder %v1640_v28, 0.0  ;;  %2373 = vmatprep.subr.mxu1 %v2323_v15  ;;  %v2317_v24 = vld [vmem:[#allocation5 + $0xbb8] sm:$0xff]  ;;  %v2311_v18 = vld [vmem:[#allocation5 + $0xb88] sm:$0xff]  ;;  %v2310_v29 = vld [vmem:[#allocation5 + $0xb80] sm:$0xff] }
 0x45e   :  { %v1645_v33 = vpop.f32.mrf.mxu0  ;;  %1878 = vmatprep.mubr.f32.mxu1 %v1753_v19  ;;  %2374 = vmatpush1.msra.mxu1 %v2322_v16  ;;  %v2308_v19 = vld [vmem:[#allocation5 + $0xb70] sm:$0xff] }
 0x45f   :  { %v1646_v35 = vadd.f32 %v1645_v33, %v7376_v58  ;;  %1879 = vmatmul.mubr.f32.gmra.mxu1 %v1752_v34  ;;  %vm1691_vm6 = vcmp.ge.f32.partialorder %v1642_v30, 0.0  ;;  %v1723_v36 = vmul.f32 0.2, %v1642_v30  ;;  %v1754_v17 = vsel %vm1690_vm7, %v1640_v28, %v1722_v32  ;;  %2375 = vmatprep.subr.mxu1 %v2321_v20  ;;  %v2312_v28 = vld [vmem:[#allocation5 + $0xb90] sm:$0xff]  ;;  %v2307_v32 = vld [vmem:[#allocation5 + $0xb68] sm:$0xff]  ;;  %v2306_v33 = vld [vmem:[#allocation5 + $0xb60] sm:$0xff] }
 0x460   :  { %v1647_v37 = vpop.f32.mrf.mxu0  ;;  %2376 = vmatpush1.msra.mxu1 %v2320_v21  ;;  %v2305_v34 = vld [vmem:[#allocation5 + $0xb58] sm:$0xff]  ;;  %v7419_v21 = vld [vmem:[#allocation7 + $0x1] ss:$0 sm:$0xff] }
 0x461   :  { %v1648_v38 = vadd.f32 %v1647_v37, %v7379_v59  ;;  %v1755_v39 = vsel %vm1691_vm6, %v1642_v30, %v1723_v36  ;;  %v1724_v40 = vmul.f32 0.2, %v1646_v35  ;;  %vm1692_vm9 = vcmp.ge.f32.partialorder %v1646_v35, 0.0  ;;  %2377 = vmatprep.subr.mxu1 %v2319_v22  ;;  %v2309_v30 = vld [vmem:[#allocation5 + $0xb78] sm:$0xff]  ;;  %v2303_v36 = vld [vmem:[#allocation5 + $0xb48] sm:$0xff]  ;;  %v2302_v37 = vld [vmem:[#allocation5 + $0xb40] sm:$0xff] }
 0x462   :  { %v1651_v41 = vpop.f32.mrf.mxu0  ;;  %1883 = vmatprep.mubr.f32.mxu1 %v1755_v39  ;;  %2378 = vmatpush1.msra.mxu1 %v2318_v23  ;;  %v2300_v39 = vld [vmem:[#allocation5 + $0xb30] sm:$0xff]  ;;  %v7008_v23 = vld [vmem:[#allocation2] sm:$0xff] }
 0x463   :  { %v1652_v42 = vadd.f32 %v1651_v41, %v7376_v58  ;;  %1884 = vmatmul.mubr.f32.gmra.mxu1 %v1754_v17  ;;  %vm1693_vm8 = vcmp.ge.f32.partialorder %v1648_v38, 0.0  ;;  %v1725_v44 = vmul.f32 0.2, %v1648_v38  ;;  %v1756_v49 = vsel %vm1692_vm9, %v1646_v35, %v1724_v40  ;;  %2379 = vmatprep.subr.mxu1 %v2317_v24  ;;  %v2304_v35 = vld [vmem:[#allocation5 + $0xb50] sm:$0xff]  ;;  %v2299_v40 = vld [vmem:[#allocation5 + $0xb28] sm:$0xff]  ;;  %v2298_v41 = vld [vmem:[#allocation5 + $0xb20] sm:$0xff] }
 0x464   :  { %v1653_v45 = vpop.f32.mrf.mxu0  ;;  %2380 = vmatpush1.msra.mxu1 %v2316_v25  ;;  %v2297_v17 = vld [vmem:[#allocation5 + $0xb18] sm:$0xff] }
 0x465   :  { %v1654_v31 = vadd.f32 %v1653_v45, %v7379_v59  ;;  %v1757_v46 = vsel %vm1693_vm8, %v1648_v38, %v1725_v44  ;;  %v1726_v47 = vmul.f32 0.2, %v1652_v42  ;;  %vm1694_vm11 = vcmp.ge.f32.partialorder %v1652_v42, 0.0  ;;  %2381 = vmatprep.subr.mxu1 %v2315_v26  ;;  %v2301_v38 = vld [vmem:[#allocation5 + $0xb38] sm:$0xff]  ;;  %v2295_v44 = vld [vmem:[#allocation5 + $0xb08] sm:$0xff]  ;;  %v2294_v45 = vld [vmem:[#allocation5 + $0xb00] sm:$0xff] }
 0x466   :  { %v1657_v48 = vpop.f32.mrf.mxu0  ;;  %1888 = vmatprep.mubr.f32.mxu1 %v1757_v46  ;;  %2382 = vmatpush1.msra.mxu1 %v2314_v27  ;;  %v2356_v46 = vld [vmem:[#allocation5 + $0xcf0] sm:$0xff] }
 0x467   :  { %v1658_v50 = vadd.f32 %v1657_v48, %v7376_v58  ;;  %1889 = vmatmul.mubr.f32.gmra.mxu1 %v1756_v49  ;;  %vm1695_vm10 = vcmp.ge.f32.partialorder %v1654_v31, 0.0  ;;  %v1727_v51 = vmul.f32 0.2, %v1654_v31  ;;  %v1758_v57 = vsel %vm1694_vm11, %v1652_v42, %v1726_v47  ;;  %2383 = vmatprep.subr.mxu1 %v2313_v43  ;;  %v2296_v42 = vld [vmem:[#allocation5 + $0xb10] sm:$0xff]  ;;  %v2355_v47 = vld [vmem:[#allocation5 + $0xce8] sm:$0xff]  ;;  %v2354_v48 = vld [vmem:[#allocation5 + $0xce0] sm:$0xff] }
 0x468   :  { %v1659_v52 = vpop.f32.mrf.mxu0  ;;  %2384 = vmatpush1.msra.mxu1 %v2312_v28  ;;  %v2353_v49 = vld [vmem:[#allocation5 + $0xcd8] sm:$0xff] }
 0x469   :  { %v1660_v53 = vadd.f32 %v1659_v52, %v7379_v59  ;;  %v1759_v54 = vsel %vm1695_vm10, %v1654_v31, %v1727_v51  ;;  %v1728_v55 = vmul.f32 0.2, %v1658_v50  ;;  %vm1696_vm13 = vcmp.ge.f32.partialorder %v1658_v50, 0.0  ;;  %2385 = vmatprep.subr.mxu1 %v2311_v18  ;;  %v2357_v31 = vld [vmem:[#allocation5 + $0xcf8] sm:$0xff]  ;;  %v2351_v51 = vld [vmem:[#allocation5 + $0xcc8] sm:$0xff]  ;;  %v2350_v52 = vld [vmem:[#allocation5 + $0xcc0] sm:$0xff] }
 0x46a   :  { %v1663_v56 = vpop.f32.mrf.mxu0  ;;  %1893 = vmatprep.mubr.f32.mxu1 %v1759_v54  ;;  %2386 = vmatpush1.msra.mxu1 %v2310_v29  ;;  %v2348_v54 = vld [vmem:[#allocation5 + $0xcb0] sm:$0xff] }
 0x46b   :  { %v1664_v60 = vadd.f32 %v1663_v56, %v7376_v58  ;;  %1894 = vmatmul.mubr.f32.gmra.mxu1 %v1758_v57  ;;  %vm1697_vm12 = vcmp.ge.f32.partialorder %v1660_v53, 0.0  ;;  %v1729_v62 = vmul.f32 0.2, %v1660_v53  ;;  %v1760_v6 = vsel %vm1696_vm13, %v1658_v50, %v1728_v55  ;;  %v1951_v58 = vld [vmem:[#allocation5 + $0x128] sm:$0xff]  ;;  %2387 = vmatprep.subr.mxu1 %v2309_v30  ;;  %v2352_v50 = vld [vmem:[#allocation5 + $0xcd0] sm:$0xff]  ;;  %v2346_v56 = vld [vmem:[#allocation5 + $0xca0] sm:$0xff] }
 0x46c   :  { %v1665_v63 = vpop.f32.mrf.mxu0  ;;  %2063 = vmatprep.subr.mxu0 %v1951_v58  ;;  %2388 = vmatpush1.msra.mxu1 %v2308_v19  ;;  %v2347_v55 = vld [vmem:[#allocation5 + $0xca8] sm:$0xff]  ;;  %v2345_v57 = vld [vmem:[#allocation5 + $0xc98] sm:$0xff]  ;;  %v2334_v58 = vld [vmem:[#allocation5 + $0xc40] sm:$0xff] }
 0x46d   :  { %v1666_v1 = vadd.f32 %v1665_v63, %v7379_v59  ;;  %v1761_v4 = vsel %vm1697_vm12, %v1660_v53, %v1729_v62  ;;  %v1730_v5 = vmul.f32 0.2, %v1664_v60  ;;  %vm1698_vm15 = vcmp.ge.f32.partialorder %v1664_v60, 0.0  ;;  %2064 = vmatpush1.msra.mxu0 %v1950_v10  ;;  %v1947_v59 = vld [vmem:[#allocation5 + $0x108] sm:$0xff]  ;;  %2389 = vmatprep.subr.mxu1 %v2307_v32  ;;  %v2349_v53 = vld [vmem:[#allocation5 + $0xcb8] sm:$0xff]  ;;  %v2342_v63 = vld [vmem:[#allocation5 + $0xc80] sm:$0xff] }
 0x46e   :  { %1898 = vmatprep.mubr.f32.mxu1 %v1761_v4  ;;  %2065 = vmatprep.subr.mxu0 %v1949_v11  ;;  %v2343_v62 = vld [vmem:[#allocation5 + $0xc88] sm:$0xff]  ;;  %v2340_v4 = vld [vmem:[#allocation5 + $0xc70] sm:$0xff]  ;;  %v7413_v11 = vld [vmem:[#allocation7 + $0x25] ss:$0 sm:$0xff] }
 0x46f   :  { %1899 = vmatmul.mubr.f32.gmra.mxu1 %v1760_v6  ;;  %vm1699_vm14 = vcmp.ge.f32.partialorder %v1666_v1, 0.0  ;;  %v1731_v7 = vmul.f32 0.2, %v1666_v1  ;;  %v1762_v9 = vsel %vm1698_vm15, %v1664_v60, %v1730_v5  ;;  %2066 = vmatpush1.msra.mxu0 %v1948_v12  ;;  %v2344_v60 = vld [vmem:[#allocation5 + $0xc90] sm:$0xff]  ;;  %v2339_v5 = vld [vmem:[#allocation5 + $0xc68] sm:$0xff]  ;;  %v2338_v6 = vld [vmem:[#allocation5 + $0xc60] sm:$0xff] }
 0x470   :  { %2067 = vmatprep.subr.mxu0 %v1947_v59  ;;  %2390 = vmatpush1.msra.mxu1 %v2306_v33  ;;  %v7009_v30 = vld [vmem:[#allocation2 + $0x8] sm:$0xff] }
 0x471   :  { %v1763_v8 = vsel %vm1699_vm14, %v1666_v1, %v1731_v7  ;;  %2068 = vmatpush1.msra.mxu0 %v1946_v13  ;;  %2391 = vmatprep.subr.mxu1 %v2305_v34  ;;  %v2341_v1 = vld [vmem:[#allocation5 + $0xc78] sm:$0xff]  ;;  %v7415_v13 = vld [vmem:[#allocation7 + $0x3] ss:$0 sm:$0xff] }
 0x472   :  { %1903 = vmatprep.mubr.f32.mxu1 %v1763_v8  ;;  %2392 = vmatpush1.msra.mxu1 %v2304_v35  ;;  %v2337_v7 = vld [vmem:[#allocation5 + $0xc58] sm:$0xff]  ;;  %v2336_v8 = vld [vmem:[#allocation5 + $0xc50] sm:$0xff] }
 0x473   :  { %1904 = vmatmul.mubr.f32.gmra.mxu1 %v1762_v9  ;;  %2393 = vmatprep.subr.mxu1 %v2303_v36  ;;  %v2335_v9 = vld [vmem:[#allocation5 + $0xc48] sm:$0xff] }
 0x474   :  { %2394 = vmatpush1.msra.mxu1 %v2302_v37 }
 0x475   :  { %2395 = vmatprep.subr.mxu1 %v2301_v38  ;;  %v7010_v38 = vld [vmem:[#allocation2 + $0x10] sm:$0xff] }
 0x476   :  { %2396 = vmatpush1.msra.mxu1 %v2300_v39 }
 0x477   :  { %2397 = vmatprep.subr.mxu1 %v2299_v40 }
 0x478   :  { %2398 = vmatpush1.msra.mxu1 %v2298_v41 }
 0x479   :  { %2399 = vmatprep.subr.mxu1 %v2297_v17 }
 0x47a   :  { %2400 = vmatpush1.msra.mxu1 %v2296_v42 }
 0x47b   :  { %2401 = vmatprep.subr.mxu1 %v2295_v44 }
 0x47c   :  { %2402 = vmatpush1.msra.mxu1 %v2294_v45 }
 0x47d   :  { %2403 = vmatprep.subr.mxu1 %v2357_v31  ;;  %v7011_v31 = vld [vmem:[#allocation2 + $0x18] sm:$0xff] }
 0x47e   :  { %2404 = vmatpush2.msra.mxu1 %v2356_v46 }
 0x47f   :  { %2405 = vmatprep.subr.mxu1 %v2355_v47 }
 0x480   :  { %2406 = vmatpush2.msra.mxu1 %v2354_v48 }
 0x481   :  { %2407 = vmatprep.subr.mxu1 %v2353_v49 }
 0x482   :  { %2408 = vmatpush2.msra.mxu1 %v2352_v50 }
 0x483   :  { %2409 = vmatprep.subr.mxu1 %v2351_v51 }
 0x484   :  { %2410 = vmatpush2.msra.mxu1 %v2350_v52 }
 0x485   :  { %2411 = vmatprep.subr.mxu1 %v2349_v53  ;;  %v7012_v53 = vld [vmem:[#allocation2 + $0x20] sm:$0xff] }
 0x486   :  { %2412 = vmatpush2.msra.mxu1 %v2348_v54 }
 0x487   :  { %2413 = vmatprep.subr.mxu1 %v2347_v55 }
 0x488   :  { %2414 = vmatpush2.msra.mxu1 %v2346_v56 }
 0x489   :  { %2415 = vmatprep.subr.mxu1 %v2345_v57 }
 0x48a   :  { %2416 = vmatpush2.msra.mxu1 %v2344_v60 }
 0x48b   :  { %2417 = vmatprep.subr.mxu1 %v2343_v62 }
 0x48c   :  { %2418 = vmatpush2.msra.mxu1 %v2342_v63 }
 0x48d   :  { %2419 = vmatprep.subr.mxu1 %v2341_v1  ;;  %v7013_v1 = vld [vmem:[#allocation2 + $0x28] sm:$0xff] }
 0x48e   :  { %2420 = vmatpush2.msra.mxu1 %v2340_v4 }
 0x48f   :  { %2421 = vmatprep.subr.mxu1 %v2339_v5 }
 0x490   :  { %2422 = vmatpush2.msra.mxu1 %v2338_v6 }
 0x491   :  { %2423 = vmatprep.subr.mxu1 %v2337_v7 }
 0x492   :  { %2424 = vmatpush2.msra.mxu1 %v2336_v8 }
 0x493   :  { %2425 = vmatprep.subr.mxu1 %v2335_v9 }
 0x494   :  { %2426 = vmatpush2.msra.mxu1 %v2334_v58 }
 0x4f7   :  { %v6574_v10 = vpop.f32.mrf.mxu1 }
 0x4f9   :  { %v6575_v12 = vpop.f32.mrf.mxu1 }
 0x4fa   :  { %v6576_v59 = vadd.f32 %v6575_v12, %v6574_v10  ;;  %v7014_v10 = vld [vmem:[#allocation2 + $0x30] sm:$0xff] }
 0x4fb   :  { %v6577_v3 = vpop.f32.mrf.mxu1 }
 0x4fc   :  { %v1831_v14 = vadd.f32 %v6576_v59, %v7413_v11 }
 0x4fd   :  { %v6578_v15 = vpop.f32.mrf.mxu1 }
 0x4fe   :  { %v1909_v16 = vmul.f32 %v1831_v14, %v7415_v13  ;;  %v6579_v20 = vadd.f32 %v6578_v15, %v6577_v3 }
 0x4ff   :  { %v6580_v22 = vpop.f32.mrf.mxu1 }
 0x500   :  { %v7421_v24 = vadd.f32 %v7008_v23, %v1909_v16  ;;  %v1836_v25 = vadd.f32 %v6579_v20, %v7413_v11 }
 0x501   :  { %v6581_v26 = vpop.f32.mrf.mxu1 }
 0x502   :  { %v2010_v27 = vmul.f32 %v7419_v21, %v7421_v24  ;;  %v1910_v43 = vmul.f32 %v1836_v25, %v7415_v13  ;;  %v6582_v28 = vadd.f32 %v6581_v26, %v6580_v22  ;;  %v7015_v22 = vld [vmem:[#allocation2 + $0x38] sm:$0xff] }
 0x503   :  { %v6583_v18 = vpop.f32.mrf.mxu1 }
 0x504   :  { %v1841_v29 = vadd.f32 %v6582_v28, %v7413_v11  ;;  %2102 = vmatmul.mubr.f32.vlgmr.msra.gmra.mxu0 %v2010_v27  ;;  %v7428_v19 = vadd.f32 %v7009_v30, %v1910_v43 }
 0x505   :  { %v6584_v32 = vpop.f32.mrf.mxu1  ;;  %2107 = vmatprep.mubr.f32.mxu0 %v7144_v0 }
 0x506   :  { %v1911_v33 = vmul.f32 %v1841_v29, %v7415_v13  ;;  %v6585_v34 = vadd.f32 %v6584_v32, %v6583_v18  ;;  %v2011_v35 = vmul.f32 %v7419_v21, %v7428_v19  ;;  %v7016_v18 = vld [vmem:[#allocation2 + $0x40] sm:$0xff] }
 0x507   :  { %v6586_v36 = vpop.f32.mrf.mxu1 }
 0x508   :  { %v1846_v37 = vadd.f32 %v6585_v34, %v7413_v11  ;;  %2108 = vmatmul.mubr.f32.gmra.mxu0 %v2011_v35  ;;  %v7435_v39 = vadd.f32 %v7010_v38, %v1911_v33 }
 0x509   :  { %v6587_v40 = vpop.f32.mrf.mxu1  ;;  %2113 = vmatprep.mubr.f32.mxu0 %v7144_v0 }
 0x50a   :  { %v1912_v41 = vmul.f32 %v1846_v37, %v7415_v13  ;;  %v6588_v17 = vadd.f32 %v6587_v40, %v6586_v36  ;;  %v2012_v42 = vmul.f32 %v7419_v21, %v7435_v39  ;;  %v7017_v37 = vld [vmem:[#allocation2 + $0x48] sm:$0xff] }
 0x50b   :  { %v6589_v44 = vpop.f32.mrf.mxu1 }
 0x50c   :  { %v1851_v45 = vadd.f32 %v6588_v17, %v7413_v11  ;;  %2114 = vmatmul.mubr.f32.gmra.mxu0 %v2012_v42  ;;  %v7442_v46 = vadd.f32 %v7011_v31, %v1912_v41  ;;  %v7018_v31 = vld [vmem:[#allocation2 + $0x50] sm:$0xff] }
 0x50d   :  { %v6590_v47 = vpop.f32.mrf.mxu1  ;;  %2119 = vmatprep.mubr.f32.mxu0 %v7144_v0 }
 0x50e   :  { %v1913_v48 = vmul.f32 %v1851_v45, %v7415_v13  ;;  %v6591_v49 = vadd.f32 %v6590_v47, %v6589_v44  ;;  %v2013_v50 = vmul.f32 %v7419_v21, %v7442_v46 }
 0x50f   :  { %v6592_v51 = vpop.f32.mrf.mxu1 }
 0x510   :  { %v1856_v52 = vadd.f32 %v6591_v49, %v7413_v11  ;;  %2120 = vmatmul.mubr.f32.gmra.mxu0 %v2013_v50  ;;  %v7449_v54 = vadd.f32 %v7012_v53, %v1913_v48 }
 0x511   :  { %v6593_v55 = vpop.f32.mrf.mxu1  ;;  %2125 = vmatprep.mubr.f32.mxu0 %v7144_v0 }
 0x512   :  { %v1914_v56 = vmul.f32 %v1856_v52, %v7415_v13  ;;  %v6594_v57 = vadd.f32 %v6593_v55, %v6592_v51  ;;  %v2014_v60 = vmul.f32 %v7419_v21, %v7449_v54  ;;  %v7019_v55 = vld [vmem:[#allocation2 + $0x58] sm:$0xff] }
 0x513   :  { %v6595_v62 = vpop.f32.mrf.mxu1 }
 0x514   :  { %v1861_v63 = vadd.f32 %v6594_v57, %v7413_v11  ;;  %2126 = vmatmul.mubr.f32.gmra.mxu0 %v2014_v60  ;;  %v7456_v4 = vadd.f32 %v7013_v1, %v1914_v56 }
 0x515   :  { %v6596_v5 = vpop.f32.mrf.mxu1  ;;  %2131 = vmatprep.mubr.f32.mxu0 %v7144_v0 }
 0x516   :  { %v1915_v6 = vmul.f32 %v1861_v63, %v7415_v13  ;;  %v6597_v7 = vadd.f32 %v6596_v5, %v6595_v62  ;;  %v2015_v8 = vmul.f32 %v7419_v21, %v7456_v4 }
 0x517   :  { %v6598_v9 = vpop.f32.mrf.mxu1 }
 0x518   :  { %v1866_v58 = vadd.f32 %v6597_v7, %v7413_v11  ;;  %2132 = vmatmul.mubr.f32.gmra.mxu0 %v2015_v8  ;;  %v7463_v12 = vadd.f32 %v7014_v10, %v1915_v6  ;;  %v7020_v6 = vld [vmem:[#allocation2 + $0x60] sm:$0xff] }
 0x519   :  { %v6599_v59 = vpop.f32.mrf.mxu1  ;;  %2137 = vmatprep.mubr.f32.mxu0 %v7144_v0 }
 0x51a   :  { %v1916_v3 = vmul.f32 %v1866_v58, %v7415_v13  ;;  %v6600_v14 = vadd.f32 %v6599_v59, %v6598_v9  ;;  %v2016_v15 = vmul.f32 %v7419_v21, %v7463_v12 }
 0x51b   :  { %v6601_v16 = vpop.f32.mrf.mxu1 }
 0x51c   :  { %v1871_v20 = vadd.f32 %v6600_v14, %v7413_v11  ;;  %2138 = vmatmul.mubr.f32.gmra.mxu0 %v2016_v15  ;;  %v7470_v23 = vadd.f32 %v7015_v22, %v1916_v3  ;;  %v7021_v14 = vld [vmem:[#allocation2 + $0x68] sm:$0xff] }
 0x51d   :  { %v6602_v25 = vpop.f32.mrf.mxu1  ;;  %2143 = vmatprep.mubr.f32.mxu0 %v7144_v0 }
 0x51e   :  { %v1917_v26 = vmul.f32 %v1871_v20, %v7415_v13  ;;  %v6603_v27 = vadd.f32 %v6602_v25, %v6601_v16  ;;  %v2017_v43 = vmul.f32 %v7419_v21, %v7470_v23 }
 0x51f   :  { %v6604_v28 = vpop.f32.mrf.mxu1 }
 0x520   :  { %v7476_v29 = vadd.f32 %v7016_v18, %v1917_v26  ;;  %v1876_v30 = vadd.f32 %v6603_v27, %v7413_v11  ;;  %2144 = vmatmul.mubr.f32.gmra.mxu0 %v2017_v43  ;;  %v7022_v27 = vld [vmem:[#allocation2 + $0x70] sm:$0xff] }
 0x521   :  { %v6605_v32 = vpop.f32.mrf.mxu1  ;;  %2149 = vmatprep.mubr.f32.mxu0 %v7144_v0 }
 0x522   :  { %v1918_v33 = vmul.f32 %v1876_v30, %v7415_v13  ;;  %v6606_v34 = vadd.f32 %v6605_v32, %v6604_v28  ;;  %v2018_v35 = vmul.f32 %v7419_v21, %v7476_v29  ;;  %v7023_v32 = vld [vmem:[#allocation2 + $0x78] sm:$0xff] }
 0x523   :  { %v6607_v36 = vpop.f32.mrf.mxu1 }
 0x524   :  { %v7483_v38 = vadd.f32 %v7017_v37, %v1918_v33  ;;  %v1881_v40 = vadd.f32 %v6606_v34, %v7413_v11  ;;  %2150 = vmatmul.mubr.f32.gmra.mxu0 %v2018_v35  ;;  %v2333_v35 = vld [vmem:[#allocation5 + $0xc38] sm:$0xff] }
 0x525   :  { %v6608_v41 = vpop.f32.mrf.mxu1  ;;  %2155 = vmatprep.mubr.f32.mxu0 %v7144_v0  ;;  %2427 = vmatprep.subr.mxu1 %v2333_v35  ;;  %v2329_v37 = vld [vmem:[#allocation5 + $0xc18] sm:$0xff]  ;;  %v2686_v35 = vld [vmem:[#allocation5 + $0xed0] sm:$0xff] }
 0x526   :  { %v1919_v17 = vmul.f32 %v1881_v40, %v7415_v13  ;;  %v6609_v42 = vadd.f32 %v6608_v41, %v6607_v36  ;;  %v2019_v44 = vmul.f32 %v7419_v21, %v7483_v38  ;;  %v2331_v36 = vld [vmem:[#allocation5 + $0xc28] sm:$0xff]  ;;  %v2328_v40 = vld [vmem:[#allocation5 + $0xc10] sm:$0xff] }
 0x527   :  { %v6610_v45 = vpop.f32.mrf.mxu1  ;;  %v2327_v41 = vld [vmem:[#allocation5 + $0xc08] sm:$0xff] }
 0x528   :  { %v7490_v47 = vadd.f32 %v7018_v31, %v1919_v17  ;;  %v1886_v48 = vadd.f32 %v6609_v42, %v7413_v11  ;;  %2156 = vmatmul.mubr.f32.gmra.mxu0 %v2019_v44  ;;  %v2326_v17 = vld [vmem:[#allocation5 + $0xc00] sm:$0xff]  ;;  %v2659_v42 = vld [vmem:[#allocation5 + $0xdf8] sm:$0xff]  ;;  %v2658_v44 = vld [vmem:[#allocation5 + $0xdf0] sm:$0xff] }
 0x529   :  { %v6611_v49 = vpop.f32.mrf.mxu1  ;;  %2161 = vmatprep.mubr.f32.mxu0 %v7144_v0  ;;  %2705 = vmatprep.subr.mxu0 %v2659_v42  ;;  %v2655_v31 = vld [vmem:[#allocation5 + $0xdd8] sm:$0xff]  ;;  %v2678_v42 = vld [vmem:[#allocation5 + $0xe90] sm:$0xff] }
 0x52a   :  { %v1920_v50 = vmul.f32 %v1886_v48, %v7415_v13  ;;  %v6612_v51 = vadd.f32 %v6611_v49, %v6610_v45  ;;  %v2020_v52 = vmul.f32 %v7419_v21, %v7490_v47  ;;  %v2656_v45 = vld [vmem:[#allocation5 + $0xde0] sm:$0xff]  ;;  %2706 = vmatpush1.msra.mxu0 %v2658_v44  ;;  %v2654_v48 = vld [vmem:[#allocation5 + $0xdd0] sm:$0xff]  ;;  %v2653_v49 = vld [vmem:[#allocation5 + $0xdc8] sm:$0xff] }
 0x52b   :  { %v6613_v53 = vpop.f32.mrf.mxu1  ;;  %v2677_v44 = vld [vmem:[#allocation5 + $0xe88] sm:$0xff] }
 0x52c   :  { %v7497_v56 = vadd.f32 %v7019_v55, %v1920_v50  ;;  %v1891_v57 = vadd.f32 %v6612_v51, %v7413_v11  ;;  %2162 = vmatmul.mubr.f32.gmra.mxu0 %v2020_v52  ;;  %v2652_v50 = vld [vmem:[#allocation5 + $0xdc0] sm:$0xff]  ;;  %v2651_v51 = vld [vmem:[#allocation5 + $0xdb8] sm:$0xff]  ;;  %v2650_v52 = vld [vmem:[#allocation5 + $0xdb0] sm:$0xff] }
 0x52d   :  { %v6614_v60 = vpop.f32.mrf.mxu1  ;;  %2167 = vmatprep.mubr.f32.mxu0 %v7144_v0  ;;  %v2648_v55 = vld [vmem:[#allocation5 + $0xda0] sm:$0xff] }
 0x52e   :  { %v1921_v62 = vmul.f32 %v1891_v57, %v7415_v13  ;;  %v6615_v63 = vadd.f32 %v6614_v60, %v6613_v53  ;;  %v2021_v1 = vmul.f32 %v7419_v21, %v7497_v56  ;;  %v2649_v53 = vld [vmem:[#allocation5 + $0xda8] sm:$0xff]  ;;  %v2647_v57 = vld [vmem:[#allocation5 + $0xd98] sm:$0xff]  ;;  %v2646_v60 = vld [vmem:[#allocation5 + $0xd90] sm:$0xff] }
 0x52f   :  { %v6616_v5 = vpop.f32.mrf.mxu1 }
 0x530   :  { %v7504_v7 = vadd.f32 %v7020_v6, %v1921_v62  ;;  %v1896_v8 = vadd.f32 %v6615_v63, %v7413_v11  ;;  %2168 = vmatmul.mubr.f32.gmra.mxu0 %v2021_v1  ;;  %v2645_v62 = vld [vmem:[#allocation5 + $0xd88] sm:$0xff]  ;;  %v2644_v63 = vld [vmem:[#allocation5 + $0xd80] sm:$0xff]  ;;  %v2643_v1 = vld [vmem:[#allocation5 + $0xd78] sm:$0xff] }
 0x531   :  { %v6617_v9 = vpop.f32.mrf.mxu1  ;;  %2173 = vmatprep.mubr.f32.mxu0 %v7144_v0  ;;  %v2641_v6 = vld [vmem:[#allocation5 + $0xd68] sm:$0xff] }
 0x532   :  { %v1922_v58 = vmul.f32 %v1896_v8, %v7415_v13  ;;  %v6618_v10 = vadd.f32 %v6617_v9, %v6616_v5  ;;  %v2022_v59 = vmul.f32 %v7419_v21, %v7504_v7  ;;  %v2642_v5 = vld [vmem:[#allocation5 + $0xd70] sm:$0xff]  ;;  %v2640_v8 = vld [vmem:[#allocation5 + $0xd60] sm:$0xff]  ;;  %v2639_v9 = vld [vmem:[#allocation5 + $0xd58] sm:$0xff] }
 0x533   :  { %v6619_v3 = vpop.f32.mrf.mxu1 }
 0x534   :  { %v7511_v15 = vadd.f32 %v7021_v14, %v1922_v58  ;;  %v1901_v16 = vadd.f32 %v6618_v10, %v7413_v11  ;;  %2174 = vmatmul.mubr.f32.gmra.mxu0 %v2022_v59  ;;  %v2638_v58 = vld [vmem:[#allocation5 + $0xd50] sm:$0xff]  ;;  %v2637_v10 = vld [vmem:[#allocation5 + $0xd48] sm:$0xff]  ;;  %v2636_v59 = vld [vmem:[#allocation5 + $0xd40] sm:$0xff] }
 0x535   :  { %v6620_v20 = vpop.f32.mrf.mxu1  ;;  %2179 = vmatprep.mubr.f32.mxu0 %v7144_v0  ;;  %v2634_v14 = vld [vmem:[#allocation5 + $0xd30] sm:$0xff] }
 0x536   :  { %v1923_v22 = vmul.f32 %v1901_v16, %v7415_v13  ;;  %v6621_v25 = vadd.f32 %v6620_v20, %v6619_v3  ;;  %v2023_v26 = vmul.f32 %v7419_v21, %v7511_v15  ;;  %v2635_v3 = vld [vmem:[#allocation5 + $0xd38] sm:$0xff]  ;;  %v2633_v16 = vld [vmem:[#allocation5 + $0xd28] sm:$0xff]  ;;  %v2632_v20 = vld [vmem:[#allocation5 + $0xd20] sm:$0xff] }
 0x538   :  { %v7518_v43 = vadd.f32 %v7022_v27, %v1923_v22  ;;  %v1906_v28 = vadd.f32 %v6621_v25, %v7413_v11  ;;  %2180 = vmatmul.mubr.f32.gmra.mxu0 %v2023_v26  ;;  %v2332_v11 = vld [vmem:[#allocation5 + $0xc30] sm:$0xff]  ;;  %v2631_v22 = vld [vmem:[#allocation5 + $0xd18] sm:$0xff]  ;;  %v2629_v26 = vld [vmem:[#allocation5 + $0xd08] sm:$0xff] }
 0x539   :  { %2185 = vmatprep.mubr.f32.mxu0 %v7144_v0  ;;  %2428 = vmatpush2.msra.mxu1 %v2332_v11  ;;  %v2630_v25 = vld [vmem:[#allocation5 + $0xd10] sm:$0xff]  ;;  %v2628_v27 = vld [vmem:[#allocation5 + $0xd00] sm:$0xff]  ;;  %v2685_v11 = vld [vmem:[#allocation5 + $0xec8] sm:$0xff] }
 0x53a   :  { %v1924_v18 = vmul.f32 %v1906_v28, %v7415_v13  ;;  %v2024_v30 = vmul.f32 %v7419_v21, %v7518_v43  ;;  %2429 = vmatprep.subr.mxu1 %v2331_v36  ;;  %v2330_v13 = vld [vmem:[#allocation5 + $0xc20] sm:$0xff]  ;;  %v2691_v28 = vld [vmem:[#allocation5 + $0xef8] sm:$0xff] }
 0x53b   :  { %2430 = vmatpush2.msra.mxu1 %v2330_v13  ;;  %v2684_v36 = vld [vmem:[#allocation5 + $0xec0] sm:$0xff]  ;;  %v2683_v13 = vld [vmem:[#allocation5 + $0xeb8] sm:$0xff] }
 0x53c   :  { %v7525_v33 = vadd.f32 %v7023_v32, %v1924_v18  ;;  %2186 = vmatmul.mubr.f32.gmra.mxu0 %v2024_v30  ;;  %2431 = vmatprep.subr.mxu1 %v2329_v37  ;;  %v2690_v18 = vld [vmem:[#allocation5 + $0xef0] sm:$0xff]  ;;  %v2689_v30 = vld [vmem:[#allocation5 + $0xee8] sm:$0xff]  ;;  %v2688_v32 = vld [vmem:[#allocation5 + $0xee0] sm:$0xff] }
 0x53d   :  { %2191 = vmatprep.mubr.f32.mxu0 %v7144_v0  ;;  %2432 = vmatpush2.msra.mxu1 %v2328_v40  ;;  %v2682_v37 = vld [vmem:[#allocation5 + $0xeb0] sm:$0xff]  ;;  %v2681_v40 = vld [vmem:[#allocation5 + $0xea8] sm:$0xff] }
 0x53e   :  { %v2025_v34 = vmul.f32 %v7419_v21, %v7525_v33  ;;  %2433 = vmatprep.subr.mxu1 %v2327_v41  ;;  %v2657_v21 = vld [vmem:[#allocation5 + $0xde8] sm:$0xff]  ;;  %v2680_v41 = vld [vmem:[#allocation5 + $0xea0] sm:$0xff] }
 0x53f   :  { %2434 = vmatpush2.msra.mxu1 %v2326_v17  ;;  %2707 = vmatprep.subr.mxu0 %v2657_v21  ;;  %v2679_v17 = vld [vmem:[#allocation5 + $0xe98] sm:$0xff]  ;;  %v2676_v21 = vld [vmem:[#allocation5 + $0xe80] sm:$0xff] }
 0x540   :  { %2192 = vmatmul.mubr.f32.gmra.mxu0 %v2025_v34  ;;  %v2687_v34 = vld [vmem:[#allocation5 + $0xed8] sm:$0xff] }
 0x541   :  { %2708 = vmatpush1.msra.mxu0 %v2656_v45  ;;  %v2675_v45 = vld [vmem:[#allocation5 + $0xe78] sm:$0xff] }
 0x542   :  { %2709 = vmatprep.subr.mxu0 %v2655_v31  ;;  %v2674_v31 = vld [vmem:[#allocation5 + $0xe70] sm:$0xff] }
 0x543   :  { %2710 = vmatpush1.msra.mxu0 %v2654_v48  ;;  %v2673_v48 = vld [vmem:[#allocation5 + $0xe68] sm:$0xff] }
 0x544   :  { %2711 = vmatprep.subr.mxu0 %v2653_v49  ;;  %v2672_v49 = vld [vmem:[#allocation5 + $0xe60] sm:$0xff] }
 0x545   :  { %2712 = vmatpush1.msra.mxu0 %v2652_v50  ;;  %v2671_v50 = vld [vmem:[#allocation5 + $0xe58] sm:$0xff] }
 0x546   :  { %2713 = vmatprep.subr.mxu0 %v2651_v51  ;;  %v2670_v51 = vld [vmem:[#allocation5 + $0xe50] sm:$0xff] }
 0x547   :  { %2714 = vmatpush1.msra.mxu0 %v2650_v52  ;;  %v2669_v52 = vld [vmem:[#allocation5 + $0xe48] sm:$0xff] }
 0x548   :  { %2715 = vmatprep.subr.mxu0 %v2649_v53  ;;  %v1944_v53 = vld [vmem:[#allocation7 + $0x7] ss:$8 sm:$0x3] }
 0x549   :  { %2716 = vmatpush1.msra.mxu0 %v2648_v55  ;;  %v2668_v55 = vld [vmem:[#allocation5 + $0xe40] sm:$0xff] }
 0x54a   :  { %2717 = vmatprep.subr.mxu0 %v2647_v57  ;;  %v7531_v57 = vrot.slane %v1944_v53, %v7218_v61 }
 0x54b   :  { %2718 = vmatpush1.msra.mxu0 %v2646_v60  ;;  %v7534_v60 = vrot.slane %v1944_v53, %v7220_v2 }
 0x54c   :  { %2719 = vmatprep.subr.mxu0 %v2645_v62 }
 0x54d   :  { %2720 = vmatpush1.msra.mxu0 %v2644_v63 }
 0x54e   :  { %2721 = vmatprep.subr.mxu0 %v2643_v1 }
 0x54f   :  { %2722 = vmatpush1.msra.mxu0 %v2642_v5 }
 0x550   :  { %2723 = vmatprep.subr.mxu0 %v2641_v6 }
 0x551   :  { %2724 = vmatpush1.msra.mxu0 %v2640_v8 }
 0x552   :  { %2725 = vmatprep.subr.mxu0 %v2639_v9 }
 0x553   :  { %2726 = vmatpush1.msra.mxu0 %v2638_v58 }
 0x554   :  { %2727 = vmatprep.subr.mxu0 %v2637_v10 }
 0x555   :  { %2728 = vmatpush1.msra.mxu0 %v2636_v59 }
 0x556   :  { %2729 = vmatprep.subr.mxu0 %v2635_v3 }
 0x557   :  { %2730 = vmatpush1.msra.mxu0 %v2634_v14 }
 0x558   :  { %2731 = vmatprep.subr.mxu0 %v2633_v16 }
 0x559   :  { %2732 = vmatpush1.msra.mxu0 %v2632_v20 }
 0x55a   :  { %2733 = vmatprep.subr.mxu0 %v2631_v22 }
 0x55b   :  { %2734 = vmatpush1.msra.mxu0 %v2630_v25 }
 0x55c   :  { %2735 = vmatprep.subr.mxu0 %v2629_v26 }
 0x55d   :  { %2736 = vmatpush1.msra.mxu0 %v2628_v27 }
 0x55e   :  { %2737 = vmatprep.subr.mxu0 %v2691_v28 }
 0x55f   :  { %2738 = vmatpush2.msra.mxu0 %v2690_v18 }
 0x560   :  { %2739 = vmatprep.subr.mxu0 %v2689_v30 }
 0x561   :  { %2740 = vmatpush2.msra.mxu0 %v2688_v32 }
 0x562   :  { %2741 = vmatprep.subr.mxu0 %v2687_v34 }
 0x563   :  { %2742 = vmatpush2.msra.mxu0 %v2686_v35 }
 0x564   :  { %2743 = vmatprep.subr.mxu0 %v2685_v11 }
 0x565   :  { %2744 = vmatpush2.msra.mxu0 %v2684_v36 }
 0x566   :  { %2745 = vmatprep.subr.mxu0 %v2683_v13 }
 0x567   :  { %2746 = vmatpush2.msra.mxu0 %v2682_v37 }
 0x568   :  { %2747 = vmatprep.subr.mxu0 %v2681_v40 }
 0x569   :  { %2748 = vmatpush2.msra.mxu0 %v2680_v41 }
 0x56a   :  { %2749 = vmatprep.subr.mxu0 %v2679_v17 }
 0x56b   :  { %2750 = vmatpush2.msra.mxu0 %v2678_v42 }
 0x56c   :  { %2751 = vmatprep.subr.mxu0 %v2677_v44 }
 0x56d   :  { %2752 = vmatpush2.msra.mxu0 %v2676_v21 }
 0x56e   :  { %2753 = vmatprep.subr.mxu0 %v2675_v45 }
 0x56f   :  { %2754 = vmatpush2.msra.mxu0 %v2674_v31 }
 0x570   :  { %2755 = vmatprep.subr.mxu0 %v2673_v48 }
 0x571   :  { %2756 = vmatpush2.msra.mxu0 %v2672_v49 }
 0x572   :  { %2757 = vmatprep.subr.mxu0 %v2671_v50 }
 0x573   :  { %2758 = vmatpush2.msra.mxu0 %v2670_v51 }
 0x574   :  { %2759 = vmatprep.subr.mxu0 %v2669_v52 }
 0x575   :  { %2760 = vmatpush2.msra.mxu0 %v2668_v55 }
 0x5c4   :  { %v2103_v62 = vpop.f32.mrf.mxu0 }
 0x5c5   :  { %v2104_v63 = vadd.f32 %v2103_v62, %v7531_v57 }
 0x5c6   :  { %v2105_v1 = vpop.f32.mrf.mxu0 }
 0x5c7   :  { %v2106_v5 = vadd.f32 %v2105_v1, %v7534_v60  ;;  %v2230_v6 = vmul.f32 0.2, %v2104_v63  ;;  %vm2198_vm0 = vcmp.ge.f32.partialorder %v2104_v63, 0.0 }
 0x5c8   :  { %v2109_v8 = vpop.f32.mrf.mxu0 }
 0x5c9   :  { %v2110_v9 = vadd.f32 %v2109_v8, %v7531_v57  ;;  %vm2199_vm1 = vcmp.ge.f32.partialorder %v2106_v5, 0.0  ;;  %v2231_v58 = vmul.f32 0.2, %v2106_v5  ;;  %v2262_v14 = vsel %vm2198_vm0, %v2104_v63, %v2230_v6 }
 0x5ca   :  { %v2111_v10 = vpop.f32.mrf.mxu0 }
 0x5cb   :  { %v2112_v59 = vadd.f32 %v2111_v10, %v7534_v60  ;;  %v2263_v3 = vsel %vm2199_vm1, %v2106_v5, %v2231_v58  ;;  %v2232_v16 = vmul.f32 0.2, %v2110_v9  ;;  %vm2200_vm3 = vcmp.ge.f32.partialorder %v2110_v9, 0.0 }
 0x5cc   :  { %v2115_v20 = vpop.f32.mrf.mxu0  ;;  %2435 = vmatprep.mubr.f32.mxu1 %v2263_v3 }
 0x5cd   :  { %v2116_v22 = vadd.f32 %v2115_v20, %v7531_v57  ;;  %2436 = vmatmul.mubr.f32.vlgmr.msra.gmra.mxu1 %v2262_v14  ;;  %vm2201_vm2 = vcmp.ge.f32.partialorder %v2112_v59, 0.0  ;;  %v2233_v25 = vmul.f32 0.2, %v2112_v59  ;;  %v2264_v32 = vsel %vm2200_vm3, %v2110_v9, %v2232_v16 }
 0x5ce   :  { %v2117_v26 = vpop.f32.mrf.mxu0 }
 0x5cf   :  { %v2118_v27 = vadd.f32 %v2117_v26, %v7534_v60  ;;  %v2265_v28 = vsel %vm2201_vm2, %v2112_v59, %v2233_v25  ;;  %v2234_v18 = vmul.f32 0.2, %v2116_v22  ;;  %vm2202_vm5 = vcmp.ge.f32.partialorder %v2116_v22, 0.0 }
 0x5d0   :  { %v2121_v30 = vpop.f32.mrf.mxu0  ;;  %2441 = vmatprep.mubr.f32.mxu1 %v2265_v28 }
 0x5d1   :  { %v2122_v34 = vadd.f32 %v2121_v30, %v7531_v57  ;;  %2442 = vmatmul.mubr.f32.gmra.mxu1 %v2264_v32  ;;  %vm2203_vm4 = vcmp.ge.f32.partialorder %v2118_v27, 0.0  ;;  %v2235_v35 = vmul.f32 0.2, %v2118_v27  ;;  %v2266_v41 = vsel %vm2202_vm5, %v2116_v22, %v2234_v18 }
 0x5d2   :  { %v2123_v11 = vpop.f32.mrf.mxu0 }
 0x5d3   :  { %v2124_v36 = vadd.f32 %v2123_v11, %v7534_v60  ;;  %v2267_v13 = vsel %vm2203_vm4, %v2118_v27, %v2235_v35  ;;  %v2236_v37 = vmul.f32 0.2, %v2122_v34  ;;  %vm2204_vm7 = vcmp.ge.f32.partialorder %v2122_v34, 0.0 }
 0x5d4   :  { %v2127_v40 = vpop.f32.mrf.mxu0  ;;  %2447 = vmatprep.mubr.f32.mxu1 %v2267_v13 }
 0x5d5   :  { %v2128_v17 = vadd.f32 %v2127_v40, %v7531_v57  ;;  %2448 = vmatmul.mubr.f32.gmra.mxu1 %v2266_v41  ;;  %vm2205_vm6 = vcmp.ge.f32.partialorder %v2124_v36, 0.0  ;;  %v2237_v42 = vmul.f32 0.2, %v2124_v36  ;;  %v2268_v49 = vsel %vm2204_vm7, %v2122_v34, %v2236_v37 }
 0x5d6   :  { %v2129_v44 = vpop.f32.mrf.mxu0 }
 0x5d7   :  { %v2130_v21 = vadd.f32 %v2129_v44, %v7534_v60  ;;  %v2269_v45 = vsel %vm2205_vm6, %v2124_v36, %v2237_v42  ;;  %v2238_v31 = vmul.f32 0.2, %v2128_v17  ;;  %vm2206_vm9 = vcmp.ge.f32.partialorder %v2128_v17, 0.0 }
 0x5d8   :  { %v2133_v48 = vpop.f32.mrf.mxu0  ;;  %2453 = vmatprep.mubr.f32.mxu1 %v2269_v45 }
 0x5d9   :  { %v2134_v50 = vadd.f32 %v2133_v48, %v7531_v57  ;;  %2454 = vmatmul.mubr.f32.gmra.mxu1 %v2268_v49  ;;  %vm2207_vm8 = vcmp.ge.f32.partialorder %v2130_v21, 0.0  ;;  %v2239_v51 = vmul.f32 0.2, %v2130_v21  ;;  %v2270_v1 = vsel %vm2206_vm9, %v2128_v17, %v2238_v31 }
 0x5da   :  { %v2135_v52 = vpop.f32.mrf.mxu0 }
 0x5db   :  { %v2136_v53 = vadd.f32 %v2135_v52, %v7534_v60  ;;  %v2271_v55 = vsel %vm2207_vm8, %v2130_v21, %v2239_v51  ;;  %v2240_v62 = vmul.f32 0.2, %v2134_v50  ;;  %vm2208_vm11 = vcmp.ge.f32.partialorder %v2134_v50, 0.0 }
 0x5dc   :  { %v2139_v63 = vpop.f32.mrf.mxu0  ;;  %2459 = vmatprep.mubr.f32.mxu1 %v2271_v55 }
 0x5dd   :  { %v2140_v5 = vadd.f32 %v2139_v63, %v7531_v57  ;;  %2460 = vmatmul.mubr.f32.gmra.mxu1 %v2270_v1  ;;  %vm2209_vm10 = vcmp.ge.f32.partialorder %v2136_v53, 0.0  ;;  %v2241_v6 = vmul.f32 0.2, %v2136_v53  ;;  %v2272_v3 = vsel %vm2208_vm11, %v2134_v50, %v2240_v62 }
 0x5de   :  { %v2141_v8 = vpop.f32.mrf.mxu0 }
 0x5df   :  { %v2142_v9 = vadd.f32 %v2141_v8, %v7534_v60  ;;  %v2273_v58 = vsel %vm2209_vm10, %v2136_v53, %v2241_v6  ;;  %v2242_v10 = vmul.f32 0.2, %v2140_v5  ;;  %vm2210_vm13 = vcmp.ge.f32.partialorder %v2140_v5, 0.0 }
 0x5e0   :  { %v2145_v59 = vpop.f32.mrf.mxu0  ;;  %2465 = vmatprep.mubr.f32.mxu1 %v2273_v58 }
 0x5e1   :  { %v2146_v14 = vadd.f32 %v2145_v59, %v7531_v57  ;;  %2466 = vmatmul.mubr.f32.gmra.mxu1 %v2272_v3  ;;  %vm2211_vm12 = vcmp.ge.f32.partialorder %v2142_v9, 0.0  ;;  %v2243_v16 = vmul.f32 0.2, %v2142_v9  ;;  %v2274_v28 = vsel %vm2210_vm13, %v2140_v5, %v2242_v10 }
 0x5e2   :  { %v2147_v20 = vpop.f32.mrf.mxu0 }
 0x5e3   :  { %v2148_v22 = vadd.f32 %v2147_v20, %v7534_v60  ;;  %v2275_v25 = vsel %vm2211_vm12, %v2142_v9, %v2243_v16  ;;  %v2244_v26 = vmul.f32 0.2, %v2146_v14  ;;  %vm2212_vm15 = vcmp.ge.f32.partialorder %v2146_v14, 0.0 }
 0x5e4   :  { %v2151_v27 = vpop.f32.mrf.mxu0  ;;  %2471 = vmatprep.mubr.f32.mxu1 %v2275_v25 }
 0x5e5   :  { %v2152_v18 = vadd.f32 %v2151_v27, %v7531_v57  ;;  %2472 = vmatmul.mubr.f32.gmra.mxu1 %v2274_v28  ;;  %vm2213_vm14 = vcmp.ge.f32.partialorder %v2148_v22, 0.0  ;;  %v2245_v30 = vmul.f32 0.2, %v2148_v22  ;;  %v2276_v13 = vsel %vm2212_vm15, %v2146_v14, %v2244_v26 }
 0x5e6   :  { %v2153_v32 = vpop.f32.mrf.mxu0 }
 0x5e7   :  { %v2154_v34 = vadd.f32 %v2153_v32, %v7534_v60  ;;  %v2277_v35 = vsel %vm2213_vm14, %v2148_v22, %v2245_v30  ;;  %v2246_v11 = vmul.f32 0.2, %v2152_v18  ;;  %vm2214_vm0 = vcmp.ge.f32.partialorder %v2152_v18, 0.0 }
 0x5e8   :  { %v2157_v36 = vpop.f32.mrf.mxu0  ;;  %2477 = vmatprep.mubr.f32.mxu1 %v2277_v35 }
 0x5e9   :  { %v2158_v37 = vadd.f32 %v2157_v36, %v7531_v57  ;;  %2478 = vmatmul.mubr.f32.gmra.mxu1 %v2276_v13  ;;  %vm2215_vm1 = vcmp.ge.f32.partialorder %v2154_v34, 0.0  ;;  %v2247_v40 = vmul.f32 0.2, %v2154_v34  ;;  %v2278_v45 = vsel %vm2214_vm0, %v2152_v18, %v2246_v11 }
 0x5ea   :  { %v2159_v41 = vpop.f32.mrf.mxu0 }
 0x5eb   :  { %v2160_v17 = vadd.f32 %v2159_v41, %v7534_v60  ;;  %v2279_v42 = vsel %vm2215_vm1, %v2154_v34, %v2247_v40  ;;  %v2248_v44 = vmul.f32 0.2, %v2158_v37  ;;  %vm2216_vm2 = vcmp.ge.f32.partialorder %v2158_v37, 0.0 }
 0x5ec   :  { %v2163_v21 = vpop.f32.mrf.mxu0  ;;  %2483 = vmatprep.mubr.f32.mxu1 %v2279_v42 }
 0x5ed   :  { %v2164_v31 = vadd.f32 %v2163_v21, %v7531_v57  ;;  %2484 = vmatmul.mubr.f32.gmra.mxu1 %v2278_v45  ;;  %vm2217_vm3 = vcmp.ge.f32.partialorder %v2160_v17, 0.0  ;;  %v2249_v48 = vmul.f32 0.2, %v2160_v17  ;;  %v2280_v55 = vsel %vm2216_vm2, %v2158_v37, %v2248_v44 }
 0x5ee   :  { %v2165_v49 = vpop.f32.mrf.mxu0 }
 0x5ef   :  { %v2166_v50 = vadd.f32 %v2165_v49, %v7534_v60  ;;  %v2281_v51 = vsel %vm2217_vm3, %v2160_v17, %v2249_v48  ;;  %v2250_v52 = vmul.f32 0.2, %v2164_v31  ;;  %vm2218_vm4 = vcmp.ge.f32.partialorder %v2164_v31, 0.0 }
 0x5f0   :  { %v2169_v53 = vpop.f32.mrf.mxu0  ;;  %2489 = vmatprep.mubr.f32.mxu1 %v2281_v51 }
 0x5f1   :  { %v2170_v62 = vadd.f32 %v2169_v53, %v7531_v57  ;;  %2490 = vmatmul.mubr.f32.gmra.mxu1 %v2280_v55  ;;  %vm2219_vm5 = vcmp.ge.f32.partialorder %v2166_v50, 0.0  ;;  %v2251_v63 = vmul.f32 0.2, %v2166_v50  ;;  %v2282_v58 = vsel %vm2218_vm4, %v2164_v31, %v2250_v52  ;;  %v2667_v55 = vld [vmem:[#allocation5 + $0xe38] sm:$0xff] }
 0x5f2   :  { %v2171_v1 = vpop.f32.mrf.mxu0  ;;  %2761 = vmatprep.subr.mxu0 %v2667_v55  ;;  %v3020_v55 = vld [vmem:[#allocation5 + $0x10d0] sm:$0xff] }
 0x5f3   :  { %v2172_v5 = vadd.f32 %v2171_v1, %v7534_v60  ;;  %v2283_v6 = vsel %vm2219_vm5, %v2166_v50, %v2251_v63  ;;  %v2252_v8 = vmul.f32 0.2, %v2170_v62  ;;  %vm2220_vm6 = vcmp.ge.f32.partialorder %v2170_v62, 0.0  ;;  %v2664_v63 = vld [vmem:[#allocation5 + $0xe20] sm:$0xff]  ;;  %v2662_v1 = vld [vmem:[#allocation5 + $0xe10] sm:$0xff] }
 0x5f4   :  { %v2175_v9 = vpop.f32.mrf.mxu0  ;;  %2495 = vmatprep.mubr.f32.mxu1 %v2283_v6  ;;  %v2660_v6 = vld [vmem:[#allocation5 + $0xe00] sm:$0xff] }
 0x5f5   :  { %v2176_v10 = vadd.f32 %v2175_v9, %v7531_v57  ;;  %2496 = vmatmul.mubr.f32.gmra.mxu1 %v2282_v58  ;;  %vm2221_vm7 = vcmp.ge.f32.partialorder %v2172_v5, 0.0  ;;  %v2253_v59 = vmul.f32 0.2, %v2172_v5  ;;  %v2284_v25 = vsel %vm2220_vm6, %v2170_v62, %v2252_v8  ;;  %v2665_v62 = vld [vmem:[#allocation5 + $0xe28] sm:$0xff]  ;;  %v2993_v8 = vld [vmem:[#allocation5 + $0xff8] sm:$0xff]  ;;  %v2992_v9 = vld [vmem:[#allocation5 + $0xff0] sm:$0xff] }
 0x5f6   :  { %v2177_v3 = vpop.f32.mrf.mxu0  ;;  %v2991_v58 = vld [vmem:[#allocation5 + $0xfe8] sm:$0xff]  ;;  %3039 = vmatprep.subr.mxu1 %v2993_v8  ;;  %v3012_v8 = vld [vmem:[#allocation5 + $0x1090] sm:$0xff] }
 0x5f7   :  { %v2178_v14 = vadd.f32 %v2177_v3, %v7534_v60  ;;  %v2285_v16 = vsel %vm2221_vm7, %v2172_v5, %v2253_v59  ;;  %v2254_v20 = vmul.f32 0.2, %v2176_v10  ;;  %vm2222_vm8 = vcmp.ge.f32.partialorder %v2176_v10, 0.0  ;;  %v2661_v5 = vld [vmem:[#allocation5 + $0xe08] sm:$0xff]  ;;  %3040 = vmatpush1.msra.mxu1 %v2992_v9  ;;  %v2989_v59 = vld [vmem:[#allocation5 + $0xfd8] sm:$0xff]  ;;  %v2988_v3 = vld [vmem:[#allocation5 + $0xfd0] sm:$0xff] }
 0x5f8   :  { %v2181_v22 = vpop.f32.mrf.mxu0  ;;  %2501 = vmatprep.mubr.f32.mxu1 %v2285_v16  ;;  %3041 = vmatprep.subr.mxu1 %v2991_v58  ;;  %v2986_v16 = vld [vmem:[#allocation5 + $0xfc0] sm:$0xff]  ;;  %v3011_v9 = vld [vmem:[#allocation5 + $0x1088] sm:$0xff] }
 0x5f9   :  { %v2182_v26 = vadd.f32 %v2181_v22, %v7531_v57  ;;  %2502 = vmatmul.mubr.f32.gmra.mxu1 %v2284_v25  ;;  %vm2223_vm9 = vcmp.ge.f32.partialorder %v2178_v14, 0.0  ;;  %v2255_v27 = vmul.f32 0.2, %v2178_v14  ;;  %v2286_v35 = vsel %vm2222_vm8, %v2176_v10, %v2254_v20  ;;  %v2990_v10 = vld [vmem:[#allocation5 + $0xfe0] sm:$0xff]  ;;  %v2985_v20 = vld [vmem:[#allocation5 + $0xfb8] sm:$0xff]  ;;  %v2984_v22 = vld [vmem:[#allocation5 + $0xfb0] sm:$0xff] }
 0x5fa   :  { %v2183_v28 = vpop.f32.mrf.mxu0  ;;  %3042 = vmatpush1.msra.mxu1 %v2990_v10  ;;  %v2983_v25 = vld [vmem:[#allocation5 + $0xfa8] sm:$0xff]  ;;  %v3010_v58 = vld [vmem:[#allocation5 + $0x1080] sm:$0xff]  ;;  %v3009_v10 = vld [vmem:[#allocation5 + $0x1078] sm:$0xff] }
 0x5fb   :  { %v2184_v18 = vadd.f32 %v2183_v28, %v7534_v60  ;;  %v2287_v30 = vsel %vm2223_vm9, %v2178_v14, %v2255_v27  ;;  %v2256_v32 = vmul.f32 0.2, %v2182_v26  ;;  %vm2224_vm10 = vcmp.ge.f32.partialorder %v2182_v26, 0.0  ;;  %v2987_v14 = vld [vmem:[#allocation5 + $0xfc8] sm:$0xff]  ;;  %3043 = vmatprep.subr.mxu1 %v2989_v59  ;;  %v2981_v27 = vld [vmem:[#allocation5 + $0xf98] sm:$0xff]  ;;  %v2980_v28 = vld [vmem:[#allocation5 + $0xf90] sm:$0xff] }
 0x5fc   :  { %v2187_v34 = vpop.f32.mrf.mxu0  ;;  %2507 = vmatprep.mubr.f32.mxu1 %v2287_v30  ;;  %3044 = vmatpush1.msra.mxu1 %v2988_v3  ;;  %v2978_v30 = vld [vmem:[#allocation5 + $0xf80] sm:$0xff]  ;;  %v3008_v59 = vld [vmem:[#allocation5 + $0x1070] sm:$0xff]  ;;  %v3007_v3 = vld [vmem:[#allocation5 + $0x1068] sm:$0xff] }
 0x5fd   :  { %v2188_v11 = vadd.f32 %v2187_v34, %v7531_v57  ;;  %2508 = vmatmul.mubr.f32.gmra.mxu1 %v2286_v35  ;;  %vm2225_vm11 = vcmp.ge.f32.partialorder %v2184_v18, 0.0  ;;  %v2257_v36 = vmul.f32 0.2, %v2184_v18  ;;  %v2288_v42 = vsel %vm2224_vm10, %v2182_v26, %v2256_v32  ;;  %3045 = vmatprep.subr.mxu1 %v2987_v14  ;;  %v2982_v26 = vld [vmem:[#allocation5 + $0xfa0] sm:$0xff]  ;;  %v2977_v32 = vld [vmem:[#allocation5 + $0xf78] sm:$0xff]  ;;  %v2976_v34 = vld [vmem:[#allocation5 + $0xf70] sm:$0xff] }
 0x5fe   :  { %v2189_v13 = vpop.f32.mrf.mxu0  ;;  %3046 = vmatpush1.msra.mxu1 %v2986_v16  ;;  %v2975_v35 = vld [vmem:[#allocation5 + $0xf68] sm:$0xff]  ;;  %v3006_v14 = vld [vmem:[#allocation5 + $0x1060] sm:$0xff]  ;;  %v3005_v16 = vld [vmem:[#allocation5 + $0x1058] sm:$0xff] }
 0x5ff   :  { %v2190_v37 = vadd.f32 %v2189_v13, %v7534_v60  ;;  %v2289_v40 = vsel %vm2225_vm11, %v2184_v18, %v2257_v36  ;;  %v2258_v41 = vmul.f32 0.2, %v2188_v11  ;;  %vm2226_vm12 = vcmp.ge.f32.partialorder %v2188_v11, 0.0  ;;  %3047 = vmatprep.subr.mxu1 %v2985_v20  ;;  %v2979_v18 = vld [vmem:[#allocation5 + $0xf88] sm:$0xff]  ;;  %v2973_v36 = vld [vmem:[#allocation5 + $0xf58] sm:$0xff]  ;;  %v2972_v13 = vld [vmem:[#allocation5 + $0xf50] sm:$0xff] }
 0x600   :  { %v2193_v17 = vpop.f32.mrf.mxu0  ;;  %2513 = vmatprep.mubr.f32.mxu1 %v2289_v40  ;;  %3048 = vmatpush1.msra.mxu1 %v2984_v22  ;;  %v2970_v40 = vld [vmem:[#allocation5 + $0xf40] sm:$0xff]  ;;  %v3004_v20 = vld [vmem:[#allocation5 + $0x1050] sm:$0xff]  ;;  %v3003_v22 = vld [vmem:[#allocation5 + $0x1048] sm:$0xff] }
 0x601   :  { %v2194_v44 = vadd.f32 %v2193_v17, %v7531_v57  ;;  %2514 = vmatmul.mubr.f32.gmra.mxu1 %v2288_v42  ;;  %vm2227_vm13 = vcmp.ge.f32.partialorder %v2190_v37, 0.0  ;;  %v2259_v21 = vmul.f32 0.2, %v2190_v37  ;;  %v2290_v50 = vsel %vm2226_vm12, %v2188_v11, %v2258_v41  ;;  %v2666_v57 = vld [vmem:[#allocation5 + $0xe30] sm:$0xff]  ;;  %3049 = vmatprep.subr.mxu1 %v2983_v25  ;;  %v2974_v11 = vld [vmem:[#allocation5 + $0xf60] sm:$0xff]  ;;  %v2969_v41 = vld [vmem:[#allocation5 + $0xf38] sm:$0xff] }
 0x602   :  { %v2195_v45 = vpop.f32.mrf.mxu0  ;;  %2762 = vmatpush2.msra.mxu0 %v2666_v57  ;;  %3050 = vmatpush1.msra.mxu1 %v2982_v26  ;;  %v2968_v17 = vld [vmem:[#allocation5 + $0xf30] sm:$0xff]  ;;  %v2967_v42 = vld [vmem:[#allocation5 + $0xf28] sm:$0xff]  ;;  %v3002_v26 = vld [vmem:[#allocation5 + $0x1040] sm:$0xff] }
 0x603   :  { %v2196_v31 = vadd.f32 %v2195_v45, %v7534_v60  ;;  %v2291_v48 = vsel %vm2227_vm13, %v2190_v37, %v2259_v21  ;;  %v2260_v49 = vmul.f32 0.2, %v2194_v44  ;;  %vm2228_vm14 = vcmp.ge.f32.partialorder %v2194_v44, 0.0  ;;  %2763 = vmatprep.subr.mxu0 %v2665_v62  ;;  %v2663_v60 = vld [vmem:[#allocation5 + $0xe18] sm:$0xff]  ;;  %3051 = vmatprep.subr.mxu1 %v2981_v27  ;;  %v2971_v37 = vld [vmem:[#allocation5 + $0xf48] sm:$0xff]  ;;  %v2964_v45 = vld [vmem:[#allocation5 + $0xf10] sm:$0xff] }
 0x604   :  { %2519 = vmatprep.mubr.f32.mxu1 %v2291_v48  ;;  %2764 = vmatpush2.msra.mxu0 %v2664_v63  ;;  %v2965_v21 = vld [vmem:[#allocation5 + $0xf18] sm:$0xff]  ;;  %v2962_v48 = vld [vmem:[#allocation5 + $0xf00] sm:$0xff]  ;;  %v3019_v57 = vld [vmem:[#allocation5 + $0x10c8] sm:$0xff] }
 0x605   :  { %2520 = vmatmul.mubr.f32.gmra.mxu1 %v2290_v50  ;;  %vm2229_vm15 = vcmp.ge.f32.partialorder %v2196_v31, 0.0  ;;  %v2261_v51 = vmul.f32 0.2, %v2196_v31  ;;  %v2292_v53 = vsel %vm2228_vm14, %v2194_v44, %v2260_v49  ;;  %2765 = vmatprep.subr.mxu0 %v2663_v60  ;;  %v2966_v44 = vld [vmem:[#allocation5 + $0xf20] sm:$0xff]  ;;  %v3025_v49 = vld [vmem:[#allocation5 + $0x10f8] sm:$0xff]  ;;  %v3024_v50 = vld [vmem:[#allocation5 + $0x10f0] sm:$0xff] }
 0x606   :  { %2766 = vmatpush2.msra.mxu0 %v2662_v1  ;;  %3052 = vmatpush1.msra.mxu1 %v2980_v28  ;;  %v3018_v62 = vld [vmem:[#allocation5 + $0x10c0] sm:$0xff]  ;;  %v3017_v63 = vld [vmem:[#allocation5 + $0x10b8] sm:$0xff]  ;;  %v3016_v60 = vld [vmem:[#allocation5 + $0x10b0] sm:$0xff] }
 0x607   :  { %v2293_v52 = vsel %vm2229_vm15, %v2196_v31, %v2261_v51  ;;  %2767 = vmatprep.subr.mxu0 %v2661_v5  ;;  %3053 = vmatprep.subr.mxu1 %v2979_v18  ;;  %v2963_v31 = vld [vmem:[#allocation5 + $0xf08] sm:$0xff]  ;;  %v3014_v5 = vld [vmem:[#allocation5 + $0x10a0] sm:$0xff]  ;;  %v2359_v25 = vld [vmem:[#allocation7 + $0x15] ss:$8 sm:$0x3] }
 0x608   :  { %2525 = vmatprep.mubr.f32.mxu1 %v2293_v52  ;;  %2768 = vmatpush2.msra.mxu0 %v2660_v6  ;;  %v3023_v51 = vld [vmem:[#allocation5 + $0x10e8] sm:$0xff]  ;;  %v3022_v52 = vld [vmem:[#allocation5 + $0x10e0] sm:$0xff]  ;;  %v3013_v6 = vld [vmem:[#allocation5 + $0x1098] sm:$0xff]  ;;  %v7569_v27 = vrot.slane %v2359_v25, %v7218_v61  ;;  %v7572_v28 = vrot.slane %v2359_v25, %v7220_v2 }
 0x609   :  { %2526 = vmatmul.mubr.f32.gmra.mxu1 %v2292_v53  ;;  %v3021_v53 = vld [vmem:[#allocation5 + $0x10d8] sm:$0xff]  ;;  %v3015_v1 = vld [vmem:[#allocation5 + $0x10a8] sm:$0xff] }
 0x60a   :  { %3054 = vmatpush1.msra.mxu1 %v2978_v30 }
 0x60b   :  { %3055 = vmatprep.subr.mxu1 %v2977_v32 }
 0x60c   :  { %3056 = vmatpush1.msra.mxu1 %v2976_v34 }
 0x60d   :  { %3057 = vmatprep.subr.mxu1 %v2975_v35 }
 0x60e   :  { %3058 = vmatpush1.msra.mxu1 %v2974_v11 }
 0x60f   :  { %3059 = vmatprep.subr.mxu1 %v2973_v36 }
 0x610   :  { %3060 = vmatpush1.msra.mxu1 %v2972_v13 }
 0x611   :  { %3061 = vmatprep.subr.mxu1 %v2971_v37 }
 0x612   :  { %3062 = vmatpush1.msra.mxu1 %v2970_v40 }
 0x613   :  { %3063 = vmatprep.subr.mxu1 %v2969_v41 }
 0x614   :  { %3064 = vmatpush1.msra.mxu1 %v2968_v17 }
 0x615   :  { %3065 = vmatprep.subr.mxu1 %v2967_v42 }
 0x616   :  { %3066 = vmatpush1.msra.mxu1 %v2966_v44 }
 0x617   :  { %3067 = vmatprep.subr.mxu1 %v2965_v21 }
 0x618   :  { %3068 = vmatpush1.msra.mxu1 %v2964_v45 }
 0x619   :  { %3069 = vmatprep.subr.mxu1 %v2963_v31 }
 0x61a   :  { %3070 = vmatpush1.msra.mxu1 %v2962_v48 }
 0x61b   :  { %3071 = vmatprep.subr.mxu1 %v3025_v49 }
 0x61c   :  { %3072 = vmatpush2.msra.mxu1 %v3024_v50 }
 0x61d   :  { %3073 = vmatprep.subr.mxu1 %v3023_v51 }
 0x61e   :  { %3074 = vmatpush2.msra.mxu1 %v3022_v52 }
 0x61f   :  { %3075 = vmatprep.subr.mxu1 %v3021_v53 }
 0x620   :  { %3076 = vmatpush2.msra.mxu1 %v3020_v55 }
 0x621   :  { %3077 = vmatprep.subr.mxu1 %v3019_v57 }
 0x622   :  { %3078 = vmatpush2.msra.mxu1 %v3018_v62 }
 0x623   :  { %3079 = vmatprep.subr.mxu1 %v3017_v63 }
 0x624   :  { %3080 = vmatpush2.msra.mxu1 %v3016_v60 }
 0x625   :  { %3081 = vmatprep.subr.mxu1 %v3015_v1 }
 0x626   :  { %3082 = vmatpush2.msra.mxu1 %v3014_v5 }
 0x627   :  { %3083 = vmatprep.subr.mxu1 %v3013_v6 }
 0x628   :  { %3084 = vmatpush2.msra.mxu1 %v3012_v8 }
 0x629   :  { %3085 = vmatprep.subr.mxu1 %v3011_v9 }
 0x62a   :  { %3086 = vmatpush2.msra.mxu1 %v3010_v58 }
 0x62b   :  { %3087 = vmatprep.subr.mxu1 %v3009_v10 }
 0x62c   :  { %3088 = vmatpush2.msra.mxu1 %v3008_v59 }
 0x62d   :  { %3089 = vmatprep.subr.mxu1 %v3007_v3 }
 0x62e   :  { %3090 = vmatpush2.msra.mxu1 %v3006_v14 }
 0x62f   :  { %3091 = vmatprep.subr.mxu1 %v3005_v16 }
 0x630   :  { %3092 = vmatpush2.msra.mxu1 %v3004_v20 }
 0x631   :  { %3093 = vmatprep.subr.mxu1 %v3003_v22 }
 0x632   :  { %3094 = vmatpush2.msra.mxu1 %v3002_v26 }
 0x68d   :  { %v2437_v18 = vpop.f32.mrf.mxu1 }
 0x68e   :  { %v2438_v30 = vadd.f32 %v2437_v18, %v7569_v27 }
 0x68f   :  { %v2439_v32 = vpop.f32.mrf.mxu1 }
 0x690   :  { %v2440_v34 = vadd.f32 %v2439_v32, %v7572_v28  ;;  %v2564_v35 = vmul.f32 0.2, %v2438_v30  ;;  %vm2532_vm0 = vcmp.ge.f32.partialorder %v2438_v30, 0.0 }
 0x691   :  { %v2443_v11 = vpop.f32.mrf.mxu1 }
 0x692   :  { %v2444_v36 = vadd.f32 %v2443_v11, %v7569_v27  ;;  %vm2533_vm1 = vcmp.ge.f32.partialorder %v2440_v34, 0.0  ;;  %v2565_v13 = vmul.f32 0.2, %v2440_v34  ;;  %v2596_v17 = vsel %vm2532_vm0, %v2438_v30, %v2564_v35 }
 0x693   :  { %v2445_v37 = vpop.f32.mrf.mxu1 }
 0x694   :  { %v2446_v40 = vadd.f32 %v2445_v37, %v7572_v28  ;;  %v2597_v41 = vsel %vm2533_vm1, %v2440_v34, %v2565_v13  ;;  %v2566_v42 = vmul.f32 0.2, %v2444_v36  ;;  %vm2534_vm2 = vcmp.ge.f32.partialorder %v2444_v36, 0.0 }
 0x695   :  { %v2449_v44 = vpop.f32.mrf.mxu1  ;;  %2769 = vmatprep.mubr.f32.mxu0 %v2597_v41 }
 0x696   :  { %v2450_v21 = vadd.f32 %v2449_v44, %v7569_v27  ;;  %2770 = vmatmul.mubr.f32.vlgmr.msra.gmra.mxu0 %v2596_v17  ;;  %vm2535_vm3 = vcmp.ge.f32.partialorder %v2446_v40, 0.0  ;;  %v2567_v45 = vmul.f32 0.2, %v2446_v40  ;;  %v2598_v52 = vsel %vm2534_vm2, %v2444_v36, %v2566_v42 }
 0x697   :  { %v2451_v31 = vpop.f32.mrf.mxu1 }
 0x698   :  { %v2452_v48 = vadd.f32 %v2451_v31, %v7572_v28  ;;  %v2599_v49 = vsel %vm2535_vm3, %v2446_v40, %v2567_v45  ;;  %v2568_v50 = vmul.f32 0.2, %v2450_v21  ;;  %vm2536_vm4 = vcmp.ge.f32.partialorder %v2450_v21, 0.0 }
 0x699   :  { %v2455_v51 = vpop.f32.mrf.mxu1  ;;  %2775 = vmatprep.mubr.f32.mxu0 %v2599_v49 }
 0x69a   :  { %v2456_v53 = vadd.f32 %v2455_v51, %v7569_v27  ;;  %2776 = vmatmul.mubr.f32.gmra.mxu0 %v2598_v52  ;;  %vm2537_vm5 = vcmp.ge.f32.partialorder %v2452_v48, 0.0  ;;  %v2569_v55 = vmul.f32 0.2, %v2452_v48  ;;  %v2600_v5 = vsel %vm2536_vm4, %v2450_v21, %v2568_v50 }
 0x69b   :  { %v2457_v57 = vpop.f32.mrf.mxu1 }
 0x69c   :  { %v2458_v62 = vadd.f32 %v2457_v57, %v7572_v28  ;;  %v2601_v63 = vsel %vm2537_vm5, %v2452_v48, %v2569_v55  ;;  %v2570_v60 = vmul.f32 0.2, %v2456_v53  ;;  %vm2538_vm6 = vcmp.ge.f32.partialorder %v2456_v53, 0.0 }
 0x69d   :  { %v2461_v1 = vpop.f32.mrf.mxu1  ;;  %2781 = vmatprep.mubr.f32.mxu0 %v2601_v63 }
 0x69e   :  { %v2462_v6 = vadd.f32 %v2461_v1, %v7569_v27  ;;  %2782 = vmatmul.mubr.f32.gmra.mxu0 %v2600_v5  ;;  %vm2539_vm7 = vcmp.ge.f32.partialorder %v2458_v62, 0.0  ;;  %v2571_v8 = vmul.f32 0.2, %v2458_v62  ;;  %v2602_v14 = vsel %vm2538_vm6, %v2456_v53, %v2570_v60 }
 0x69f   :  { %v2463_v9 = vpop.f32.mrf.mxu1 }
 0x6a0   :  { %v2464_v58 = vadd.f32 %v2463_v9, %v7572_v28  ;;  %v2603_v10 = vsel %vm2539_vm7, %v2458_v62, %v2571_v8  ;;  %v2572_v59 = vmul.f32 0.2, %v2462_v6  ;;  %vm2540_vm8 = vcmp.ge.f32.partialorder %v2462_v6, 0.0 }
 0x6a1   :  { %v2467_v3 = vpop.f32.mrf.mxu1  ;;  %2787 = vmatprep.mubr.f32.mxu0 %v2603_v10 }
 0x6a2   :  { %v2468_v16 = vadd.f32 %v2467_v3, %v7569_v27  ;;  %2788 = vmatmul.mubr.f32.gmra.mxu0 %v2602_v14  ;;  %vm2541_vm9 = vcmp.ge.f32.partialorder %v2464_v58, 0.0  ;;  %v2573_v20 = vmul.f32 0.2, %v2464_v58  ;;  %v2604_v32 = vsel %vm2540_vm8, %v2462_v6, %v2572_v59 }
 0x6a3   :  { %v2469_v22 = vpop.f32.mrf.mxu1 }
 0x6a4   :  { %v2470_v25 = vadd.f32 %v2469_v22, %v7572_v28  ;;  %v2605_v26 = vsel %vm2541_vm9, %v2464_v58, %v2573_v20  ;;  %v2574_v18 = vmul.f32 0.2, %v2468_v16  ;;  %vm2542_vm10 = vcmp.ge.f32.partialorder %v2468_v16, 0.0 }
 0x6a5   :  { %v2473_v30 = vpop.f32.mrf.mxu1  ;;  %2793 = vmatprep.mubr.f32.mxu0 %v2605_v26 }
 0x6a6   :  { %v2474_v34 = vadd.f32 %v2473_v30, %v7569_v27  ;;  %2794 = vmatmul.mubr.f32.gmra.mxu0 %v2604_v32  ;;  %vm2543_vm11 = vcmp.ge.f32.partialorder %v2470_v25, 0.0  ;;  %v2575_v35 = vmul.f32 0.2, %v2470_v25  ;;  %v2606_v41 = vsel %vm2542_vm10, %v2468_v16, %v2574_v18 }
 0x6a7   :  { %v2475_v11 = vpop.f32.mrf.mxu1 }
 0x6a8   :  { %v2476_v36 = vadd.f32 %v2475_v11, %v7572_v28  ;;  %v2607_v13 = vsel %vm2543_vm11, %v2470_v25, %v2575_v35  ;;  %v2576_v37 = vmul.f32 0.2, %v2474_v34  ;;  %vm2544_vm12 = vcmp.ge.f32.partialorder %v2474_v34, 0.0 }
 0x6a9   :  { %v2479_v40 = vpop.f32.mrf.mxu1  ;;  %2799 = vmatprep.mubr.f32.mxu0 %v2607_v13 }
 0x6aa   :  { %v2480_v17 = vadd.f32 %v2479_v40, %v7569_v27  ;;  %2800 = vmatmul.mubr.f32.gmra.mxu0 %v2606_v41  ;;  %vm2545_vm13 = vcmp.ge.f32.partialorder %v2476_v36, 0.0  ;;  %v2577_v42 = vmul.f32 0.2, %v2476_v36  ;;  %v2608_v49 = vsel %vm2544_vm12, %v2474_v34, %v2576_v37 }
 0x6ab   :  { %v2481_v44 = vpop.f32.mrf.mxu1 }
 0x6ac   :  { %v2482_v21 = vadd.f32 %v2481_v44, %v7572_v28  ;;  %v2609_v45 = vsel %vm2545_vm13, %v2476_v36, %v2577_v42  ;;  %v2578_v31 = vmul.f32 0.2, %v2480_v17  ;;  %vm2546_vm14 = vcmp.ge.f32.partialorder %v2480_v17, 0.0 }
 0x6ad   :  { %v2485_v48 = vpop.f32.mrf.mxu1  ;;  %2805 = vmatprep.mubr.f32.mxu0 %v2609_v45 }
 0x6ae   :  { %v2486_v50 = vadd.f32 %v2485_v48, %v7569_v27  ;;  %2806 = vmatmul.mubr.f32.gmra.mxu0 %v2608_v49  ;;  %vm2547_vm15 = vcmp.ge.f32.partialorder %v2482_v21, 0.0  ;;  %v2579_v51 = vmul.f32 0.2, %v2482_v21  ;;  %v2610_v63 = vsel %vm2546_vm14, %v2480_v17, %v2578_v31 }
 0x6af   :  { %v2487_v52 = vpop.f32.mrf.mxu1 }
 0x6b0   :  { %v2488_v53 = vadd.f32 %v2487_v52, %v7572_v28  ;;  %v2611_v55 = vsel %vm2547_vm15, %v2482_v21, %v2579_v51  ;;  %v2580_v57 = vmul.f32 0.2, %v2486_v50  ;;  %vm2548_vm0 = vcmp.ge.f32.partialorder %v2486_v50, 0.0 }
 0x6b1   :  { %v2491_v62 = vpop.f32.mrf.mxu1  ;;  %2811 = vmatprep.mubr.f32.mxu0 %v2611_v55 }
 0x6b2   :  { %v2492_v60 = vadd.f32 %v2491_v62, %v7569_v27  ;;  %2812 = vmatmul.mubr.f32.gmra.mxu0 %v2610_v63  ;;  %vm2549_vm1 = vcmp.ge.f32.partialorder %v2488_v53, 0.0  ;;  %v2581_v1 = vmul.f32 0.2, %v2488_v53  ;;  %v2612_v10 = vsel %vm2548_vm0, %v2486_v50, %v2580_v57 }
 0x6b3   :  { %v2493_v5 = vpop.f32.mrf.mxu1 }
 0x6b4   :  { %v2494_v6 = vadd.f32 %v2493_v5, %v7572_v28  ;;  %v2613_v8 = vsel %vm2549_vm1, %v2488_v53, %v2581_v1  ;;  %v2582_v9 = vmul.f32 0.2, %v2492_v60  ;;  %vm2550_vm2 = vcmp.ge.f32.partialorder %v2492_v60, 0.0 }
 0x6b5   :  { %v2497_v58 = vpop.f32.mrf.mxu1  ;;  %2817 = vmatprep.mubr.f32.mxu0 %v2613_v8 }
 0x6b6   :  { %v2498_v59 = vadd.f32 %v2497_v58, %v7569_v27  ;;  %2818 = vmatmul.mubr.f32.gmra.mxu0 %v2612_v10  ;;  %vm2551_vm3 = vcmp.ge.f32.partialorder %v2494_v6, 0.0  ;;  %v2583_v3 = vmul.f32 0.2, %v2494_v6  ;;  %v2614_v26 = vsel %vm2550_vm2, %v2492_v60, %v2582_v9 }
 0x6b7   :  { %v2499_v14 = vpop.f32.mrf.mxu1 }
 0x6b8   :  { %v2500_v16 = vadd.f32 %v2499_v14, %v7572_v28  ;;  %v2615_v20 = vsel %vm2551_vm3, %v2494_v6, %v2583_v3  ;;  %v2584_v22 = vmul.f32 0.2, %v2498_v59  ;;  %vm2552_vm4 = vcmp.ge.f32.partialorder %v2498_v59, 0.0 }
 0x6b9   :  { %v2503_v25 = vpop.f32.mrf.mxu1  ;;  %2823 = vmatprep.mubr.f32.mxu0 %v2615_v20 }
 0x6ba   :  { %v2504_v18 = vadd.f32 %v2503_v25, %v7569_v27  ;;  %2824 = vmatmul.mubr.f32.gmra.mxu0 %v2614_v26  ;;  %vm2553_vm5 = vcmp.ge.f32.partialorder %v2500_v16, 0.0  ;;  %v2585_v30 = vmul.f32 0.2, %v2500_v16  ;;  %v2616_v13 = vsel %vm2552_vm4, %v2498_v59, %v2584_v22  ;;  %v3001_v26 = vld [vmem:[#allocation5 + $0x1038] sm:$0xff] }
 0x6bb   :  { %v2505_v32 = vpop.f32.mrf.mxu1  ;;  %3095 = vmatprep.subr.mxu1 %v3001_v26  ;;  %v3354_v26 = vld [vmem:[#allocation5 + $0x12d0] sm:$0xff] }
 0x6bc   :  { %v2506_v34 = vadd.f32 %v2505_v32, %v7572_v28  ;;  %v2617_v35 = vsel %vm2553_vm5, %v2500_v16, %v2585_v30  ;;  %v2586_v11 = vmul.f32 0.2, %v2504_v18  ;;  %vm2554_vm6 = vcmp.ge.f32.partialorder %v2504_v18, 0.0  ;;  %v2998_v30 = vld [vmem:[#allocation5 + $0x1020] sm:$0xff]  ;;  %v2996_v32 = vld [vmem:[#allocation5 + $0x1010] sm:$0xff] }
 0x6bd   :  { %v2509_v36 = vpop.f32.mrf.mxu1  ;;  %2829 = vmatprep.mubr.f32.mxu0 %v2617_v35  ;;  %v2994_v35 = vld [vmem:[#allocation5 + $0x1000] sm:$0xff] }
 0x6be   :  { %v2510_v37 = vadd.f32 %v2509_v36, %v7569_v27  ;;  %2830 = vmatmul.mubr.f32.gmra.mxu0 %v2616_v13  ;;  %vm2555_vm7 = vcmp.ge.f32.partialorder %v2506_v34, 0.0  ;;  %v2587_v40 = vmul.f32 0.2, %v2506_v34  ;;  %v2618_v45 = vsel %vm2554_vm6, %v2504_v18, %v2586_v11  ;;  %v2999_v18 = vld [vmem:[#allocation5 + $0x1028] sm:$0xff]  ;;  %v3327_v11 = vld [vmem:[#allocation5 + $0x11f8] sm:$0xff]  ;;  %v3326_v36 = vld [vmem:[#allocation5 + $0x11f0] sm:$0xff] }
 0x6bf   :  { %v2511_v41 = vpop.f32.mrf.mxu1  ;;  %v3325_v13 = vld [vmem:[#allocation5 + $0x11e8] sm:$0xff]  ;;  %3373 = vmatprep.subr.mxu0 %v3327_v11  ;;  %v3346_v11 = vld [vmem:[#allocation5 + $0x1290] sm:$0xff] }
 0x6c0   :  { %v2512_v17 = vadd.f32 %v2511_v41, %v7572_v28  ;;  %v2619_v42 = vsel %vm2555_vm7, %v2506_v34, %v2587_v40  ;;  %v2588_v44 = vmul.f32 0.2, %v2510_v37  ;;  %vm2556_vm8 = vcmp.ge.f32.partialorder %v2510_v37, 0.0  ;;  %v2995_v34 = vld [vmem:[#allocation5 + $0x1008] sm:$0xff]  ;;  %3374 = vmatpush1.msra.mxu0 %v3326_v36  ;;  %v3323_v40 = vld [vmem:[#allocation5 + $0x11d8] sm:$0xff]  ;;  %v3322_v41 = vld [vmem:[#allocation5 + $0x11d0] sm:$0xff] }
 0x6c1   :  { %v2515_v21 = vpop.f32.mrf.mxu1  ;;  %2835 = vmatprep.mubr.f32.mxu0 %v2619_v42  ;;  %3375 = vmatprep.subr.mxu0 %v3325_v13  ;;  %v3320_v42 = vld [vmem:[#allocation5 + $0x11c0] sm:$0xff]  ;;  %v3345_v36 = vld [vmem:[#allocation5 + $0x1288] sm:$0xff] }
 0x6c2   :  { %v2516_v31 = vadd.f32 %v2515_v21, %v7569_v27  ;;  %2836 = vmatmul.mubr.f32.gmra.mxu0 %v2618_v45  ;;  %vm2557_vm9 = vcmp.ge.f32.partialorder %v2512_v17, 0.0  ;;  %v2589_v48 = vmul.f32 0.2, %v2512_v17  ;;  %v2620_v55 = vsel %vm2556_vm8, %v2510_v37, %v2588_v44  ;;  %v3324_v37 = vld [vmem:[#allocation5 + $0x11e0] sm:$0xff]  ;;  %v3319_v44 = vld [vmem:[#allocation5 + $0x11b8] sm:$0xff]  ;;  %v3318_v21 = vld [vmem:[#allocation5 + $0x11b0] sm:$0xff] }
 0x6c3   :  { %v2517_v49 = vpop.f32.mrf.mxu1  ;;  %3376 = vmatpush1.msra.mxu0 %v3324_v37  ;;  %v3317_v45 = vld [vmem:[#allocation5 + $0x11a8] sm:$0xff]  ;;  %v3344_v13 = vld [vmem:[#allocation5 + $0x1280] sm:$0xff]  ;;  %v3343_v37 = vld [vmem:[#allocation5 + $0x1278] sm:$0xff] }
 0x6c4   :  { %v2518_v50 = vadd.f32 %v2517_v49, %v7572_v28  ;;  %v2621_v51 = vsel %vm2557_vm9, %v2512_v17, %v2589_v48  ;;  %v2590_v52 = vmul.f32 0.2, %v2516_v31  ;;  %vm2558_vm10 = vcmp.ge.f32.partialorder %v2516_v31, 0.0  ;;  %v3321_v17 = vld [vmem:[#allocation5 + $0x11c8] sm:$0xff]  ;;  %3377 = vmatprep.subr.mxu0 %v3323_v40  ;;  %v3315_v48 = vld [vmem:[#allocation5 + $0x1198] sm:$0xff]  ;;  %v3314_v49 = vld [vmem:[#allocation5 + $0x1190] sm:$0xff] }
 0x6c5   :  { %v2521_v53 = vpop.f32.mrf.mxu1  ;;  %2841 = vmatprep.mubr.f32.mxu0 %v2621_v51  ;;  %3378 = vmatpush1.msra.mxu0 %v3322_v41  ;;  %v3312_v51 = vld [vmem:[#allocation5 + $0x1180] sm:$0xff]  ;;  %v3342_v40 = vld [vmem:[#allocation5 + $0x1270] sm:$0xff]  ;;  %v3341_v41 = vld [vmem:[#allocation5 + $0x1268] sm:$0xff] }
 0x6c6   :  { %v2522_v57 = vadd.f32 %v2521_v53, %v7569_v27  ;;  %2842 = vmatmul.mubr.f32.gmra.mxu0 %v2620_v55  ;;  %vm2559_vm11 = vcmp.ge.f32.partialorder %v2518_v50, 0.0  ;;  %v2591_v62 = vmul.f32 0.2, %v2518_v50  ;;  %v2622_v8 = vsel %vm2558_vm10, %v2516_v31, %v2590_v52  ;;  %3379 = vmatprep.subr.mxu0 %v3321_v17  ;;  %v3316_v31 = vld [vmem:[#allocation5 + $0x11a0] sm:$0xff]  ;;  %v3311_v52 = vld [vmem:[#allocation5 + $0x1178] sm:$0xff]  ;;  %v3310_v53 = vld [vmem:[#allocation5 + $0x1170] sm:$0xff] }
 0x6c7   :  { %v2523_v63 = vpop.f32.mrf.mxu1  ;;  %3380 = vmatpush1.msra.mxu0 %v3320_v42  ;;  %v3309_v55 = vld [vmem:[#allocation5 + $0x1168] sm:$0xff]  ;;  %v3340_v17 = vld [vmem:[#allocation5 + $0x1260] sm:$0xff]  ;;  %v3339_v42 = vld [vmem:[#allocation5 + $0x1258] sm:$0xff] }
 0x6c8   :  { %v2524_v60 = vadd.f32 %v2523_v63, %v7572_v28  ;;  %v2623_v1 = vsel %vm2559_vm11, %v2518_v50, %v2591_v62  ;;  %v2592_v5 = vmul.f32 0.2, %v2522_v57  ;;  %vm2560_vm12 = vcmp.ge.f32.partialorder %v2522_v57, 0.0  ;;  %3381 = vmatprep.subr.mxu0 %v3319_v44  ;;  %v3313_v50 = vld [vmem:[#allocation5 + $0x1188] sm:$0xff]  ;;  %v3307_v62 = vld [vmem:[#allocation5 + $0x1158] sm:$0xff]  ;;  %v3306_v63 = vld [vmem:[#allocation5 + $0x1150] sm:$0xff] }
 0x6c9   :  { %v2527_v6 = vpop.f32.mrf.mxu1  ;;  %2847 = vmatprep.mubr.f32.mxu0 %v2623_v1  ;;  %3382 = vmatpush1.msra.mxu0 %v3318_v21  ;;  %v3304_v1 = vld [vmem:[#allocation5 + $0x1140] sm:$0xff]  ;;  %v3338_v44 = vld [vmem:[#allocation5 + $0x1250] sm:$0xff]  ;;  %v3337_v21 = vld [vmem:[#allocation5 + $0x1248] sm:$0xff] }
 0x6ca   :  { %v2528_v9 = vadd.f32 %v2527_v6, %v7569_v27  ;;  %2848 = vmatmul.mubr.f32.gmra.mxu0 %v2622_v8  ;;  %vm2561_vm13 = vcmp.ge.f32.partialorder %v2524_v60, 0.0  ;;  %v2593_v58 = vmul.f32 0.2, %v2524_v60  ;;  %v2624_v16 = vsel %vm2560_vm12, %v2522_v57, %v2592_v5  ;;  %v3000_v27 = vld [vmem:[#allocation5 + $0x1030] sm:$0xff]  ;;  %3383 = vmatprep.subr.mxu0 %v3317_v45  ;;  %v3308_v57 = vld [vmem:[#allocation5 + $0x1160] sm:$0xff]  ;;  %v3303_v5 = vld [vmem:[#allocation5 + $0x1138] sm:$0xff] }
 0x6cb   :  { %v2529_v10 = vpop.f32.mrf.mxu1  ;;  %3096 = vmatpush2.msra.mxu1 %v3000_v27  ;;  %3384 = vmatpush1.msra.mxu0 %v3316_v31  ;;  %v3302_v6 = vld [vmem:[#allocation5 + $0x1130] sm:$0xff]  ;;  %v3301_v8 = vld [vmem:[#allocation5 + $0x1128] sm:$0xff]  ;;  %v3336_v31 = vld [vmem:[#allocation5 + $0x1240] sm:$0xff] }
 0x6cc   :  { %v2530_v59 = vadd.f32 %v2529_v10, %v7572_v28  ;;  %v2625_v3 = vsel %vm2561_vm13, %v2524_v60, %v2593_v58  ;;  %v2594_v14 = vmul.f32 0.2, %v2528_v9  ;;  %vm2562_vm14 = vcmp.ge.f32.partialorder %v2528_v9, 0.0  ;;  %3097 = vmatprep.subr.mxu1 %v2999_v18  ;;  %v2997_v28 = vld [vmem:[#allocation5 + $0x1018] sm:$0xff]  ;;  %3385 = vmatprep.subr.mxu0 %v3315_v48  ;;  %v3305_v60 = vld [vmem:[#allocation5 + $0x1148] sm:$0xff]  ;;  %v3298_v10 = vld [vmem:[#allocation5 + $0x1110] sm:$0xff] }
 0x6cd   :  { %2853 = vmatprep.mubr.f32.mxu0 %v2625_v3  ;;  %3098 = vmatpush2.msra.mxu1 %v2998_v30  ;;  %v3299_v58 = vld [vmem:[#allocation5 + $0x1118] sm:$0xff]  ;;  %v3296_v3 = vld [vmem:[#allocation5 + $0x1100] sm:$0xff]  ;;  %v3353_v27 = vld [vmem:[#allocation5 + $0x12c8] sm:$0xff] }
 0x6ce   :  { %2854 = vmatmul.mubr.f32.gmra.mxu0 %v2624_v16  ;;  %vm2563_vm15 = vcmp.ge.f32.partialorder %v2530_v59, 0.0  ;;  %v2595_v20 = vmul.f32 0.2, %v2530_v59  ;;  %v2626_v25 = vsel %vm2562_vm14, %v2528_v9, %v2594_v14  ;;  %3099 = vmatprep.subr.mxu1 %v2997_v28  ;;  %v3300_v9 = vld [vmem:[#allocation5 + $0x1120] sm:$0xff]  ;;  %v3359_v14 = vld [vmem:[#allocation5 + $0x12f8] sm:$0xff]  ;;  %v3358_v16 = vld [vmem:[#allocation5 + $0x12f0] sm:$0xff] }
 0x6cf   :  { %3100 = vmatpush2.msra.mxu1 %v2996_v32  ;;  %3386 = vmatpush1.msra.mxu0 %v3314_v49  ;;  %v3352_v18 = vld [vmem:[#allocation5 + $0x12c0] sm:$0xff]  ;;  %v3351_v30 = vld [vmem:[#allocation5 + $0x12b8] sm:$0xff]  ;;  %v3350_v28 = vld [vmem:[#allocation5 + $0x12b0] sm:$0xff] }
 0x6d0   :  { %v2627_v22 = vsel %vm2563_vm15, %v2530_v59, %v2595_v20  ;;  %3101 = vmatprep.subr.mxu1 %v2995_v34  ;;  %3387 = vmatprep.subr.mxu0 %v3313_v50  ;;  %v3297_v59 = vld [vmem:[#allocation5 + $0x1108] sm:$0xff]  ;;  %v3348_v34 = vld [vmem:[#allocation5 + $0x12a0] sm:$0xff]  ;;  %v2693_v45 = vld [vmem:[#allocation7 + $0x16] ss:$8 sm:$0x3] }
 0x6d1   :  { %2859 = vmatprep.mubr.f32.mxu0 %v2627_v22  ;;  %3102 = vmatpush2.msra.mxu1 %v2994_v35  ;;  %v3357_v20 = vld [vmem:[#allocation5 + $0x12e8] sm:$0xff]  ;;  %v3356_v22 = vld [vmem:[#allocation5 + $0x12e0] sm:$0xff]  ;;  %v3347_v35 = vld [vmem:[#allocation5 + $0x1298] sm:$0xff]  ;;  %v7607_v48 = vrot.slane %v2693_v45, %v7218_v61  ;;  %v7610_v49 = vrot.slane %v2693_v45, %v7220_v2 }
 0x6d2   :  { %2860 = vmatmul.mubr.f32.gmra.mxu0 %v2626_v25  ;;  %v3355_v25 = vld [vmem:[#allocation5 + $0x12d8] sm:$0xff]  ;;  %v3349_v32 = vld [vmem:[#allocation5 + $0x12a8] sm:$0xff] }
 0x6d3   :  { %3388 = vmatpush1.msra.mxu0 %v3312_v51 }
 0x6d4   :  { %3389 = vmatprep.subr.mxu0 %v3311_v52 }
 0x6d5   :  { %3390 = vmatpush1.msra.mxu0 %v3310_v53 }
 0x6d6   :  { %3391 = vmatprep.subr.mxu0 %v3309_v55 }
 0x6d7   :  { %3392 = vmatpush1.msra.mxu0 %v3308_v57 }
 0x6d8   :  { %3393 = vmatprep.subr.mxu0 %v3307_v62 }
 0x6d9   :  { %3394 = vmatpush1.msra.mxu0 %v3306_v63 }
 0x6da   :  { %3395 = vmatprep.subr.mxu0 %v3305_v60 }
 0x6db   :  { %3396 = vmatpush1.msra.mxu0 %v3304_v1 }
 0x6dc   :  { %3397 = vmatprep.subr.mxu0 %v3303_v5 }
 0x6dd   :  { %3398 = vmatpush1.msra.mxu0 %v3302_v6 }
 0x6de   :  { %3399 = vmatprep.subr.mxu0 %v3301_v8 }
 0x6df   :  { %3400 = vmatpush1.msra.mxu0 %v3300_v9 }
 0x6e0   :  { %3401 = vmatprep.subr.mxu0 %v3299_v58 }
 0x6e1   :  { %3402 = vmatpush1.msra.mxu0 %v3298_v10 }
 0x6e2   :  { %3403 = vmatprep.subr.mxu0 %v3297_v59 }
 0x6e3   :  { %3404 = vmatpush1.msra.mxu0 %v3296_v3 }
 0x6e4   :  { %3405 = vmatprep.subr.mxu0 %v3359_v14 }
 0x6e5   :  { %3406 = vmatpush2.msra.mxu0 %v3358_v16 }
 0x6e6   :  { %3407 = vmatprep.subr.mxu0 %v3357_v20 }
 0x6e7   :  { %3408 = vmatpush2.msra.mxu0 %v3356_v22 }
 0x6e8   :  { %3409 = vmatprep.subr.mxu0 %v3355_v25 }
 0x6e9   :  { %3410 = vmatpush2.msra.mxu0 %v3354_v26 }
 0x6ea   :  { %3411 = vmatprep.subr.mxu0 %v3353_v27 }
 0x6eb   :  { %3412 = vmatpush2.msra.mxu0 %v3352_v18 }
 0x6ec   :  { %3413 = vmatprep.subr.mxu0 %v3351_v30 }
 0x6ed   :  { %3414 = vmatpush2.msra.mxu0 %v3350_v28 }
 0x6ee   :  { %3415 = vmatprep.subr.mxu0 %v3349_v32 }
 0x6ef   :  { %3416 = vmatpush2.msra.mxu0 %v3348_v34 }
 0x6f0   :  { %3417 = vmatprep.subr.mxu0 %v3347_v35 }
 0x6f1   :  { %3418 = vmatpush2.msra.mxu0 %v3346_v11 }
 0x6f2   :  { %3419 = vmatprep.subr.mxu0 %v3345_v36 }
 0x6f3   :  { %3420 = vmatpush2.msra.mxu0 %v3344_v13 }
 0x6f4   :  { %3421 = vmatprep.subr.mxu0 %v3343_v37 }
 0x6f5   :  { %3422 = vmatpush2.msra.mxu0 %v3342_v40 }
 0x6f6   :  { %3423 = vmatprep.subr.mxu0 %v3341_v41 }
 0x6f7   :  { %3424 = vmatpush2.msra.mxu0 %v3340_v17 }
 0x6f8   :  { %3425 = vmatprep.subr.mxu0 %v3339_v42 }
 0x6f9   :  { %3426 = vmatpush2.msra.mxu0 %v3338_v44 }
 0x6fa   :  { %3427 = vmatprep.subr.mxu0 %v3337_v21 }
 0x6fb   :  { %3428 = vmatpush2.msra.mxu0 %v3336_v31 }
 0x756   :  { %v2771_v50 = vpop.f32.mrf.mxu0 }
 0x757   :  { %v2772_v51 = vadd.f32 %v2771_v50, %v7607_v48 }
 0x758   :  { %v2773_v52 = vpop.f32.mrf.mxu0 }
 0x759   :  { %v2774_v53 = vadd.f32 %v2773_v52, %v7610_v49  ;;  %v2898_v55 = vmul.f32 0.2, %v2772_v51  ;;  %vm2866_vm0 = vcmp.ge.f32.partialorder %v2772_v51, 0.0 }
 0x75a   :  { %v2777_v57 = vpop.f32.mrf.mxu0 }
 0x75b   :  { %v2778_v62 = vadd.f32 %v2777_v57, %v7607_v48  ;;  %vm2867_vm1 = vcmp.ge.f32.partialorder %v2774_v53, 0.0  ;;  %v2899_v63 = vmul.f32 0.2, %v2774_v53  ;;  %v2930_v6 = vsel %vm2866_vm0, %v2772_v51, %v2898_v55 }
 0x75c   :  { %v2779_v60 = vpop.f32.mrf.mxu0 }
 0x75d   :  { %v2780_v1 = vadd.f32 %v2779_v60, %v7610_v49  ;;  %v2931_v5 = vsel %vm2867_vm1, %v2774_v53, %v2899_v63  ;;  %v2900_v8 = vmul.f32 0.2, %v2778_v62  ;;  %vm2868_vm2 = vcmp.ge.f32.partialorder %v2778_v62, 0.0 }
 0x75e   :  { %v2783_v9 = vpop.f32.mrf.mxu0  ;;  %3103 = vmatprep.mubr.f32.mxu1 %v2931_v5 }
 0x75f   :  { %v2784_v58 = vadd.f32 %v2783_v9, %v7607_v48  ;;  %3104 = vmatmul.mubr.f32.vlgmr.msra.gmra.mxu1 %v2930_v6  ;;  %vm2869_vm3 = vcmp.ge.f32.partialorder %v2780_v1, 0.0  ;;  %v2901_v10 = vmul.f32 0.2, %v2780_v1  ;;  %v2932_v22 = vsel %vm2868_vm2, %v2778_v62, %v2900_v8 }
 0x760   :  { %v2785_v59 = vpop.f32.mrf.mxu0 }
 0x761   :  { %v2786_v3 = vadd.f32 %v2785_v59, %v7610_v49  ;;  %v2933_v14 = vsel %vm2869_vm3, %v2780_v1, %v2901_v10  ;;  %v2902_v16 = vmul.f32 0.2, %v2784_v58  ;;  %vm2870_vm4 = vcmp.ge.f32.partialorder %v2784_v58, 0.0 }
 0x762   :  { %v2789_v20 = vpop.f32.mrf.mxu0  ;;  %3109 = vmatprep.mubr.f32.mxu1 %v2933_v14 }
 0x763   :  { %v2790_v25 = vadd.f32 %v2789_v20, %v7607_v48  ;;  %3110 = vmatmul.mubr.f32.gmra.mxu1 %v2932_v22  ;;  %vm2871_vm5 = vcmp.ge.f32.partialorder %v2786_v3, 0.0  ;;  %v2903_v26 = vmul.f32 0.2, %v2786_v3  ;;  %v2934_v34 = vsel %vm2870_vm4, %v2784_v58, %v2902_v16 }
 0x764   :  { %v2791_v27 = vpop.f32.mrf.mxu0 }
 0x765   :  { %v2792_v18 = vadd.f32 %v2791_v27, %v7610_v49  ;;  %v2935_v30 = vsel %vm2871_vm5, %v2786_v3, %v2903_v26  ;;  %v2904_v28 = vmul.f32 0.2, %v2790_v25  ;;  %vm2872_vm6 = vcmp.ge.f32.partialorder %v2790_v25, 0.0 }
 0x766   :  { %v2795_v32 = vpop.f32.mrf.mxu0  ;;  %3115 = vmatprep.mubr.f32.mxu1 %v2935_v30 }
 0x767   :  { %v2796_v35 = vadd.f32 %v2795_v32, %v7607_v48  ;;  %3116 = vmatmul.mubr.f32.gmra.mxu1 %v2934_v34  ;;  %vm2873_vm7 = vcmp.ge.f32.partialorder %v2792_v18, 0.0  ;;  %v2905_v11 = vmul.f32 0.2, %v2792_v18  ;;  %v2936_v17 = vsel %vm2872_vm6, %v2790_v25, %v2904_v28 }
 0x768   :  { %v2797_v36 = vpop.f32.mrf.mxu0 }
 0x769   :  { %v2798_v13 = vadd.f32 %v2797_v36, %v7610_v49  ;;  %v2937_v37 = vsel %vm2873_vm7, %v2792_v18, %v2905_v11  ;;  %v2906_v40 = vmul.f32 0.2, %v2796_v35  ;;  %vm2874_vm8 = vcmp.ge.f32.partialorder %v2796_v35, 0.0 }
 0x76a   :  { %v2801_v41 = vpop.f32.mrf.mxu0  ;;  %3121 = vmatprep.mubr.f32.mxu1 %v2937_v37 }
 0x76b   :  { %v2802_v42 = vadd.f32 %v2801_v41, %v7607_v48  ;;  %3122 = vmatmul.mubr.f32.gmra.mxu1 %v2936_v17  ;;  %vm2875_vm9 = vcmp.ge.f32.partialorder %v2798_v13, 0.0  ;;  %v2907_v44 = vmul.f32 0.2, %v2798_v13  ;;  %v2938_v52 = vsel %vm2874_vm8, %v2796_v35, %v2906_v40 }
 0x76c   :  { %v2803_v21 = vpop.f32.mrf.mxu0 }
 0x76d   :  { %v2804_v45 = vadd.f32 %v2803_v21, %v7610_v49  ;;  %v2939_v31 = vsel %vm2875_vm9, %v2798_v13, %v2907_v44  ;;  %v2908_v50 = vmul.f32 0.2, %v2802_v42  ;;  %vm2876_vm10 = vcmp.ge.f32.partialorder %v2802_v42, 0.0 }
 0x76e   :  { %v2807_v51 = vpop.f32.mrf.mxu0  ;;  %3127 = vmatprep.mubr.f32.mxu1 %v2939_v31 }
 0x76f   :  { %v2808_v53 = vadd.f32 %v2807_v51, %v7607_v48  ;;  %3128 = vmatmul.mubr.f32.gmra.mxu1 %v2938_v52  ;;  %vm2877_vm11 = vcmp.ge.f32.partialorder %v2804_v45, 0.0  ;;  %v2909_v55 = vmul.f32 0.2, %v2804_v45  ;;  %v2940_v5 = vsel %vm2876_vm10, %v2802_v42, %v2908_v50 }
 0x770   :  { %v2809_v57 = vpop.f32.mrf.mxu0 }
 0x771   :  { %v2810_v62 = vadd.f32 %v2809_v57, %v7610_v49  ;;  %v2941_v63 = vsel %vm2877_vm11, %v2804_v45, %v2909_v55  ;;  %v2910_v60 = vmul.f32 0.2, %v2808_v53  ;;  %vm2878_vm12 = vcmp.ge.f32.partialorder %v2808_v53, 0.0 }
 0x772   :  { %v2813_v1 = vpop.f32.mrf.mxu0  ;;  %3133 = vmatprep.mubr.f32.mxu1 %v2941_v63 }
 0x773   :  { %v2814_v6 = vadd.f32 %v2813_v1, %v7607_v48  ;;  %3134 = vmatmul.mubr.f32.gmra.mxu1 %v2940_v5  ;;  %vm2879_vm13 = vcmp.ge.f32.partialorder %v2810_v62, 0.0  ;;  %v2911_v8 = vmul.f32 0.2, %v2810_v62  ;;  %v2942_v14 = vsel %vm2878_vm12, %v2808_v53, %v2910_v60 }
 0x774   :  { %v2815_v9 = vpop.f32.mrf.mxu0 }
 0x775   :  { %v2816_v58 = vadd.f32 %v2815_v9, %v7610_v49  ;;  %v2943_v10 = vsel %vm2879_vm13, %v2810_v62, %v2911_v8  ;;  %v2912_v59 = vmul.f32 0.2, %v2814_v6  ;;  %vm2880_vm14 = vcmp.ge.f32.partialorder %v2814_v6, 0.0 }
 0x776   :  { %v2819_v3 = vpop.f32.mrf.mxu0  ;;  %3139 = vmatprep.mubr.f32.mxu1 %v2943_v10 }
 0x777   :  { %v2820_v16 = vadd.f32 %v2819_v3, %v7607_v48  ;;  %3140 = vmatmul.mubr.f32.gmra.mxu1 %v2942_v14  ;;  %vm2881_vm15 = vcmp.ge.f32.partialorder %v2816_v58, 0.0  ;;  %v2913_v20 = vmul.f32 0.2, %v2816_v58  ;;  %v2944_v30 = vsel %vm2880_vm14, %v2814_v6, %v2912_v59 }
 0x778   :  { %v2821_v22 = vpop.f32.mrf.mxu0 }
 0x779   :  { %v2822_v25 = vadd.f32 %v2821_v22, %v7610_v49  ;;  %v2945_v26 = vsel %vm2881_vm15, %v2816_v58, %v2913_v20  ;;  %v2914_v27 = vmul.f32 0.2, %v2820_v16  ;;  %vm2882_vm0 = vcmp.ge.f32.partialorder %v2820_v16, 0.0 }
 0x77a   :  { %v2825_v18 = vpop.f32.mrf.mxu0  ;;  %3145 = vmatprep.mubr.f32.mxu1 %v2945_v26 }
 0x77b   :  { %v2826_v28 = vadd.f32 %v2825_v18, %v7607_v48  ;;  %3146 = vmatmul.mubr.f32.gmra.mxu1 %v2944_v30  ;;  %vm2883_vm1 = vcmp.ge.f32.partialorder %v2822_v25, 0.0  ;;  %v2915_v32 = vmul.f32 0.2, %v2822_v25  ;;  %v2946_v37 = vsel %vm2882_vm0, %v2820_v16, %v2914_v27 }
 0x77c   :  { %v2827_v34 = vpop.f32.mrf.mxu0 }
 0x77d   :  { %v2828_v35 = vadd.f32 %v2827_v34, %v7610_v49  ;;  %v2947_v11 = vsel %vm2883_vm1, %v2822_v25, %v2915_v32  ;;  %v2916_v36 = vmul.f32 0.2, %v2826_v28  ;;  %vm2884_vm2 = vcmp.ge.f32.partialorder %v2826_v28, 0.0 }
 0x77e   :  { %v2831_v13 = vpop.f32.mrf.mxu0  ;;  %3151 = vmatprep.mubr.f32.mxu1 %v2947_v11 }
 0x77f   :  { %v2832_v40 = vadd.f32 %v2831_v13, %v7607_v48  ;;  %3152 = vmatmul.mubr.f32.gmra.mxu1 %v2946_v37  ;;  %vm2885_vm3 = vcmp.ge.f32.partialorder %v2828_v35, 0.0  ;;  %v2917_v41 = vmul.f32 0.2, %v2828_v35  ;;  %v2948_v31 = vsel %vm2884_vm2, %v2826_v28, %v2916_v36 }
 0x780   :  { %v2833_v17 = vpop.f32.mrf.mxu0 }
 0x781   :  { %v2834_v42 = vadd.f32 %v2833_v17, %v7610_v49  ;;  %v2949_v44 = vsel %vm2885_vm3, %v2828_v35, %v2917_v41  ;;  %v2918_v21 = vmul.f32 0.2, %v2832_v40  ;;  %vm2886_vm4 = vcmp.ge.f32.partialorder %v2832_v40, 0.0 }
 0x782   :  { %v2837_v45 = vpop.f32.mrf.mxu0  ;;  %3157 = vmatprep.mubr.f32.mxu1 %v2949_v44 }
 0x783   :  { %v2838_v50 = vadd.f32 %v2837_v45, %v7607_v48  ;;  %3158 = vmatmul.mubr.f32.gmra.mxu1 %v2948_v31  ;;  %vm2887_vm5 = vcmp.ge.f32.partialorder %v2834_v42, 0.0  ;;  %v2919_v51 = vmul.f32 0.2, %v2834_v42  ;;  %v2950_v63 = vsel %vm2886_vm4, %v2832_v40, %v2918_v21  ;;  %v3335_v31 = vld [vmem:[#allocation5 + $0x1238] sm:$0xff] }
 0x784   :  { %v2839_v52 = vpop.f32.mrf.mxu0  ;;  %3429 = vmatprep.subr.mxu0 %v3335_v31 }
 0x785   :  { %v2840_v53 = vadd.f32 %v2839_v52, %v7610_v49  ;;  %v2951_v55 = vsel %vm2887_vm5, %v2834_v42, %v2919_v51  ;;  %v2920_v57 = vmul.f32 0.2, %v2838_v50  ;;  %vm2888_vm6 = vcmp.ge.f32.partialorder %v2838_v50, 0.0  ;;  %v3332_v51 = vld [vmem:[#allocation5 + $0x1220] sm:$0xff]  ;;  %v3330_v52 = vld [vmem:[#allocation5 + $0x1210] sm:$0xff] }
 0x786   :  { %v2843_v62 = vpop.f32.mrf.mxu0  ;;  %3163 = vmatprep.mubr.f32.mxu1 %v2951_v55  ;;  %v3328_v55 = vld [vmem:[#allocation5 + $0x1200] sm:$0xff] }
 0x787   :  { %v2844_v60 = vadd.f32 %v2843_v62, %v7607_v48  ;;  %3164 = vmatmul.mubr.f32.gmra.mxu1 %v2950_v63  ;;  %vm2889_vm7 = vcmp.ge.f32.partialorder %v2840_v53, 0.0  ;;  %v2921_v1 = vmul.f32 0.2, %v2840_v53  ;;  %v2952_v10 = vsel %vm2888_vm6, %v2838_v50, %v2920_v57  ;;  %v3333_v50 = vld [vmem:[#allocation5 + $0x1228] sm:$0xff]  ;;  %v2009_v57 = vld [vmem:[#allocation5 + $0x1ef0] sm:$0xff]  ;;  %v2008_v63 = vld [vmem:[#allocation5 + $0x1ee0] sm:$0xff] }
 0x788   :  { %v2845_v5 = vpop.f32.mrf.mxu0  ;;  %v1993_v62 = vld [vmem:[#allocation5 + $0x1df0] sm:$0xff]  ;;  %6622 = vmatprep.subr.mxu1 %v2009_v57 }
 0x789   :  { %v2846_v6 = vadd.f32 %v2845_v5, %v7610_v49  ;;  %v2953_v8 = vsel %vm2889_vm7, %v2840_v53, %v2921_v1  ;;  %v2922_v9 = vmul.f32 0.2, %v2844_v60  ;;  %vm2890_vm8 = vcmp.ge.f32.partialorder %v2844_v60, 0.0  ;;  %v3329_v53 = vld [vmem:[#allocation5 + $0x1208] sm:$0xff]  ;;  %6623 = vmatpush3.msra.mxu1 %v1993_v62  ;;  %v2007_v1 = vld [vmem:[#allocation5 + $0x1ed0] sm:$0xff] }
 0x78a   :  { %v2849_v58 = vpop.f32.mrf.mxu0  ;;  %3169 = vmatprep.mubr.f32.mxu1 %v2953_v8  ;;  %6624 = vmatprep.subr.mxu1 %v2008_v63  ;;  %v1991_v5 = vld [vmem:[#allocation5 + $0x1dd0] sm:$0xff]  ;;  %v1990_v8 = vld [vmem:[#allocation5 + $0x1dc0] sm:$0xff] }
 0x78b   :  { %v2850_v59 = vadd.f32 %v2849_v58, %v7607_v48  ;;  %3170 = vmatmul.mubr.f32.gmra.mxu1 %v2952_v10  ;;  %vm2891_vm9 = vcmp.ge.f32.partialorder %v2846_v6, 0.0  ;;  %v2923_v3 = vmul.f32 0.2, %v2846_v6  ;;  %v2954_v26 = vsel %vm2890_vm8, %v2844_v60, %v2922_v9  ;;  %v1992_v60 = vld [vmem:[#allocation5 + $0x1de0] sm:$0xff]  ;;  %v2005_v9 = vld [vmem:[#allocation5 + $0x1eb0] sm:$0xff] }
 0x78c   :  { %v2851_v14 = vpop.f32.mrf.mxu0  ;;  %6625 = vmatpush3.msra.mxu1 %v1992_v60  ;;  %v1989_v58 = vld [vmem:[#allocation5 + $0x1db0] sm:$0xff]  ;;  %v2004_v10 = vld [vmem:[#allocation5 + $0x1ea0] sm:$0xff] }
 0x78d   :  { %v2852_v16 = vadd.f32 %v2851_v14, %v7610_v49  ;;  %v2955_v20 = vsel %vm2891_vm9, %v2846_v6, %v2923_v3  ;;  %v2924_v22 = vmul.f32 0.2, %v2850_v59  ;;  %vm2892_vm10 = vcmp.ge.f32.partialorder %v2850_v59, 0.0  ;;  %v2006_v6 = vld [vmem:[#allocation5 + $0x1ec0] sm:$0xff]  ;;  %6626 = vmatprep.subr.mxu1 %v2007_v1  ;;  %v2003_v3 = vld [vmem:[#allocation5 + $0x1e90] sm:$0xff] }
 0x78e   :  { %v2855_v25 = vpop.f32.mrf.mxu0  ;;  %3175 = vmatprep.mubr.f32.mxu1 %v2955_v20  ;;  %6627 = vmatpush3.msra.mxu1 %v1991_v5  ;;  %v1987_v14 = vld [vmem:[#allocation5 + $0x1d90] sm:$0xff]  ;;  %v1986_v20 = vld [vmem:[#allocation5 + $0x1d80] sm:$0xff] }
 0x78f   :  { %v2856_v27 = vadd.f32 %v2855_v25, %v7607_v48  ;;  %3176 = vmatmul.mubr.f32.gmra.mxu1 %v2954_v26  ;;  %vm2893_vm11 = vcmp.ge.f32.partialorder %v2852_v16, 0.0  ;;  %v2925_v18 = vmul.f32 0.2, %v2852_v16  ;;  %v2956_v11 = vsel %vm2892_vm10, %v2850_v59, %v2924_v22  ;;  %6628 = vmatprep.subr.mxu1 %v2006_v6  ;;  %v1988_v59 = vld [vmem:[#allocation5 + $0x1da0] sm:$0xff]  ;;  %v2001_v22 = vld [vmem:[#allocation5 + $0x1e70] sm:$0xff] }
 0x790   :  { %v2857_v30 = vpop.f32.mrf.mxu0  ;;  %6629 = vmatpush3.msra.mxu1 %v1990_v8  ;;  %v1985_v25 = vld [vmem:[#allocation5 + $0x1d70] sm:$0xff]  ;;  %v2000_v26 = vld [vmem:[#allocation5 + $0x1e60] sm:$0xff] }
 0x791   :  { %v2858_v28 = vadd.f32 %v2857_v30, %v7610_v49  ;;  %v2957_v32 = vsel %vm2893_vm11, %v2852_v16, %v2925_v18  ;;  %v2926_v34 = vmul.f32 0.2, %v2856_v27  ;;  %vm2894_vm12 = vcmp.ge.f32.partialorder %v2856_v27, 0.0  ;;  %6630 = vmatprep.subr.mxu1 %v2005_v9  ;;  %v2002_v16 = vld [vmem:[#allocation5 + $0x1e80] sm:$0xff]  ;;  %v1999_v18 = vld [vmem:[#allocation5 + $0x1e50] sm:$0xff] }
 0x792   :  { %v2861_v35 = vpop.f32.mrf.mxu0  ;;  %3181 = vmatprep.mubr.f32.mxu1 %v2957_v32  ;;  %6631 = vmatpush3.msra.mxu1 %v1989_v58  ;;  %v1983_v30 = vld [vmem:[#allocation5 + $0x1d50] sm:$0xff]  ;;  %v1982_v32 = vld [vmem:[#allocation5 + $0x1d40] sm:$0xff] }
 0x793   :  { %v2862_v36 = vadd.f32 %v2861_v35, %v7607_v48  ;;  %3182 = vmatmul.mubr.f32.gmra.mxu1 %v2956_v11  ;;  %vm2895_vm13 = vcmp.ge.f32.partialorder %v2858_v28, 0.0  ;;  %v2927_v13 = vmul.f32 0.2, %v2858_v28  ;;  %v2958_v42 = vsel %vm2894_vm12, %v2856_v27, %v2926_v34  ;;  %v3334_v48 = vld [vmem:[#allocation5 + $0x1230] sm:$0xff]  ;;  %6632 = vmatprep.subr.mxu1 %v2004_v10  ;;  %v1984_v27 = vld [vmem:[#allocation5 + $0x1d60] sm:$0xff] }
 0x794   :  { %v2863_v37 = vpop.f32.mrf.mxu0  ;;  %3430 = vmatpush2.msra.mxu0 %v3334_v48  ;;  %6633 = vmatpush3.msra.mxu1 %v1988_v59  ;;  %v1997_v34 = vld [vmem:[#allocation5 + $0x1e30] sm:$0xff]  ;;  %v1996_v11 = vld [vmem:[#allocation5 + $0x1e20] sm:$0xff] }
 0x795   :  { %v2864_v40 = vadd.f32 %v2863_v37, %v7610_v49  ;;  %v2959_v41 = vsel %vm2895_vm13, %v2858_v28, %v2927_v13  ;;  %v2928_v17 = vmul.f32 0.2, %v2862_v36  ;;  %vm2896_vm14 = vcmp.ge.f32.partialorder %v2862_v36, 0.0  ;;  %3431 = vmatprep.subr.mxu0 %v3333_v50  ;;  %v3331_v49 = vld [vmem:[#allocation5 + $0x1218] sm:$0xff]  ;;  %6634 = vmatprep.subr.mxu1 %v2003_v3  ;;  %v1998_v28 = vld [vmem:[#allocation5 + $0x1e40] sm:$0xff]  ;;  %v1981_v35 = vld [vmem:[#allocation5 + $0x1d30] sm:$0xff] }
 0x796   :  { %3187 = vmatprep.mubr.f32.mxu1 %v2959_v41  ;;  %3432 = vmatpush2.msra.mxu0 %v3332_v51  ;;  %v3027_v13 = vld [vmem:[#allocation7 + $0x17] ss:$8 sm:$0x3] }
 0x797   :  { %3188 = vmatmul.mubr.f32.gmra.mxu1 %v2958_v42  ;;  %vm2897_vm15 = vcmp.ge.f32.partialorder %v2864_v40, 0.0  ;;  %v2929_v44 = vmul.f32 0.2, %v2864_v40  ;;  %v2960_v45 = vsel %vm2896_vm14, %v2862_v36, %v2928_v17  ;;  %3433 = vmatprep.subr.mxu0 %v3331_v49  ;;  %v1980_v36 = vld [vmem:[#allocation5 + $0x1d20] sm:$0xff]  ;;  %v7645_v37 = vrot.slane %v3027_v13, %v7218_v61 }
 0x798   :  { %3434 = vmatpush2.msra.mxu0 %v3330_v52  ;;  %6635 = vmatpush3.msra.mxu1 %v1987_v14 }
 0x799   :  { %v2961_v21 = vsel %vm2897_vm15, %v2864_v40, %v2929_v44  ;;  %3435 = vmatprep.subr.mxu0 %v3329_v53  ;;  %6636 = vmatprep.subr.mxu1 %v2002_v16  ;;  %v7648_v40 = vrot.slane %v3027_v13, %v7220_v2 }
 0x79a   :  { %3193 = vmatprep.mubr.f32.mxu1 %v2961_v21  ;;  %3436 = vmatpush2.msra.mxu0 %v3328_v55 }
 0x79b   :  { %3194 = vmatmul.mubr.f32.gmra.mxu1 %v2960_v45 }
 0x79c   :  { %6637 = vmatpush3.msra.mxu1 %v1986_v20 }
 0x79d   :  { %6638 = vmatprep.subr.mxu1 %v2001_v22 }
 0x79e   :  { %6639 = vmatpush3.msra.mxu1 %v1985_v25 }
 0x79f   :  { %6640 = vmatprep.subr.mxu1 %v2000_v26 }
 0x7a0   :  { %6641 = vmatpush3.msra.mxu1 %v1984_v27 }
 0x7a1   :  { %6642 = vmatprep.subr.mxu1 %v1999_v18 }
 0x7a2   :  { %6643 = vmatpush3.msra.mxu1 %v1983_v30 }
 0x7a3   :  { %6644 = vmatprep.subr.mxu1 %v1998_v28 }
 0x7a4   :  { %6645 = vmatpush3.msra.mxu1 %v1982_v32 }
 0x7a5   :  { %6646 = vmatprep.subr.mxu1 %v1997_v34 }
 0x7a6   :  { %6647 = vmatpush3.msra.mxu1 %v1981_v35 }
 0x7a7   :  { %6648 = vmatprep.subr.mxu1 %v1996_v11 }
 0x7a8   :  { %6649 = vmatpush3.msra.mxu1 %v1980_v36 }
 0x81f   :  { %v3105_v41 = vpop.f32.mrf.mxu1 }
 0x820   :  { %v3106_v17 = vadd.f32 %v3105_v41, %v7645_v37 }
 0x821   :  { %v3107_v42 = vpop.f32.mrf.mxu1 }
 0x822   :  { %v3108_v44 = vadd.f32 %v3107_v42, %v7648_v40  ;;  %v3232_v21 = vmul.f32 0.2, %v3106_v17  ;;  %vm3200_vm0 = vcmp.ge.f32.partialorder %v3106_v17, 0.0 }
 0x823   :  { %v3111_v45 = vpop.f32.mrf.mxu1 }
 0x824   :  { %v3112_v31 = vadd.f32 %v3111_v45, %v7645_v37  ;;  %vm3201_vm1 = vcmp.ge.f32.partialorder %v3108_v44, 0.0  ;;  %v3233_v48 = vmul.f32 0.2, %v3108_v44  ;;  %v3264_v52 = vsel %vm3200_vm0, %v3106_v17, %v3232_v21 }
 0x825   :  { %v3113_v50 = vpop.f32.mrf.mxu1 }
 0x826   :  { %v3114_v51 = vadd.f32 %v3113_v50, %v7648_v40  ;;  %v3265_v49 = vsel %vm3201_vm1, %v3108_v44, %v3233_v48  ;;  %v3234_v53 = vmul.f32 0.2, %v3112_v31  ;;  %vm3202_vm2 = vcmp.ge.f32.partialorder %v3112_v31, 0.0 }
 0x827   :  { %v3117_v55 = vpop.f32.mrf.mxu1  ;;  %3437 = vmatprep.mubr.f32.mxu0 %v3265_v49 }
 0x828   :  { %v3118_v57 = vadd.f32 %v3117_v55, %v7645_v37  ;;  %3438 = vmatmul.mubr.f32.vlgmr.msra.gmra.mxu0 %v3264_v52  ;;  %vm3203_vm3 = vcmp.ge.f32.partialorder %v3114_v51, 0.0  ;;  %v3235_v62 = vmul.f32 0.2, %v3114_v51  ;;  %v3266_v8 = vsel %vm3202_vm2, %v3112_v31, %v3234_v53 }
 0x829   :  { %v3119_v63 = vpop.f32.mrf.mxu1 }
 0x82a   :  { %v3120_v60 = vadd.f32 %v3119_v63, %v7648_v40  ;;  %v3267_v1 = vsel %vm3203_vm3, %v3114_v51, %v3235_v62  ;;  %v3236_v5 = vmul.f32 0.2, %v3118_v57  ;;  %vm3204_vm4 = vcmp.ge.f32.partialorder %v3118_v57, 0.0 }
 0x82b   :  { %v3123_v6 = vpop.f32.mrf.mxu1  ;;  %3443 = vmatprep.mubr.f32.mxu0 %v3267_v1 }
 0x82c   :  { %v3124_v9 = vadd.f32 %v3123_v6, %v7645_v37  ;;  %3444 = vmatmul.mubr.f32.gmra.mxu0 %v3266_v8  ;;  %vm3205_vm5 = vcmp.ge.f32.partialorder %v3120_v60, 0.0  ;;  %v3237_v58 = vmul.f32 0.2, %v3120_v60  ;;  %v3268_v20 = vsel %vm3204_vm4, %v3118_v57, %v3236_v5 }
 0x82d   :  { %v3125_v10 = vpop.f32.mrf.mxu1 }
 0x82e   :  { %v3126_v59 = vadd.f32 %v3125_v10, %v7648_v40  ;;  %v3269_v3 = vsel %vm3205_vm5, %v3120_v60, %v3237_v58  ;;  %v3238_v14 = vmul.f32 0.2, %v3124_v9  ;;  %vm3206_vm6 = vcmp.ge.f32.partialorder %v3124_v9, 0.0 }
 0x82f   :  { %v3129_v16 = vpop.f32.mrf.mxu1  ;;  %3449 = vmatprep.mubr.f32.mxu0 %v3269_v3 }
 0x830   :  { %v3130_v22 = vadd.f32 %v3129_v16, %v7645_v37  ;;  %3450 = vmatmul.mubr.f32.gmra.mxu0 %v3268_v20  ;;  %vm3207_vm7 = vcmp.ge.f32.partialorder %v3126_v59, 0.0  ;;  %v3239_v25 = vmul.f32 0.2, %v3126_v59  ;;  %v3270_v32 = vsel %vm3206_vm6, %v3124_v9, %v3238_v14 }
 0x831   :  { %v3131_v26 = vpop.f32.mrf.mxu1 }
 0x832   :  { %v3132_v27 = vadd.f32 %v3131_v26, %v7648_v40  ;;  %v3271_v18 = vsel %vm3207_vm7, %v3126_v59, %v3239_v25  ;;  %v3240_v30 = vmul.f32 0.2, %v3130_v22  ;;  %vm3208_vm8 = vcmp.ge.f32.partialorder %v3130_v22, 0.0 }
 0x833   :  { %v3135_v28 = vpop.f32.mrf.mxu1  ;;  %3455 = vmatprep.mubr.f32.mxu0 %v3271_v18 }
 0x834   :  { %v3136_v34 = vadd.f32 %v3135_v28, %v7645_v37  ;;  %3456 = vmatmul.mubr.f32.gmra.mxu0 %v3270_v32  ;;  %vm3209_vm9 = vcmp.ge.f32.partialorder %v3132_v27, 0.0  ;;  %v3241_v35 = vmul.f32 0.2, %v3132_v27  ;;  %v3272_v42 = vsel %vm3208_vm8, %v3130_v22, %v3240_v30 }
 0x835   :  { %v3137_v11 = vpop.f32.mrf.mxu1 }
 0x836   :  { %v3138_v36 = vadd.f32 %v3137_v11, %v7648_v40  ;;  %v3273_v13 = vsel %vm3209_vm9, %v3132_v27, %v3241_v35  ;;  %v3242_v41 = vmul.f32 0.2, %v3136_v34  ;;  %vm3210_vm10 = vcmp.ge.f32.partialorder %v3136_v34, 0.0 }
 0x837   :  { %v3141_v17 = vpop.f32.mrf.mxu1  ;;  %3461 = vmatprep.mubr.f32.mxu0 %v3273_v13 }
 0x838   :  { %v3142_v44 = vadd.f32 %v3141_v17, %v7645_v37  ;;  %3462 = vmatmul.mubr.f32.gmra.mxu0 %v3272_v42  ;;  %vm3211_vm11 = vcmp.ge.f32.partialorder %v3138_v36, 0.0  ;;  %v3243_v21 = vmul.f32 0.2, %v3138_v36  ;;  %v3274_v49 = vsel %vm3210_vm10, %v3136_v34, %v3242_v41 }
 0x839   :  { %v3143_v45 = vpop.f32.mrf.mxu1 }
 0x83a   :  { %v3144_v31 = vadd.f32 %v3143_v45, %v7648_v40  ;;  %v3275_v48 = vsel %vm3211_vm11, %v3138_v36, %v3243_v21  ;;  %v3244_v50 = vmul.f32 0.2, %v3142_v44  ;;  %vm3212_vm12 = vcmp.ge.f32.partialorder %v3142_v44, 0.0 }
 0x83b   :  { %v3147_v51 = vpop.f32.mrf.mxu1  ;;  %3467 = vmatprep.mubr.f32.mxu0 %v3275_v48 }
 0x83c   :  { %v3148_v52 = vadd.f32 %v3147_v51, %v7645_v37  ;;  %3468 = vmatmul.mubr.f32.gmra.mxu0 %v3274_v49  ;;  %vm3213_vm13 = vcmp.ge.f32.partialorder %v3144_v31, 0.0  ;;  %v3245_v53 = vmul.f32 0.2, %v3144_v31  ;;  %v3276_v1 = vsel %vm3212_vm12, %v3142_v44, %v3244_v50 }
 0x83d   :  { %v3149_v55 = vpop.f32.mrf.mxu1 }
 0x83e   :  { %v3150_v57 = vadd.f32 %v3149_v55, %v7648_v40  ;;  %v3277_v62 = vsel %vm3213_vm13, %v3144_v31, %v3245_v53  ;;  %v3246_v63 = vmul.f32 0.2, %v3148_v52  ;;  %vm3214_vm14 = vcmp.ge.f32.partialorder %v3148_v52, 0.0 }
 0x83f   :  { %v3153_v60 = vpop.f32.mrf.mxu1  ;;  %3473 = vmatprep.mubr.f32.mxu0 %v3277_v62 }
 0x840   :  { %v3154_v5 = vadd.f32 %v3153_v60, %v7645_v37  ;;  %3474 = vmatmul.mubr.f32.gmra.mxu0 %v3276_v1  ;;  %vm3215_vm15 = vcmp.ge.f32.partialorder %v3150_v57, 0.0  ;;  %v3247_v6 = vmul.f32 0.2, %v3150_v57  ;;  %v3278_v3 = vsel %vm3214_vm14, %v3148_v52, %v3246_v63 }
 0x841   :  { %v3155_v8 = vpop.f32.mrf.mxu1 }
 0x842   :  { %v3156_v9 = vadd.f32 %v3155_v8, %v7648_v40  ;;  %v3279_v58 = vsel %vm3215_vm15, %v3150_v57, %v3247_v6  ;;  %v3248_v10 = vmul.f32 0.2, %v3154_v5  ;;  %vm3216_vm0 = vcmp.ge.f32.partialorder %v3154_v5, 0.0 }
 0x843   :  { %v3159_v59 = vpop.f32.mrf.mxu1  ;;  %3479 = vmatprep.mubr.f32.mxu0 %v3279_v58 }
 0x844   :  { %v3160_v14 = vadd.f32 %v3159_v59, %v7645_v37  ;;  %3480 = vmatmul.mubr.f32.gmra.mxu0 %v3278_v3  ;;  %vm3217_vm1 = vcmp.ge.f32.partialorder %v3156_v9, 0.0  ;;  %v3249_v16 = vmul.f32 0.2, %v3156_v9  ;;  %v3280_v18 = vsel %vm3216_vm0, %v3154_v5, %v3248_v10 }
 0x845   :  { %v3161_v20 = vpop.f32.mrf.mxu1 }
 0x846   :  { %v3162_v22 = vadd.f32 %v3161_v20, %v7648_v40  ;;  %v3281_v25 = vsel %vm3217_vm1, %v3156_v9, %v3249_v16  ;;  %v3250_v26 = vmul.f32 0.2, %v3160_v14  ;;  %vm3218_vm2 = vcmp.ge.f32.partialorder %v3160_v14, 0.0 }
 0x847   :  { %v3165_v27 = vpop.f32.mrf.mxu1  ;;  %3485 = vmatprep.mubr.f32.mxu0 %v3281_v25 }
 0x848   :  { %v3166_v30 = vadd.f32 %v3165_v27, %v7645_v37  ;;  %3486 = vmatmul.mubr.f32.gmra.mxu0 %v3280_v18  ;;  %vm3219_vm3 = vcmp.ge.f32.partialorder %v3162_v22, 0.0  ;;  %v3251_v28 = vmul.f32 0.2, %v3162_v22  ;;  %v3282_v13 = vsel %vm3218_vm2, %v3160_v14, %v3250_v26 }
 0x849   :  { %v3167_v32 = vpop.f32.mrf.mxu1 }
 0x84a   :  { %v3168_v34 = vadd.f32 %v3167_v32, %v7648_v40  ;;  %v3283_v35 = vsel %vm3219_vm3, %v3162_v22, %v3251_v28  ;;  %v3252_v11 = vmul.f32 0.2, %v3166_v30  ;;  %vm3220_vm4 = vcmp.ge.f32.partialorder %v3166_v30, 0.0 }
 0x84b   :  { %v3171_v36 = vpop.f32.mrf.mxu1  ;;  %3491 = vmatprep.mubr.f32.mxu0 %v3283_v35 }
 0x84c   :  { %v3172_v41 = vadd.f32 %v3171_v36, %v7645_v37  ;;  %3492 = vmatmul.mubr.f32.gmra.mxu0 %v3282_v13  ;;  %vm3221_vm5 = vcmp.ge.f32.partialorder %v3168_v34, 0.0  ;;  %v3253_v17 = vmul.f32 0.2, %v3168_v34  ;;  %v3284_v48 = vsel %vm3220_vm4, %v3166_v30, %v3252_v11  ;;  %v1979_v13 = vld [vmem:[#allocation5 + $0x1d10] sm:$0xff] }
 0x84d   :  { %v3173_v42 = vpop.f32.mrf.mxu1 }
 0x84e   :  { %v3174_v44 = vadd.f32 %v3173_v42, %v7648_v40  ;;  %v3285_v21 = vsel %vm3221_vm5, %v3168_v34, %v3253_v17  ;;  %v3254_v45 = vmul.f32 0.2, %v3172_v41  ;;  %vm3222_vm6 = vcmp.ge.f32.partialorder %v3172_v41, 0.0  ;;  %v3843_v17 = vld [vmem:[#allocation5 + $0x2f8] sm:$0xff]  ;;  %v3842_v42 = vld [vmem:[#allocation5 + $0x2f0] sm:$0xff] }
 0x84f   :  { %v3177_v31 = vpop.f32.mrf.mxu1  ;;  %3497 = vmatprep.mubr.f32.mxu0 %v3285_v21  ;;  %3903 = vmatprep.subr.mxu0 %v3843_v17  ;;  %v3840_v21 = vld [vmem:[#allocation5 + $0x2e0] sm:$0xff] }
 0x850   :  { %v3178_v50 = vadd.f32 %v3177_v31, %v7645_v37  ;;  %3498 = vmatmul.mubr.f32.gmra.mxu0 %v3284_v48  ;;  %vm3223_vm7 = vcmp.ge.f32.partialorder %v3174_v44, 0.0  ;;  %v3255_v51 = vmul.f32 0.2, %v3174_v44  ;;  %v3286_v62 = vsel %vm3222_vm6, %v3172_v41, %v3254_v45  ;;  %v1994_v41 = vld [vmem:[#allocation5 + $0x1e00] sm:$0xff]  ;;  %v3839_v45 = vld [vmem:[#allocation5 + $0x2d8] sm:$0xff]  ;;  %v3838_v31 = vld [vmem:[#allocation5 + $0x2d0] sm:$0xff] }
 0x851   :  { %v3179_v49 = vpop.f32.mrf.mxu1  ;;  %3904 = vmatpush1.msra.mxu0 %v3842_v42  ;;  %v3837_v48 = vld [vmem:[#allocation5 + $0x2c8] sm:$0xff] }
 0x852   :  { %v3180_v52 = vadd.f32 %v3179_v49, %v7648_v40  ;;  %v3287_v53 = vsel %vm3223_vm7, %v3174_v44, %v3255_v51  ;;  %v3256_v55 = vmul.f32 0.2, %v3178_v50  ;;  %vm3224_vm8 = vcmp.ge.f32.partialorder %v3178_v50, 0.0  ;;  %v3841_v44 = vld [vmem:[#allocation5 + $0x2e8] sm:$0xff]  ;;  %v3835_v51 = vld [vmem:[#allocation5 + $0x2b8] sm:$0xff]  ;;  %v3834_v49 = vld [vmem:[#allocation5 + $0x2b0] sm:$0xff] }
 0x853   :  { %v3183_v57 = vpop.f32.mrf.mxu1  ;;  %3503 = vmatprep.mubr.f32.mxu0 %v3287_v53  ;;  %3905 = vmatprep.subr.mxu0 %v3841_v44  ;;  %v3832_v53 = vld [vmem:[#allocation5 + $0x2a0] sm:$0xff] }
 0x854   :  { %v3184_v63 = vadd.f32 %v3183_v57, %v7645_v37  ;;  %3504 = vmatmul.mubr.f32.gmra.mxu0 %v3286_v62  ;;  %vm3225_vm9 = vcmp.ge.f32.partialorder %v3180_v52, 0.0  ;;  %v3257_v60 = vmul.f32 0.2, %v3180_v52  ;;  %v3288_v58 = vsel %vm3224_vm8, %v3178_v50, %v3256_v55  ;;  %v3836_v50 = vld [vmem:[#allocation5 + $0x2c0] sm:$0xff]  ;;  %v3831_v55 = vld [vmem:[#allocation5 + $0x298] sm:$0xff]  ;;  %v3830_v57 = vld [vmem:[#allocation5 + $0x290] sm:$0xff] }
 0x855   :  { %v3185_v1 = vpop.f32.mrf.mxu1  ;;  %3906 = vmatpush1.msra.mxu0 %v3840_v21  ;;  %v3829_v62 = vld [vmem:[#allocation5 + $0x288] sm:$0xff] }
 0x856   :  { %v3186_v5 = vadd.f32 %v3185_v1, %v7648_v40  ;;  %v3289_v6 = vsel %vm3225_vm9, %v3180_v52, %v3257_v60  ;;  %v3258_v8 = vmul.f32 0.2, %v3184_v63  ;;  %vm3226_vm10 = vcmp.ge.f32.partialorder %v3184_v63, 0.0  ;;  %3907 = vmatprep.subr.mxu0 %v3839_v45  ;;  %v3833_v52 = vld [vmem:[#allocation5 + $0x2a8] sm:$0xff]  ;;  %v3827_v60 = vld [vmem:[#allocation5 + $0x278] sm:$0xff]  ;;  %v3826_v1 = vld [vmem:[#allocation5 + $0x270] sm:$0xff] }
 0x857   :  { %v3189_v9 = vpop.f32.mrf.mxu1  ;;  %3509 = vmatprep.mubr.f32.mxu0 %v3289_v6  ;;  %3908 = vmatpush1.msra.mxu0 %v3838_v31  ;;  %v3824_v6 = vld [vmem:[#allocation5 + $0x260] sm:$0xff] }
 0x858   :  { %v3190_v10 = vadd.f32 %v3189_v9, %v7645_v37  ;;  %3510 = vmatmul.mubr.f32.gmra.mxu0 %v3288_v58  ;;  %vm3227_vm11 = vcmp.ge.f32.partialorder %v3186_v5, 0.0  ;;  %v3259_v59 = vmul.f32 0.2, %v3186_v5  ;;  %v3290_v25 = vsel %vm3226_vm10, %v3184_v63, %v3258_v8  ;;  %3909 = vmatprep.subr.mxu0 %v3837_v48  ;;  %v3828_v63 = vld [vmem:[#allocation5 + $0x280] sm:$0xff]  ;;  %v3823_v8 = vld [vmem:[#allocation5 + $0x258] sm:$0xff]  ;;  %v3822_v9 = vld [vmem:[#allocation5 + $0x250] sm:$0xff] }
 0x859   :  { %v3191_v3 = vpop.f32.mrf.mxu1  ;;  %3910 = vmatpush1.msra.mxu0 %v3836_v50  ;;  %v3821_v58 = vld [vmem:[#allocation5 + $0x248] sm:$0xff] }
 0x85a   :  { %v3192_v14 = vadd.f32 %v3191_v3, %v7648_v40  ;;  %v3291_v16 = vsel %vm3227_vm11, %v3186_v5, %v3259_v59  ;;  %v3260_v20 = vmul.f32 0.2, %v3190_v10  ;;  %vm3228_vm12 = vcmp.ge.f32.partialorder %v3190_v10, 0.0  ;;  %3911 = vmatprep.subr.mxu0 %v3835_v51  ;;  %v3825_v5 = vld [vmem:[#allocation5 + $0x268] sm:$0xff]  ;;  %v3819_v59 = vld [vmem:[#allocation5 + $0x238] sm:$0xff]  ;;  %v3818_v3 = vld [vmem:[#allocation5 + $0x230] sm:$0xff] }
 0x85b   :  { %v3195_v22 = vpop.f32.mrf.mxu1  ;;  %3515 = vmatprep.mubr.f32.mxu0 %v3291_v16  ;;  %3912 = vmatpush1.msra.mxu0 %v3834_v49 }
 0x85c   :  { %v3196_v26 = vadd.f32 %v3195_v22, %v7645_v37  ;;  %3516 = vmatmul.mubr.f32.gmra.mxu0 %v3290_v25  ;;  %vm3229_vm13 = vcmp.ge.f32.partialorder %v3192_v14, 0.0  ;;  %v3261_v27 = vmul.f32 0.2, %v3192_v14  ;;  %v3292_v34 = vsel %vm3228_vm12, %v3190_v10, %v3260_v20  ;;  %v1995_v37 = vld [vmem:[#allocation5 + $0x1e10] sm:$0xff]  ;;  %3913 = vmatprep.subr.mxu0 %v3833_v52  ;;  %v3820_v10 = vld [vmem:[#allocation5 + $0x240] sm:$0xff] }
 0x85d   :  { %v3197_v18 = vpop.f32.mrf.mxu1  ;;  %6650 = vmatprep.subr.mxu1 %v1995_v37  ;;  %3914 = vmatpush1.msra.mxu0 %v3832_v53 }
 0x85e   :  { %v3198_v30 = vadd.f32 %v3197_v18, %v7648_v40  ;;  %v3293_v28 = vsel %vm3229_vm13, %v3192_v14, %v3261_v27  ;;  %v3262_v32 = vmul.f32 0.2, %v3196_v26  ;;  %vm3230_vm14 = vcmp.ge.f32.partialorder %v3196_v26, 0.0  ;;  %6651 = vmatpush3.msra.mxu1 %v1979_v13  ;;  %v1978_v40 = vld [vmem:[#allocation5 + $0x1d00] sm:$0xff]  ;;  %3915 = vmatprep.subr.mxu0 %v3831_v55 }
 0x85f   :  { %3521 = vmatprep.mubr.f32.mxu0 %v3293_v28  ;;  %6652 = vmatprep.subr.mxu1 %v1994_v41  ;;  %v3361_v14 = vld [vmem:[#allocation7 + $0x20] ss:$8 sm:$0x3] }
 0x860   :  { %3522 = vmatmul.mubr.f32.gmra.mxu0 %v3292_v34  ;;  %vm3231_vm15 = vcmp.ge.f32.partialorder %v3198_v30, 0.0  ;;  %v3263_v35 = vmul.f32 0.2, %v3198_v30  ;;  %v3294_v36 = vsel %vm3230_vm14, %v3196_v26, %v3262_v32  ;;  %6653 = vmatpush3.msra.mxu1 %v1978_v40  ;;  %v7684_v16 = vrot.slane %v3361_v14, %v7218_v61 }
 0x861   :  { %3916 = vmatpush1.msra.mxu0 %v3830_v57  ;;  %v7687_v20 = vrot.slane %v3361_v14, %v7220_v2 }
 0x862   :  { %v3295_v11 = vsel %vm3231_vm15, %v3198_v30, %v3263_v35  ;;  %3917 = vmatprep.subr.mxu0 %v3829_v62 }
 0x863   :  { %3527 = vmatprep.mubr.f32.mxu0 %v3295_v11  ;;  %3918 = vmatpush1.msra.mxu0 %v3828_v63 }
 0x864   :  { %3528 = vmatmul.mubr.f32.gmra.mxu0 %v3294_v36  ;;  %3919 = vmatprep.subr.mxu0 %v3827_v60 }
 0x865   :  { %3967 = vmatprep.mubr.f32.mxu0 %v7144_v0  ;;  %3920 = vmatpush1.msra.mxu0 %v3826_v1 }
 0x866   :  { %3921 = vmatprep.subr.mxu0 %v3825_v5 }
 0x867   :  { %3922 = vmatpush1.msra.mxu0 %v3824_v6 }
 0x868   :  { %3923 = vmatprep.subr.mxu0 %v3823_v8 }
 0x869   :  { %3924 = vmatpush1.msra.mxu0 %v3822_v9 }
 0x86a   :  { %3925 = vmatprep.subr.mxu0 %v3821_v58 }
 0x86b   :  { %3926 = vmatpush1.msra.mxu0 %v3820_v10 }
 0x86c   :  { %3927 = vmatprep.subr.mxu0 %v3819_v59 }
 0x86d   :  { %3928 = vmatpush1.msra.mxu0 %v3818_v3 }
 0x8e8   :  { %v3439_v22 = vpop.f32.mrf.mxu0 }
 0x8e9   :  { %v3440_v25 = vadd.f32 %v3439_v22, %v7684_v16 }
 0x8ea   :  { %v3441_v26 = vpop.f32.mrf.mxu0 }
 0x8eb   :  { %v3442_v27 = vadd.f32 %v3441_v26, %v7687_v20  ;;  %v3566_v18 = vmul.f32 0.2, %v3440_v25  ;;  %vm3534_vm0 = vcmp.ge.f32.partialorder %v3440_v25, 0.0 }
 0x8ec   :  { %v3445_v30 = vpop.f32.mrf.mxu0 }
 0x8ed   :  { %v3446_v28 = vadd.f32 %v3445_v30, %v7684_v16  ;;  %vm3535_vm1 = vcmp.ge.f32.partialorder %v3442_v27, 0.0  ;;  %v3567_v32 = vmul.f32 0.2, %v3442_v27  ;;  %v3598_v36 = vsel %vm3534_vm0, %v3440_v25, %v3566_v18 }
 0x8ee   :  { %v3447_v34 = vpop.f32.mrf.mxu0 }
 0x8ef   :  { %v3448_v35 = vadd.f32 %v3447_v34, %v7687_v20  ;;  %v3599_v11 = vsel %vm3535_vm1, %v3442_v27, %v3567_v32  ;;  %v3568_v37 = vmul.f32 0.2, %v3446_v28  ;;  %vm3536_vm2 = vcmp.ge.f32.partialorder %v3446_v28, 0.0 }
 0x8f0   :  { %v3451_v13 = vpop.f32.mrf.mxu0  ;;  %3694 = vmatprep.mubr.f32.mxu1 %v3599_v11 }
 0x8f1   :  { %v3452_v41 = vadd.f32 %v3451_v13, %v7684_v16  ;;  %3695 = vmatmul.mubr.f32.vlgmr.msra.gmra.mxu1 %v3598_v36  ;;  %vm3537_vm3 = vcmp.ge.f32.partialorder %v3448_v35, 0.0  ;;  %v3569_v40 = vmul.f32 0.2, %v3448_v35  ;;  %v3600_v31 = vsel %vm3536_vm2, %v3446_v28, %v3568_v37 }
 0x8f2   :  { %v3453_v17 = vpop.f32.mrf.mxu0 }
 0x8f3   :  { %v3454_v42 = vadd.f32 %v3453_v17, %v7687_v20  ;;  %v3601_v44 = vsel %vm3537_vm3, %v3448_v35, %v3569_v40  ;;  %v3570_v21 = vmul.f32 0.2, %v3452_v41  ;;  %vm3538_vm4 = vcmp.ge.f32.partialorder %v3452_v41, 0.0 }
 0x8f4   :  { %v3457_v45 = vpop.f32.mrf.mxu0  ;;  %3699 = vmatprep.mubr.f32.mxu1 %v3601_v44 }
 0x8f5   :  { %v3458_v48 = vadd.f32 %v3457_v45, %v7684_v16  ;;  %3700 = vmatmul.mubr.f32.gmra.mxu1 %v3600_v31  ;;  %vm3539_vm5 = vcmp.ge.f32.partialorder %v3454_v42, 0.0  ;;  %v3571_v50 = vmul.f32 0.2, %v3454_v42  ;;  %v3602_v57 = vsel %vm3538_vm4, %v3452_v41, %v3570_v21 }
 0x8f6   :  { %v3459_v51 = vpop.f32.mrf.mxu0 }
 0x8f7   :  { %v3460_v49 = vadd.f32 %v3459_v51, %v7687_v20  ;;  %v3603_v52 = vsel %vm3539_vm5, %v3454_v42, %v3571_v50  ;;  %v3572_v53 = vmul.f32 0.2, %v3458_v48  ;;  %vm3540_vm6 = vcmp.ge.f32.partialorder %v3458_v48, 0.0 }
 0x8f8   :  { %v3463_v55 = vpop.f32.mrf.mxu0  ;;  %3704 = vmatprep.mubr.f32.mxu1 %v3603_v52 }
 0x8f9   :  { %v3464_v62 = vadd.f32 %v3463_v55, %v7684_v16  ;;  %3705 = vmatmul.mubr.f32.gmra.mxu1 %v3602_v57  ;;  %vm3541_vm7 = vcmp.ge.f32.partialorder %v3460_v49, 0.0  ;;  %v3573_v63 = vmul.f32 0.2, %v3460_v49  ;;  %v3604_v9 = vsel %vm3540_vm6, %v3458_v48, %v3572_v53 }
 0x8fa   :  { %v3465_v60 = vpop.f32.mrf.mxu0 }
 0x8fb   :  { %v3466_v1 = vadd.f32 %v3465_v60, %v7687_v20  ;;  %v3605_v5 = vsel %vm3541_vm7, %v3460_v49, %v3573_v63  ;;  %v3574_v6 = vmul.f32 0.2, %v3464_v62  ;;  %vm3542_vm8 = vcmp.ge.f32.partialorder %v3464_v62, 0.0 }
 0x8fc   :  { %v3469_v8 = vpop.f32.mrf.mxu0  ;;  %3709 = vmatprep.mubr.f32.mxu1 %v3605_v5 }
 0x8fd   :  { %v3470_v58 = vadd.f32 %v3469_v8, %v7684_v16  ;;  %3710 = vmatmul.mubr.f32.gmra.mxu1 %v3604_v9  ;;  %vm3543_vm9 = vcmp.ge.f32.partialorder %v3466_v1, 0.0  ;;  %v3575_v10 = vmul.f32 0.2, %v3466_v1  ;;  %v3606_v26 = vsel %vm3542_vm8, %v3464_v62, %v3574_v6 }
 0x8fe   :  { %v3471_v59 = vpop.f32.mrf.mxu0 }
 0x8ff   :  { %v3472_v3 = vadd.f32 %v3471_v59, %v7687_v20  ;;  %v3607_v14 = vsel %vm3543_vm9, %v3466_v1, %v3575_v10  ;;  %v3576_v22 = vmul.f32 0.2, %v3470_v58  ;;  %vm3544_vm10 = vcmp.ge.f32.partialorder %v3470_v58, 0.0 }
 0x900   :  { %v3475_v25 = vpop.f32.mrf.mxu0  ;;  %3714 = vmatprep.mubr.f32.mxu1 %v3607_v14 }
 0x901   :  { %v3476_v27 = vadd.f32 %v3475_v25, %v7684_v16  ;;  %3715 = vmatmul.mubr.f32.gmra.mxu1 %v3606_v26  ;;  %vm3545_vm11 = vcmp.ge.f32.partialorder %v3472_v3, 0.0  ;;  %v3577_v18 = vmul.f32 0.2, %v3472_v3  ;;  %v3608_v11 = vsel %vm3544_vm10, %v3470_v58, %v3576_v22 }
 0x902   :  { %v3477_v30 = vpop.f32.mrf.mxu0 }
 0x903   :  { %v3478_v28 = vadd.f32 %v3477_v30, %v7687_v20  ;;  %v3609_v32 = vsel %vm3545_vm11, %v3472_v3, %v3577_v18  ;;  %v3578_v34 = vmul.f32 0.2, %v3476_v27  ;;  %vm3546_vm12 = vcmp.ge.f32.partialorder %v3476_v27, 0.0 }
 0x904   :  { %v3481_v35 = vpop.f32.mrf.mxu0  ;;  %3719 = vmatprep.mubr.f32.mxu1 %v3609_v32 }
 0x905   :  { %v3482_v36 = vadd.f32 %v3481_v35, %v7684_v16  ;;  %3720 = vmatmul.mubr.f32.gmra.mxu1 %v3608_v11  ;;  %vm3547_vm13 = vcmp.ge.f32.partialorder %v3478_v28, 0.0  ;;  %v3579_v37 = vmul.f32 0.2, %v3478_v28  ;;  %v3610_v44 = vsel %vm3546_vm12, %v3476_v27, %v3578_v34 }
 0x906   :  { %v3483_v13 = vpop.f32.mrf.mxu0 }
 0x907   :  { %v3484_v41 = vadd.f32 %v3483_v13, %v7687_v20  ;;  %v3611_v40 = vsel %vm3547_vm13, %v3478_v28, %v3579_v37  ;;  %v3580_v17 = vmul.f32 0.2, %v3482_v36  ;;  %vm3548_vm14 = vcmp.ge.f32.partialorder %v3482_v36, 0.0 }
 0x908   :  { %v3487_v42 = vpop.f32.mrf.mxu0  ;;  %3724 = vmatprep.mubr.f32.mxu1 %v3611_v40 }
 0x909   :  { %v3488_v21 = vadd.f32 %v3487_v42, %v7684_v16  ;;  %3725 = vmatmul.mubr.f32.gmra.mxu1 %v3610_v44  ;;  %vm3549_vm15 = vcmp.ge.f32.partialorder %v3484_v41, 0.0  ;;  %v3581_v45 = vmul.f32 0.2, %v3484_v41  ;;  %v3612_v52 = vsel %vm3548_vm14, %v3482_v36, %v3580_v17 }
 0x90a   :  { %v3489_v31 = vpop.f32.mrf.mxu0 }
 0x90b   :  { %v3490_v48 = vadd.f32 %v3489_v31, %v7687_v20  ;;  %v3613_v50 = vsel %vm3549_vm15, %v3484_v41, %v3581_v45  ;;  %v3582_v51 = vmul.f32 0.2, %v3488_v21  ;;  %vm3550_vm0 = vcmp.ge.f32.partialorder %v3488_v21, 0.0 }
 0x90c   :  { %v3493_v49 = vpop.f32.mrf.mxu0  ;;  %3729 = vmatprep.mubr.f32.mxu1 %v3613_v50 }
 0x90d   :  { %v3494_v53 = vadd.f32 %v3493_v49, %v7684_v16  ;;  %3730 = vmatmul.mubr.f32.gmra.mxu1 %v3612_v52  ;;  %vm3551_vm1 = vcmp.ge.f32.partialorder %v3490_v48, 0.0  ;;  %v3583_v55 = vmul.f32 0.2, %v3490_v48  ;;  %v3614_v5 = vsel %vm3550_vm0, %v3488_v21, %v3582_v51 }
 0x90e   :  { %v3495_v57 = vpop.f32.mrf.mxu0 }
 0x90f   :  { %v3496_v62 = vadd.f32 %v3495_v57, %v7687_v20  ;;  %v3615_v63 = vsel %vm3551_vm1, %v3490_v48, %v3583_v55  ;;  %v3584_v60 = vmul.f32 0.2, %v3494_v53  ;;  %vm3552_vm2 = vcmp.ge.f32.partialorder %v3494_v53, 0.0 }
 0x910   :  { %v3499_v1 = vpop.f32.mrf.mxu0  ;;  %3734 = vmatprep.mubr.f32.mxu1 %v3615_v63 }
 0x911   :  { %v3500_v6 = vadd.f32 %v3499_v1, %v7684_v16  ;;  %3735 = vmatmul.mubr.f32.gmra.mxu1 %v3614_v5  ;;  %vm3553_vm3 = vcmp.ge.f32.partialorder %v3496_v62, 0.0  ;;  %v3585_v8 = vmul.f32 0.2, %v3496_v62  ;;  %v3616_v14 = vsel %vm3552_vm2, %v3494_v53, %v3584_v60 }
 0x912   :  { %v3501_v9 = vpop.f32.mrf.mxu0 }
 0x913   :  { %v3502_v58 = vadd.f32 %v3501_v9, %v7687_v20  ;;  %v3617_v10 = vsel %vm3553_vm3, %v3496_v62, %v3585_v8  ;;  %v3586_v59 = vmul.f32 0.2, %v3500_v6  ;;  %vm3554_vm4 = vcmp.ge.f32.partialorder %v3500_v6, 0.0 }
 0x914   :  { %v3505_v3 = vpop.f32.mrf.mxu0  ;;  %3739 = vmatprep.mubr.f32.mxu1 %v3617_v10 }
 0x915   :  { %v3506_v22 = vadd.f32 %v3505_v3, %v7684_v16  ;;  %3740 = vmatmul.mubr.f32.gmra.mxu1 %v3616_v14  ;;  %vm3555_vm5 = vcmp.ge.f32.partialorder %v3502_v58, 0.0  ;;  %v3587_v25 = vmul.f32 0.2, %v3502_v58  ;;  %v3618_v32 = vsel %vm3554_vm4, %v3500_v6, %v3586_v59  ;;  %v3817_v14 = vld [vmem:[#allocation5 + $0x228] sm:$0xff] }
 0x916   :  { %v3507_v26 = vpop.f32.mrf.mxu0  ;;  %3929 = vmatprep.subr.mxu0 %v3817_v14  ;;  %v4216_v14 = vld [vmem:[#allocation5 + $0x14c0] sm:$0xff] }
 0x917   :  { %v3508_v27 = vadd.f32 %v3507_v26, %v7687_v20  ;;  %v3619_v18 = vsel %vm3555_vm5, %v3502_v58, %v3587_v25  ;;  %v3588_v30 = vmul.f32 0.2, %v3506_v22  ;;  %vm3556_vm6 = vcmp.ge.f32.partialorder %v3506_v22, 0.0  ;;  %v3814_v25 = vld [vmem:[#allocation5 + $0x210] sm:$0xff]  ;;  %v3812_v26 = vld [vmem:[#allocation5 + $0x200] sm:$0xff] }
 0x918   :  { %v3511_v28 = vpop.f32.mrf.mxu0  ;;  %3744 = vmatprep.mubr.f32.mxu1 %v3619_v18  ;;  %v4190_v18 = vld [vmem:[#allocation5 + $0x13f0] sm:$0xff] }
 0x919   :  { %v3512_v34 = vadd.f32 %v3511_v28, %v7684_v16  ;;  %3745 = vmatmul.mubr.f32.gmra.mxu1 %v3618_v32  ;;  %vm3557_vm7 = vcmp.ge.f32.partialorder %v3508_v27, 0.0  ;;  %v3589_v35 = vmul.f32 0.2, %v3508_v27  ;;  %v3620_v40 = vsel %vm3556_vm6, %v3506_v22, %v3588_v30  ;;  %v3815_v22 = vld [vmem:[#allocation5 + $0x218] sm:$0xff]  ;;  %v4189_v30 = vld [vmem:[#allocation5 + $0x13e8] sm:$0xff]  ;;  %v4188_v28 = vld [vmem:[#allocation5 + $0x13e0] sm:$0xff] }
 0x91a   :  { %v3513_v11 = vpop.f32.mrf.mxu0  ;;  %v4187_v32 = vld [vmem:[#allocation5 + $0x13d8] sm:$0xff] }
 0x91b   :  { %v3514_v36 = vadd.f32 %v3513_v11, %v7687_v20  ;;  %v3621_v37 = vsel %vm3557_vm7, %v3508_v27, %v3589_v35  ;;  %v3590_v13 = vmul.f32 0.2, %v3512_v34  ;;  %vm3558_vm8 = vcmp.ge.f32.partialorder %v3512_v34, 0.0  ;;  %v4191_v27 = vld [vmem:[#allocation5 + $0x13f8] sm:$0xff]  ;;  %v4185_v35 = vld [vmem:[#allocation5 + $0x13c8] sm:$0xff]  ;;  %v4184_v11 = vld [vmem:[#allocation5 + $0x13c0] sm:$0xff] }
 0x91c   :  { %v3517_v41 = vpop.f32.mrf.mxu0  ;;  %3749 = vmatprep.mubr.f32.mxu1 %v3621_v37  ;;  %4237 = vmatprep.subr.mxu1 %v4191_v27  ;;  %v4182_v37 = vld [vmem:[#allocation5 + $0x13b0] sm:$0xff] }
 0x91d   :  { %v3518_v17 = vadd.f32 %v3517_v41, %v7684_v16  ;;  %3750 = vmatmul.mubr.f32.gmra.mxu1 %v3620_v40  ;;  %vm3559_vm9 = vcmp.ge.f32.partialorder %v3514_v36, 0.0  ;;  %v3591_v42 = vmul.f32 0.2, %v3514_v36  ;;  %v3622_v50 = vsel %vm3558_vm8, %v3512_v34, %v3590_v13  ;;  %v4186_v34 = vld [vmem:[#allocation5 + $0x13d0] sm:$0xff]  ;;  %v4181_v13 = vld [vmem:[#allocation5 + $0x13a8] sm:$0xff]  ;;  %v4180_v41 = vld [vmem:[#allocation5 + $0x13a0] sm:$0xff] }
 0x91e   :  { %v3519_v44 = vpop.f32.mrf.mxu0  ;;  %4238 = vmatpush1.msra.mxu1 %v4190_v18  ;;  %v4179_v40 = vld [vmem:[#allocation5 + $0x1398] sm:$0xff]  ;;  %v4210_v27 = vld [vmem:[#allocation5 + $0x1490] sm:$0xff]  ;;  %v4209_v18 = vld [vmem:[#allocation5 + $0x1488] sm:$0xff] }
 0x91f   :  { %v3520_v21 = vadd.f32 %v3519_v44, %v7687_v20  ;;  %v3623_v45 = vsel %vm3559_vm9, %v3514_v36, %v3591_v42  ;;  %v3592_v31 = vmul.f32 0.2, %v3518_v17  ;;  %vm3560_vm10 = vcmp.ge.f32.partialorder %v3518_v17, 0.0  ;;  %4239 = vmatprep.subr.mxu1 %v4189_v30  ;;  %v4183_v36 = vld [vmem:[#allocation5 + $0x13b8] sm:$0xff]  ;;  %v4177_v42 = vld [vmem:[#allocation5 + $0x1388] sm:$0xff]  ;;  %v4176_v44 = vld [vmem:[#allocation5 + $0x1380] sm:$0xff] }
 0x920   :  { %v3523_v48 = vpop.f32.mrf.mxu0  ;;  %3754 = vmatprep.mubr.f32.mxu1 %v3623_v45  ;;  %4240 = vmatpush1.msra.mxu1 %v4188_v28  ;;  %v4174_v45 = vld [vmem:[#allocation5 + $0x1370] sm:$0xff]  ;;  %v4208_v30 = vld [vmem:[#allocation5 + $0x1480] sm:$0xff]  ;;  %v4207_v28 = vld [vmem:[#allocation5 + $0x1478] sm:$0xff] }
 0x921   :  { %v3524_v51 = vadd.f32 %v3523_v48, %v7684_v16  ;;  %3755 = vmatmul.mubr.f32.gmra.mxu1 %v3622_v50  ;;  %vm3561_vm11 = vcmp.ge.f32.partialorder %v3520_v21, 0.0  ;;  %v3593_v49 = vmul.f32 0.2, %v3520_v21  ;;  %v3624_v63 = vsel %vm3560_vm10, %v3518_v17, %v3592_v31  ;;  %4241 = vmatprep.subr.mxu1 %v4187_v32  ;;  %v4178_v17 = vld [vmem:[#allocation5 + $0x1390] sm:$0xff]  ;;  %v4173_v31 = vld [vmem:[#allocation5 + $0x1368] sm:$0xff]  ;;  %v4172_v48 = vld [vmem:[#allocation5 + $0x1360] sm:$0xff] }
 0x922   :  { %v3525_v52 = vpop.f32.mrf.mxu0  ;;  %4242 = vmatpush1.msra.mxu1 %v4186_v34  ;;  %v4171_v50 = vld [vmem:[#allocation5 + $0x1358] sm:$0xff]  ;;  %v4206_v32 = vld [vmem:[#allocation5 + $0x1470] sm:$0xff]  ;;  %v4205_v34 = vld [vmem:[#allocation5 + $0x1468] sm:$0xff] }
 0x923   :  { %v3526_v53 = vadd.f32 %v3525_v52, %v7687_v20  ;;  %v3625_v55 = vsel %vm3561_vm11, %v3520_v21, %v3593_v49  ;;  %v3594_v57 = vmul.f32 0.2, %v3524_v51  ;;  %vm3562_vm12 = vcmp.ge.f32.partialorder %v3524_v51, 0.0  ;;  %4243 = vmatprep.subr.mxu1 %v4185_v35  ;;  %v4175_v21 = vld [vmem:[#allocation5 + $0x1378] sm:$0xff]  ;;  %v4169_v49 = vld [vmem:[#allocation5 + $0x1348] sm:$0xff]  ;;  %v4168_v52 = vld [vmem:[#allocation5 + $0x1340] sm:$0xff] }
 0x924   :  { %v3529_v62 = vpop.f32.mrf.mxu0  ;;  %3759 = vmatprep.mubr.f32.mxu1 %v3625_v55  ;;  %4244 = vmatpush1.msra.mxu1 %v4184_v11  ;;  %v4166_v55 = vld [vmem:[#allocation5 + $0x1330] sm:$0xff]  ;;  %v4204_v35 = vld [vmem:[#allocation5 + $0x1460] sm:$0xff]  ;;  %v4203_v11 = vld [vmem:[#allocation5 + $0x1458] sm:$0xff] }
 0x925   :  { %v3530_v60 = vadd.f32 %v3529_v62, %v7684_v16  ;;  %3760 = vmatmul.mubr.f32.gmra.mxu1 %v3624_v63  ;;  %vm3563_vm13 = vcmp.ge.f32.partialorder %v3526_v53, 0.0  ;;  %v3595_v1 = vmul.f32 0.2, %v3526_v53  ;;  %v3626_v58 = vsel %vm3562_vm12, %v3524_v51, %v3594_v57  ;;  %v3816_v16 = vld [vmem:[#allocation5 + $0x220] sm:$0xff]  ;;  %4245 = vmatprep.subr.mxu1 %v4183_v36  ;;  %v4170_v51 = vld [vmem:[#allocation5 + $0x1350] sm:$0xff]  ;;  %v4165_v57 = vld [vmem:[#allocation5 + $0x1328] sm:$0xff] }
 0x926   :  { %v3531_v5 = vpop.f32.mrf.mxu0  ;;  %3930 = vmatpush1.msra.mxu0 %v3816_v16  ;;  %4246 = vmatpush1.msra.mxu1 %v4182_v37  ;;  %v4164_v62 = vld [vmem:[#allocation5 + $0x1320] sm:$0xff]  ;;  %v4163_v63 = vld [vmem:[#allocation5 + $0x1318] sm:$0xff]  ;;  %v4202_v36 = vld [vmem:[#allocation5 + $0x1450] sm:$0xff] }
 0x927   :  { %v3532_v6 = vadd.f32 %v3531_v5, %v7687_v20  ;;  %v3627_v8 = vsel %vm3563_vm13, %v3526_v53, %v3595_v1  ;;  %v3596_v9 = vmul.f32 0.2, %v3530_v60  ;;  %vm3564_vm14 = vcmp.ge.f32.partialorder %v3530_v60, 0.0  ;;  %3931 = vmatprep.subr.mxu0 %v3815_v22  ;;  %v3813_v20 = vld [vmem:[#allocation5 + $0x208] sm:$0xff]  ;;  %4247 = vmatprep.subr.mxu1 %v4181_v13  ;;  %v4167_v53 = vld [vmem:[#allocation5 + $0x1338] sm:$0xff]  ;;  %v4160_v5 = vld [vmem:[#allocation5 + $0x1300] sm:$0xff] }
 0x928   :  { %3764 = vmatprep.mubr.f32.mxu1 %v3627_v8  ;;  %3932 = vmatpush1.msra.mxu0 %v3814_v25  ;;  %v4161_v1 = vld [vmem:[#allocation5 + $0x1308] sm:$0xff]  ;;  %v4222_v8 = vld [vmem:[#allocation5 + $0x14f0] sm:$0xff]  ;;  %v4215_v16 = vld [vmem:[#allocation5 + $0x14b8] sm:$0xff] }
 0x929   :  { %3765 = vmatmul.mubr.f32.gmra.mxu1 %v3626_v58  ;;  %vm3565_vm15 = vcmp.ge.f32.partialorder %v3532_v6, 0.0  ;;  %v3597_v10 = vmul.f32 0.2, %v3532_v6  ;;  %v3628_v3 = vsel %vm3564_vm14, %v3530_v60, %v3596_v9  ;;  %3933 = vmatprep.subr.mxu0 %v3813_v20  ;;  %v4162_v60 = vld [vmem:[#allocation5 + $0x1310] sm:$0xff]  ;;  %v4221_v9 = vld [vmem:[#allocation5 + $0x14e8] sm:$0xff]  ;;  %v4220_v58 = vld [vmem:[#allocation5 + $0x14e0] sm:$0xff] }
 0x92a   :  { %3934 = vmatpush1.msra.mxu0 %v3812_v26  ;;  %4248 = vmatpush1.msra.mxu1 %v4180_v41  ;;  %v4214_v22 = vld [vmem:[#allocation5 + $0x14b0] sm:$0xff]  ;;  %v4213_v25 = vld [vmem:[#allocation5 + $0x14a8] sm:$0xff]  ;;  %v4212_v20 = vld [vmem:[#allocation5 + $0x14a0] sm:$0xff] }
 0x92b   :  { %v3629_v59 = vsel %vm3565_vm15, %v3532_v6, %v3597_v10  ;;  %4249 = vmatprep.subr.mxu1 %v4179_v40  ;;  %v4223_v6 = vld [vmem:[#allocation5 + $0x14f8] sm:$0xff]  ;;  %v4201_v37 = vld [vmem:[#allocation5 + $0x1448] sm:$0xff]  ;;  %v4200_v13 = vld [vmem:[#allocation5 + $0x1440] sm:$0xff] }
 0x92c   :  { %3769 = vmatprep.mubr.f32.mxu1 %v3629_v59  ;;  %4250 = vmatpush1.msra.mxu1 %v4178_v17  ;;  %v4219_v10 = vld [vmem:[#allocation5 + $0x14d8] sm:$0xff]  ;;  %v4218_v59 = vld [vmem:[#allocation5 + $0x14d0] sm:$0xff]  ;;  %v7721_v40 = vld [vmem:[#allocation7 + $0x26] ss:$0 sm:$0xff] }
 0x92d   :  { %3770 = vmatmul.mubr.f32.gmra.mxu1 %v3628_v3  ;;  %4251 = vmatprep.subr.mxu1 %v4177_v42  ;;  %v4217_v3 = vld [vmem:[#allocation5 + $0x14c8] sm:$0xff]  ;;  %v4211_v26 = vld [vmem:[#allocation5 + $0x1498] sm:$0xff] }
 0x92e   :  { %4252 = vmatpush1.msra.mxu1 %v4176_v44  ;;  %v7723_v44 = vld [vmem:[#allocation7 + $0x4] ss:$0 sm:$0xff] }
 0x92f   :  { %4253 = vmatprep.subr.mxu1 %v4175_v21 }
 0x930   :  { %4254 = vmatpush1.msra.mxu1 %v4174_v45 }
 0x931   :  { %4255 = vmatprep.subr.mxu1 %v4173_v31 }
 0x932   :  { %4256 = vmatpush1.msra.mxu1 %v4172_v48 }
 0x933   :  { %4257 = vmatprep.subr.mxu1 %v4171_v50 }
 0x934   :  { %4258 = vmatpush1.msra.mxu1 %v4170_v51  ;;  %v7727_v51 = vld [vmem:[#allocation7 + $0x2] ss:$0 sm:$0xff] }
 0x935   :  { %4259 = vmatprep.subr.mxu1 %v4169_v49 }
 0x936   :  { %4260 = vmatpush1.msra.mxu1 %v4168_v52 }
 0x937   :  { %4261 = vmatprep.subr.mxu1 %v4167_v53 }
 0x938   :  { %4262 = vmatpush1.msra.mxu1 %v4166_v55 }
 0x939   :  { %4263 = vmatprep.subr.mxu1 %v4165_v57 }
 0x93a   :  { %4264 = vmatpush1.msra.mxu1 %v4164_v62 }
 0x93b   :  { %4265 = vmatprep.subr.mxu1 %v4163_v63 }
 0x93c   :  { %4266 = vmatpush1.msra.mxu1 %v4162_v60 }
 0x93d   :  { %4267 = vmatprep.subr.mxu1 %v4161_v1 }
 0x93e   :  { %4268 = vmatpush1.msra.mxu1 %v4160_v5 }
 0x93f   :  { %4269 = vmatprep.subr.mxu1 %v4223_v6 }
 0x940   :  { %4270 = vmatpush2.msra.mxu1 %v4222_v8 }
 0x941   :  { %4271 = vmatprep.subr.mxu1 %v4221_v9 }
 0x942   :  { %4272 = vmatpush2.msra.mxu1 %v4220_v58 }
 0x943   :  { %4273 = vmatprep.subr.mxu1 %v4219_v10 }
 0x944   :  { %4274 = vmatpush2.msra.mxu1 %v4218_v59 }
 0x945   :  { %4275 = vmatprep.subr.mxu1 %v4217_v3 }
 0x946   :  { %4276 = vmatpush2.msra.mxu1 %v4216_v14 }
 0x947   :  { %4277 = vmatprep.subr.mxu1 %v4215_v16 }
 0x948   :  { %4278 = vmatpush2.msra.mxu1 %v4214_v22 }
 0x949   :  { %4279 = vmatprep.subr.mxu1 %v4213_v25 }
 0x94a   :  { %4280 = vmatpush2.msra.mxu1 %v4212_v20 }
 0x94b   :  { %4281 = vmatprep.subr.mxu1 %v4211_v26 }
 0x94c   :  { %4282 = vmatpush2.msra.mxu1 %v4210_v27 }
 0x94d   :  { %4283 = vmatprep.subr.mxu1 %v4209_v18 }
 0x94e   :  { %4284 = vmatpush2.msra.mxu1 %v4208_v30 }
 0x94f   :  { %4285 = vmatprep.subr.mxu1 %v4207_v28 }
 0x950   :  { %4286 = vmatpush2.msra.mxu1 %v4206_v32 }
 0x951   :  { %4287 = vmatprep.subr.mxu1 %v4205_v34 }
 0x952   :  { %4288 = vmatpush2.msra.mxu1 %v4204_v35 }
 0x953   :  { %4289 = vmatprep.subr.mxu1 %v4203_v11 }
 0x954   :  { %4290 = vmatpush2.msra.mxu1 %v4202_v36 }
 0x955   :  { %4291 = vmatprep.subr.mxu1 %v4201_v37 }
 0x956   :  { %4292 = vmatpush2.msra.mxu1 %v4200_v13 }
 0x9b1   :  { %v6654_v41 = vpop.f32.mrf.mxu1 }
 0x9b3   :  { %v6655_v17 = vpop.f32.mrf.mxu1 }
 0x9b4   :  { %v6656_v42 = vadd.f32 %v6655_v17, %v6654_v41 }
 0x9b5   :  { %v6657_v21 = vpop.f32.mrf.mxu1 }
 0x9b6   :  { %v3697_v45 = vadd.f32 %v6656_v42, %v7721_v40 }
 0x9b7   :  { %v6658_v31 = vpop.f32.mrf.mxu1 }
 0x9b8   :  { %v3775_v48 = vmul.f32 %v3697_v45, %v7723_v44  ;;  %v6659_v50 = vadd.f32 %v6658_v31, %v6657_v21 }
 0x9b9   :  { %v6660_v49 = vpop.f32.mrf.mxu1 }
 0x9ba   :  { %v7730_v52 = vadd.f32 %v3775_v48, %v7421_v24  ;;  %v3702_v53 = vadd.f32 %v6659_v50, %v7721_v40 }
 0x9bb   :  { %v6661_v55 = vpop.f32.mrf.mxu1 }
 0x9bc   :  { %v3876_v57 = vmul.f32 %v7727_v51, %v7730_v52  ;;  %v3776_v62 = vmul.f32 %v3702_v53, %v7723_v44  ;;  %v6662_v63 = vadd.f32 %v6661_v55, %v6660_v49 }
 0x9bd   :  { %v6663_v60 = vpop.f32.mrf.mxu1 }
 0x9be   :  { %v7737_v1 = vadd.f32 %v3776_v62, %v7428_v19  ;;  %v3707_v5 = vadd.f32 %v6662_v63, %v7721_v40  ;;  %3968 = vmatmul.mubr.f32.vlgmr.msra.gmra.mxu0 %v3876_v57 }
 0x9bf   :  { %v6664_v6 = vpop.f32.mrf.mxu1  ;;  %3973 = vmatprep.mubr.f32.mxu0 %v7144_v0 }
 0x9c0   :  { %v3777_v24 = vmul.f32 %v3707_v5, %v7723_v44  ;;  %v6665_v8 = vadd.f32 %v6664_v6, %v6663_v60  ;;  %v3877_v9 = vmul.f32 %v7727_v51, %v7737_v1 }
 0x9c1   :  { %v6666_v58 = vpop.f32.mrf.mxu1 }
 0x9c2   :  { %v7745_v10 = vadd.f32 %v3777_v24, %v7435_v39  ;;  %v3712_v59 = vadd.f32 %v6665_v8, %v7721_v40  ;;  %3974 = vmatmul.mubr.f32.gmra.mxu0 %v3877_v9 }
 0x9c3   :  { %v6667_v19 = vpop.f32.mrf.mxu1  ;;  %3979 = vmatprep.mubr.f32.mxu0 %v7144_v0 }
 0x9c4   :  { %v3778_v3 = vmul.f32 %v3712_v59, %v7723_v44  ;;  %v6668_v14 = vadd.f32 %v6667_v19, %v6666_v58  ;;  %v3878_v16 = vmul.f32 %v7727_v51, %v7745_v10 }
 0x9c5   :  { %v6669_v22 = vpop.f32.mrf.mxu1 }
 0x9c6   :  { %v7753_v25 = vadd.f32 %v3778_v3, %v7442_v46  ;;  %v3717_v20 = vadd.f32 %v6668_v14, %v7721_v40  ;;  %3980 = vmatmul.mubr.f32.gmra.mxu0 %v3878_v16 }
 0x9c7   :  { %v6670_v39 = vpop.f32.mrf.mxu1  ;;  %3985 = vmatprep.mubr.f32.mxu0 %v7144_v0 }
 0x9c8   :  { %v3779_v26 = vmul.f32 %v3717_v20, %v7723_v44  ;;  %v6671_v27 = vadd.f32 %v6670_v39, %v6669_v22  ;;  %v3879_v18 = vmul.f32 %v7727_v51, %v7753_v25 }
 0x9c9   :  { %v6672_v30 = vpop.f32.mrf.mxu1 }
 0x9ca   :  { %v7761_v28 = vadd.f32 %v3779_v26, %v7449_v54  ;;  %v3722_v32 = vadd.f32 %v6671_v27, %v7721_v40  ;;  %3986 = vmatmul.mubr.f32.gmra.mxu0 %v3879_v18 }
 0x9cb   :  { %v6673_v46 = vpop.f32.mrf.mxu1  ;;  %3991 = vmatprep.mubr.f32.mxu0 %v7144_v0 }
 0x9cc   :  { %v3780_v34 = vmul.f32 %v3722_v32, %v7723_v44  ;;  %v6674_v35 = vadd.f32 %v6673_v46, %v6672_v30  ;;  %v3880_v11 = vmul.f32 %v7727_v51, %v7761_v28 }
 0x9cd   :  { %v6675_v36 = vpop.f32.mrf.mxu1 }
 0x9ce   :  { %v7769_v37 = vadd.f32 %v3780_v34, %v7456_v4  ;;  %v3727_v13 = vadd.f32 %v6674_v35, %v7721_v40  ;;  %3992 = vmatmul.mubr.f32.gmra.mxu0 %v3880_v11 }
 0x9cf   :  { %v6676_v54 = vpop.f32.mrf.mxu1  ;;  %3997 = vmatprep.mubr.f32.mxu0 %v7144_v0 }
 0x9d0   :  { %v3781_v41 = vmul.f32 %v3727_v13, %v7723_v44  ;;  %v6677_v17 = vadd.f32 %v6676_v54, %v6675_v36  ;;  %v3881_v42 = vmul.f32 %v7727_v51, %v7769_v37 }
 0x9d1   :  { %v6678_v21 = vpop.f32.mrf.mxu1 }
 0x9d2   :  { %v7777_v45 = vadd.f32 %v3781_v41, %v7463_v12  ;;  %v3732_v31 = vadd.f32 %v6677_v17, %v7721_v40  ;;  %3998 = vmatmul.mubr.f32.gmra.mxu0 %v3881_v42 }
 0x9d3   :  { %v6679_v4 = vpop.f32.mrf.mxu1  ;;  %4003 = vmatprep.mubr.f32.mxu0 %v7144_v0 }
 0x9d4   :  { %v3782_v48 = vmul.f32 %v3732_v31, %v7723_v44  ;;  %v6680_v50 = vadd.f32 %v6679_v4, %v6678_v21  ;;  %v3882_v49 = vmul.f32 %v7727_v51, %v7777_v45 }
 0x9d5   :  { %v6681_v53 = vpop.f32.mrf.mxu1 }
 0x9d6   :  { %v7785_v55 = vadd.f32 %v3782_v48, %v7470_v23  ;;  %v3737_v57 = vadd.f32 %v6680_v50, %v7721_v40  ;;  %4004 = vmatmul.mubr.f32.gmra.mxu0 %v3882_v49 }
 0x9d7   :  { %v6682_v12 = vpop.f32.mrf.mxu1  ;;  %4009 = vmatprep.mubr.f32.mxu0 %v7144_v0 }
 0x9d8   :  { %v3783_v62 = vmul.f32 %v3737_v57, %v7723_v44  ;;  %v6683_v63 = vadd.f32 %v6682_v12, %v6681_v53  ;;  %v3883_v60 = vmul.f32 %v7727_v51, %v7785_v55 }
 0x9d9   :  { %v6684_v5 = vpop.f32.mrf.mxu1 }
 0x9da   :  { %v7793_v6 = vadd.f32 %v3783_v62, %v7476_v29  ;;  %v3742_v24 = vadd.f32 %v6683_v63, %v7721_v40  ;;  %4010 = vmatmul.mubr.f32.gmra.mxu0 %v3883_v60  ;;  %v4199_v60 = vld [vmem:[#allocation5 + $0x1438] sm:$0xff] }
 0x9db   :  { %v6685_v23 = vpop.f32.mrf.mxu1  ;;  %4015 = vmatprep.mubr.f32.mxu0 %v7144_v0  ;;  %4293 = vmatprep.subr.mxu1 %v4199_v60  ;;  %v4551_v60 = vld [vmem:[#allocation5 + $0x16c8] sm:$0xff] }
 0x9dc   :  { %v3784_v8 = vmul.f32 %v3742_v24, %v7723_v44  ;;  %v6686_v9 = vadd.f32 %v6685_v23, %v6684_v5  ;;  %v3884_v58 = vmul.f32 %v7727_v51, %v7793_v6  ;;  %v4197_v5 = vld [vmem:[#allocation5 + $0x1428] sm:$0xff]  ;;  %v4195_v24 = vld [vmem:[#allocation5 + $0x1418] sm:$0xff]  ;;  %v4194_v23 = vld [vmem:[#allocation5 + $0x1410] sm:$0xff] }
 0x9dd   :  { %v6687_v59 = vpop.f32.mrf.mxu1 }
 0x9de   :  { %v7801_v19 = vadd.f32 %v3784_v8, %v7483_v38  ;;  %v3747_v3 = vadd.f32 %v6686_v9, %v7721_v40  ;;  %4016 = vmatmul.mubr.f32.gmra.mxu0 %v3884_v58  ;;  %v4192_v8 = vld [vmem:[#allocation5 + $0x1400] sm:$0xff]  ;;  %v4524_v9 = vld [vmem:[#allocation5 + $0x15f0] sm:$0xff] }
 0x9df   :  { %v6688_v29 = vpop.f32.mrf.mxu1  ;;  %4021 = vmatprep.mubr.f32.mxu0 %v7144_v0  ;;  %v4522_v58 = vld [vmem:[#allocation5 + $0x15e0] sm:$0xff] }
 0x9e0   :  { %v3785_v14 = vmul.f32 %v3747_v3, %v7723_v44  ;;  %v6689_v16 = vadd.f32 %v6688_v29, %v6687_v59  ;;  %v3885_v22 = vmul.f32 %v7727_v51, %v7801_v19  ;;  %v4521_v59 = vld [vmem:[#allocation5 + $0x15d8] sm:$0xff]  ;;  %v4520_v3 = vld [vmem:[#allocation5 + $0x15d0] sm:$0xff]  ;;  %v4519_v29 = vld [vmem:[#allocation5 + $0x15c8] sm:$0xff] }
 0x9e1   :  { %v6690_v20 = vpop.f32.mrf.mxu1 }
 0x9e2   :  { %v7809_v39 = vadd.f32 %v3785_v14, %v7490_v47  ;;  %v3752_v26 = vadd.f32 %v6689_v16, %v7721_v40  ;;  %4022 = vmatmul.mubr.f32.gmra.mxu0 %v3885_v22  ;;  %v4518_v14 = vld [vmem:[#allocation5 + $0x15c0] sm:$0xff]  ;;  %v4517_v16 = vld [vmem:[#allocation5 + $0x15b8] sm:$0xff]  ;;  %v4516_v22 = vld [vmem:[#allocation5 + $0x15b0] sm:$0xff] }
 0x9e3   :  { %v6691_v38 = vpop.f32.mrf.mxu1  ;;  %4027 = vmatprep.mubr.f32.mxu0 %v7144_v0 }
 0x9e4   :  { %v3786_v27 = vmul.f32 %v3752_v26, %v7723_v44  ;;  %v6692_v18 = vadd.f32 %v6691_v38, %v6690_v20  ;;  %v3886_v30 = vmul.f32 %v7727_v51, %v7809_v39  ;;  %v4515_v20 = vld [vmem:[#allocation5 + $0x15a8] sm:$0xff]  ;;  %v4514_v26 = vld [vmem:[#allocation5 + $0x15a0] sm:$0xff]  ;;  %v4513_v38 = vld [vmem:[#allocation5 + $0x1598] sm:$0xff] }
 0x9e5   :  { %v6693_v32 = vpop.f32.mrf.mxu1 }
 0x9e6   :  { %v7817_v46 = vadd.f32 %v3786_v27, %v7497_v56  ;;  %v3757_v34 = vadd.f32 %v6692_v18, %v7721_v40  ;;  %4028 = vmatmul.mubr.f32.gmra.mxu0 %v3886_v30  ;;  %v4512_v27 = vld [vmem:[#allocation5 + $0x1590] sm:$0xff]  ;;  %v4511_v18 = vld [vmem:[#allocation5 + $0x1588] sm:$0xff]  ;;  %v4510_v30 = vld [vmem:[#allocation5 + $0x1580] sm:$0xff] }
 0x9e7   :  { %v6694_v47 = vpop.f32.mrf.mxu1  ;;  %4033 = vmatprep.mubr.f32.mxu0 %v7144_v0 }
 0x9e8   :  { %v3787_v35 = vmul.f32 %v3757_v34, %v7723_v44  ;;  %v6695_v11 = vadd.f32 %v6694_v47, %v6693_v32  ;;  %v3887_v36 = vmul.f32 %v7727_v51, %v7817_v46  ;;  %v4509_v32 = vld [vmem:[#allocation5 + $0x1578] sm:$0xff]  ;;  %v4508_v34 = vld [vmem:[#allocation5 + $0x1570] sm:$0xff]  ;;  %v4507_v47 = vld [vmem:[#allocation5 + $0x1568] sm:$0xff] }
 0x9e9   :  { %v6696_v13 = vpop.f32.mrf.mxu1 }
 0x9ea   :  { %v7825_v54 = vadd.f32 %v3787_v35, %v7504_v7  ;;  %v3762_v41 = vadd.f32 %v6695_v11, %v7721_v40  ;;  %4034 = vmatmul.mubr.f32.gmra.mxu0 %v3887_v36  ;;  %v4506_v35 = vld [vmem:[#allocation5 + $0x1560] sm:$0xff]  ;;  %v4505_v11 = vld [vmem:[#allocation5 + $0x1558] sm:$0xff]  ;;  %v4504_v36 = vld [vmem:[#allocation5 + $0x1550] sm:$0xff] }
 0x9eb   :  { %v6697_v56 = vpop.f32.mrf.mxu1  ;;  %4039 = vmatprep.mubr.f32.mxu0 %v7144_v0 }
 0x9ec   :  { %v3788_v17 = vmul.f32 %v3762_v41, %v7723_v44  ;;  %v6698_v42 = vadd.f32 %v6697_v56, %v6696_v13  ;;  %v3888_v21 = vmul.f32 %v7727_v51, %v7825_v54  ;;  %v4503_v13 = vld [vmem:[#allocation5 + $0x1548] sm:$0xff]  ;;  %v4502_v41 = vld [vmem:[#allocation5 + $0x1540] sm:$0xff]  ;;  %v4501_v56 = vld [vmem:[#allocation5 + $0x1538] sm:$0xff] }
 0x9ed   :  { %v6699_v31 = vpop.f32.mrf.mxu1 }
 0x9ee   :  { %v7833_v4 = vadd.f32 %v3788_v17, %v7511_v15  ;;  %v3767_v48 = vadd.f32 %v6698_v42, %v7721_v40  ;;  %4040 = vmatmul.mubr.f32.gmra.mxu0 %v3888_v21  ;;  %v4500_v17 = vld [vmem:[#allocation5 + $0x1530] sm:$0xff]  ;;  %v4499_v42 = vld [vmem:[#allocation5 + $0x1528] sm:$0xff]  ;;  %v4498_v21 = vld [vmem:[#allocation5 + $0x1520] sm:$0xff] }
 0x9ef   :  { %v6700_v7 = vpop.f32.mrf.mxu1  ;;  %4045 = vmatprep.mubr.f32.mxu0 %v7144_v0 }
 0x9f0   :  { %v3789_v50 = vmul.f32 %v3767_v48, %v7723_v44  ;;  %v6701_v49 = vadd.f32 %v6700_v7, %v6699_v31  ;;  %v3889_v53 = vmul.f32 %v7727_v51, %v7833_v4  ;;  %v4497_v31 = vld [vmem:[#allocation5 + $0x1518] sm:$0xff]  ;;  %v4496_v48 = vld [vmem:[#allocation5 + $0x1510] sm:$0xff]  ;;  %v4495_v7 = vld [vmem:[#allocation5 + $0x1508] sm:$0xff] }
 0x9f2   :  { %v7841_v57 = vadd.f32 %v3789_v50, %v7518_v43  ;;  %v3772_v12 = vadd.f32 %v6701_v49, %v7721_v40  ;;  %4046 = vmatmul.mubr.f32.gmra.mxu0 %v3889_v53  ;;  %v4198_v40 = vld [vmem:[#allocation5 + $0x1430] sm:$0xff]  ;;  %v4494_v50 = vld [vmem:[#allocation5 + $0x1500] sm:$0xff]  ;;  %v4557_v49 = vld [vmem:[#allocation5 + $0x16f8] sm:$0xff] }
 0x9f3   :  { %4051 = vmatprep.mubr.f32.mxu0 %v7144_v0  ;;  %4294 = vmatpush2.msra.mxu1 %v4198_v40  ;;  %v4556_v53 = vld [vmem:[#allocation5 + $0x16f0] sm:$0xff]  ;;  %v4550_v40 = vld [vmem:[#allocation5 + $0x16c0] sm:$0xff] }
 0x9f4   :  { %v3790_v15 = vmul.f32 %v3772_v12, %v7723_v44  ;;  %v3890_v62 = vmul.f32 %v7727_v51, %v7841_v57  ;;  %4295 = vmatprep.subr.mxu1 %v4197_v5  ;;  %v4196_v44 = vld [vmem:[#allocation5 + $0x1420] sm:$0xff]  ;;  %v4555_v12 = vld [vmem:[#allocation5 + $0x16e8] sm:$0xff]  ;;  %v4549_v5 = vld [vmem:[#allocation5 + $0x16b8] sm:$0xff] }
 0x9f5   :  { %4296 = vmatpush2.msra.mxu1 %v4196_v44  ;;  %v4548_v44 = vld [vmem:[#allocation5 + $0x16b0] sm:$0xff] }
 0x9f6   :  { %v7849_v63 = vadd.f32 %v3790_v15, %v7525_v33  ;;  %4052 = vmatmul.mubr.f32.gmra.mxu0 %v3890_v62  ;;  %4297 = vmatprep.subr.mxu1 %v4195_v24  ;;  %v4193_v33 = vld [vmem:[#allocation5 + $0x1408] sm:$0xff]  ;;  %v4554_v15 = vld [vmem:[#allocation5 + $0x16e0] sm:$0xff]  ;;  %v4553_v62 = vld [vmem:[#allocation5 + $0x16d8] sm:$0xff] }
 0x9f7   :  { %4057 = vmatprep.mubr.f32.mxu0 %v7144_v0  ;;  %4298 = vmatpush2.msra.mxu1 %v4194_v23  ;;  %v4525_v0 = vld [vmem:[#allocation5 + $0x15f8] sm:$0xff]  ;;  %v4547_v24 = vld [vmem:[#allocation5 + $0x16a8] sm:$0xff]  ;;  %v4546_v23 = vld [vmem:[#allocation5 + $0x16a0] sm:$0xff] }
 0x9f8   :  { %v3891_v43 = vmul.f32 %v7727_v51, %v7849_v63  ;;  %4299 = vmatprep.subr.mxu1 %v4193_v33  ;;  %v4523_v51 = vld [vmem:[#allocation5 + $0x15e8] sm:$0xff]  ;;  %4571 = vmatprep.subr.mxu0 %v4525_v0  ;;  %v4545_v33 = vld [vmem:[#allocation5 + $0x1698] sm:$0xff] }
 0x9f9   :  { %4300 = vmatpush2.msra.mxu1 %v4192_v8  ;;  %4572 = vmatpush1.msra.mxu0 %v4524_v9  ;;  %v4544_v8 = vld [vmem:[#allocation5 + $0x1690] sm:$0xff]  ;;  %v4543_v0 = vld [vmem:[#allocation5 + $0x1688] sm:$0xff]  ;;  %v4542_v9 = vld [vmem:[#allocation5 + $0x1680] sm:$0xff] }
 0x9fa   :  { %4058 = vmatmul.mubr.f32.gmra.mxu0 %v3891_v43  ;;  %4573 = vmatprep.subr.mxu0 %v4523_v51  ;;  %v4552_v43 = vld [vmem:[#allocation5 + $0x16d0] sm:$0xff]  ;;  %v4541_v51 = vld [vmem:[#allocation5 + $0x1678] sm:$0xff] }
 0x9fb   :  { %4574 = vmatpush1.msra.mxu0 %v4522_v58  ;;  %v4540_v58 = vld [vmem:[#allocation5 + $0x1670] sm:$0xff] }
 0x9fc   :  { %4575 = vmatprep.subr.mxu0 %v4521_v59  ;;  %v4539_v59 = vld [vmem:[#allocation5 + $0x1668] sm:$0xff] }
 0x9fd   :  { %4576 = vmatpush1.msra.mxu0 %v4520_v3  ;;  %v4538_v3 = vld [vmem:[#allocation5 + $0x1660] sm:$0xff] }
 0x9fe   :  { %4577 = vmatprep.subr.mxu0 %v4519_v29  ;;  %v4537_v29 = vld [vmem:[#allocation5 + $0x1658] sm:$0xff] }
 0x9ff   :  { %4578 = vmatpush1.msra.mxu0 %v4518_v14  ;;  %v4536_v14 = vld [vmem:[#allocation5 + $0x1650] sm:$0xff] }
 0xa00   :  { %4579 = vmatprep.subr.mxu0 %v4517_v16  ;;  %v4535_v16 = vld [vmem:[#allocation5 + $0x1648] sm:$0xff] }
 0xa01   :  { %4580 = vmatpush1.msra.mxu0 %v4516_v22  ;;  %v3810_v22 = vld [vmem:[#allocation7 + $0x10] ss:$8 sm:$0x3] }
 0xa02   :  { %4581 = vmatprep.subr.mxu0 %v4515_v20  ;;  %v4534_v20 = vld [vmem:[#allocation5 + $0x1640] sm:$0xff] }
 0xa03   :  { %4582 = vmatpush1.msra.mxu0 %v4514_v26  ;;  %v7855_v26 = vrot.slane %v3810_v22, %v7218_v61 }
 0xa04   :  { %4583 = vmatprep.subr.mxu0 %v4513_v38  ;;  %v7858_v38 = vrot.slane %v3810_v22, %v7220_v2 }
 0xa05   :  { %4584 = vmatpush1.msra.mxu0 %v4512_v27 }
 0xa06   :  { %4585 = vmatprep.subr.mxu0 %v4511_v18 }
 0xa07   :  { %4586 = vmatpush1.msra.mxu0 %v4510_v30 }
 0xa08   :  { %4587 = vmatprep.subr.mxu0 %v4509_v32 }
 0xa09   :  { %4588 = vmatpush1.msra.mxu0 %v4508_v34 }
 0xa0a   :  { %4589 = vmatprep.subr.mxu0 %v4507_v47 }
 0xa0b   :  { %4590 = vmatpush1.msra.mxu0 %v4506_v35 }
 0xa0c   :  { %4591 = vmatprep.subr.mxu0 %v4505_v11 }
 0xa0d   :  { %4592 = vmatpush1.msra.mxu0 %v4504_v36 }
 0xa0e   :  { %4593 = vmatprep.subr.mxu0 %v4503_v13 }
 0xa0f   :  { %4594 = vmatpush1.msra.mxu0 %v4502_v41 }
 0xa10   :  { %4595 = vmatprep.subr.mxu0 %v4501_v56 }
 0xa11   :  { %4596 = vmatpush1.msra.mxu0 %v4500_v17 }
 0xa12   :  { %4597 = vmatprep.subr.mxu0 %v4499_v42 }
 0xa13   :  { %4598 = vmatpush1.msra.mxu0 %v4498_v21 }
 0xa14   :  { %4599 = vmatprep.subr.mxu0 %v4497_v31 }
 0xa15   :  { %4600 = vmatpush1.msra.mxu0 %v4496_v48 }
 0xa16   :  { %4601 = vmatprep.subr.mxu0 %v4495_v7 }
 0xa17   :  { %4602 = vmatpush1.msra.mxu0 %v4494_v50 }
 0xa18   :  { %4603 = vmatprep.subr.mxu0 %v4557_v49 }
 0xa19   :  { %4604 = vmatpush2.msra.mxu0 %v4556_v53 }
 0xa1a   :  { %4605 = vmatprep.subr.mxu0 %v4555_v12 }
 0xa1b   :  { %4606 = vmatpush2.msra.mxu0 %v4554_v15 }
 0xa1c   :  { %4607 = vmatprep.subr.mxu0 %v4553_v62 }
 0xa1d   :  { %4608 = vmatpush2.msra.mxu0 %v4552_v43 }
 0xa1e   :  { %4609 = vmatprep.subr.mxu0 %v4551_v60 }
 0xa1f   :  { %4610 = vmatpush2.msra.mxu0 %v4550_v40 }
 0xa20   :  { %4611 = vmatprep.subr.mxu0 %v4549_v5 }
 0xa21   :  { %4612 = vmatpush2.msra.mxu0 %v4548_v44 }
 0xa22   :  { %4613 = vmatprep.subr.mxu0 %v4547_v24 }
 0xa23   :  { %4614 = vmatpush2.msra.mxu0 %v4546_v23 }
 0xa24   :  { %4615 = vmatprep.subr.mxu0 %v4545_v33 }
 0xa25   :  { %4616 = vmatpush2.msra.mxu0 %v4544_v8 }
 0xa26   :  { %4617 = vmatprep.subr.mxu0 %v4543_v0 }
 0xa27   :  { %4618 = vmatpush2.msra.mxu0 %v4542_v9 }
 0xa28   :  { %4619 = vmatprep.subr.mxu0 %v4541_v51 }
 0xa29   :  { %4620 = vmatpush2.msra.mxu0 %v4540_v58 }
 0xa2a   :  { %4621 = vmatprep.subr.mxu0 %v4539_v59 }
 0xa2b   :  { %4622 = vmatpush2.msra.mxu0 %v4538_v3 }
 0xa2c   :  { %4623 = vmatprep.subr.mxu0 %v4537_v29 }
 0xa2d   :  { %4624 = vmatpush2.msra.mxu0 %v4536_v14 }
 0xa2e   :  { %4625 = vmatprep.subr.mxu0 %v4535_v16 }
 0xa2f   :  { %4626 = vmatpush2.msra.mxu0 %v4534_v20 }
 0xa7e   :  { %v3969_v27 = vpop.f32.mrf.mxu0 }
 0xa7f   :  { %v3970_v18 = vadd.f32 %v3969_v27, %v7855_v26 }
 0xa80   :  { %v3971_v30 = vpop.f32.mrf.mxu0 }
 0xa81   :  { %v3972_v32 = vadd.f32 %v3971_v30, %v7858_v38  ;;  %v4096_v34 = vmul.f32 0.2, %v3970_v18  ;;  %vm4064_vm0 = vcmp.ge.f32.partialorder %v3970_v18, 0.0 }
 0xa82   :  { %v3975_v47 = vpop.f32.mrf.mxu0 }
 0xa83   :  { %v4097_v35 = vmul.f32 0.2, %v3972_v32  ;;  %v3976_v11 = vadd.f32 %v3975_v47, %v7855_v26  ;;  %vm4065_vm1 = vcmp.ge.f32.partialorder %v3972_v32, 0.0  ;;  %v4128_v56 = vsel %vm4064_vm0, %v3970_v18, %v4096_v34 }
 0xa84   :  { %v3977_v36 = vpop.f32.mrf.mxu0 }
 0xa85   :  { %v3978_v13 = vadd.f32 %v3977_v36, %v7858_v38  ;;  %v4129_v41 = vsel %vm4065_vm1, %v3972_v32, %v4097_v35  ;;  %v4098_v17 = vmul.f32 0.2, %v3976_v11  ;;  %vm4066_vm2 = vcmp.ge.f32.partialorder %v3976_v11, 0.0 }
 0xa86   :  { %v3981_v42 = vpop.f32.mrf.mxu0  ;;  %4301 = vmatprep.mubr.f32.mxu1 %v4129_v41 }
 0xa87   :  { %v4099_v21 = vmul.f32 0.2, %v3978_v13  ;;  %v3982_v31 = vadd.f32 %v3981_v42, %v7855_v26  ;;  %4302 = vmatmul.mubr.f32.vlgmr.msra.gmra.mxu1 %v4128_v56  ;;  %vm4067_vm3 = vcmp.ge.f32.partialorder %v3978_v13, 0.0  ;;  %v4130_v12 = vsel %vm4066_vm2, %v3976_v11, %v4098_v17 }
 0xa88   :  { %v3983_v48 = vpop.f32.mrf.mxu0 }
 0xa89   :  { %v3984_v7 = vadd.f32 %v3983_v48, %v7858_v38  ;;  %v4131_v50 = vsel %vm4067_vm3, %v3978_v13, %v4099_v21  ;;  %v4100_v49 = vmul.f32 0.2, %v3982_v31  ;;  %vm4068_vm4 = vcmp.ge.f32.partialorder %v3982_v31, 0.0 }
 0xa8a   :  { %v3987_v53 = vpop.f32.mrf.mxu0  ;;  %4307 = vmatprep.mubr.f32.mxu1 %v4131_v50 }
 0xa8b   :  { %v4101_v15 = vmul.f32 0.2, %v3984_v7  ;;  %v3988_v62 = vadd.f32 %v3987_v53, %v7855_v26  ;;  %4308 = vmatmul.mubr.f32.gmra.mxu1 %v4130_v12  ;;  %vm4069_vm5 = vcmp.ge.f32.partialorder %v3984_v7, 0.0  ;;  %v4132_v24 = vsel %vm4068_vm4, %v3982_v31, %v4100_v49 }
 0xa8c   :  { %v3989_v43 = vpop.f32.mrf.mxu0 }
 0xa8d   :  { %v3990_v60 = vadd.f32 %v3989_v43, %v7858_v38  ;;  %v4133_v40 = vsel %vm4069_vm5, %v3984_v7, %v4101_v15  ;;  %v4102_v5 = vmul.f32 0.2, %v3988_v62  ;;  %vm4070_vm6 = vcmp.ge.f32.partialorder %v3988_v62, 0.0 }
 0xa8e   :  { %v3993_v44 = vpop.f32.mrf.mxu0  ;;  %4313 = vmatprep.mubr.f32.mxu1 %v4133_v40 }
 0xa8f   :  { %v4103_v23 = vmul.f32 0.2, %v3990_v60  ;;  %v3994_v33 = vadd.f32 %v3993_v44, %v7855_v26  ;;  %4314 = vmatmul.mubr.f32.gmra.mxu1 %v4132_v24  ;;  %vm4071_vm7 = vcmp.ge.f32.partialorder %v3990_v60, 0.0  ;;  %v4134_v59 = vsel %vm4070_vm6, %v3988_v62, %v4102_v5 }
 0xa90   :  { %v3995_v8 = vpop.f32.mrf.mxu0 }
 0xa91   :  { %v3996_v0 = vadd.f32 %v3995_v8, %v7858_v38  ;;  %v4135_v9 = vsel %vm4071_vm7, %v3990_v60, %v4103_v23  ;;  %v4104_v51 = vmul.f32 0.2, %v3994_v33  ;;  %vm4072_vm8 = vcmp.ge.f32.partialorder %v3994_v33, 0.0 }
 0xa92   :  { %v3999_v58 = vpop.f32.mrf.mxu0  ;;  %4319 = vmatprep.mubr.f32.mxu1 %v4135_v9 }
 0xa93   :  { %v4105_v3 = vmul.f32 0.2, %v3996_v0  ;;  %v4000_v29 = vadd.f32 %v3999_v58, %v7855_v26  ;;  %4320 = vmatmul.mubr.f32.gmra.mxu1 %v4134_v59  ;;  %vm4073_vm9 = vcmp.ge.f32.partialorder %v3996_v0, 0.0  ;;  %v4136_v18 = vsel %vm4072_vm8, %v3994_v33, %v4104_v51 }
 0xa94   :  { %v4001_v14 = vpop.f32.mrf.mxu0 }
 0xa95   :  { %v4002_v16 = vadd.f32 %v4001_v14, %v7858_v38  ;;  %v4137_v22 = vsel %vm4073_vm9, %v3996_v0, %v4105_v3  ;;  %v4106_v20 = vmul.f32 0.2, %v4000_v29  ;;  %vm4074_vm10 = vcmp.ge.f32.partialorder %v4000_v29, 0.0 }
 0xa96   :  { %v4005_v27 = vpop.f32.mrf.mxu0  ;;  %4325 = vmatprep.mubr.f32.mxu1 %v4137_v22 }
 0xa97   :  { %v4107_v30 = vmul.f32 0.2, %v4002_v16  ;;  %v4006_v32 = vadd.f32 %v4005_v27, %v7855_v26  ;;  %4326 = vmatmul.mubr.f32.gmra.mxu1 %v4136_v18  ;;  %vm4075_vm11 = vcmp.ge.f32.partialorder %v4002_v16, 0.0  ;;  %v4138_v13 = vsel %vm4074_vm10, %v4000_v29, %v4106_v20 }
 0xa98   :  { %v4007_v34 = vpop.f32.mrf.mxu0 }
 0xa99   :  { %v4008_v47 = vadd.f32 %v4007_v34, %v7858_v38  ;;  %v4139_v35 = vsel %vm4075_vm11, %v4002_v16, %v4107_v30  ;;  %v4108_v11 = vmul.f32 0.2, %v4006_v32  ;;  %vm4076_vm12 = vcmp.ge.f32.partialorder %v4006_v32, 0.0 }
 0xa9a   :  { %v4011_v36 = vpop.f32.mrf.mxu0  ;;  %4331 = vmatprep.mubr.f32.mxu1 %v4139_v35 }
 0xa9b   :  { %v4109_v41 = vmul.f32 0.2, %v4008_v47  ;;  %v4012_v56 = vadd.f32 %v4011_v36, %v7855_v26  ;;  %4332 = vmatmul.mubr.f32.gmra.mxu1 %v4138_v13  ;;  %vm4077_vm13 = vcmp.ge.f32.partialorder %v4008_v47, 0.0  ;;  %v4140_v7 = vsel %vm4076_vm12, %v4006_v32, %v4108_v11 }
 0xa9c   :  { %v4013_v17 = vpop.f32.mrf.mxu0 }
 0xa9d   :  { %v4014_v42 = vadd.f32 %v4013_v17, %v7858_v38  ;;  %v4141_v21 = vsel %vm4077_vm13, %v4008_v47, %v4109_v41  ;;  %v4110_v31 = vmul.f32 0.2, %v4012_v56  ;;  %vm4078_vm14 = vcmp.ge.f32.partialorder %v4012_v56, 0.0 }
 0xa9e   :  { %v4017_v48 = vpop.f32.mrf.mxu0  ;;  %4337 = vmatprep.mubr.f32.mxu1 %v4141_v21 }
 0xa9f   :  { %v4111_v50 = vmul.f32 0.2, %v4014_v42  ;;  %v4018_v49 = vadd.f32 %v4017_v48, %v7855_v26  ;;  %4338 = vmatmul.mubr.f32.gmra.mxu1 %v4140_v7  ;;  %vm4079_vm15 = vcmp.ge.f32.partialorder %v4014_v42, 0.0  ;;  %v4142_v60 = vsel %vm4078_vm14, %v4012_v56, %v4110_v31 }
 0xaa0   :  { %v4019_v53 = vpop.f32.mrf.mxu0 }
 0xaa1   :  { %v4020_v12 = vadd.f32 %v4019_v53, %v7858_v38  ;;  %v4143_v15 = vsel %vm4079_vm15, %v4014_v42, %v4111_v50  ;;  %v4112_v62 = vmul.f32 0.2, %v4018_v49  ;;  %vm4080_vm0 = vcmp.ge.f32.partialorder %v4018_v49, 0.0 }
 0xaa2   :  { %v4023_v43 = vpop.f32.mrf.mxu0  ;;  %4343 = vmatprep.mubr.f32.mxu1 %v4143_v15 }
 0xaa3   :  { %v4113_v40 = vmul.f32 0.2, %v4020_v12  ;;  %v4024_v5 = vadd.f32 %v4023_v43, %v7855_v26  ;;  %4344 = vmatmul.mubr.f32.gmra.mxu1 %v4142_v60  ;;  %vm4081_vm1 = vcmp.ge.f32.partialorder %v4020_v12, 0.0  ;;  %v4144_v0 = vsel %vm4080_vm0, %v4018_v49, %v4112_v62 }
 0xaa4   :  { %v4025_v44 = vpop.f32.mrf.mxu0 }
 0xaa5   :  { %v4026_v24 = vadd.f32 %v4025_v44, %v7858_v38  ;;  %v4145_v23 = vsel %vm4081_vm1, %v4020_v12, %v4113_v40  ;;  %v4114_v33 = vmul.f32 0.2, %v4024_v5  ;;  %vm4082_vm2 = vcmp.ge.f32.partialorder %v4024_v5, 0.0 }
 0xaa6   :  { %v4029_v8 = vpop.f32.mrf.mxu0  ;;  %4349 = vmatprep.mubr.f32.mxu1 %v4145_v23 }
 0xaa7   :  { %v4115_v9 = vmul.f32 0.2, %v4026_v24  ;;  %v4030_v51 = vadd.f32 %v4029_v8, %v7855_v26  ;;  %4350 = vmatmul.mubr.f32.gmra.mxu1 %v4144_v0  ;;  %vm4083_vm3 = vcmp.ge.f32.partialorder %v4026_v24, 0.0  ;;  %v4146_v16 = vsel %vm4082_vm2, %v4024_v5, %v4114_v33 }
 0xaa8   :  { %v4031_v58 = vpop.f32.mrf.mxu0 }
 0xaa9   :  { %v4032_v59 = vadd.f32 %v4031_v58, %v7858_v38  ;;  %v4147_v3 = vsel %vm4083_vm3, %v4026_v24, %v4115_v9  ;;  %v4116_v29 = vmul.f32 0.2, %v4030_v51  ;;  %vm4084_vm4 = vcmp.ge.f32.partialorder %v4030_v51, 0.0 }
 0xaaa   :  { %v4035_v14 = vpop.f32.mrf.mxu0  ;;  %4355 = vmatprep.mubr.f32.mxu1 %v4147_v3 }
 0xaab   :  { %v4117_v22 = vmul.f32 0.2, %v4032_v59  ;;  %v4036_v20 = vadd.f32 %v4035_v14, %v7855_v26  ;;  %4356 = vmatmul.mubr.f32.gmra.mxu1 %v4146_v16  ;;  %vm4085_vm5 = vcmp.ge.f32.partialorder %v4032_v59, 0.0  ;;  %v4148_v47 = vsel %vm4084_vm4, %v4030_v51, %v4116_v29  ;;  %v4533_v14 = vld [vmem:[#allocation5 + $0x1638] sm:$0xff]  ;;  %v4531_v16 = vld [vmem:[#allocation5 + $0x1628] sm:$0xff] }
 0xaac   :  { %v4037_v27 = vpop.f32.mrf.mxu0  ;;  %4627 = vmatprep.subr.mxu0 %v4533_v14  ;;  %v4885_v14 = vld [vmem:[#allocation5 + $0x18c8] sm:$0xff] }
 0xaad   :  { %v4038_v18 = vadd.f32 %v4037_v27, %v7858_v38  ;;  %v4149_v30 = vsel %vm4085_vm5, %v4032_v59, %v4117_v22  ;;  %v4118_v32 = vmul.f32 0.2, %v4036_v20  ;;  %vm4086_vm6 = vcmp.ge.f32.partialorder %v4036_v20, 0.0  ;;  %v4530_v22 = vld [vmem:[#allocation5 + $0x1620] sm:$0xff]  ;;  %v4527_v27 = vld [vmem:[#allocation5 + $0x1608] sm:$0xff] }
 0xaae   :  { %v4041_v34 = vpop.f32.mrf.mxu0  ;;  %4361 = vmatprep.mubr.f32.mxu1 %v4149_v30  ;;  %v4859_v30 = vld [vmem:[#allocation5 + $0x17f8] sm:$0xff] }
 0xaaf   :  { %v4119_v35 = vmul.f32 0.2, %v4038_v18  ;;  %v4042_v11 = vadd.f32 %v4041_v34, %v7855_v26  ;;  %4362 = vmatmul.mubr.f32.gmra.mxu1 %v4148_v47  ;;  %vm4087_vm7 = vcmp.ge.f32.partialorder %v4038_v18, 0.0  ;;  %v4150_v42 = vsel %vm4086_vm6, %v4036_v20, %v4118_v32  ;;  %v4528_v20 = vld [vmem:[#allocation5 + $0x1610] sm:$0xff]  ;;  %v4857_v34 = vld [vmem:[#allocation5 + $0x17e8] sm:$0xff]  ;;  %4905 = vmatprep.subr.mxu1 %v4859_v30  ;;  %v4856_v47 = vld [vmem:[#allocation5 + $0x17e0] sm:$0xff] }
 0xab0   :  { %v4043_v36 = vpop.f32.mrf.mxu0  ;;  %v4858_v32 = vld [vmem:[#allocation5 + $0x17f0] sm:$0xff]  ;;  %v4877_v30 = vld [vmem:[#allocation5 + $0x1888] sm:$0xff] }
 0xab1   :  { %v4044_v13 = vadd.f32 %v4043_v36, %v7858_v38  ;;  %v4151_v41 = vsel %vm4087_vm7, %v4038_v18, %v4119_v35  ;;  %v4120_v56 = vmul.f32 0.2, %v4042_v11  ;;  %vm4088_vm8 = vcmp.ge.f32.partialorder %v4042_v11, 0.0  ;;  %v4526_v18 = vld [vmem:[#allocation5 + $0x1600] sm:$0xff]  ;;  %4906 = vmatpush1.msra.mxu1 %v4858_v32  ;;  %v4855_v35 = vld [vmem:[#allocation5 + $0x17d8] sm:$0xff]  ;;  %v4853_v36 = vld [vmem:[#allocation5 + $0x17c8] sm:$0xff] }
 0xab2   :  { %v4047_v17 = vpop.f32.mrf.mxu0  ;;  %4367 = vmatprep.mubr.f32.mxu1 %v4151_v41  ;;  %4907 = vmatprep.subr.mxu1 %v4857_v34  ;;  %v4851_v41 = vld [vmem:[#allocation5 + $0x17b8] sm:$0xff]  ;;  %v4876_v32 = vld [vmem:[#allocation5 + $0x1880] sm:$0xff] }
 0xab3   :  { %v4121_v21 = vmul.f32 0.2, %v4044_v13  ;;  %v4048_v31 = vadd.f32 %v4047_v17, %v7855_v26  ;;  %4368 = vmatmul.mubr.f32.gmra.mxu1 %v4150_v42  ;;  %vm4089_vm9 = vcmp.ge.f32.partialorder %v4044_v13, 0.0  ;;  %v4152_v12 = vsel %vm4088_vm8, %v4042_v11, %v4120_v56  ;;  %v4854_v11 = vld [vmem:[#allocation5 + $0x17d0] sm:$0xff]  ;;  %v4849_v17 = vld [vmem:[#allocation5 + $0x17a8] sm:$0xff]  ;;  %v4848_v42 = vld [vmem:[#allocation5 + $0x17a0] sm:$0xff] }
 0xab4   :  { %v4049_v48 = vpop.f32.mrf.mxu0  ;;  %4908 = vmatpush1.msra.mxu1 %v4856_v47  ;;  %v4850_v56 = vld [vmem:[#allocation5 + $0x17b0] sm:$0xff]  ;;  %v4875_v34 = vld [vmem:[#allocation5 + $0x1878] sm:$0xff] }
 0xab5   :  { %v4050_v7 = vadd.f32 %v4049_v48, %v7858_v38  ;;  %v4153_v50 = vsel %vm4089_vm9, %v4044_v13, %v4121_v21  ;;  %v4122_v49 = vmul.f32 0.2, %v4048_v31  ;;  %vm4090_vm10 = vcmp.ge.f32.partialorder %v4048_v31, 0.0  ;;  %4909 = vmatprep.subr.mxu1 %v4855_v35  ;;  %v4852_v13 = vld [vmem:[#allocation5 + $0x17c0] sm:$0xff]  ;;  %v4847_v21 = vld [vmem:[#allocation5 + $0x1798] sm:$0xff]  ;;  %v4845_v48 = vld [vmem:[#allocation5 + $0x1788] sm:$0xff] }
 0xab6   :  { %v4053_v53 = vpop.f32.mrf.mxu0  ;;  %4373 = vmatprep.mubr.f32.mxu1 %v4153_v50  ;;  %4910 = vmatpush1.msra.mxu1 %v4854_v11  ;;  %v4843_v50 = vld [vmem:[#allocation5 + $0x1778] sm:$0xff]  ;;  %v4874_v47 = vld [vmem:[#allocation5 + $0x1870] sm:$0xff]  ;;  %v4873_v35 = vld [vmem:[#allocation5 + $0x1868] sm:$0xff] }
 0xab7   :  { %v4123_v15 = vmul.f32 0.2, %v4050_v7  ;;  %v4054_v62 = vadd.f32 %v4053_v53, %v7855_v26  ;;  %4374 = vmatmul.mubr.f32.gmra.mxu1 %v4152_v12  ;;  %vm4091_vm11 = vcmp.ge.f32.partialorder %v4050_v7, 0.0  ;;  %v4154_v24 = vsel %vm4090_vm10, %v4048_v31, %v4122_v49  ;;  %4911 = vmatprep.subr.mxu1 %v4853_v36  ;;  %v4846_v31 = vld [vmem:[#allocation5 + $0x1790] sm:$0xff]  ;;  %v4841_v53 = vld [vmem:[#allocation5 + $0x1768] sm:$0xff]  ;;  %v4840_v12 = vld [vmem:[#allocation5 + $0x1760] sm:$0xff] }
 0xab8   :  { %v4055_v43 = vpop.f32.mrf.mxu0  ;;  %4912 = vmatpush1.msra.mxu1 %v4852_v13  ;;  %v4842_v49 = vld [vmem:[#allocation5 + $0x1770] sm:$0xff]  ;;  %v4872_v11 = vld [vmem:[#allocation5 + $0x1860] sm:$0xff]  ;;  %v4871_v36 = vld [vmem:[#allocation5 + $0x1858] sm:$0xff] }
 0xab9   :  { %v4056_v60 = vadd.f32 %v4055_v43, %v7858_v38  ;;  %v4155_v40 = vsel %vm4091_vm11, %v4050_v7, %v4123_v15  ;;  %v4124_v5 = vmul.f32 0.2, %v4054_v62  ;;  %vm4092_vm12 = vcmp.ge.f32.partialorder %v4054_v62, 0.0  ;;  %4913 = vmatprep.subr.mxu1 %v4851_v41  ;;  %v4844_v7 = vld [vmem:[#allocation5 + $0x1780] sm:$0xff]  ;;  %v4839_v15 = vld [vmem:[#allocation5 + $0x1758] sm:$0xff]  ;;  %v4837_v43 = vld [vmem:[#allocation5 + $0x1748] sm:$0xff] }
 0xaba   :  { %v4059_v44 = vpop.f32.mrf.mxu0  ;;  %4379 = vmatprep.mubr.f32.mxu1 %v4155_v40  ;;  %4914 = vmatpush1.msra.mxu1 %v4850_v56  ;;  %v4835_v40 = vld [vmem:[#allocation5 + $0x1738] sm:$0xff]  ;;  %v4870_v13 = vld [vmem:[#allocation5 + $0x1850] sm:$0xff]  ;;  %v4869_v41 = vld [vmem:[#allocation5 + $0x1848] sm:$0xff] }
 0xabb   :  { %v4125_v23 = vmul.f32 0.2, %v4056_v60  ;;  %v4060_v33 = vadd.f32 %v4059_v44, %v7855_v26  ;;  %4380 = vmatmul.mubr.f32.gmra.mxu1 %v4154_v24  ;;  %vm4093_vm13 = vcmp.ge.f32.partialorder %v4056_v60, 0.0  ;;  %v4156_v58 = vsel %vm4092_vm12, %v4054_v62, %v4124_v5  ;;  %v4532_v26 = vld [vmem:[#allocation5 + $0x1630] sm:$0xff]  ;;  %4915 = vmatprep.subr.mxu1 %v4849_v17  ;;  %v4833_v44 = vld [vmem:[#allocation5 + $0x1728] sm:$0xff]  ;;  %v4832_v24 = vld [vmem:[#allocation5 + $0x1720] sm:$0xff] }
 0xabc   :  { %v4061_v8 = vpop.f32.mrf.mxu0  ;;  %4628 = vmatpush2.msra.mxu0 %v4532_v26  ;;  %4916 = vmatpush1.msra.mxu1 %v4848_v42  ;;  %v4838_v62 = vld [vmem:[#allocation5 + $0x1750] sm:$0xff]  ;;  %v4884_v26 = vld [vmem:[#allocation5 + $0x18c0] sm:$0xff] }
 0xabd   :  { %v4062_v0 = vadd.f32 %v4061_v8, %v7858_v38  ;;  %v4157_v9 = vsel %vm4093_vm13, %v4056_v60, %v4125_v23  ;;  %v4126_v51 = vmul.f32 0.2, %v4060_v33  ;;  %vm4094_vm14 = vcmp.ge.f32.partialorder %v4060_v33, 0.0  ;;  %4629 = vmatprep.subr.mxu0 %v4531_v16  ;;  %v4529_v38 = vld [vmem:[#allocation5 + $0x1618] sm:$0xff]  ;;  %4917 = vmatprep.subr.mxu1 %v4847_v21  ;;  %v4836_v60 = vld [vmem:[#allocation5 + $0x1740] sm:$0xff]  ;;  %v4834_v5 = vld [vmem:[#allocation5 + $0x1730] sm:$0xff] }
 0xabe   :  { %4385 = vmatprep.mubr.f32.mxu1 %v4157_v9  ;;  %4630 = vmatpush2.msra.mxu0 %v4530_v22  ;;  %v4831_v23 = vld [vmem:[#allocation5 + $0x1718] sm:$0xff]  ;;  %v4829_v8 = vld [vmem:[#allocation5 + $0x1708] sm:$0xff]  ;;  %v4882_v22 = vld [vmem:[#allocation5 + $0x18b0] sm:$0xff] }
 0xabf   :  { %v4127_v59 = vmul.f32 0.2, %v4062_v0  ;;  %4386 = vmatmul.mubr.f32.gmra.mxu1 %v4156_v58  ;;  %vm4095_vm15 = vcmp.ge.f32.partialorder %v4062_v0, 0.0  ;;  %v4158_v29 = vsel %vm4094_vm14, %v4060_v33, %v4126_v51  ;;  %4631 = vmatprep.subr.mxu0 %v4529_v38  ;;  %v4830_v33 = vld [vmem:[#allocation5 + $0x1710] sm:$0xff]  ;;  %v4891_v9 = vld [vmem:[#allocation5 + $0x18f8] sm:$0xff]  ;;  %v4889_v58 = vld [vmem:[#allocation5 + $0x18e8] sm:$0xff] }
 0xac0   :  { %4632 = vmatpush2.msra.mxu0 %v4528_v20  ;;  %4918 = vmatpush1.msra.mxu1 %v4846_v31  ;;  %v4890_v51 = vld [vmem:[#allocation5 + $0x18f0] sm:$0xff]  ;;  %v4883_v16 = vld [vmem:[#allocation5 + $0x18b8] sm:$0xff]  ;;  %v4881_v38 = vld [vmem:[#allocation5 + $0x18a8] sm:$0xff] }
 0xac1   :  { %v4159_v3 = vsel %vm4095_vm15, %v4062_v0, %v4127_v59  ;;  %4633 = vmatprep.subr.mxu0 %v4527_v27  ;;  %4919 = vmatprep.subr.mxu1 %v4845_v48  ;;  %v4828_v0 = vld [vmem:[#allocation5 + $0x1700] sm:$0xff]  ;;  %v4879_v27 = vld [vmem:[#allocation5 + $0x1898] sm:$0xff] }
 0xac2   :  { %4391 = vmatprep.mubr.f32.mxu1 %v4159_v3  ;;  %4634 = vmatpush2.msra.mxu0 %v4526_v18  ;;  %v4888_v59 = vld [vmem:[#allocation5 + $0x18e0] sm:$0xff]  ;;  %v4887_v3 = vld [vmem:[#allocation5 + $0x18d8] sm:$0xff]  ;;  %v4878_v18 = vld [vmem:[#allocation5 + $0x1890] sm:$0xff] }
 0xac3   :  { %4392 = vmatmul.mubr.f32.gmra.mxu1 %v4158_v29  ;;  %v4886_v29 = vld [vmem:[#allocation5 + $0x18d0] sm:$0xff]  ;;  %v4880_v20 = vld [vmem:[#allocation5 + $0x18a0] sm:$0xff] }
 0xac4   :  { %4920 = vmatpush1.msra.mxu1 %v4844_v7  ;;  %v4225_v56 = vld [vmem:[#allocation7 + $0x21] ss:$8 sm:$0x3] }
 0xac5   :  { %4921 = vmatprep.subr.mxu1 %v4843_v50  ;;  %v4868_v17 = vld [vmem:[#allocation5 + $0x1840] sm:$0xff]  ;;  %v7893_v42 = vrot.slane %v4225_v56, %v7218_v61  ;;  %v7896_v21 = vrot.slane %v4225_v56, %v7220_v2 }
 0xac6   :  { %4922 = vmatpush1.msra.mxu1 %v4842_v49 }
 0xac7   :  { %4923 = vmatprep.subr.mxu1 %v4841_v53 }
 0xac8   :  { %4924 = vmatpush1.msra.mxu1 %v4840_v12 }
 0xac9   :  { %4925 = vmatprep.subr.mxu1 %v4839_v15 }
 0xaca   :  { %4926 = vmatpush1.msra.mxu1 %v4838_v62 }
 0xacb   :  { %4927 = vmatprep.subr.mxu1 %v4837_v43 }
 0xacc   :  { %4928 = vmatpush1.msra.mxu1 %v4836_v60 }
 0xacd   :  { %4929 = vmatprep.subr.mxu1 %v4835_v40 }
 0xace   :  { %4930 = vmatpush1.msra.mxu1 %v4834_v5 }
 0xacf   :  { %4931 = vmatprep.subr.mxu1 %v4833_v44 }
 0xad0   :  { %4932 = vmatpush1.msra.mxu1 %v4832_v24 }
 0xad1   :  { %4933 = vmatprep.subr.mxu1 %v4831_v23 }
 0xad2   :  { %4934 = vmatpush1.msra.mxu1 %v4830_v33 }
 0xad3   :  { %4935 = vmatprep.subr.mxu1 %v4829_v8 }
 0xad4   :  { %4936 = vmatpush1.msra.mxu1 %v4828_v0 }
 0xad5   :  { %4937 = vmatprep.subr.mxu1 %v4891_v9 }
 0xad6   :  { %4938 = vmatpush2.msra.mxu1 %v4890_v51 }
 0xad7   :  { %4939 = vmatprep.subr.mxu1 %v4889_v58 }
 0xad8   :  { %4940 = vmatpush2.msra.mxu1 %v4888_v59 }
 0xad9   :  { %4941 = vmatprep.subr.mxu1 %v4887_v3 }
 0xada   :  { %4942 = vmatpush2.msra.mxu1 %v4886_v29 }
 0xadb   :  { %4943 = vmatprep.subr.mxu1 %v4885_v14 }
 0xadc   :  { %4944 = vmatpush2.msra.mxu1 %v4884_v26 }
 0xadd   :  { %4945 = vmatprep.subr.mxu1 %v4883_v16 }
 0xade   :  { %4946 = vmatpush2.msra.mxu1 %v4882_v22 }
 0xadf   :  { %4947 = vmatprep.subr.mxu1 %v4881_v38 }
 0xae0   :  { %4948 = vmatpush2.msra.mxu1 %v4880_v20 }
 0xae1   :  { %4949 = vmatprep.subr.mxu1 %v4879_v27 }
 0xae2   :  { %4950 = vmatpush2.msra.mxu1 %v4878_v18 }
 0xae3   :  { %4951 = vmatprep.subr.mxu1 %v4877_v30 }
 0xae4   :  { %4952 = vmatpush2.msra.mxu1 %v4876_v32 }
 0xae5   :  { %4953 = vmatprep.subr.mxu1 %v4875_v34 }
 0xae6   :  { %4954 = vmatpush2.msra.mxu1 %v4874_v47 }
 0xae7   :  { %4955 = vmatprep.subr.mxu1 %v4873_v35 }
 0xae8   :  { %4956 = vmatpush2.msra.mxu1 %v4872_v11 }
 0xae9   :  { %4957 = vmatprep.subr.mxu1 %v4871_v36 }
 0xaea   :  { %4958 = vmatpush2.msra.mxu1 %v4870_v13 }
 0xaeb   :  { %4959 = vmatprep.subr.mxu1 %v4869_v41 }
 0xaec   :  { %4960 = vmatpush2.msra.mxu1 %v4868_v17 }
 0xb47   :  { %v4303_v31 = vpop.f32.mrf.mxu1 }
 0xb48   :  { %v4304_v48 = vadd.f32 %v4303_v31, %v7893_v42 }
 0xb49   :  { %v4305_v7 = vpop.f32.mrf.mxu1 }
 0xb4a   :  { %v4306_v50 = vadd.f32 %v4305_v7, %v7896_v21  ;;  %v4430_v49 = vmul.f32 0.2, %v4304_v48  ;;  %vm4398_vm0 = vcmp.ge.f32.partialorder %v4304_v48, 0.0 }
 0xb4b   :  { %v4309_v53 = vpop.f32.mrf.mxu1 }
 0xb4c   :  { %v4431_v12 = vmul.f32 0.2, %v4306_v50  ;;  %v4310_v15 = vadd.f32 %v4309_v53, %v7893_v42  ;;  %vm4399_vm1 = vcmp.ge.f32.partialorder %v4306_v50, 0.0  ;;  %v4462_v40 = vsel %vm4398_vm0, %v4304_v48, %v4430_v49 }
 0xb4d   :  { %v4311_v62 = vpop.f32.mrf.mxu1 }
 0xb4e   :  { %v4312_v43 = vadd.f32 %v4311_v62, %v7896_v21  ;;  %v4463_v60 = vsel %vm4399_vm1, %v4306_v50, %v4431_v12  ;;  %v4432_v5 = vmul.f32 0.2, %v4310_v15  ;;  %vm4400_vm2 = vcmp.ge.f32.partialorder %v4310_v15, 0.0 }
 0xb4f   :  { %v4315_v44 = vpop.f32.mrf.mxu1  ;;  %4635 = vmatprep.mubr.f32.mxu0 %v4463_v60 }
 0xb50   :  { %v4433_v24 = vmul.f32 0.2, %v4312_v43  ;;  %v4316_v23 = vadd.f32 %v4315_v44, %v7893_v42  ;;  %4636 = vmatmul.mubr.f32.vlgmr.msra.gmra.mxu0 %v4462_v40  ;;  %vm4401_vm3 = vcmp.ge.f32.partialorder %v4312_v43, 0.0  ;;  %v4464_v58 = vsel %vm4400_vm2, %v4310_v15, %v4432_v5 }
 0xb51   :  { %v4317_v33 = vpop.f32.mrf.mxu1 }
 0xb52   :  { %v4318_v8 = vadd.f32 %v4317_v33, %v7896_v21  ;;  %v4465_v0 = vsel %vm4401_vm3, %v4312_v43, %v4433_v24  ;;  %v4434_v9 = vmul.f32 0.2, %v4316_v23  ;;  %vm4402_vm4 = vcmp.ge.f32.partialorder %v4316_v23, 0.0 }
 0xb53   :  { %v4321_v51 = vpop.f32.mrf.mxu1  ;;  %4641 = vmatprep.mubr.f32.mxu0 %v4465_v0 }
 0xb54   :  { %v4435_v59 = vmul.f32 0.2, %v4318_v8  ;;  %v4322_v3 = vadd.f32 %v4321_v51, %v7893_v42  ;;  %4642 = vmatmul.mubr.f32.gmra.mxu0 %v4464_v58  ;;  %vm4403_vm5 = vcmp.ge.f32.partialorder %v4318_v8, 0.0  ;;  %v4466_v38 = vsel %vm4402_vm4, %v4316_v23, %v4434_v9 }
 0xb55   :  { %v4323_v29 = vpop.f32.mrf.mxu1 }
 0xb56   :  { %v4324_v14 = vadd.f32 %v4323_v29, %v7896_v21  ;;  %v4467_v26 = vsel %vm4403_vm5, %v4318_v8, %v4435_v59  ;;  %v4436_v16 = vmul.f32 0.2, %v4322_v3  ;;  %vm4404_vm6 = vcmp.ge.f32.partialorder %v4322_v3, 0.0 }
 0xb57   :  { %v4327_v22 = vpop.f32.mrf.mxu1  ;;  %4647 = vmatprep.mubr.f32.mxu0 %v4467_v26 }
 0xb58   :  { %v4437_v20 = vmul.f32 0.2, %v4324_v14  ;;  %v4328_v27 = vadd.f32 %v4327_v22, %v7893_v42  ;;  %4648 = vmatmul.mubr.f32.gmra.mxu0 %v4466_v38  ;;  %vm4405_vm7 = vcmp.ge.f32.partialorder %v4324_v14, 0.0  ;;  %v4468_v35 = vsel %vm4404_vm6, %v4322_v3, %v4436_v16 }
 0xb59   :  { %v4329_v18 = vpop.f32.mrf.mxu1 }
 0xb5a   :  { %v4330_v30 = vadd.f32 %v4329_v18, %v7896_v21  ;;  %v4469_v32 = vsel %vm4405_vm7, %v4324_v14, %v4437_v20  ;;  %v4438_v34 = vmul.f32 0.2, %v4328_v27  ;;  %vm4406_vm8 = vcmp.ge.f32.partialorder %v4328_v27, 0.0 }
 0xb5b   :  { %v4333_v47 = vpop.f32.mrf.mxu1  ;;  %4653 = vmatprep.mubr.f32.mxu0 %v4469_v32 }
 0xb5c   :  { %v4439_v11 = vmul.f32 0.2, %v4330_v30  ;;  %v4334_v36 = vadd.f32 %v4333_v47, %v7893_v42  ;;  %4654 = vmatmul.mubr.f32.gmra.mxu0 %v4468_v35  ;;  %vm4407_vm9 = vcmp.ge.f32.partialorder %v4330_v30, 0.0  ;;  %v4470_v48 = vsel %vm4406_vm8, %v4328_v27, %v4438_v34 }
 0xb5d   :  { %v4335_v13 = vpop.f32.mrf.mxu1 }
 0xb5e   :  { %v4336_v41 = vadd.f32 %v4335_v13, %v7896_v21  ;;  %v4471_v56 = vsel %vm4407_vm9, %v4330_v30, %v4439_v11  ;;  %v4440_v17 = vmul.f32 0.2, %v4334_v36  ;;  %vm4408_vm10 = vcmp.ge.f32.partialorder %v4334_v36, 0.0 }
 0xb5f   :  { %v4339_v31 = vpop.f32.mrf.mxu1  ;;  %4659 = vmatprep.mubr.f32.mxu0 %v4471_v56 }
 0xb60   :  { %v4441_v7 = vmul.f32 0.2, %v4336_v41  ;;  %v4340_v50 = vadd.f32 %v4339_v31, %v7893_v42  ;;  %4660 = vmatmul.mubr.f32.gmra.mxu0 %v4470_v48  ;;  %vm4409_vm11 = vcmp.ge.f32.partialorder %v4336_v41, 0.0  ;;  %v4472_v43 = vsel %vm4408_vm10, %v4334_v36, %v4440_v17 }
 0xb61   :  { %v4341_v49 = vpop.f32.mrf.mxu1 }
 0xb62   :  { %v4342_v53 = vadd.f32 %v4341_v49, %v7896_v21  ;;  %v4473_v12 = vsel %vm4409_vm11, %v4336_v41, %v4441_v7  ;;  %v4442_v15 = vmul.f32 0.2, %v4340_v50  ;;  %vm4410_vm12 = vcmp.ge.f32.partialorder %v4340_v50, 0.0 }
 0xb63   :  { %v4345_v62 = vpop.f32.mrf.mxu1  ;;  %4665 = vmatprep.mubr.f32.mxu0 %v4473_v12 }
 0xb64   :  { %v4443_v60 = vmul.f32 0.2, %v4342_v53  ;;  %v4346_v40 = vadd.f32 %v4345_v62, %v7893_v42  ;;  %4666 = vmatmul.mubr.f32.gmra.mxu0 %v4472_v43  ;;  %vm4411_vm13 = vcmp.ge.f32.partialorder %v4342_v53, 0.0  ;;  %v4474_v8 = vsel %vm4410_vm12, %v4340_v50, %v4442_v15 }
 0xb65   :  { %v4347_v5 = vpop.f32.mrf.mxu1 }
 0xb66   :  { %v4348_v44 = vadd.f32 %v4347_v5, %v7896_v21  ;;  %v4475_v24 = vsel %vm4411_vm13, %v4342_v53, %v4443_v60  ;;  %v4444_v23 = vmul.f32 0.2, %v4346_v40  ;;  %vm4412_vm14 = vcmp.ge.f32.partialorder %v4346_v40, 0.0 }
 0xb67   :  { %v4351_v33 = vpop.f32.mrf.mxu1  ;;  %4671 = vmatprep.mubr.f32.mxu0 %v4475_v24 }
 0xb68   :  { %v4445_v0 = vmul.f32 0.2, %v4348_v44  ;;  %v4352_v9 = vadd.f32 %v4351_v33, %v7893_v42  ;;  %4672 = vmatmul.mubr.f32.gmra.mxu0 %v4474_v8  ;;  %vm4413_vm15 = vcmp.ge.f32.partialorder %v4348_v44, 0.0  ;;  %v4476_v14 = vsel %vm4412_vm14, %v4346_v40, %v4444_v23 }
 0xb69   :  { %v4353_v51 = vpop.f32.mrf.mxu1 }
 0xb6a   :  { %v4354_v58 = vadd.f32 %v4353_v51, %v7896_v21  ;;  %v4477_v59 = vsel %vm4413_vm15, %v4348_v44, %v4445_v0  ;;  %v4446_v3 = vmul.f32 0.2, %v4352_v9  ;;  %vm4414_vm0 = vcmp.ge.f32.partialorder %v4352_v9, 0.0 }
 0xb6b   :  { %v4357_v29 = vpop.f32.mrf.mxu1  ;;  %4677 = vmatprep.mubr.f32.mxu0 %v4477_v59 }
 0xb6c   :  { %v4447_v26 = vmul.f32 0.2, %v4354_v58  ;;  %v4358_v16 = vadd.f32 %v4357_v29, %v7893_v42  ;;  %4678 = vmatmul.mubr.f32.gmra.mxu0 %v4476_v14  ;;  %vm4415_vm1 = vcmp.ge.f32.partialorder %v4354_v58, 0.0  ;;  %v4478_v30 = vsel %vm4414_vm0, %v4352_v9, %v4446_v3 }
 0xb6d   :  { %v4359_v22 = vpop.f32.mrf.mxu1 }
 0xb6e   :  { %v4360_v38 = vadd.f32 %v4359_v22, %v7896_v21  ;;  %v4479_v20 = vsel %vm4415_vm1, %v4354_v58, %v4447_v26  ;;  %v4448_v27 = vmul.f32 0.2, %v4358_v16  ;;  %vm4416_vm2 = vcmp.ge.f32.partialorder %v4358_v16, 0.0 }
 0xb6f   :  { %v4363_v18 = vpop.f32.mrf.mxu1  ;;  %4683 = vmatprep.mubr.f32.mxu0 %v4479_v20 }
 0xb70   :  { %v4449_v32 = vmul.f32 0.2, %v4360_v38  ;;  %v4364_v34 = vadd.f32 %v4363_v18, %v7893_v42  ;;  %4684 = vmatmul.mubr.f32.gmra.mxu0 %v4478_v30  ;;  %vm4417_vm3 = vcmp.ge.f32.partialorder %v4360_v38, 0.0  ;;  %v4480_v41 = vsel %vm4416_vm2, %v4358_v16, %v4448_v27 }
 0xb71   :  { %v4365_v47 = vpop.f32.mrf.mxu1 }
 0xb72   :  { %v4366_v35 = vadd.f32 %v4365_v47, %v7896_v21  ;;  %v4481_v11 = vsel %vm4417_vm3, %v4360_v38, %v4449_v32  ;;  %v4450_v36 = vmul.f32 0.2, %v4364_v34  ;;  %vm4418_vm4 = vcmp.ge.f32.partialorder %v4364_v34, 0.0 }
 0xb73   :  { %v4369_v13 = vpop.f32.mrf.mxu1  ;;  %4689 = vmatprep.mubr.f32.mxu0 %v4481_v11 }
 0xb74   :  { %v4451_v56 = vmul.f32 0.2, %v4366_v35  ;;  %v4370_v17 = vadd.f32 %v4369_v13, %v7893_v42  ;;  %4690 = vmatmul.mubr.f32.gmra.mxu0 %v4480_v41  ;;  %vm4419_vm5 = vcmp.ge.f32.partialorder %v4366_v35, 0.0  ;;  %v4482_v53 = vsel %vm4418_vm4, %v4364_v34, %v4450_v36  ;;  %v4867_v13 = vld [vmem:[#allocation5 + $0x1838] sm:$0xff]  ;;  %v4865_v41 = vld [vmem:[#allocation5 + $0x1828] sm:$0xff] }
 0xb75   :  { %v4371_v31 = vpop.f32.mrf.mxu1  ;;  %4961 = vmatprep.subr.mxu1 %v4867_v13  ;;  %v5219_v13 = vld [vmem:[#allocation5 + $0x1ac8] sm:$0xff] }
 0xb76   :  { %v4372_v48 = vadd.f32 %v4371_v31, %v7896_v21  ;;  %v4483_v7 = vsel %vm4419_vm5, %v4366_v35, %v4451_v56  ;;  %v4452_v50 = vmul.f32 0.2, %v4370_v17  ;;  %vm4420_vm6 = vcmp.ge.f32.partialorder %v4370_v17, 0.0  ;;  %v4864_v56 = vld [vmem:[#allocation5 + $0x1820] sm:$0xff]  ;;  %v4861_v31 = vld [vmem:[#allocation5 + $0x1808] sm:$0xff] }
 0xb77   :  { %v4375_v49 = vpop.f32.mrf.mxu1  ;;  %4695 = vmatprep.mubr.f32.mxu0 %v4483_v7  ;;  %v5193_v7 = vld [vmem:[#allocation5 + $0x19f8] sm:$0xff] }
 0xb78   :  { %v4453_v12 = vmul.f32 0.2, %v4372_v48  ;;  %v4376_v15 = vadd.f32 %v4375_v49, %v7893_v42  ;;  %4696 = vmatmul.mubr.f32.gmra.mxu0 %v4482_v53  ;;  %vm4421_vm7 = vcmp.ge.f32.partialorder %v4372_v48, 0.0  ;;  %v4484_v44 = vsel %vm4420_vm6, %v4370_v17, %v4452_v50  ;;  %v4862_v17 = vld [vmem:[#allocation5 + $0x1810] sm:$0xff]  ;;  %v5191_v49 = vld [vmem:[#allocation5 + $0x19e8] sm:$0xff]  ;;  %5239 = vmatprep.subr.mxu0 %v5193_v7  ;;  %v5190_v53 = vld [vmem:[#allocation5 + $0x19e0] sm:$0xff] }
 0xb79   :  { %v4377_v62 = vpop.f32.mrf.mxu1  ;;  %v5192_v50 = vld [vmem:[#allocation5 + $0x19f0] sm:$0xff]  ;;  %v5211_v7 = vld [vmem:[#allocation5 + $0x1a88] sm:$0xff] }
 0xb7a   :  { %v4378_v43 = vadd.f32 %v4377_v62, %v7896_v21  ;;  %v4485_v60 = vsel %vm4421_vm7, %v4372_v48, %v4453_v12  ;;  %v4454_v40 = vmul.f32 0.2, %v4376_v15  ;;  %vm4422_vm8 = vcmp.ge.f32.partialorder %v4376_v15, 0.0  ;;  %v4860_v48 = vld [vmem:[#allocation5 + $0x1800] sm:$0xff]  ;;  %5240 = vmatpush1.msra.mxu0 %v5192_v50  ;;  %v5189_v12 = vld [vmem:[#allocation5 + $0x19d8] sm:$0xff]  ;;  %v5187_v62 = vld [vmem:[#allocation5 + $0x19c8] sm:$0xff] }
 0xb7b   :  { %v4381_v5 = vpop.f32.mrf.mxu1  ;;  %4701 = vmatprep.mubr.f32.mxu0 %v4485_v60  ;;  %5241 = vmatprep.subr.mxu0 %v5191_v49  ;;  %v5185_v60 = vld [vmem:[#allocation5 + $0x19b8] sm:$0xff]  ;;  %v5210_v50 = vld [vmem:[#allocation5 + $0x1a80] sm:$0xff] }
 0xb7c   :  { %v4455_v24 = vmul.f32 0.2, %v4378_v43  ;;  %v4382_v23 = vadd.f32 %v4381_v5, %v7893_v42  ;;  %4702 = vmatmul.mubr.f32.gmra.mxu0 %v4484_v44  ;;  %vm4423_vm9 = vcmp.ge.f32.partialorder %v4378_v43, 0.0  ;;  %v4486_v58 = vsel %vm4422_vm8, %v4376_v15, %v4454_v40  ;;  %v5188_v15 = vld [vmem:[#allocation5 + $0x19d0] sm:$0xff]  ;;  %v5183_v5 = vld [vmem:[#allocation5 + $0x19a8] sm:$0xff]  ;;  %v5182_v44 = vld [vmem:[#allocation5 + $0x19a0] sm:$0xff] }
 0xb7d   :  { %v4383_v33 = vpop.f32.mrf.mxu1  ;;  %5242 = vmatpush1.msra.mxu0 %v5190_v53  ;;  %v5184_v40 = vld [vmem:[#allocation5 + $0x19b0] sm:$0xff]  ;;  %v5209_v49 = vld [vmem:[#allocation5 + $0x1a78] sm:$0xff] }
 0xb7e   :  { %v4384_v8 = vadd.f32 %v4383_v33, %v7896_v21  ;;  %v4487_v0 = vsel %vm4423_vm9, %v4378_v43, %v4455_v24  ;;  %v4456_v9 = vmul.f32 0.2, %v4382_v23  ;;  %vm4424_vm10 = vcmp.ge.f32.partialorder %v4382_v23, 0.0  ;;  %5243 = vmatprep.subr.mxu0 %v5189_v12  ;;  %v5186_v43 = vld [vmem:[#allocation5 + $0x19c0] sm:$0xff]  ;;  %v5181_v24 = vld [vmem:[#allocation5 + $0x1998] sm:$0xff]  ;;  %v5179_v33 = vld [vmem:[#allocation5 + $0x1988] sm:$0xff] }
 0xb7f   :  { %v4387_v51 = vpop.f32.mrf.mxu1  ;;  %4707 = vmatprep.mubr.f32.mxu0 %v4487_v0  ;;  %5244 = vmatpush1.msra.mxu0 %v5188_v15  ;;  %v5177_v0 = vld [vmem:[#allocation5 + $0x1978] sm:$0xff]  ;;  %v5208_v53 = vld [vmem:[#allocation5 + $0x1a70] sm:$0xff]  ;;  %v5207_v12 = vld [vmem:[#allocation5 + $0x1a68] sm:$0xff] }
 0xb80   :  { %v4457_v59 = vmul.f32 0.2, %v4384_v8  ;;  %v4388_v3 = vadd.f32 %v4387_v51, %v7893_v42  ;;  %4708 = vmatmul.mubr.f32.gmra.mxu0 %v4486_v58  ;;  %vm4425_vm11 = vcmp.ge.f32.partialorder %v4384_v8, 0.0  ;;  %v4488_v38 = vsel %vm4424_vm10, %v4382_v23, %v4456_v9  ;;  %5245 = vmatprep.subr.mxu0 %v5187_v62  ;;  %v5180_v23 = vld [vmem:[#allocation5 + $0x1990] sm:$0xff]  ;;  %v5175_v51 = vld [vmem:[#allocation5 + $0x1968] sm:$0xff]  ;;  %v5174_v58 = vld [vmem:[#allocation5 + $0x1960] sm:$0xff] }
 0xb81   :  { %v4389_v29 = vpop.f32.mrf.mxu1  ;;  %5246 = vmatpush1.msra.mxu0 %v5186_v43  ;;  %v5176_v9 = vld [vmem:[#allocation5 + $0x1970] sm:$0xff]  ;;  %v5206_v15 = vld [vmem:[#allocation5 + $0x1a60] sm:$0xff]  ;;  %v5205_v62 = vld [vmem:[#allocation5 + $0x1a58] sm:$0xff] }
 0xb82   :  { %v4390_v14 = vadd.f32 %v4389_v29, %v7896_v21  ;;  %v4489_v26 = vsel %vm4425_vm11, %v4384_v8, %v4457_v59  ;;  %v4458_v16 = vmul.f32 0.2, %v4388_v3  ;;  %vm4426_vm12 = vcmp.ge.f32.partialorder %v4388_v3, 0.0  ;;  %5247 = vmatprep.subr.mxu0 %v5185_v60  ;;  %v5178_v8 = vld [vmem:[#allocation5 + $0x1980] sm:$0xff]  ;;  %v5173_v59 = vld [vmem:[#allocation5 + $0x1958] sm:$0xff]  ;;  %v5171_v29 = vld [vmem:[#allocation5 + $0x1948] sm:$0xff] }
 0xb83   :  { %v4393_v22 = vpop.f32.mrf.mxu1  ;;  %4713 = vmatprep.mubr.f32.mxu0 %v4489_v26  ;;  %5248 = vmatpush1.msra.mxu0 %v5184_v40  ;;  %v5169_v26 = vld [vmem:[#allocation5 + $0x1938] sm:$0xff]  ;;  %v5204_v43 = vld [vmem:[#allocation5 + $0x1a50] sm:$0xff]  ;;  %v5203_v60 = vld [vmem:[#allocation5 + $0x1a48] sm:$0xff] }
 0xb84   :  { %v4459_v20 = vmul.f32 0.2, %v4390_v14  ;;  %v4394_v27 = vadd.f32 %v4393_v22, %v7893_v42  ;;  %4714 = vmatmul.mubr.f32.gmra.mxu0 %v4488_v38  ;;  %vm4427_vm13 = vcmp.ge.f32.partialorder %v4390_v14, 0.0  ;;  %v4490_v47 = vsel %vm4426_vm12, %v4388_v3, %v4458_v16  ;;  %v4866_v42 = vld [vmem:[#allocation5 + $0x1830] sm:$0xff]  ;;  %5249 = vmatprep.subr.mxu0 %v5183_v5  ;;  %v5167_v22 = vld [vmem:[#allocation5 + $0x1928] sm:$0xff]  ;;  %v5166_v38 = vld [vmem:[#allocation5 + $0x1920] sm:$0xff] }
 0xb85   :  { %v4395_v18 = vpop.f32.mrf.mxu1  ;;  %4962 = vmatpush2.msra.mxu1 %v4866_v42  ;;  %5250 = vmatpush1.msra.mxu0 %v5182_v44  ;;  %v5172_v3 = vld [vmem:[#allocation5 + $0x1950] sm:$0xff]  ;;  %v5218_v42 = vld [vmem:[#allocation5 + $0x1ac0] sm:$0xff] }
 0xb86   :  { %v4396_v30 = vadd.f32 %v4395_v18, %v7896_v21  ;;  %v4491_v32 = vsel %vm4427_vm13, %v4390_v14, %v4459_v20  ;;  %v4460_v34 = vmul.f32 0.2, %v4394_v27  ;;  %vm4428_vm14 = vcmp.ge.f32.partialorder %v4394_v27, 0.0  ;;  %4963 = vmatprep.subr.mxu1 %v4865_v41  ;;  %v4863_v21 = vld [vmem:[#allocation5 + $0x1818] sm:$0xff]  ;;  %5251 = vmatprep.subr.mxu0 %v5181_v24  ;;  %v5170_v14 = vld [vmem:[#allocation5 + $0x1940] sm:$0xff]  ;;  %v5168_v16 = vld [vmem:[#allocation5 + $0x1930] sm:$0xff] }
 0xb87   :  { %4719 = vmatprep.mubr.f32.mxu0 %v4491_v32  ;;  %4964 = vmatpush2.msra.mxu1 %v4864_v56  ;;  %v5165_v20 = vld [vmem:[#allocation5 + $0x1918] sm:$0xff]  ;;  %v5163_v18 = vld [vmem:[#allocation5 + $0x1908] sm:$0xff]  ;;  %v5216_v56 = vld [vmem:[#allocation5 + $0x1ab0] sm:$0xff] }
 0xb88   :  { %v4461_v35 = vmul.f32 0.2, %v4396_v30  ;;  %4720 = vmatmul.mubr.f32.gmra.mxu0 %v4490_v47  ;;  %vm4429_vm15 = vcmp.ge.f32.partialorder %v4396_v30, 0.0  ;;  %v4492_v36 = vsel %vm4428_vm14, %v4394_v27, %v4460_v34  ;;  %4965 = vmatprep.subr.mxu1 %v4863_v21  ;;  %v5164_v27 = vld [vmem:[#allocation5 + $0x1910] sm:$0xff]  ;;  %v5225_v32 = vld [vmem:[#allocation5 + $0x1af8] sm:$0xff]  ;;  %v5223_v47 = vld [vmem:[#allocation5 + $0x1ae8] sm:$0xff] }
 0xb89   :  { %4966 = vmatpush2.msra.mxu1 %v4862_v17  ;;  %5252 = vmatpush1.msra.mxu0 %v5180_v23  ;;  %v5224_v34 = vld [vmem:[#allocation5 + $0x1af0] sm:$0xff]  ;;  %v5217_v41 = vld [vmem:[#allocation5 + $0x1ab8] sm:$0xff]  ;;  %v5215_v21 = vld [vmem:[#allocation5 + $0x1aa8] sm:$0xff] }
 0xb8a   :  { %v4493_v11 = vsel %vm4429_vm15, %v4396_v30, %v4461_v35  ;;  %4967 = vmatprep.subr.mxu1 %v4861_v31  ;;  %5253 = vmatprep.subr.mxu0 %v5179_v33  ;;  %v5162_v30 = vld [vmem:[#allocation5 + $0x1900] sm:$0xff]  ;;  %v5213_v31 = vld [vmem:[#allocation5 + $0x1a98] sm:$0xff] }
 0xb8b   :  { %4725 = vmatprep.mubr.f32.mxu0 %v4493_v11  ;;  %4968 = vmatpush2.msra.mxu1 %v4860_v48  ;;  %v5222_v35 = vld [vmem:[#allocation5 + $0x1ae0] sm:$0xff]  ;;  %v5221_v11 = vld [vmem:[#allocation5 + $0x1ad8] sm:$0xff]  ;;  %v5212_v48 = vld [vmem:[#allocation5 + $0x1a90] sm:$0xff] }
 0xb8c   :  { %4726 = vmatmul.mubr.f32.gmra.mxu0 %v4492_v36  ;;  %v5220_v36 = vld [vmem:[#allocation5 + $0x1ad0] sm:$0xff]  ;;  %v5214_v17 = vld [vmem:[#allocation5 + $0x1aa0] sm:$0xff] }
 0xb8d   :  { %5254 = vmatpush1.msra.mxu0 %v5178_v8  ;;  %v4559_v40 = vld [vmem:[#allocation7 + $0x22] ss:$8 sm:$0x3] }
 0xb8e   :  { %5255 = vmatprep.subr.mxu0 %v5177_v0  ;;  %v5202_v5 = vld [vmem:[#allocation5 + $0x1a40] sm:$0xff]  ;;  %v7931_v44 = vrot.slane %v4559_v40, %v7218_v61  ;;  %v7934_v24 = vrot.slane %v4559_v40, %v7220_v2 }
 0xb8f   :  { %5256 = vmatpush1.msra.mxu0 %v5176_v9 }
 0xb90   :  { %5257 = vmatprep.subr.mxu0 %v5175_v51 }
 0xb91   :  { %5258 = vmatpush1.msra.mxu0 %v5174_v58 }
 0xb92   :  { %5259 = vmatprep.subr.mxu0 %v5173_v59 }
 0xb93   :  { %5260 = vmatpush1.msra.mxu0 %v5172_v3 }
 0xb94   :  { %5261 = vmatprep.subr.mxu0 %v5171_v29 }
 0xb95   :  { %5262 = vmatpush1.msra.mxu0 %v5170_v14 }
 0xb96   :  { %5263 = vmatprep.subr.mxu0 %v5169_v26 }
 0xb97   :  { %5264 = vmatpush1.msra.mxu0 %v5168_v16 }
 0xb98   :  { %5265 = vmatprep.subr.mxu0 %v5167_v22 }
 0xb99   :  { %5266 = vmatpush1.msra.mxu0 %v5166_v38 }
 0xb9a   :  { %5267 = vmatprep.subr.mxu0 %v5165_v20 }
 0xb9b   :  { %5268 = vmatpush1.msra.mxu0 %v5164_v27 }
 0xb9c   :  { %5269 = vmatprep.subr.mxu0 %v5163_v18 }
 0xb9d   :  { %5270 = vmatpush1.msra.mxu0 %v5162_v30 }
 0xb9e   :  { %5271 = vmatprep.subr.mxu0 %v5225_v32 }
 0xb9f   :  { %5272 = vmatpush2.msra.mxu0 %v5224_v34 }
 0xba0   :  { %5273 = vmatprep.subr.mxu0 %v5223_v47 }
 0xba1   :  { %5274 = vmatpush2.msra.mxu0 %v5222_v35 }
 0xba2   :  { %5275 = vmatprep.subr.mxu0 %v5221_v11 }
 0xba3   :  { %5276 = vmatpush2.msra.mxu0 %v5220_v36 }
 0xba4   :  { %5277 = vmatprep.subr.mxu0 %v5219_v13 }
 0xba5   :  { %5278 = vmatpush2.msra.mxu0 %v5218_v42 }
 0xba6   :  { %5279 = vmatprep.subr.mxu0 %v5217_v41 }
 0xba7   :  { %5280 = vmatpush2.msra.mxu0 %v5216_v56 }
 0xba8   :  { %5281 = vmatprep.subr.mxu0 %v5215_v21 }
 0xba9   :  { %5282 = vmatpush2.msra.mxu0 %v5214_v17 }
 0xbaa   :  { %5283 = vmatprep.subr.mxu0 %v5213_v31 }
 0xbab   :  { %5284 = vmatpush2.msra.mxu0 %v5212_v48 }
 0xbac   :  { %5285 = vmatprep.subr.mxu0 %v5211_v7 }
 0xbad   :  { %5286 = vmatpush2.msra.mxu0 %v5210_v50 }
 0xbae   :  { %5287 = vmatprep.subr.mxu0 %v5209_v49 }
 0xbaf   :  { %5288 = vmatpush2.msra.mxu0 %v5208_v53 }
 0xbb0   :  { %5289 = vmatprep.subr.mxu0 %v5207_v12 }
 0xbb1   :  { %5290 = vmatpush2.msra.mxu0 %v5206_v15 }
 0xbb2   :  { %5291 = vmatprep.subr.mxu0 %v5205_v62 }
 0xbb3   :  { %5292 = vmatpush2.msra.mxu0 %v5204_v43 }
 0xbb4   :  { %5293 = vmatprep.subr.mxu0 %v5203_v60 }
 0xbb5   :  { %5294 = vmatpush2.msra.mxu0 %v5202_v5 }
 0xc10   :  { %v4637_v23 = vpop.f32.mrf.mxu0 }
 0xc11   :  { %v4638_v33 = vadd.f32 %v4637_v23, %v7931_v44 }
 0xc12   :  { %v4639_v8 = vpop.f32.mrf.mxu0 }
 0xc13   :  { %v4640_v0 = vadd.f32 %v4639_v8, %v7934_v24  ;;  %v4764_v9 = vmul.f32 0.2, %v4638_v33  ;;  %vm4732_vm0 = vcmp.ge.f32.partialorder %v4638_v33, 0.0 }
 0xc14   :  { %v4643_v51 = vpop.f32.mrf.mxu0 }
 0xc15   :  { %v4765_v58 = vmul.f32 0.2, %v4640_v0  ;;  %v4644_v59 = vadd.f32 %v4643_v51, %v7931_v44  ;;  %vm4733_vm1 = vcmp.ge.f32.partialorder %v4640_v0, 0.0  ;;  %v4796_v26 = vsel %vm4732_vm0, %v4638_v33, %v4764_v9 }
 0xc16   :  { %v4645_v3 = vpop.f32.mrf.mxu0 }
 0xc17   :  { %v4646_v29 = vadd.f32 %v4645_v3, %v7934_v24  ;;  %v4797_v14 = vsel %vm4733_vm1, %v4640_v0, %v4765_v58  ;;  %v4766_v16 = vmul.f32 0.2, %v4644_v59  ;;  %vm4734_vm2 = vcmp.ge.f32.partialorder %v4644_v59, 0.0 }
 0xc18   :  { %v4649_v22 = vpop.f32.mrf.mxu0  ;;  %4969 = vmatprep.mubr.f32.mxu1 %v4797_v14 }
 0xc19   :  { %v4767_v38 = vmul.f32 0.2, %v4646_v29  ;;  %v4650_v20 = vadd.f32 %v4649_v22, %v7931_v44  ;;  %4970 = vmatmul.mubr.f32.vlgmr.msra.gmra.mxu1 %v4796_v26  ;;  %vm4735_vm3 = vcmp.ge.f32.partialorder %v4646_v29, 0.0  ;;  %v4798_v47 = vsel %vm4734_vm2, %v4644_v59, %v4766_v16 }
 0xc1a   :  { %v4651_v27 = vpop.f32.mrf.mxu0 }
 0xc1b   :  { %v4652_v18 = vadd.f32 %v4651_v27, %v7934_v24  ;;  %v4799_v30 = vsel %vm4735_vm3, %v4646_v29, %v4767_v38  ;;  %v4768_v32 = vmul.f32 0.2, %v4650_v20  ;;  %vm4736_vm4 = vcmp.ge.f32.partialorder %v4650_v20, 0.0 }
 0xc1c   :  { %v4655_v34 = vpop.f32.mrf.mxu0  ;;  %4975 = vmatprep.mubr.f32.mxu1 %v4799_v30 }
 0xc1d   :  { %v4769_v35 = vmul.f32 0.2, %v4652_v18  ;;  %v4656_v11 = vadd.f32 %v4655_v34, %v7931_v44  ;;  %4976 = vmatmul.mubr.f32.gmra.mxu1 %v4798_v47  ;;  %vm4737_vm5 = vcmp.ge.f32.partialorder %v4652_v18, 0.0  ;;  %v4800_v21 = vsel %vm4736_vm4, %v4650_v20, %v4768_v32 }
 0xc1e   :  { %v4657_v36 = vpop.f32.mrf.mxu0 }
 0xc1f   :  { %v4658_v13 = vadd.f32 %v4657_v36, %v7934_v24  ;;  %v4801_v42 = vsel %vm4737_vm5, %v4652_v18, %v4769_v35  ;;  %v4770_v41 = vmul.f32 0.2, %v4656_v11  ;;  %vm4738_vm6 = vcmp.ge.f32.partialorder %v4656_v11, 0.0 }
 0xc20   :  { %v4661_v56 = vpop.f32.mrf.mxu0  ;;  %4981 = vmatprep.mubr.f32.mxu1 %v4801_v42 }
 0xc21   :  { %v4771_v17 = vmul.f32 0.2, %v4658_v13  ;;  %v4662_v31 = vadd.f32 %v4661_v56, %v7931_v44  ;;  %4982 = vmatmul.mubr.f32.gmra.mxu1 %v4800_v21  ;;  %vm4739_vm7 = vcmp.ge.f32.partialorder %v4658_v13, 0.0  ;;  %v4802_v12 = vsel %vm4738_vm6, %v4656_v11, %v4770_v41 }
 0xc22   :  { %v4663_v48 = vpop.f32.mrf.mxu0 }
 0xc23   :  { %v4664_v7 = vadd.f32 %v4663_v48, %v7934_v24  ;;  %v4803_v50 = vsel %vm4739_vm7, %v4658_v13, %v4771_v17  ;;  %v4772_v49 = vmul.f32 0.2, %v4662_v31  ;;  %vm4740_vm8 = vcmp.ge.f32.partialorder %v4662_v31, 0.0 }
 0xc24   :  { %v4667_v53 = vpop.f32.mrf.mxu0  ;;  %4987 = vmatprep.mubr.f32.mxu1 %v4803_v50 }
 0xc25   :  { %v4773_v15 = vmul.f32 0.2, %v4664_v7  ;;  %v4668_v62 = vadd.f32 %v4667_v53, %v7931_v44  ;;  %4988 = vmatmul.mubr.f32.gmra.mxu1 %v4802_v12  ;;  %vm4741_vm9 = vcmp.ge.f32.partialorder %v4664_v7, 0.0  ;;  %v4804_v33 = vsel %vm4740_vm8, %v4662_v31, %v4772_v49 }
 0xc26   :  { %v4669_v43 = vpop.f32.mrf.mxu0 }
 0xc27   :  { %v4670_v60 = vadd.f32 %v4669_v43, %v7934_v24  ;;  %v4805_v40 = vsel %vm4741_vm9, %v4664_v7, %v4773_v15  ;;  %v4774_v5 = vmul.f32 0.2, %v4668_v62  ;;  %vm4742_vm10 = vcmp.ge.f32.partialorder %v4668_v62, 0.0 }
 0xc28   :  { %v4673_v23 = vpop.f32.mrf.mxu0  ;;  %4993 = vmatprep.mubr.f32.mxu1 %v4805_v40 }
 0xc29   :  { %v4775_v8 = vmul.f32 0.2, %v4670_v60  ;;  %v4674_v0 = vadd.f32 %v4673_v23, %v7931_v44  ;;  %4994 = vmatmul.mubr.f32.gmra.mxu1 %v4804_v33  ;;  %vm4743_vm11 = vcmp.ge.f32.partialorder %v4670_v60, 0.0  ;;  %v4806_v29 = vsel %vm4742_vm10, %v4668_v62, %v4774_v5 }
 0xc2a   :  { %v4675_v9 = vpop.f32.mrf.mxu0 }
 0xc2b   :  { %v4676_v51 = vadd.f32 %v4675_v9, %v7934_v24  ;;  %v4807_v58 = vsel %vm4743_vm11, %v4670_v60, %v4775_v8  ;;  %v4776_v59 = vmul.f32 0.2, %v4674_v0  ;;  %vm4744_vm12 = vcmp.ge.f32.partialorder %v4674_v0, 0.0 }
 0xc2c   :  { %v4679_v3 = vpop.f32.mrf.mxu0  ;;  %4999 = vmatprep.mubr.f32.mxu1 %v4807_v58 }
 0xc2d   :  { %v4777_v14 = vmul.f32 0.2, %v4676_v51  ;;  %v4680_v26 = vadd.f32 %v4679_v3, %v7931_v44  ;;  %5000 = vmatmul.mubr.f32.gmra.mxu1 %v4806_v29  ;;  %vm4745_vm13 = vcmp.ge.f32.partialorder %v4676_v51, 0.0  ;;  %v4808_v18 = vsel %vm4744_vm12, %v4674_v0, %v4776_v59 }
 0xc2e   :  { %v4681_v16 = vpop.f32.mrf.mxu0 }
 0xc2f   :  { %v4682_v22 = vadd.f32 %v4681_v16, %v7934_v24  ;;  %v4809_v38 = vsel %vm4745_vm13, %v4676_v51, %v4777_v14  ;;  %v4778_v20 = vmul.f32 0.2, %v4680_v26  ;;  %vm4746_vm14 = vcmp.ge.f32.partialorder %v4680_v26, 0.0 }
 0xc30   :  { %v4685_v27 = vpop.f32.mrf.mxu0  ;;  %5005 = vmatprep.mubr.f32.mxu1 %v4809_v38 }
 0xc31   :  { %v4779_v30 = vmul.f32 0.2, %v4682_v22  ;;  %v4686_v32 = vadd.f32 %v4685_v27, %v7931_v44  ;;  %5006 = vmatmul.mubr.f32.gmra.mxu1 %v4808_v18  ;;  %vm4747_vm15 = vcmp.ge.f32.partialorder %v4682_v22, 0.0  ;;  %v4810_v13 = vsel %vm4746_vm14, %v4680_v26, %v4778_v20 }
 0xc32   :  { %v4687_v34 = vpop.f32.mrf.mxu0 }
 0xc33   :  { %v4688_v47 = vadd.f32 %v4687_v34, %v7934_v24  ;;  %v4811_v35 = vsel %vm4747_vm15, %v4682_v22, %v4779_v30  ;;  %v4780_v11 = vmul.f32 0.2, %v4686_v32  ;;  %vm4748_vm0 = vcmp.ge.f32.partialorder %v4686_v32, 0.0 }
 0xc34   :  { %v4691_v36 = vpop.f32.mrf.mxu0  ;;  %5011 = vmatprep.mubr.f32.mxu1 %v4811_v35 }
 0xc35   :  { %v4781_v42 = vmul.f32 0.2, %v4688_v47  ;;  %v4692_v41 = vadd.f32 %v4691_v36, %v7931_v44  ;;  %5012 = vmatmul.mubr.f32.gmra.mxu1 %v4810_v13  ;;  %vm4749_vm1 = vcmp.ge.f32.partialorder %v4688_v47, 0.0  ;;  %v4812_v7 = vsel %vm4748_vm0, %v4686_v32, %v4780_v11 }
 0xc36   :  { %v4693_v56 = vpop.f32.mrf.mxu0 }
 0xc37   :  { %v4694_v21 = vadd.f32 %v4693_v56, %v7934_v24  ;;  %v4813_v17 = vsel %vm4749_vm1, %v4688_v47, %v4781_v42  ;;  %v4782_v31 = vmul.f32 0.2, %v4692_v41  ;;  %vm4750_vm2 = vcmp.ge.f32.partialorder %v4692_v41, 0.0 }
 0xc38   :  { %v4697_v48 = vpop.f32.mrf.mxu0  ;;  %5017 = vmatprep.mubr.f32.mxu1 %v4813_v17 }
 0xc39   :  { %v4783_v50 = vmul.f32 0.2, %v4694_v21  ;;  %v4698_v49 = vadd.f32 %v4697_v48, %v7931_v44  ;;  %5018 = vmatmul.mubr.f32.gmra.mxu1 %v4812_v7  ;;  %vm4751_vm3 = vcmp.ge.f32.partialorder %v4694_v21, 0.0  ;;  %v4814_v60 = vsel %vm4750_vm2, %v4692_v41, %v4782_v31 }
 0xc3a   :  { %v4699_v53 = vpop.f32.mrf.mxu0 }
 0xc3b   :  { %v4700_v12 = vadd.f32 %v4699_v53, %v7934_v24  ;;  %v4815_v15 = vsel %vm4751_vm3, %v4694_v21, %v4783_v50  ;;  %v4784_v62 = vmul.f32 0.2, %v4698_v49  ;;  %vm4752_vm4 = vcmp.ge.f32.partialorder %v4698_v49, 0.0 }
 0xc3c   :  { %v4703_v43 = vpop.f32.mrf.mxu0  ;;  %5023 = vmatprep.mubr.f32.mxu1 %v4815_v15 }
 0xc3d   :  { %v4785_v40 = vmul.f32 0.2, %v4700_v12  ;;  %v4704_v5 = vadd.f32 %v4703_v43, %v7931_v44  ;;  %5024 = vmatmul.mubr.f32.gmra.mxu1 %v4814_v60  ;;  %vm4753_vm5 = vcmp.ge.f32.partialorder %v4700_v12, 0.0  ;;  %v4816_v51 = vsel %vm4752_vm4, %v4698_v49, %v4784_v62  ;;  %v5201_v43 = vld [vmem:[#allocation5 + $0x1a38] sm:$0xff]  ;;  %v5199_v60 = vld [vmem:[#allocation5 + $0x1a28] sm:$0xff] }
 0xc3e   :  { %v4705_v23 = vpop.f32.mrf.mxu0  ;;  %5295 = vmatprep.subr.mxu0 %v5201_v43 }
 0xc3f   :  { %v4706_v33 = vadd.f32 %v4705_v23, %v7934_v24  ;;  %v4817_v8 = vsel %vm4753_vm5, %v4700_v12, %v4785_v40  ;;  %v4786_v0 = vmul.f32 0.2, %v4704_v5  ;;  %vm4754_vm6 = vcmp.ge.f32.partialorder %v4704_v5, 0.0  ;;  %v5198_v40 = vld [vmem:[#allocation5 + $0x1a20] sm:$0xff]  ;;  %v5195_v23 = vld [vmem:[#allocation5 + $0x1a08] sm:$0xff] }
 0xc40   :  { %v4709_v9 = vpop.f32.mrf.mxu0  ;;  %5029 = vmatprep.mubr.f32.mxu1 %v4817_v8  ;;  %v3875_v8 = vld [vmem:[#allocation5 + $0x20f0] sm:$0xff] }
 0xc41   :  { %v4787_v58 = vmul.f32 0.2, %v4706_v33  ;;  %v4710_v59 = vadd.f32 %v4709_v9, %v7931_v44  ;;  %5030 = vmatmul.mubr.f32.gmra.mxu1 %v4816_v51  ;;  %vm4755_vm7 = vcmp.ge.f32.partialorder %v4706_v33, 0.0  ;;  %v4818_v22 = vsel %vm4754_vm6, %v4704_v5, %v4786_v0  ;;  %v5196_v5 = vld [vmem:[#allocation5 + $0x1a10] sm:$0xff]  ;;  %v3874_v9 = vld [vmem:[#allocation5 + $0x20e0] sm:$0xff]  ;;  %6702 = vmatprep.subr.mxu1 %v3875_v8 }
 0xc42   :  { %v4711_v3 = vpop.f32.mrf.mxu0  ;;  %v3859_v0 = vld [vmem:[#allocation5 + $0x1ff0] sm:$0xff]  ;;  %v3858_v51 = vld [vmem:[#allocation5 + $0x1fe0] sm:$0xff] }
 0xc43   :  { %v4712_v29 = vadd.f32 %v4711_v3, %v7934_v24  ;;  %v4819_v14 = vsel %vm4755_vm7, %v4706_v33, %v4787_v58  ;;  %v4788_v26 = vmul.f32 0.2, %v4710_v59  ;;  %vm4756_vm8 = vcmp.ge.f32.partialorder %v4710_v59, 0.0  ;;  %v5194_v33 = vld [vmem:[#allocation5 + $0x1a00] sm:$0xff]  ;;  %6703 = vmatpush3.msra.mxu1 %v3859_v0  ;;  %v3873_v58 = vld [vmem:[#allocation5 + $0x20d0] sm:$0xff] }
 0xc44   :  { %v4715_v16 = vpop.f32.mrf.mxu0  ;;  %5035 = vmatprep.mubr.f32.mxu1 %v4819_v14  ;;  %6704 = vmatprep.subr.mxu1 %v3874_v9  ;;  %v3872_v3 = vld [vmem:[#allocation5 + $0x20c0] sm:$0xff]  ;;  %v3871_v14 = vld [vmem:[#allocation5 + $0x20b0] sm:$0xff] }
 0xc45   :  { %v4789_v38 = vmul.f32 0.2, %v4712_v29  ;;  %v4716_v20 = vadd.f32 %v4715_v16, %v7931_v44  ;;  %5036 = vmatmul.mubr.f32.gmra.mxu1 %v4818_v22  ;;  %vm4757_vm9 = vcmp.ge.f32.partialorder %v4712_v29, 0.0  ;;  %v4820_v47 = vsel %vm4756_vm8, %v4710_v59, %v4788_v26  ;;  %v3857_v59 = vld [vmem:[#allocation5 + $0x1fd0] sm:$0xff]  ;;  %v3870_v16 = vld [vmem:[#allocation5 + $0x20a0] sm:$0xff] }
 0xc46   :  { %v4717_v27 = vpop.f32.mrf.mxu0  ;;  %6705 = vmatpush3.msra.mxu1 %v3858_v51  ;;  %v3855_v26 = vld [vmem:[#allocation5 + $0x1fb0] sm:$0xff]  ;;  %v3854_v22 = vld [vmem:[#allocation5 + $0x1fa0] sm:$0xff] }
 0xc47   :  { %v4718_v18 = vadd.f32 %v4717_v27, %v7934_v24  ;;  %v4821_v30 = vsel %vm4757_vm9, %v4712_v29, %v4789_v38  ;;  %v4790_v32 = vmul.f32 0.2, %v4716_v20  ;;  %vm4758_vm10 = vcmp.ge.f32.partialorder %v4716_v20, 0.0  ;;  %6706 = vmatprep.subr.mxu1 %v3873_v58  ;;  %v3856_v29 = vld [vmem:[#allocation5 + $0x1fc0] sm:$0xff]  ;;  %v3869_v38 = vld [vmem:[#allocation5 + $0x2090] sm:$0xff] }
 0xc48   :  { %v4721_v34 = vpop.f32.mrf.mxu0  ;;  %5041 = vmatprep.mubr.f32.mxu1 %v4821_v30  ;;  %6707 = vmatpush3.msra.mxu1 %v3857_v59  ;;  %v3868_v27 = vld [vmem:[#allocation5 + $0x2080] sm:$0xff]  ;;  %v3867_v30 = vld [vmem:[#allocation5 + $0x2070] sm:$0xff] }
 0xc49   :  { %v4791_v35 = vmul.f32 0.2, %v4718_v18  ;;  %v4722_v11 = vadd.f32 %v4721_v34, %v7931_v44  ;;  %5042 = vmatmul.mubr.f32.gmra.mxu1 %v4820_v47  ;;  %vm4759_vm11 = vcmp.ge.f32.partialorder %v4718_v18, 0.0  ;;  %v4822_v21 = vsel %vm4758_vm10, %v4716_v20, %v4790_v32  ;;  %6708 = vmatprep.subr.mxu1 %v3872_v3  ;;  %v3853_v20 = vld [vmem:[#allocation5 + $0x1f90] sm:$0xff]  ;;  %v3866_v34 = vld [vmem:[#allocation5 + $0x2060] sm:$0xff] }
 0xc4a   :  { %v4723_v36 = vpop.f32.mrf.mxu0  ;;  %6709 = vmatpush3.msra.mxu1 %v3856_v29  ;;  %v3851_v32 = vld [vmem:[#allocation5 + $0x1f70] sm:$0xff]  ;;  %v3850_v47 = vld [vmem:[#allocation5 + $0x1f60] sm:$0xff] }
 0xc4b   :  { %v4724_v13 = vadd.f32 %v4723_v36, %v7934_v24  ;;  %v4823_v42 = vsel %vm4759_vm11, %v4718_v18, %v4791_v35  ;;  %v4792_v41 = vmul.f32 0.2, %v4722_v11  ;;  %vm4760_vm12 = vcmp.ge.f32.partialorder %v4722_v11, 0.0  ;;  %6710 = vmatprep.subr.mxu1 %v3871_v14  ;;  %v3852_v18 = vld [vmem:[#allocation5 + $0x1f80] sm:$0xff]  ;;  %v3865_v35 = vld [vmem:[#allocation5 + $0x2050] sm:$0xff] }
 0xc4c   :  { %v4727_v56 = vpop.f32.mrf.mxu0  ;;  %5047 = vmatprep.mubr.f32.mxu1 %v4823_v42  ;;  %6711 = vmatpush3.msra.mxu1 %v3855_v26  ;;  %v3864_v36 = vld [vmem:[#allocation5 + $0x2040] sm:$0xff]  ;;  %v3863_v42 = vld [vmem:[#allocation5 + $0x2030] sm:$0xff] }
 0xc4d   :  { %v4793_v17 = vmul.f32 0.2, %v4724_v13  ;;  %v4728_v31 = vadd.f32 %v4727_v56, %v7931_v44  ;;  %5048 = vmatmul.mubr.f32.gmra.mxu1 %v4822_v21  ;;  %vm4761_vm13 = vcmp.ge.f32.partialorder %v4724_v13, 0.0  ;;  %v4824_v53 = vsel %vm4760_vm12, %v4722_v11, %v4792_v41  ;;  %v5200_v44 = vld [vmem:[#allocation5 + $0x1a30] sm:$0xff]  ;;  %6712 = vmatprep.subr.mxu1 %v3870_v16  ;;  %v3862_v56 = vld [vmem:[#allocation5 + $0x2020] sm:$0xff] }
 0xc4e   :  { %v4729_v48 = vpop.f32.mrf.mxu0  ;;  %5296 = vmatpush2.msra.mxu0 %v5200_v44  ;;  %6713 = vmatpush3.msra.mxu1 %v3854_v22  ;;  %v3849_v11 = vld [vmem:[#allocation5 + $0x1f50] sm:$0xff]  ;;  %v3846_v21 = vld [vmem:[#allocation5 + $0x1f20] sm:$0xff] }
 0xc4f   :  { %v4730_v7 = vadd.f32 %v4729_v48, %v7934_v24  ;;  %v4825_v50 = vsel %vm4761_vm13, %v4724_v13, %v4793_v17  ;;  %v4794_v49 = vmul.f32 0.2, %v4728_v31  ;;  %vm4762_vm14 = vcmp.ge.f32.partialorder %v4728_v31, 0.0  ;;  %5297 = vmatprep.subr.mxu0 %v5199_v60  ;;  %v5197_v24 = vld [vmem:[#allocation5 + $0x1a18] sm:$0xff]  ;;  %6714 = vmatprep.subr.mxu1 %v3869_v38  ;;  %v3848_v13 = vld [vmem:[#allocation5 + $0x1f40] sm:$0xff]  ;;  %v3847_v41 = vld [vmem:[#allocation5 + $0x1f30] sm:$0xff] }
 0xc50   :  { %5053 = vmatprep.mubr.f32.mxu1 %v4825_v50  ;;  %5298 = vmatpush2.msra.mxu0 %v5198_v40  ;;  %v4893_v17 = vld [vmem:[#allocation7 + $0x23] ss:$8 sm:$0x3] }
 0xc51   :  { %v4795_v12 = vmul.f32 0.2, %v4730_v7  ;;  %5054 = vmatmul.mubr.f32.gmra.mxu1 %v4824_v53  ;;  %vm4763_vm15 = vcmp.ge.f32.partialorder %v4730_v7, 0.0  ;;  %v4826_v62 = vsel %vm4762_vm14, %v4728_v31, %v4794_v49  ;;  %5299 = vmatprep.subr.mxu0 %v5197_v24  ;;  %v7969_v31 = vrot.slane %v4893_v17, %v7218_v61 }
 0xc52   :  { %5300 = vmatpush2.msra.mxu0 %v5196_v5  ;;  %6715 = vmatpush3.msra.mxu1 %v3853_v20  ;;  %v7972_v48 = vrot.slane %v4893_v17, %v7220_v2 }
 0xc53   :  { %v4827_v15 = vsel %vm4763_vm15, %v4730_v7, %v4795_v12  ;;  %5301 = vmatprep.subr.mxu0 %v5195_v23  ;;  %6716 = vmatprep.subr.mxu1 %v3868_v27 }
 0xc54   :  { %5059 = vmatprep.mubr.f32.mxu1 %v4827_v15  ;;  %5302 = vmatpush2.msra.mxu0 %v5194_v33 }
 0xc55   :  { %5060 = vmatmul.mubr.f32.gmra.mxu1 %v4826_v62 }
 0xc56   :  { %6717 = vmatpush3.msra.mxu1 %v3852_v18 }
 0xc57   :  { %6718 = vmatprep.subr.mxu1 %v3867_v30 }
 0xc58   :  { %6719 = vmatpush3.msra.mxu1 %v3851_v32 }
 0xc59   :  { %6720 = vmatprep.subr.mxu1 %v3866_v34 }
 0xc5a   :  { %6721 = vmatpush3.msra.mxu1 %v3850_v47 }
 0xc5b   :  { %6722 = vmatprep.subr.mxu1 %v3865_v35 }
 0xc5c   :  { %6723 = vmatpush3.msra.mxu1 %v3849_v11 }
 0xc5d   :  { %6724 = vmatprep.subr.mxu1 %v3864_v36 }
 0xc5e   :  { %6725 = vmatpush3.msra.mxu1 %v3848_v13 }
 0xc5f   :  { %6726 = vmatprep.subr.mxu1 %v3863_v42 }
 0xc60   :  { %6727 = vmatpush3.msra.mxu1 %v3847_v41 }
 0xc61   :  { %6728 = vmatprep.subr.mxu1 %v3862_v56 }
 0xc62   :  { %6729 = vmatpush3.msra.mxu1 %v3846_v21 }
 0xcd9   :  { %v4971_v7 = vpop.f32.mrf.mxu1 }
 0xcda   :  { %v4972_v50 = vadd.f32 %v4971_v7, %v7969_v31 }
 0xcdb   :  { %v4973_v49 = vpop.f32.mrf.mxu1 }
 0xcdc   :  { %v4974_v53 = vadd.f32 %v4973_v49, %v7972_v48  ;;  %v5098_v12 = vmul.f32 0.2, %v4972_v50  ;;  %vm5066_vm0 = vcmp.ge.f32.partialorder %v4972_v50, 0.0 }
 0xcdd   :  { %v4977_v15 = vpop.f32.mrf.mxu1 }
 0xcde   :  { %v5099_v62 = vmul.f32 0.2, %v4974_v53  ;;  %v4978_v43 = vadd.f32 %v4977_v15, %v7969_v31  ;;  %vm5067_vm1 = vcmp.ge.f32.partialorder %v4974_v53, 0.0  ;;  %v5130_v24 = vsel %vm5066_vm0, %v4972_v50, %v5098_v12 }
 0xcdf   :  { %v4979_v44 = vpop.f32.mrf.mxu1 }
 0xce0   :  { %v4980_v60 = vadd.f32 %v4979_v44, %v7972_v48  ;;  %v5131_v40 = vsel %vm5067_vm1, %v4974_v53, %v5099_v62  ;;  %v5100_v5 = vmul.f32 0.2, %v4978_v43  ;;  %vm5068_vm2 = vcmp.ge.f32.partialorder %v4978_v43, 0.0 }
 0xce1   :  { %v4983_v23 = vpop.f32.mrf.mxu1  ;;  %5303 = vmatprep.mubr.f32.mxu0 %v5131_v40 }
 0xce2   :  { %v5101_v33 = vmul.f32 0.2, %v4980_v60  ;;  %v4984_v8 = vadd.f32 %v4983_v23, %v7969_v31  ;;  %5304 = vmatmul.mubr.f32.vlgmr.msra.gmra.mxu0 %v5130_v24  ;;  %vm5069_vm3 = vcmp.ge.f32.partialorder %v4980_v60, 0.0  ;;  %v5132_v3 = vsel %vm5068_vm2, %v4978_v43, %v5100_v5 }
 0xce3   :  { %v4985_v0 = vpop.f32.mrf.mxu1 }
 0xce4   :  { %v4986_v9 = vadd.f32 %v4985_v0, %v7972_v48  ;;  %v5133_v51 = vsel %vm5069_vm3, %v4980_v60, %v5101_v33  ;;  %v5102_v58 = vmul.f32 0.2, %v4984_v8  ;;  %vm5070_vm4 = vcmp.ge.f32.partialorder %v4984_v8, 0.0 }
 0xce5   :  { %v4989_v59 = vpop.f32.mrf.mxu1  ;;  %5309 = vmatprep.mubr.f32.mxu0 %v5133_v51 }
 0xce6   :  { %v5103_v29 = vmul.f32 0.2, %v4986_v9  ;;  %v4990_v14 = vadd.f32 %v4989_v59, %v7969_v31  ;;  %5310 = vmatmul.mubr.f32.gmra.mxu0 %v5132_v3  ;;  %vm5071_vm5 = vcmp.ge.f32.partialorder %v4986_v9, 0.0  ;;  %v5134_v27 = vsel %vm5070_vm4, %v4984_v8, %v5102_v58 }
 0xce7   :  { %v4991_v26 = vpop.f32.mrf.mxu1 }
 0xce8   :  { %v4992_v16 = vadd.f32 %v4991_v26, %v7972_v48  ;;  %v5135_v22 = vsel %vm5071_vm5, %v4986_v9, %v5103_v29  ;;  %v5104_v38 = vmul.f32 0.2, %v4990_v14  ;;  %vm5072_vm6 = vcmp.ge.f32.partialorder %v4990_v14, 0.0 }
 0xce9   :  { %v4995_v20 = vpop.f32.mrf.mxu1  ;;  %5315 = vmatprep.mubr.f32.mxu0 %v5135_v22 }
 0xcea   :  { %v5105_v18 = vmul.f32 0.2, %v4992_v16  ;;  %v4996_v30 = vadd.f32 %v4995_v20, %v7969_v31  ;;  %5316 = vmatmul.mubr.f32.gmra.mxu0 %v5134_v27  ;;  %vm5073_vm7 = vcmp.ge.f32.partialorder %v4992_v16, 0.0  ;;  %v5136_v36 = vsel %vm5072_vm6, %v4990_v14, %v5104_v38 }
 0xceb   :  { %v4997_v32 = vpop.f32.mrf.mxu1 }
 0xcec   :  { %v4998_v34 = vadd.f32 %v4997_v32, %v7972_v48  ;;  %v5137_v47 = vsel %vm5073_vm7, %v4992_v16, %v5105_v18  ;;  %v5106_v35 = vmul.f32 0.2, %v4996_v30  ;;  %vm5074_vm8 = vcmp.ge.f32.partialorder %v4996_v30, 0.0 }
 0xced   :  { %v5001_v11 = vpop.f32.mrf.mxu1  ;;  %5321 = vmatprep.mubr.f32.mxu0 %v5137_v47 }
 0xcee   :  { %v5107_v13 = vmul.f32 0.2, %v4998_v34  ;;  %v5002_v42 = vadd.f32 %v5001_v11, %v7969_v31  ;;  %5322 = vmatmul.mubr.f32.gmra.mxu0 %v5136_v36  ;;  %vm5075_vm9 = vcmp.ge.f32.partialorder %v4998_v34, 0.0  ;;  %v5138_v50 = vsel %vm5074_vm8, %v4996_v30, %v5106_v35 }
 0xcef   :  { %v5003_v41 = vpop.f32.mrf.mxu1 }
 0xcf0   :  { %v5004_v56 = vadd.f32 %v5003_v41, %v7972_v48  ;;  %v5139_v21 = vsel %vm5075_vm9, %v4998_v34, %v5107_v13  ;;  %v5108_v17 = vmul.f32 0.2, %v5002_v42  ;;  %vm5076_vm10 = vcmp.ge.f32.partialorder %v5002_v42, 0.0 }
 0xcf1   :  { %v5007_v7 = vpop.f32.mrf.mxu1  ;;  %5327 = vmatprep.mubr.f32.mxu0 %v5139_v21 }
 0xcf2   :  { %v5109_v49 = vmul.f32 0.2, %v5004_v56  ;;  %v5008_v53 = vadd.f32 %v5007_v7, %v7969_v31  ;;  %5328 = vmatmul.mubr.f32.gmra.mxu0 %v5138_v50  ;;  %vm5077_vm11 = vcmp.ge.f32.partialorder %v5004_v56, 0.0  ;;  %v5140_v60 = vsel %vm5076_vm10, %v5002_v42, %v5108_v17 }
 0xcf3   :  { %v5009_v12 = vpop.f32.mrf.mxu1 }
 0xcf4   :  { %v5010_v15 = vadd.f32 %v5009_v12, %v7972_v48  ;;  %v5141_v62 = vsel %vm5077_vm11, %v5004_v56, %v5109_v49  ;;  %v5110_v43 = vmul.f32 0.2, %v5008_v53  ;;  %vm5078_vm12 = vcmp.ge.f32.partialorder %v5008_v53, 0.0 }
 0xcf5   :  { %v5013_v44 = vpop.f32.mrf.mxu1  ;;  %5333 = vmatprep.mubr.f32.mxu0 %v5141_v62 }
 0xcf6   :  { %v5111_v40 = vmul.f32 0.2, %v5010_v15  ;;  %v5014_v24 = vadd.f32 %v5013_v44, %v7969_v31  ;;  %5334 = vmatmul.mubr.f32.gmra.mxu0 %v5140_v60  ;;  %vm5079_vm13 = vcmp.ge.f32.partialorder %v5010_v15, 0.0  ;;  %v5142_v9 = vsel %vm5078_vm12, %v5008_v53, %v5110_v43 }
 0xcf7   :  { %v5015_v5 = vpop.f32.mrf.mxu1 }
 0xcf8   :  { %v5016_v23 = vadd.f32 %v5015_v5, %v7972_v48  ;;  %v5143_v33 = vsel %vm5079_vm13, %v5010_v15, %v5111_v40  ;;  %v5112_v8 = vmul.f32 0.2, %v5014_v24  ;;  %vm5080_vm14 = vcmp.ge.f32.partialorder %v5014_v24, 0.0 }
 0xcf9   :  { %v5019_v0 = vpop.f32.mrf.mxu1  ;;  %5339 = vmatprep.mubr.f32.mxu0 %v5143_v33 }
 0xcfa   :  { %v5113_v51 = vmul.f32 0.2, %v5016_v23  ;;  %v5020_v58 = vadd.f32 %v5019_v0, %v7969_v31  ;;  %5340 = vmatmul.mubr.f32.gmra.mxu0 %v5142_v9  ;;  %vm5081_vm15 = vcmp.ge.f32.partialorder %v5016_v23, 0.0  ;;  %v5144_v16 = vsel %vm5080_vm14, %v5014_v24, %v5112_v8 }
 0xcfb   :  { %v5021_v59 = vpop.f32.mrf.mxu1 }
 0xcfc   :  { %v5022_v3 = vadd.f32 %v5021_v59, %v7972_v48  ;;  %v5145_v29 = vsel %vm5081_vm15, %v5016_v23, %v5113_v51  ;;  %v5114_v14 = vmul.f32 0.2, %v5020_v58  ;;  %vm5082_vm0 = vcmp.ge.f32.partialorder %v5020_v58, 0.0 }
 0xcfd   :  { %v5025_v26 = vpop.f32.mrf.mxu1  ;;  %5345 = vmatprep.mubr.f32.mxu0 %v5145_v29 }
 0xcfe   :  { %v5115_v22 = vmul.f32 0.2, %v5022_v3  ;;  %v5026_v38 = vadd.f32 %v5025_v26, %v7969_v31  ;;  %5346 = vmatmul.mubr.f32.gmra.mxu0 %v5144_v16  ;;  %vm5083_vm1 = vcmp.ge.f32.partialorder %v5022_v3, 0.0  ;;  %v5146_v34 = vsel %vm5082_vm0, %v5020_v58, %v5114_v14 }
 0xcff   :  { %v5027_v20 = vpop.f32.mrf.mxu1 }
 0xd00   :  { %v5028_v27 = vadd.f32 %v5027_v20, %v7972_v48  ;;  %v5147_v18 = vsel %vm5083_vm1, %v5022_v3, %v5115_v22  ;;  %v5116_v30 = vmul.f32 0.2, %v5026_v38  ;;  %vm5084_vm2 = vcmp.ge.f32.partialorder %v5026_v38, 0.0 }
 0xd01   :  { %v5031_v32 = vpop.f32.mrf.mxu1  ;;  %5351 = vmatprep.mubr.f32.mxu0 %v5147_v18 }
 0xd02   :  { %v5117_v47 = vmul.f32 0.2, %v5028_v27  ;;  %v5032_v35 = vadd.f32 %v5031_v32, %v7969_v31  ;;  %5352 = vmatmul.mubr.f32.gmra.mxu0 %v5146_v34  ;;  %vm5085_vm3 = vcmp.ge.f32.partialorder %v5028_v27, 0.0  ;;  %v5148_v56 = vsel %vm5084_vm2, %v5026_v38, %v5116_v30 }
 0xd03   :  { %v5033_v11 = vpop.f32.mrf.mxu1 }
 0xd04   :  { %v5034_v36 = vadd.f32 %v5033_v11, %v7972_v48  ;;  %v5149_v13 = vsel %vm5085_vm3, %v5028_v27, %v5117_v47  ;;  %v5118_v42 = vmul.f32 0.2, %v5032_v35  ;;  %vm5086_vm4 = vcmp.ge.f32.partialorder %v5032_v35, 0.0 }
 0xd05   :  { %v5037_v41 = vpop.f32.mrf.mxu1  ;;  %5357 = vmatprep.mubr.f32.mxu0 %v5149_v13 }
 0xd06   :  { %v5119_v21 = vmul.f32 0.2, %v5034_v36  ;;  %v5038_v17 = vadd.f32 %v5037_v41, %v7969_v31  ;;  %5358 = vmatmul.mubr.f32.gmra.mxu0 %v5148_v56  ;;  %vm5087_vm5 = vcmp.ge.f32.partialorder %v5034_v36, 0.0  ;;  %v5150_v15 = vsel %vm5086_vm4, %v5032_v35, %v5118_v42  ;;  %v3861_v41 = vld [vmem:[#allocation5 + $0x2010] sm:$0xff]  ;;  %v3860_v56 = vld [vmem:[#allocation5 + $0x2000] sm:$0xff] }
 0xd07   :  { %v5039_v7 = vpop.f32.mrf.mxu1  ;;  %6730 = vmatprep.subr.mxu1 %v3861_v41 }
 0xd08   :  { %v5040_v50 = vadd.f32 %v5039_v7, %v7972_v48  ;;  %v5151_v49 = vsel %vm5087_vm5, %v5034_v36, %v5119_v21  ;;  %v5120_v53 = vmul.f32 0.2, %v5038_v17  ;;  %vm5088_vm6 = vcmp.ge.f32.partialorder %v5038_v17, 0.0  ;;  %v3844_v21 = vld [vmem:[#allocation5 + $0x1f00] sm:$0xff] }
 0xd09   :  { %v5043_v12 = vpop.f32.mrf.mxu1  ;;  %5363 = vmatprep.mubr.f32.mxu0 %v5151_v49 }
 0xd0a   :  { %v5121_v62 = vmul.f32 0.2, %v5040_v50  ;;  %v5044_v43 = vadd.f32 %v5043_v12, %v7969_v31  ;;  %5364 = vmatmul.mubr.f32.gmra.mxu0 %v5150_v15  ;;  %vm5089_vm7 = vcmp.ge.f32.partialorder %v5040_v50, 0.0  ;;  %v5152_v23 = vsel %vm5088_vm6, %v5038_v17, %v5120_v53 }
 0xd0b   :  { %v5045_v44 = vpop.f32.mrf.mxu1 }
 0xd0c   :  { %v5046_v60 = vadd.f32 %v5045_v44, %v7972_v48  ;;  %v5153_v40 = vsel %vm5089_vm7, %v5040_v50, %v5121_v62  ;;  %v5122_v24 = vmul.f32 0.2, %v5044_v43  ;;  %vm5090_vm8 = vcmp.ge.f32.partialorder %v5044_v43, 0.0 }
 0xd0d   :  { %v5049_v5 = vpop.f32.mrf.mxu1  ;;  %5369 = vmatprep.mubr.f32.mxu0 %v5153_v40 }
 0xd0e   :  { %v5123_v33 = vmul.f32 0.2, %v5046_v60  ;;  %v5050_v8 = vadd.f32 %v5049_v5, %v7969_v31  ;;  %5370 = vmatmul.mubr.f32.gmra.mxu0 %v5152_v23  ;;  %vm5091_vm9 = vcmp.ge.f32.partialorder %v5046_v60, 0.0  ;;  %v5154_v3 = vsel %vm5090_vm8, %v5044_v43, %v5122_v24 }
 0xd0f   :  { %v5051_v0 = vpop.f32.mrf.mxu1 }
 0xd10   :  { %v5052_v9 = vadd.f32 %v5051_v0, %v7972_v48  ;;  %v5155_v51 = vsel %vm5091_vm9, %v5046_v60, %v5123_v33  ;;  %v5124_v58 = vmul.f32 0.2, %v5050_v8  ;;  %vm5092_vm10 = vcmp.ge.f32.partialorder %v5050_v8, 0.0 }
 0xd11   :  { %v5055_v59 = vpop.f32.mrf.mxu1  ;;  %5375 = vmatprep.mubr.f32.mxu0 %v5155_v51 }
 0xd12   :  { %v5125_v29 = vmul.f32 0.2, %v5052_v9  ;;  %v5056_v14 = vadd.f32 %v5055_v59, %v7969_v31  ;;  %5376 = vmatmul.mubr.f32.gmra.mxu0 %v5154_v3  ;;  %vm5093_vm11 = vcmp.ge.f32.partialorder %v5052_v9, 0.0  ;;  %v5156_v27 = vsel %vm5092_vm10, %v5050_v8, %v5124_v58 }
 0xd13   :  { %v5057_v26 = vpop.f32.mrf.mxu1 }
 0xd14   :  { %v5058_v16 = vadd.f32 %v5057_v26, %v7972_v48  ;;  %v5157_v22 = vsel %vm5093_vm11, %v5052_v9, %v5125_v29  ;;  %v5126_v38 = vmul.f32 0.2, %v5056_v14  ;;  %vm5094_vm12 = vcmp.ge.f32.partialorder %v5056_v14, 0.0 }
 0xd15   :  { %v5061_v20 = vpop.f32.mrf.mxu1  ;;  %5381 = vmatprep.mubr.f32.mxu0 %v5157_v22 }
 0xd16   :  { %v5127_v18 = vmul.f32 0.2, %v5058_v16  ;;  %v5062_v30 = vadd.f32 %v5061_v20, %v7969_v31  ;;  %5382 = vmatmul.mubr.f32.gmra.mxu0 %v5156_v27  ;;  %vm5095_vm13 = vcmp.ge.f32.partialorder %v5058_v16, 0.0  ;;  %v5158_v11 = vsel %vm5094_vm12, %v5056_v14, %v5126_v38  ;;  %v3845_v31 = vld [vmem:[#allocation5 + $0x1f10] sm:$0xff] }
 0xd17   :  { %v5063_v32 = vpop.f32.mrf.mxu1  ;;  %6731 = vmatpush3.msra.mxu1 %v3845_v31 }
 0xd18   :  { %v5064_v34 = vadd.f32 %v5063_v32, %v7972_v48  ;;  %v5159_v47 = vsel %vm5095_vm13, %v5058_v16, %v5127_v18  ;;  %v5128_v35 = vmul.f32 0.2, %v5062_v30  ;;  %vm5096_vm14 = vcmp.ge.f32.partialorder %v5062_v30, 0.0  ;;  %6732 = vmatprep.subr.mxu1 %v3860_v56  ;;  %v5227_v48 = vld [vmem:[#allocation7 + $0x24] ss:$8 sm:$0x3] }
 0xd19   :  { %5387 = vmatprep.mubr.f32.mxu0 %v5159_v47  ;;  %6733 = vmatpush3.msra.mxu1 %v3844_v21  ;;  %v8007_v17 = vrot.slane %v5227_v48, %v7218_v61  ;;  %v8010_v7 = vrot.slane %v5227_v48, %v7220_v2 }
 0xd1a   :  { %v5129_v36 = vmul.f32 0.2, %v5064_v34  ;;  %5388 = vmatmul.mubr.f32.gmra.mxu0 %v5158_v11  ;;  %vm5097_vm15 = vcmp.ge.f32.partialorder %v5064_v34, 0.0  ;;  %v5160_v42 = vsel %vm5096_vm14, %v5062_v30, %v5128_v35 }
 0xd1c   :  { %v5161_v13 = vsel %vm5097_vm15, %v5064_v34, %v5129_v36 }
 0xd1d   :  { %5393 = vmatprep.mubr.f32.mxu0 %v5161_v13 }
 0xd1e   :  { %5394 = vmatmul.mubr.f32.gmra.mxu0 %v5160_v42 }
 0xda2   :  { %v5305_v50 = vpop.f32.mrf.mxu0 }
 0xda3   :  { %v5306_v49 = vadd.f32 %v5305_v50, %v8007_v17 }
 0xda4   :  { %v5307_v53 = vpop.f32.mrf.mxu0 }
 0xda5   :  { %v5308_v12 = vadd.f32 %v5307_v53, %v8010_v7  ;;  %v5432_v15 = vmul.f32 0.2, %v5306_v49  ;;  %vm5400_vm0 = vcmp.ge.f32.partialorder %v5306_v49, 0.0 }
 0xda6   :  { %v5311_v62 = vpop.f32.mrf.mxu0 }
 0xda7   :  { %v5433_v43 = vmul.f32 0.2, %v5308_v12  ;;  %v5312_v44 = vadd.f32 %v5311_v62, %v8007_v17  ;;  %vm5401_vm1 = vcmp.ge.f32.partialorder %v5308_v12, 0.0  ;;  %v5464_v24 = vsel %vm5400_vm0, %v5306_v49, %v5432_v15 }
 0xda8   :  { %v5313_v60 = vpop.f32.mrf.mxu0 }
 0xda9   :  { %v5314_v61 = vadd.f32 %v5313_v60, %v8010_v7  ;;  %v5465_v40 = vsel %vm5401_vm1, %v5308_v12, %v5433_v43  ;;  %v5434_v2 = vmul.f32 0.2, %v5312_v44  ;;  %vm5402_vm2 = vcmp.ge.f32.partialorder %v5312_v44, 0.0 }
 0xdaa   :  { %v5317_v5 = vpop.f32.mrf.mxu0  ;;  %5560 = vmatprep.mubr.f32.mxu1 %v5465_v40 }
 0xdab   :  { %v5435_v23 = vmul.f32 0.2, %v5314_v61  ;;  %v5318_v33 = vadd.f32 %v5317_v5, %v8007_v17  ;;  %5561 = vmatmul.mubr.f32.vlgmr.msra.gmra.mxu1 %v5464_v24  ;;  %vm5403_vm3 = vcmp.ge.f32.partialorder %v5314_v61, 0.0  ;;  %v5466_v59 = vsel %vm5402_vm2, %v5312_v44, %v5434_v2 }
 0xdac   :  { %v5319_v8 = vpop.f32.mrf.mxu0 }
 0xdad   :  { %v5320_v0 = vadd.f32 %v5319_v8, %v8010_v7  ;;  %v5467_v9 = vsel %vm5403_vm3, %v5314_v61, %v5435_v23  ;;  %v5436_v51 = vmul.f32 0.2, %v5318_v33  ;;  %vm5404_vm4 = vcmp.ge.f32.partialorder %v5318_v33, 0.0 }
 0xdae   :  { %v5323_v58 = vpop.f32.mrf.mxu0  ;;  %5565 = vmatprep.mubr.f32.mxu1 %v5467_v9 }
 0xdaf   :  { %v5437_v3 = vmul.f32 0.2, %v5320_v0  ;;  %v5324_v29 = vadd.f32 %v5323_v58, %v8007_v17  ;;  %5566 = vmatmul.mubr.f32.gmra.mxu1 %v5466_v59  ;;  %vm5405_vm5 = vcmp.ge.f32.partialorder %v5320_v0, 0.0  ;;  %v5468_v20 = vsel %vm5404_vm4, %v5318_v33, %v5436_v51 }
 0xdb0   :  { %v5325_v14 = vpop.f32.mrf.mxu0 }
 0xdb1   :  { %v5326_v26 = vadd.f32 %v5325_v14, %v8010_v7  ;;  %v5469_v16 = vsel %vm5405_vm5, %v5320_v0, %v5437_v3  ;;  %v5438_v22 = vmul.f32 0.2, %v5324_v29  ;;  %vm5406_vm6 = vcmp.ge.f32.partialorder %v5324_v29, 0.0 }
 0xdb2   :  { %v5329_v38 = vpop.f32.mrf.mxu0  ;;  %5570 = vmatprep.mubr.f32.mxu1 %v5469_v16 }
 0xdb3   :  { %v5439_v27 = vmul.f32 0.2, %v5326_v26  ;;  %v5330_v18 = vadd.f32 %v5329_v38, %v8007_v17  ;;  %5571 = vmatmul.mubr.f32.gmra.mxu1 %v5468_v20  ;;  %vm5407_vm7 = vcmp.ge.f32.partialorder %v5326_v26, 0.0  ;;  %v5470_v11 = vsel %vm5406_vm6, %v5324_v29, %v5438_v22 }
 0xdb4   :  { %v5331_v30 = vpop.f32.mrf.mxu0 }
 0xdb5   :  { %v5332_v32 = vadd.f32 %v5331_v30, %v8010_v7  ;;  %v5471_v34 = vsel %vm5407_vm7, %v5326_v26, %v5439_v27  ;;  %v5440_v47 = vmul.f32 0.2, %v5330_v18  ;;  %vm5408_vm8 = vcmp.ge.f32.partialorder %v5330_v18, 0.0 }
 0xdb6   :  { %v5335_v35 = vpop.f32.mrf.mxu0  ;;  %5575 = vmatprep.mubr.f32.mxu1 %v5471_v34 }
 0xdb7   :  { %v5441_v36 = vmul.f32 0.2, %v5332_v32  ;;  %v5336_v13 = vadd.f32 %v5335_v35, %v8007_v17  ;;  %5576 = vmatmul.mubr.f32.gmra.mxu1 %v5470_v11  ;;  %vm5409_vm9 = vcmp.ge.f32.partialorder %v5332_v32, 0.0  ;;  %v5472_v48 = vsel %vm5408_vm8, %v5330_v18, %v5440_v47 }
 0xdb8   :  { %v5337_v42 = vpop.f32.mrf.mxu0 }
 0xdb9   :  { %v5338_v41 = vadd.f32 %v5337_v42, %v8010_v7  ;;  %v5473_v31 = vsel %vm5409_vm9, %v5332_v32, %v5441_v36  ;;  %v5442_v56 = vmul.f32 0.2, %v5336_v13  ;;  %vm5410_vm10 = vcmp.ge.f32.partialorder %v5336_v13, 0.0 }
 0xdba   :  { %v5341_v21 = vpop.f32.mrf.mxu0  ;;  %5580 = vmatprep.mubr.f32.mxu1 %v5473_v31 }
 0xdbb   :  { %v5443_v50 = vmul.f32 0.2, %v5338_v41  ;;  %v5342_v49 = vadd.f32 %v5341_v21, %v8007_v17  ;;  %5581 = vmatmul.mubr.f32.gmra.mxu1 %v5472_v48  ;;  %vm5411_vm11 = vcmp.ge.f32.partialorder %v5338_v41, 0.0  ;;  %v5474_v44 = vsel %vm5410_vm10, %v5336_v13, %v5442_v56 }
 0xdbc   :  { %v5343_v53 = vpop.f32.mrf.mxu0 }
 0xdbd   :  { %v5344_v12 = vadd.f32 %v5343_v53, %v8010_v7  ;;  %v5475_v15 = vsel %vm5411_vm11, %v5338_v41, %v5443_v50  ;;  %v5444_v62 = vmul.f32 0.2, %v5342_v49  ;;  %vm5412_vm12 = vcmp.ge.f32.partialorder %v5342_v49, 0.0 }
 0xdbe   :  { %v5347_v43 = vpop.f32.mrf.mxu0  ;;  %5585 = vmatprep.mubr.f32.mxu1 %v5475_v15 }
 0xdbf   :  { %v5445_v60 = vmul.f32 0.2, %v5344_v12  ;;  %v5348_v61 = vadd.f32 %v5347_v43, %v8007_v17  ;;  %5586 = vmatmul.mubr.f32.gmra.mxu1 %v5474_v44  ;;  %vm5413_vm13 = vcmp.ge.f32.partialorder %v5344_v12, 0.0  ;;  %v5476_v33 = vsel %vm5412_vm12, %v5342_v49, %v5444_v62 }
 0xdc0   :  { %v5349_v40 = vpop.f32.mrf.mxu0 }
 0xdc1   :  { %v5350_v24 = vadd.f32 %v5349_v40, %v8010_v7  ;;  %v5477_v2 = vsel %vm5413_vm13, %v5344_v12, %v5445_v60  ;;  %v5446_v5 = vmul.f32 0.2, %v5348_v61  ;;  %vm5414_vm14 = vcmp.ge.f32.partialorder %v5348_v61, 0.0 }
 0xdc2   :  { %v5353_v23 = vpop.f32.mrf.mxu0  ;;  %5590 = vmatprep.mubr.f32.mxu1 %v5477_v2 }
 0xdc3   :  { %v5447_v8 = vmul.f32 0.2, %v5350_v24  ;;  %v5354_v0 = vadd.f32 %v5353_v23, %v8007_v17  ;;  %5591 = vmatmul.mubr.f32.gmra.mxu1 %v5476_v33  ;;  %vm5415_vm15 = vcmp.ge.f32.partialorder %v5350_v24, 0.0  ;;  %v5478_v29 = vsel %vm5414_vm14, %v5348_v61, %v5446_v5 }
 0xdc4   :  { %v5355_v9 = vpop.f32.mrf.mxu0 }
 0xdc5   :  { %v5356_v51 = vadd.f32 %v5355_v9, %v8010_v7  ;;  %v5479_v58 = vsel %vm5415_vm15, %v5350_v24, %v5447_v8  ;;  %v5448_v59 = vmul.f32 0.2, %v5354_v0  ;;  %vm5416_vm0 = vcmp.ge.f32.partialorder %v5354_v0, 0.0 }
 0xdc6   :  { %v5359_v3 = vpop.f32.mrf.mxu0  ;;  %5595 = vmatprep.mubr.f32.mxu1 %v5479_v58 }
 0xdc7   :  { %v5449_v14 = vmul.f32 0.2, %v5356_v51  ;;  %v5360_v26 = vadd.f32 %v5359_v3, %v8007_v17  ;;  %5596 = vmatmul.mubr.f32.gmra.mxu1 %v5478_v29  ;;  %vm5417_vm1 = vcmp.ge.f32.partialorder %v5356_v51, 0.0  ;;  %v5480_v18 = vsel %vm5416_vm0, %v5354_v0, %v5448_v59 }
 0xdc8   :  { %v5361_v16 = vpop.f32.mrf.mxu0 }
 0xdc9   :  { %v5362_v22 = vadd.f32 %v5361_v16, %v8010_v7  ;;  %v5481_v38 = vsel %vm5417_vm1, %v5356_v51, %v5449_v14  ;;  %v5450_v20 = vmul.f32 0.2, %v5360_v26  ;;  %vm5418_vm2 = vcmp.ge.f32.partialorder %v5360_v26, 0.0 }
 0xdca   :  { %v5365_v27 = vpop.f32.mrf.mxu0  ;;  %5600 = vmatprep.mubr.f32.mxu1 %v5481_v38 }
 0xdcb   :  { %v5451_v30 = vmul.f32 0.2, %v5362_v22  ;;  %v5366_v32 = vadd.f32 %v5365_v27, %v8007_v17  ;;  %5601 = vmatmul.mubr.f32.gmra.mxu1 %v5480_v18  ;;  %vm5419_vm3 = vcmp.ge.f32.partialorder %v5362_v22, 0.0  ;;  %v5482_v13 = vsel %vm5418_vm2, %v5360_v26, %v5450_v20 }
 0xdcc   :  { %v5367_v34 = vpop.f32.mrf.mxu0 }
 0xdcd   :  { %v5368_v47 = vadd.f32 %v5367_v34, %v8010_v7  ;;  %v5483_v35 = vsel %vm5419_vm3, %v5362_v22, %v5451_v30  ;;  %v5452_v11 = vmul.f32 0.2, %v5366_v32  ;;  %vm5420_vm4 = vcmp.ge.f32.partialorder %v5366_v32, 0.0 }
 0xdce   :  { %v5371_v36 = vpop.f32.mrf.mxu0  ;;  %5605 = vmatprep.mubr.f32.mxu1 %v5483_v35  ;;  %v6330_v35 = vld [vmem:[#allocation7 + $0x130] sm:$0xff] }
 0xdcf   :  { %v5453_v42 = vmul.f32 0.2, %v5368_v47  ;;  %v5372_v41 = vadd.f32 %v5371_v36, %v8007_v17  ;;  %5606 = vmatmul.mubr.f32.gmra.mxu1 %v5482_v13  ;;  %vm5421_vm5 = vcmp.ge.f32.partialorder %v5368_v47, 0.0  ;;  %v5484_v49 = vsel %vm5420_vm4, %v5366_v32, %v5452_v11  ;;  %6814 = vmatprep.subr.mxu0 %v6330_v35  ;;  %v6328_v11 = vld [vmem:[#allocation7 + $0x110] sm:$0xff]  ;;  %v6325_v13 = vld [vmem:[#allocation7 + $0xe0] sm:$0xff] }
 0xdd0   :  { %v5373_v31 = vpop.f32.mrf.mxu0  ;;  %6815 = vmatpush3.msra.mxu0 %v6330_v35  ;;  %v6326_v36 = vld [vmem:[#allocation7 + $0xf0] sm:$0xff] }
 0xdd1   :  { %v5374_v56 = vadd.f32 %v5373_v31, %v8010_v7  ;;  %v5485_v21 = vsel %vm5421_vm5, %v5368_v47, %v5453_v42  ;;  %v5454_v48 = vmul.f32 0.2, %v5372_v41  ;;  %vm5422_vm6 = vcmp.ge.f32.partialorder %v5372_v41, 0.0  ;;  %v6324_v42 = vld [vmem:[#allocation7 + $0xd0] sm:$0xff] }
 0xdd2   :  { %v5377_v50 = vpop.f32.mrf.mxu0  ;;  %5610 = vmatprep.mubr.f32.mxu1 %v5485_v21  ;;  %v6322_v31 = vld [vmem:[#allocation7 + $0xb0] sm:$0xff] }
 0xdd3   :  { %v5455_v53 = vmul.f32 0.2, %v5374_v56  ;;  %v5378_v12 = vadd.f32 %v5377_v50, %v8007_v17  ;;  %5611 = vmatmul.mubr.f32.gmra.mxu1 %v5484_v49  ;;  %vm5423_vm7 = vcmp.ge.f32.partialorder %v5374_v56, 0.0  ;;  %v5486_v61 = vsel %vm5422_vm6, %v5372_v41, %v5454_v48  ;;  %v6323_v41 = vld [vmem:[#allocation7 + $0xc0] sm:$0xff]  ;;  %v6320_v21 = vld [vmem:[#allocation7 + $0x90] sm:$0xff] }
 0xdd4   :  { %v5379_v15 = vpop.f32.mrf.mxu0  ;;  %v6319_v48 = vld [vmem:[#allocation7 + $0x80] sm:$0xff]  ;;  %v6318_v50 = vld [vmem:[#allocation7 + $0x70] sm:$0xff] }
 0xdd5   :  { %v5380_v62 = vadd.f32 %v5379_v15, %v8010_v7  ;;  %v5487_v43 = vsel %vm5423_vm7, %v5374_v56, %v5455_v53  ;;  %v5456_v44 = vmul.f32 0.2, %v5378_v12  ;;  %vm5424_vm8 = vcmp.ge.f32.partialorder %v5378_v12, 0.0  ;;  %v6321_v56 = vld [vmem:[#allocation7 + $0xa0] sm:$0xff]  ;;  %v6316_v53 = vld [vmem:[#allocation7 + $0x50] sm:$0xff] }
 0xdd6   :  { %v5383_v60 = vpop.f32.mrf.mxu0  ;;  %5615 = vmatprep.mubr.f32.mxu1 %v5487_v43  ;;  %v6317_v49 = vld [vmem:[#allocation7 + $0x60] sm:$0xff] }
 0xdd7   :  { %v5457_v40 = vmul.f32 0.2, %v5380_v62  ;;  %v5384_v24 = vadd.f32 %v5383_v60, %v8007_v17  ;;  %5616 = vmatmul.mubr.f32.gmra.mxu1 %v5486_v61  ;;  %vm5425_vm9 = vcmp.ge.f32.partialorder %v5380_v62, 0.0  ;;  %v5488_v0 = vsel %vm5424_vm8, %v5378_v12, %v5456_v44  ;;  %v6315_v12 = vld [vmem:[#allocation7 + $0x40] sm:$0xff] }
 0xdd8   :  { %v5385_v2 = vpop.f32.mrf.mxu0  ;;  %v8046_v60 = vld [vmem:[#allocation7 + $0x5] ss:$0 sm:$0xff] }
 0xdd9   :  { %v5386_v5 = vadd.f32 %v5385_v2, %v8010_v7  ;;  %v5489_v23 = vsel %vm5425_vm9, %v5380_v62, %v5457_v40  ;;  %v5458_v33 = vmul.f32 0.2, %v5384_v24  ;;  %vm5426_vm10 = vcmp.ge.f32.partialorder %v5384_v24, 0.0  ;;  %v8044_v62 = vld [vmem:[#allocation7 + $0x27] ss:$0 sm:$0xff] }
 0xdda   :  { %v5389_v8 = vpop.f32.mrf.mxu0  ;;  %5620 = vmatprep.mubr.f32.mxu1 %v5489_v23  ;;  %v8050_v23 = vld [vmem:[#allocation7 + $0x30] ss:$0 sm:$0xff] }
 0xddb   :  { %v5459_v9 = vmul.f32 0.2, %v5386_v5  ;;  %v5390_v51 = vadd.f32 %v5389_v8, %v8007_v17  ;;  %5621 = vmatmul.mubr.f32.gmra.mxu1 %v5488_v0  ;;  %vm5427_vm11 = vcmp.ge.f32.partialorder %v5386_v5, 0.0  ;;  %v5490_v26 = vsel %vm5426_vm10, %v5384_v24, %v5458_v33 }
 0xddc   :  { %v5391_v58 = vpop.f32.mrf.mxu0 }
 0xddd   :  { %v5392_v59 = vadd.f32 %v5391_v58, %v8010_v7  ;;  %v5491_v3 = vsel %vm5427_vm11, %v5386_v5, %v5459_v9  ;;  %v5460_v29 = vmul.f32 0.2, %v5390_v51  ;;  %vm5428_vm12 = vcmp.ge.f32.partialorder %v5390_v51, 0.0 }
 0xdde   :  { %v5395_v14 = vpop.f32.mrf.mxu0  ;;  %5625 = vmatprep.mubr.f32.mxu1 %v5491_v3 }
 0xddf   :  { %v5461_v16 = vmul.f32 0.2, %v5392_v59  ;;  %v5396_v22 = vadd.f32 %v5395_v14, %v8007_v17  ;;  %5626 = vmatmul.mubr.f32.gmra.mxu1 %v5490_v26  ;;  %vm5429_vm13 = vcmp.ge.f32.partialorder %v5392_v59, 0.0  ;;  %v5492_v30 = vsel %vm5428_vm12, %v5390_v51, %v5460_v29  ;;  %v6329_v17 = vld [vmem:[#allocation7 + $0x120] sm:$0xff] }
 0xde0   :  { %v5397_v38 = vpop.f32.mrf.mxu0  ;;  %6816 = vmatprep.subr.mxu0 %v6329_v17 }
 0xde1   :  { %v5398_v20 = vadd.f32 %v5397_v38, %v8010_v7  ;;  %v5493_v27 = vsel %vm5429_vm13, %v5392_v59, %v5461_v16  ;;  %v5462_v18 = vmul.f32 0.2, %v5396_v22  ;;  %vm5430_vm14 = vcmp.ge.f32.partialorder %v5396_v22, 0.0  ;;  %6817 = vmatpush3.msra.mxu0 %v6329_v17  ;;  %v6327_v7 = vld [vmem:[#allocation7 + $0x100] sm:$0xff] }
 0xde2   :  { %5630 = vmatprep.mubr.f32.mxu1 %v5493_v27  ;;  %6818 = vmatprep.subr.mxu0 %v6328_v11 }
 0xde3   :  { %v5463_v32 = vmul.f32 0.2, %v5398_v20  ;;  %5631 = vmatmul.mubr.f32.gmra.mxu1 %v5492_v30  ;;  %vm5431_vm15 = vcmp.ge.f32.partialorder %v5398_v20, 0.0  ;;  %v5494_v47 = vsel %vm5430_vm14, %v5396_v22, %v5462_v18  ;;  %6819 = vmatpush3.msra.mxu0 %v6328_v11 }
 0xde4   :  { %6820 = vmatprep.subr.mxu0 %v6327_v7 }
 0xde5   :  { %v5495_v34 = vsel %vm5431_vm15, %v5398_v20, %v5463_v32  ;;  %6821 = vmatpush3.msra.mxu0 %v6327_v7 }
 0xde6   :  { %5635 = vmatprep.mubr.f32.mxu1 %v5495_v34  ;;  %6822 = vmatprep.subr.mxu0 %v6326_v36 }
 0xde7   :  { %5636 = vmatmul.mubr.f32.gmra.mxu1 %v5494_v47  ;;  %6823 = vmatpush3.msra.mxu0 %v6326_v36 }
 0xde8   :  { %6824 = vmatprep.subr.mxu0 %v6325_v13 }
 0xde9   :  { %6825 = vmatpush3.msra.mxu0 %v6325_v13 }
 0xdea   :  { %6826 = vmatprep.subr.mxu0 %v6324_v42 }
 0xdeb   :  { %6827 = vmatpush3.msra.mxu0 %v6324_v42 }
 0xdec   :  { %6828 = vmatprep.subr.mxu0 %v6323_v41 }
 0xded   :  { %6829 = vmatpush3.msra.mxu0 %v6323_v41 }
 0xdee   :  { %6830 = vmatprep.subr.mxu0 %v6322_v31 }
 0xdef   :  { %6831 = vmatpush3.msra.mxu0 %v6322_v31 }
 0xdf0   :  { %6832 = vmatprep.subr.mxu0 %v6321_v56 }
 0xdf1   :  { %6833 = vmatpush3.msra.mxu0 %v6321_v56 }
 0xdf2   :  { %6834 = vmatprep.subr.mxu0 %v6320_v21 }
 0xdf3   :  { %6835 = vmatpush3.msra.mxu0 %v6320_v21 }
 0xdf4   :  { %6836 = vmatprep.subr.mxu0 %v6319_v48 }
 0xdf5   :  { %6837 = vmatpush3.msra.mxu0 %v6319_v48 }
 0xdf6   :  { %6838 = vmatprep.subr.mxu0 %v6318_v50 }
 0xdf7   :  { %6839 = vmatpush3.msra.mxu0 %v6318_v50 }
 0xdf8   :  { %6840 = vmatprep.subr.mxu0 %v6317_v49 }
 0xdf9   :  { %6841 = vmatpush3.msra.mxu0 %v6317_v49 }
 0xdfa   :  { %6842 = vmatprep.subr.mxu0 %v6316_v53 }
 0xdfb   :  { %6843 = vmatpush3.msra.mxu0 %v6316_v53 }
 0xdfc   :  { %6844 = vmatprep.subr.mxu0 %v6315_v12 }
 0xdfd   :  { %6845 = vmatpush3.msra.mxu0 %v6315_v12 }
 0xe6b   :  { %v6734_v15 = vpop.f32.mrf.mxu1 }
 0xe6d   :  { %v6735_v43 = vpop.f32.mrf.mxu1 }
 0xe6e   :  { %v6736_v44 = vadd.f32 %v6735_v43, %v6734_v15 }
 0xe6f   :  { %v6737_v61 = vpop.f32.mrf.mxu1 }
 0xe70   :  { %v5563_v40 = vadd.f32 %v6736_v44, %v8044_v62 }
 0xe71   :  { %v6738_v24 = vpop.f32.mrf.mxu1 }
 0xe72   :  { %v5641_v2 = vmul.f32 %v5563_v40, %v8046_v60  ;;  %v6739_v5 = vadd.f32 %v6738_v24, %v6737_v61 }
 0xe73   :  { %v6740_v33 = vpop.f32.mrf.mxu1 }
 0xe74   :  { %v5657_v8 = vadd.f32 %v5641_v2, %v7730_v52  ;;  %v5568_v0 = vadd.f32 %v6739_v5, %v8044_v62 }
 0xe75   :  { %v6741_v9 = vpop.f32.mrf.mxu1 }
 0xe76   :  { %v8055_v51 = vmul.f32 %v8050_v23, %v5657_v8  ;;  %v5642_v58 = vmul.f32 %v5568_v0, %v8046_v60  ;;  %v6742_v59 = vadd.f32 %v6741_v9, %v6740_v33 }
 0xe77   :  { %v6743_v3 = vpop.f32.mrf.mxu1 }
 0xe78   :  { %v5739_v29 = vand.u32 2147483647, %v8055_v51  ;;  %6476 = vst [vmem:[#allocation8] sm:$0xff] %v8055_v51  ;;  %v5658_v14 = vadd.f32 %v5642_v58, %v7737_v1  ;;  %v5573_v26 = vadd.f32 %v6742_v59, %v8044_v62  ;;  %v8063_v52 = vsub.f32 0.0, %v8055_v51 }
 0xe79   :  { %v6744_v16 = vpop.f32.mrf.mxu1  ;;  %vm5707_vm0 = vcmp.ne.f32.partialorder %v8055_v51, %v8055_v51 }
 0xe7a   :  { %v5755_v22 = vsub.f32 0.0, %v5739_v29  ;;  %v8066_v38 = vmul.f32 %v8050_v23, %v5658_v14  ;;  %v5643_v20 = vmul.f32 %v5573_v26, %v8046_v60  ;;  %v6745_v27 = vadd.f32 %v6744_v16, %v6743_v3 }
 0xe7b   :  { %v6746_v18 = vpop.f32.mrf.mxu1  ;;  %v6043_v30 = vand.u32 2147483647, %v8063_v52  ;;  %vm6011_vm1 = vcmp.ne.f32.partialorder %v8063_v52, %v8063_v52 }
 0xe7c   :  { %v5771_v32 = vmul.f32 1.442695, %v5755_v22  ;;  %v5740_v34 = vand.u32 2147483647, %v8066_v38  ;;  %v8072_v1 = vsub.f32 0.0, %v8066_v38  ;;  %6477 = vst [vmem:[#allocation8 + $0x8] sm:$0xff] %v8066_v38  ;;  %v5659_v47 = vadd.f32 %v5643_v20, %v7745_v10 }
 0xe7d   :  { %v5578_v35 = vadd.f32 %v6745_v27, %v8044_v62  ;;  %v6747_v17 = vpop.f32.mrf.mxu1  ;;  %v6059_v11 = vsub.f32 0.0, %v6043_v30  ;;  %vm5708_vm4 = vcmp.ne.f32.partialorder %v8066_v38, %v8066_v38 }
 0xe7e   :  { %6880 = vpow2.f32 %v5771_v32  ;;  %v5756_v7 = vsub.f32 0.0, %v5740_v34  ;;  %v6044_v36 = vand.u32 2147483647, %v8072_v1  ;;  %v8079_v13 = vmul.f32 %v8050_v23, %v5659_v47 }
 0xe7f   :  { %v5644_v42 = vmul.f32 %v5578_v35, %v8046_v60  ;;  %v6748_v41 = vadd.f32 %v6747_v17, %v6746_v18  ;;  %v6749_v31 = vpop.f32.mrf.mxu1  ;;  %v6075_v56 = vmul.f32 1.442695, %v6059_v11  ;;  %vm6012_vm5 = vcmp.ne.f32.partialorder %v8072_v1, %v8072_v1 }
 0xe80   :  { %v5773_v21 = vmul.f32 1.442695, %v5756_v7  ;;  %v6060_v48 = vsub.f32 0.0, %v6044_v36  ;;  %v5741_v10 = vand.u32 2147483647, %v8079_v13  ;;  %6478 = vst [vmem:[#allocation8 + $0x10] sm:$0xff] %v8079_v13  ;;  %vm5709_vm10 = vcmp.ne.f32.partialorder %v8079_v13, %v8079_v13 }
 0xe81   :  { %v5660_v50 = vadd.f32 %v5644_v42, %v7753_v25  ;;  %v5583_v49 = vadd.f32 %v6748_v41, %v8044_v62  ;;  %v6750_v53 = vpop.f32.mrf.mxu1  ;;  %6882 = vpow2.f32 %v6075_v56  ;;  %v8091_v61 = vsub.f32 0.0, %v8079_v13 }
 0xe82   :  { %v6751_v12 = vadd.f32 %v6750_v53, %v6749_v31  ;;  %6884 = vpow2.f32 %v5773_v21  ;;  %v6077_v40 = vmul.f32 1.442695, %v6060_v48  ;;  %v5757_v24 = vsub.f32 0.0, %v5741_v10 }
 0xe83   :  { %v8087_v15 = vmul.f32 %v8050_v23, %v5660_v50  ;;  %v5645_v43 = vmul.f32 %v5583_v49, %v8046_v60  ;;  %v6752_v44 = vpop.f32.mrf.mxu1  ;;  %v6045_v0 = vand.u32 2147483647, %v8091_v61  ;;  %vm6013_vm11 = vcmp.ne.f32.partialorder %v8091_v61, %v8091_v61 }
 0xe84   :  { %v5588_v2 = vadd.f32 %v6751_v12, %v8044_v62  ;;  %6886 = vpow2.f32 %v6077_v40  ;;  %v5775_v59 = vmul.f32 1.442695, %v5757_v24 }
 0xe85   :  { %6479 = vst [vmem:[#allocation8 + $0x18] sm:$0xff] %v8087_v15  ;;  %v5661_v25 = vadd.f32 %v5645_v43, %v7761_v28  ;;  %v6753_v5 = vpop.f32.mrf.mxu1  ;;  %v6061_v22 = vsub.f32 0.0, %v6045_v0  ;;  %v5742_v56 = vand.u32 2147483647, %v8087_v15  ;;  %vm5710_vm13 = vcmp.ne.f32.partialorder %v8087_v15, %v8087_v15 }
 0xe86   :  { %v5646_v33 = vmul.f32 %v5588_v2, %v8046_v60  ;;  %v6754_v8 = vadd.f32 %v6753_v5, %v6752_v44  ;;  %6888 = vpow2.f32 %v5775_v59  ;;  %v5691_v59 = vmax.f32 %v8055_v51, 0.0 }
 0xe87   :  { %v8099_v9 = vmul.f32 %v8050_v23, %v5661_v25  ;;  %v6755_v58 = vpop.f32.mrf.mxu1  ;;  %v6079_v11 = vmul.f32 1.442695, %v6061_v22  ;;  %v5758_v44 = vsub.f32 0.0, %v5742_v56 }
 0xe88   :  { %v5662_v3 = vadd.f32 %v5646_v33, %v7769_v37  ;;  %v5593_v29 = vadd.f32 %v6754_v8, %v8044_v62 }
 0xe89   :  { %6480 = vst [vmem:[#allocation8 + $0x20] sm:$0xff] %v8099_v9  ;;  %v6756_v14 = vpop.f32.mrf.mxu1 }
 0xe8a   :  { %v8105_v28 = vmul.f32 %v8050_v23, %v5662_v3  ;;  %v5647_v26 = vmul.f32 %v5593_v29, %v8046_v60  ;;  %v6757_v16 = vadd.f32 %v6756_v14, %v6755_v58  ;;  %v5995_v3 = vmax.f32 %v8063_v52, 0.0 }
 0xe8b   :  { %v8108_v20 = vpop.eup %6880  ;;  %v6758_v27 = vpop.f32.mrf.mxu1  ;;  %v5777_v14 = vmul.f32 1.442695, %v5758_v44 }
 0xe8c   :  { %6481 = vst [vmem:[#allocation8 + $0x28] sm:$0xff] %v8105_v28  ;;  %v5663_v37 = vadd.f32 %v5647_v26, %v7777_v45  ;;  %v5598_v18 = vadd.f32 %v6757_v16, %v8044_v62  ;;  %v5803_v32 = vadd.f32 1.0, %v8108_v20  ;;  %v5806_v5 = vmul.f32 -0.5, %v8108_v20 }
 0xe8d   :  { %v6759_v30 = vpop.f32.mrf.mxu1  ;;  %v5809_v22 = vand.u32 2147483647, %v8108_v20 }
 0xe8e   :  { %v8114_v34 = vpop.eup %6882  ;;  %v8117_v47 = vmul.f32 %v8050_v23, %v5663_v37  ;;  %v5648_v35 = vmul.f32 %v5598_v18, %v8046_v60  ;;  %v6760_v17 = vadd.f32 %v6759_v30, %v6758_v27  ;;  %6890 = vlog2.f32 %v5803_v32 }
 0xe8f   :  { %v6761_v7 = vpop.f32.mrf.mxu1  ;;  %v6107_v36 = vadd.f32 1.0, %v8114_v34  ;;  %v8124_v41 = vpop.eup %6884  ;;  %6892 = vpow2.f32 %v6079_v11  ;;  %v6110_v29 = vmul.f32 -0.5, %v8114_v34  ;;  %v5807_v18 = vadd.f32 1.0, %v5806_v5 }
 0xe90   :  { %6482 = vst [vmem:[#allocation8 + $0x30] sm:$0xff] %v8117_v47  ;;  %v5664_v45 = vadd.f32 %v5648_v35, %v7785_v55  ;;  %v5603_v42 = vadd.f32 %v6760_v17, %v8044_v62  ;;  %v5812_v49 = vadd.f32 1.0, %v8124_v41  ;;  %v5815_v35 = vmul.f32 -0.5, %v8124_v41 }
 0xe91   :  { %v6762_v31 = vpop.f32.mrf.mxu1  ;;  %6894 = vlog2.f32 %v6107_v36  ;;  %v8134_v53 = vpop.eup %6886  ;;  %v5743_v11 = vand.u32 2147483647, %v8099_v9  ;;  %v6111_v36 = vadd.f32 1.0, %v6110_v29  ;;  %vm8176_vm2 = vcmp.lt.f32.partialorder %v5809_v22, 0.0004427343 }
 0xe92   :  { %v8128_v21 = vmul.f32 %v8050_v23, %v5664_v45  ;;  %v5649_v48 = vmul.f32 %v5603_v42, %v8046_v60  ;;  %v6763_v10 = vadd.f32 %v6762_v31, %v6761_v7  ;;  %6896 = vlog2.f32 %v5812_v49 }
 0xe93   :  { %v6764_v50 = vpop.f32.mrf.mxu1  ;;  %v6116_v33 = vadd.f32 1.0, %v8134_v53  ;;  %v8145_v8 = vpop.eup %6888  ;;  %v5692_v45 = vmax.f32 %v8066_v38, 0.0  ;;  %v5996_v42 = vmax.f32 %v8072_v1, 0.0  ;;  %v5808_v49 = vmul.f32 %v8108_v20, %v5807_v18 }
 0xe94   :  { %6483 = vst [vmem:[#allocation8 + $0x38] sm:$0xff] %v8128_v21  ;;  %v5665_v55 = vadd.f32 %v5649_v48, %v7793_v6  ;;  %v5608_v12 = vadd.f32 %v6763_v10, %v8044_v62  ;;  %v5821_v17 = vadd.f32 1.0, %v8145_v8 }
 0xe95   :  { %v6765_v43 = vpop.f32.mrf.mxu1  ;;  %6898 = vlog2.f32 %v6116_v33  ;;  %v6112_v33 = vmul.f32 %v8114_v34, %v6111_v36 }
 0xe96   :  { %v8138_v40 = vmul.f32 %v8050_v23, %v5665_v55  ;;  %v6766_v24 = vadd.f32 %v6765_v43, %v6764_v50  ;;  %v5650_v2 = vmul.f32 %v5608_v12, %v8046_v60  ;;  %6900 = vpow2.f32 %v5777_v14 }
 0xe97   :  { %v6767_v25 = vpop.f32.mrf.mxu1  ;;  %6902 = vlog2.f32 %v5821_v17  ;;  %v5818_v14 = vand.u32 2147483647, %v8124_v41 }
 0xe98   :  { %6484 = vst [vmem:[#allocation8 + $0x40] sm:$0xff] %v8138_v40  ;;  %v5613_v6 = vadd.f32 %v6766_v24, %v8044_v62  ;;  %v5666_v0 = vadd.f32 %v5650_v2, %v7801_v19  ;;  %v6113_v19 = vand.u32 2147483647, %v8114_v34 }
 0xe99   :  { %v6768_v58 = vpop.f32.mrf.mxu1  ;;  %vm8213_vm6 = vcmp.lt.f32.partialorder %v5818_v14, 0.0004427343 }
 0xe9a   :  { %v5651_v26 = vmul.f32 %v5613_v6, %v8046_v60  ;;  %v6769_v16 = vadd.f32 %v6768_v58, %v6767_v25  ;;  %v8154_v27 = vmul.f32 %v8050_v23, %v5666_v0  ;;  %vm8183_vm3 = vcmp.lt.f32.partialorder %v6113_v19, 0.0004427343 }
 0xe9b   :  { %v6770_v37 = vpop.f32.mrf.mxu1  ;;  %v6891_v31 = vpop.eup %6890  ;;  %v5816_v25 = vadd.f32 1.0, %v5815_v35  ;;  %v6119_v0 = vmul.f32 -0.5, %v8134_v53  ;;  %v6122_v35 = vand.u32 2147483647, %v8134_v53 }
 0xe9c   :  { %v5667_v30 = vadd.f32 %v5651_v26, %v7809_v39  ;;  %v5618_v32 = vadd.f32 %v6769_v16, %v8044_v62  ;;  %6485 = vst [vmem:[#allocation8 + $0x48] sm:$0xff] %v8154_v27  ;;  %v8173_v10 = vpop.eup %6892  ;;  %v5805_v55 = vmul.f32 0.6931472, %v6891_v31  ;;  %v5744_v26 = vand.u32 2147483647, %v8105_v28 }
 0xe9d   :  { %v6771_v7 = vpop.f32.mrf.mxu1  ;;  %v6125_v18 = vadd.f32 1.0, %v8173_v10  ;;  %v6120_v36 = vadd.f32 1.0, %v6119_v0  ;;  %vm6123_vm7 = vcmp.lt.f32.partialorder %v6122_v35, 0.0004427343  ;;  %v6128_v14 = vmul.f32 -0.5, %v8173_v10 }
 0xe9e   :  { %v8166_v39 = vmul.f32 %v8050_v23, %v5667_v30  ;;  %v5652_v56 = vmul.f32 %v5618_v32, %v8046_v60  ;;  %v6772_v48 = vadd.f32 %v6771_v7, %v6770_v37  ;;  %v6895_v43 = vpop.eup %6894  ;;  %v5811_v20 = vsel %vm8176_vm2, %v5808_v49, %v5805_v55 }
 0xe9f   :  { %v6773_v50 = vpop.f32.mrf.mxu1  ;;  %v6109_v6 = vmul.f32 0.6931472, %v6895_v43  ;;  %v5947_v22 = vadd.f32 %v5811_v20, %v5691_v59  ;;  %v6897_v34 = vpop.eup %6896  ;;  %v5817_v32 = vmul.f32 %v8124_v41, %v5816_v25  ;;  %6904 = vlog2.f32 %v6125_v18 }
 0xea0   :  { %6486 = vst [vmem:[#allocation8 + $0x50] sm:$0xff] %v8166_v39  ;;  %v5668_v44 = vadd.f32 %v5652_v56, %v7817_v46  ;;  %v5623_v24 = vadd.f32 %v6772_v48, %v8044_v62  ;;  %v5814_v59 = vmul.f32 0.6931472, %v6897_v34  ;;  %v5759_v43 = vsub.f32 0.0, %v5743_v11 }
 0xea1   :  { %v6774_v5 = vpop.f32.mrf.mxu1  ;;  %v6115_v37 = vsel %vm8183_vm3, %v6112_v33, %v6109_v6  ;;  %v6121_v20 = vmul.f32 %v8134_v53, %v6120_v36  ;;  %vm5711_vm2 = vcmp.ne.f32.partialorder %v8099_v9, %v8099_v9 }
 0xea2   :  { %v8192_v58 = vmul.f32 %v8050_v23, %v5668_v44  ;;  %v5653_v46 = vmul.f32 %v5623_v24, %v8046_v60  ;;  %v6775_v29 = vadd.f32 %v6774_v5, %v6773_v50  ;;  %v6251_v7 = vadd.f32 %v6115_v37, %v5995_v3  ;;  %v6899_v12 = vpop.eup %6898 }
 0xea3   :  { %v6776_v16 = vpop.f32.mrf.mxu1  ;;  %v5824_v3 = vmul.f32 -0.5, %v8145_v8  ;;  %v5963_v50 = vsel %vm5707_vm0, %v8055_v51, %v5947_v22  ;;  %v5820_v49 = vsel %vm8213_vm6, %v5817_v32, %v5814_v59  ;;  %v5760_v44 = vsub.f32 0.0, %v5744_v26  ;;  %v8237_v0 = vpop.eup %6900 }
 0xea4   :  { %6487 = vst [vmem:[#allocation8 + $0x58] sm:$0xff] %v8192_v58  ;;  %v5669_v19 = vadd.f32 %v5653_v46, %v7825_v54  ;;  %v5628_v30 = vadd.f32 %v6775_v29, %v8044_v62  ;;  %v6267_v55 = vsel %vm6011_vm1, %v8063_v52, %v6251_v7  ;;  %v6118_v51 = vmul.f32 0.6931472, %v6899_v12  ;;  %v6903_v26 = vpop.eup %6902 }
 0xea5   :  { %v6777_v17 = vpop.f32.mrf.mxu1  ;;  %v6283_v2 = vadd.f32 %v6267_v55, %v5963_v50  ;;  %v5948_v11 = vadd.f32 %v5820_v49, %v5692_v45  ;;  %v5825_v33 = vadd.f32 1.0, %v5824_v3  ;;  %v5827_v22 = vand.u32 2147483647, %v8145_v8 }
 0xea6   :  { %v8210_v31 = vmul.f32 %v8050_v23, %v5669_v19  ;;  %v5654_v54 = vmul.f32 %v5628_v30, %v8046_v60  ;;  %v6778_v56 = vadd.f32 %v6777_v17, %v6776_v16  ;;  %v6124_v29 = vsel %vm6123_vm7, %v6121_v20, %v6118_v51 }
 0xea7   :  { %v6779_v48 = vpop.f32.mrf.mxu1  ;;  %v6299_v6 = vsub.f32 0.0, %v6283_v2  ;;  %v5779_v16 = vmul.f32 1.442695, %v5759_v43  ;;  %v6252_v53 = vadd.f32 %v6124_v29, %v5996_v42  ;;  %v8246_v45 = vsub.f32 0.0, %v8087_v15 }
 0xea8   :  { %6488 = vst [vmem:[#allocation8 + $0x60] sm:$0xff] %v8210_v31  ;;  %v5670_v24 = vadd.f32 %v5654_v54, %v7833_v4  ;;  %v5633_v25 = vadd.f32 %v6778_v56, %v8044_v62  ;;  %v5781_v37 = vmul.f32 1.442695, %v5760_v44  ;;  %v5823_v19 = vmul.f32 0.6931472, %v6903_v26 }
 0xea9   :  { %v6780_v5 = vpop.f32.mrf.mxu1  ;;  %6846 = vmatprep.mubr.f32.mxu0 %v6299_v6  ;;  %v5745_v30 = vand.u32 2147483647, %v8117_v47  ;;  %v5964_v32 = vsel %vm5708_vm4, %v8066_v38, %v5948_v11  ;;  %v6268_v42 = vsel %vm6012_vm5, %v8072_v1, %v6252_v53  ;;  %v5826_v35 = vmul.f32 %v8145_v8, %v5825_v33 }
 0xeaa   :  { %v8233_v52 = vmul.f32 %v8050_v23, %v5670_v24  ;;  %v5655_v4 = vmul.f32 %v5633_v25, %v8046_v60  ;;  %v6781_v46 = vadd.f32 %v6780_v5, %v6779_v48  ;;  %v6129_v7 = vadd.f32 1.0, %v6128_v14 }
 0xeab   :  { %6906 = vpow2.f32 %v5779_v16  ;;  %vm5828_vm8 = vcmp.lt.f32.partialorder %v5827_v22, 0.0004427343  ;;  %v6131_v59 = vand.u32 2147483647, %v8173_v10  ;;  %v5693_v8 = vmax.f32 %v8079_v13, 0.0 }
 0xeac   :  { %6489 = vst [vmem:[#allocation8 + $0x68] sm:$0xff] %v8233_v52  ;;  %v5671_v18 = vadd.f32 %v5655_v4, %v7841_v57  ;;  %v5638_v34 = vadd.f32 %v6781_v46, %v8044_v62  ;;  %v6284_v62 = vadd.f32 %v6268_v42, %v5964_v32  ;;  %v5829_v54 = vsel %vm5828_vm8, %v5826_v35, %v5823_v19  ;;  %v6905_v1 = vpop.eup %6904 }
 0xead   :  { %6908 = vpow2.f32 %v5781_v37  ;;  %v6046_v41 = vand.u32 2147483647, %v8246_v45  ;;  %v5761_v3 = vsub.f32 0.0, %v5745_v30  ;;  %v6127_v56 = vmul.f32 0.6931472, %v6905_v1 }
 0xeae   :  { %v8261_v17 = vmul.f32 %v8050_v23, %v5671_v18  ;;  %v5656_v57 = vmul.f32 %v5638_v34, %v8046_v60  ;;  %v6300_v36 = vsub.f32 0.0, %v6284_v62  ;;  %v6130_v48 = vmul.f32 %v8173_v10, %v6129_v7 }
 0xeaf   :  { %v5949_v50 = vadd.f32 %v5829_v54, %v5693_v8  ;;  %v5997_v55 = vmax.f32 %v8091_v61, 0.0  ;;  %vm6132_vm9 = vcmp.lt.f32.partialorder %v6131_v59, 0.0004427343  ;;  %v5746_v49 = vand.u32 2147483647, %v8128_v21 }
 0xeb0   :  { %6490 = vst [vmem:[#allocation8 + $0x70] sm:$0xff] %v8261_v17  ;;  %v5672_v38 = vadd.f32 %v5656_v57, %v7849_v63  ;;  %6847 = vmatmul.mubr.f32.vlgmr.msra.gmra.mxu0 %v6300_v36  ;;  %v6062_v63 = vsub.f32 0.0, %v6046_v41  ;;  %v6133_v12 = vsel %vm6132_vm9, %v6130_v48, %v6127_v56  ;;  %v5747_v43 = vand.u32 2147483647, %v8138_v40 }
 0xeb1   :  { %v5783_v24 = vmul.f32 1.442695, %v5761_v3  ;;  %v5748_v10 = vand.u32 2147483647, %v8154_v27  ;;  %v8283_v2 = vsub.f32 0.0, %v8099_v9  ;;  %v5965_v25 = vsel %vm5709_vm10, %v8079_v13, %v5949_v50 }
 0xeb2   :  { %v8270_v60 = vmul.f32 %v8050_v23, %v5672_v38  ;;  %v6253_v23 = vadd.f32 %v6133_v12, %v5997_v55  ;;  %v6081_v44 = vmul.f32 1.442695, %v6062_v63  ;;  %v5762_v51 = vsub.f32 0.0, %v5746_v49 }
 0xeb3   :  { %v5763_v6 = vsub.f32 0.0, %v5747_v43  ;;  %v6047_v11 = vand.u32 2147483647, %v8283_v2  ;;  %v5764_v33 = vsub.f32 0.0, %v5748_v10  ;;  %v5830_v46 = vadd.f32 1.0, %v8237_v0 }
 0xeb4   :  { %6491 = vst [vmem:[#allocation8 + $0x78] sm:$0xff] %v8270_v60  ;;  %v6269_v5 = vsel %vm6013_vm11, %v8091_v61, %v6253_v23  ;;  %6910 = vpow2.f32 %v6081_v44  ;;  %v8290_v14 = vsub.f32 0.0, %v8105_v28  ;;  %v5785_v13 = vmul.f32 1.442695, %v5762_v51 }
 0xeb5   :  { %v6285_v20 = vadd.f32 %v6269_v5, %v5965_v25  ;;  %6912 = vpow2.f32 %v5783_v24  ;;  %v6063_v29 = vsub.f32 0.0, %v6047_v11  ;;  %v5787_v61 = vmul.f32 1.442695, %v5763_v6 }
 0xeb6   :  { %v5749_v16 = vand.u32 2147483647, %v8166_v39  ;;  %v5789_v37 = vmul.f32 1.442695, %v5764_v33  ;;  %v5750_v18 = vand.u32 2147483647, %v8192_v58  ;;  %6914 = vlog2.f32 %v5830_v46 }
 0xeb7   :  { %v6301_v4 = vsub.f32 0.0, %v6285_v20  ;;  %v6083_v53 = vmul.f32 1.442695, %v6063_v29  ;;  %v6048_v34 = vand.u32 2147483647, %v8290_v14  ;;  %v8302_v32 = vsub.f32 0.0, %v8117_v47 }
 0xeb8   :  { %v8292_v26 = vpop.eup %6906  ;;  %v5751_v19 = vand.u32 2147483647, %v8210_v31  ;;  %v5752_v42 = vand.u32 2147483647, %v8233_v52  ;;  %v5765_v57 = vsub.f32 0.0, %v5749_v16  ;;  %v5766_v59 = vsub.f32 0.0, %v5750_v18 }
 0xeb9   :  { %6849 = vmatprep.mubr.f32.mxu0 %v6301_v4  ;;  %v5839_v30 = vadd.f32 1.0, %v8292_v26  ;;  %6916 = vpow2.f32 %v6083_v53  ;;  %v6064_v35 = vsub.f32 0.0, %v6048_v34  ;;  %v5753_v62 = vand.u32 2147483647, %v8261_v17 }
 0xeba   :  { %v8295_v22 = vpop.eup %6908  ;;  %6918 = vpow2.f32 %v5785_v13  ;;  %v6049_v7 = vand.u32 2147483647, %v8302_v32  ;;  %v5767_v54 = vsub.f32 0.0, %v5751_v19  ;;  %v5768_v41 = vsub.f32 0.0, %v5752_v42 }
 0xebb   :  { %6920 = vpow2.f32 %v5787_v61  ;;  %v5848_v38 = vadd.f32 1.0, %v8295_v22  ;;  %v6085_v36 = vmul.f32 1.442695, %v6064_v35  ;;  %v5791_v3 = vmul.f32 1.442695, %v5765_v57 }
 0xebc   :  { %6922 = vpow2.f32 %v5789_v37  ;;  %v6065_v1 = vsub.f32 0.0, %v6049_v7  ;;  %v5769_v56 = vsub.f32 0.0, %v5753_v62  ;;  %v8312_v50 = vsub.f32 0.0, %v8128_v21 }
 0xebd   :  { %6924 = vlog2.f32 %v5839_v30  ;;  %v5793_v55 = vmul.f32 1.442695, %v5766_v59  ;;  %v5833_v63 = vmul.f32 -0.5, %v8237_v0  ;;  %v5795_v43 = vmul.f32 1.442695, %v5767_v54 }
 0xebe   :  { %6926 = vpow2.f32 %v6085_v36  ;;  %v6087_v49 = vmul.f32 1.442695, %v6065_v1  ;;  %v5842_v23 = vmul.f32 -0.5, %v8292_v26  ;;  %v5797_v44 = vmul.f32 1.442695, %v5768_v41 }
 0xebf   :  { %6928 = vlog2.f32 %v5848_v38  ;;  %v5694_v24 = vmax.f32 %v8087_v15, 0.0  ;;  %v5799_v10 = vmul.f32 1.442695, %v5769_v56  ;;  %v5695_v25 = vmax.f32 %v8099_v9, 0.0 }
 0xec0   :  { %v6050_v5 = vand.u32 2147483647, %v8312_v50  ;;  %v5834_v51 = vadd.f32 1.0, %v5833_v63  ;;  %v5836_v20 = vand.u32 2147483647, %v8237_v0  ;;  %v5998_v33 = vmax.f32 %v8246_v45, 0.0 }
 0xec1   :  { %v8308_v8 = vpop.eup %6910  ;;  %v5843_v4 = vadd.f32 1.0, %v5842_v23  ;;  %v5851_v61 = vmul.f32 -0.5, %v8295_v22  ;;  %v8329_v16 = vsub.f32 0.0, %v8138_v40  ;;  %v5845_v37 = vand.u32 2147483647, %v8292_v26 }
 0xec2   :  { %v6134_v48 = vadd.f32 1.0, %v8308_v8  ;;  %v8315_v12 = vpop.eup %6912  ;;  %v6066_v46 = vsub.f32 0.0, %v6050_v5  ;;  %v6137_v13 = vmul.f32 -0.5, %v8308_v8  ;;  %v5754_v30 = vand.u32 2147483647, %v8270_v60 }
 0xec3   :  { %v5857_v6 = vadd.f32 1.0, %v8315_v12  ;;  %v6915_v11 = vpop.eup %6914  ;;  %v5835_v42 = vmul.f32 %v8237_v0, %v5834_v51  ;;  %vm8339_vm12 = vcmp.lt.f32.partialorder %v5836_v20, 0.0004427343  ;;  %v8346_v7 = vmul.f32 %v8292_v26, %v5843_v4 }
 0xec4   :  { %6930 = vlog2.f32 %v6134_v48  ;;  %v6089_v34 = vmul.f32 1.442695, %v6066_v46  ;;  %v5832_v62 = vmul.f32 0.6931472, %v6915_v11  ;;  %v5854_v59 = vand.u32 2147483647, %v8295_v22 }
 0xec5   :  { %6932 = vpow2.f32 %v6087_v49  ;;  %v6138_v36 = vadd.f32 1.0, %v6137_v13  ;;  %v5852_v54 = vadd.f32 1.0, %v5851_v61  ;;  %v6051_v0 = vand.u32 2147483647, %v8329_v16 }
 0xec6   :  { %6934 = vpow2.f32 %v5791_v3  ;;  %v8324_v29 = vpop.eup %6916  ;;  %vm6014_vm14 = vcmp.ne.f32.partialorder %v8246_v45, %v8246_v45  ;;  %vm8356_vm15 = vcmp.lt.f32.partialorder %v5845_v37, 0.0004427343  ;;  %v5999_v41 = vmax.f32 %v8283_v2, 0.0 }
 0xec7   :  { %6936 = vpow2.f32 %v5793_v55  ;;  %v8331_v53 = vpop.eup %6918  ;;  %v6143_v18 = vadd.f32 1.0, %v8324_v29  ;;  %v5696_v3 = vmax.f32 %v8105_v28, 0.0  ;;  %v5697_v56 = vmax.f32 %v8117_v47, 0.0 }
 0xec8   :  { %6938 = vpow2.f32 %v5795_v43  ;;  %v8335_v19 = vpop.eup %6920  ;;  %v6140_v48 = vand.u32 2147483647, %v8308_v8  ;;  %v5866_v63 = vadd.f32 1.0, %v8331_v53  ;;  %v6067_v49 = vsub.f32 0.0, %v6051_v0 }
 0xec9   :  { %6940 = vpow2.f32 %v5797_v44  ;;  %v8343_v57 = vpop.eup %6922  ;;  %v5838_v23 = vsel %vm8339_vm12, %v5835_v42, %v5832_v62  ;;  %vm8368_vm0 = vcmp.lt.f32.partialorder %v5854_v59, 0.0004427343  ;;  %v5860_v5 = vmul.f32 -0.5, %v8315_v12 }
 0xeca   :  { %6942 = vpow2.f32 %v5799_v10  ;;  %v6925_v38 = vpop.eup %6924  ;;  %v6000_v10 = vmax.f32 %v8290_v14, 0.0  ;;  %v6139_v20 = vmul.f32 %v8308_v8, %v6138_v36  ;;  %v5853_v11 = vmul.f32 %v8295_v22, %v5852_v54 }
 0xecb   :  { %6944 = vlog2.f32 %v5857_v6  ;;  %v8350_v1 = vpop.eup %6926  ;;  %v5841_v6 = vmul.f32 0.6931472, %v6925_v38  ;;  %v6146_v13 = vmul.f32 -0.5, %v8324_v29  ;;  %v6091_v61 = vmul.f32 1.442695, %v6067_v49 }
 0xecc   :  { %6946 = vlog2.f32 %v6143_v18  ;;  %v6152_v55 = vadd.f32 1.0, %v8350_v1  ;;  %v6929_v43 = vpop.eup %6928  ;;  %v8380_v37 = vsub.f32 0.0, %v8154_v27  ;;  %vm6141_vm1 = vcmp.lt.f32.partialorder %v6140_v48, 0.0004427343 }
 0xecd   :  { %6948 = vpow2.f32 %v6089_v34  ;;  %v5950_v34 = vadd.f32 %v5838_v23, %v5694_v24  ;;  %v5861_v35 = vadd.f32 1.0, %v5860_v5  ;;  %v5863_v62 = vand.u32 2147483647, %v8315_v12 }
 0xece   :  { %6950 = vlog2.f32 %v6152_v55  ;;  %v5850_v24 = vmul.f32 0.6931472, %v6929_v43  ;;  %v5875_v36 = vadd.f32 1.0, %v8335_v19  ;;  %v5847_v0 = vsel %vm8356_vm15, %v8346_v7, %v5841_v6 }
 0xecf   :  { %6952 = vlog2.f32 %v5866_v63  ;;  %vm6015_vm3 = vcmp.ne.f32.partialorder %v8283_v2, %v8283_v2  ;;  %v6147_v48 = vadd.f32 1.0, %v6146_v13  ;;  %v5698_v55 = vmax.f32 %v8128_v21, 0.0 }
 0xed0   :  { %6954 = vpow2.f32 %v6091_v61  ;;  %v5966_v49 = vsel %vm5710_vm13, %v8087_v15, %v5950_v34  ;;  %v6149_v26 = vand.u32 2147483647, %v8324_v29  ;;  %v6155_v43 = vmul.f32 -0.5, %v8350_v1 }
 0xed1   :  { %v6931_v51 = vpop.eup %6930  ;;  %vm5712_vm4 = vcmp.ne.f32.partialorder %v8105_v28, %v8105_v28  ;;  %vm8420_vm5 = vcmp.lt.f32.partialorder %v5863_v62, 0.0004427343  ;;  %v6001_v15 = vmax.f32 %v8302_v32, 0.0  ;;  %v5862_v13 = vmul.f32 %v8315_v12, %v5861_v35 }
 0xed2   :  { %v8376_v4 = vpop.eup %6932  ;;  %v6136_v46 = vmul.f32 0.6931472, %v6931_v51  ;;  %vm6150_vm6 = vcmp.lt.f32.partialorder %v6149_v26, 0.0004427343  ;;  %vm6016_vm7 = vcmp.ne.f32.partialorder %v8290_v14, %v8290_v14  ;;  %v6158_v12 = vand.u32 2147483647, %v8350_v1 }
 0xed3   :  { %v8382_v18 = vpop.eup %6934  ;;  %v6161_v8 = vadd.f32 1.0, %v8376_v4  ;;  %v5869_v35 = vmul.f32 -0.5, %v8331_v53  ;;  %vm5713_vm8 = vcmp.ne.f32.partialorder %v8117_v47, %v8117_v47  ;;  %vm6017_vm11 = vcmp.ne.f32.partialorder %v8302_v32, %v8302_v32 }
 0xed4   :  { %v8387_v22 = vpop.eup %6936  ;;  %v6142_v42 = vsel %vm6141_vm1, %v6139_v20, %v6136_v46  ;;  %v5856_v46 = vsel %vm8368_vm0, %v5853_v11, %v5850_v24  ;;  %vm6159_vm9 = vcmp.lt.f32.partialorder %v6158_v12, 0.0004427343  ;;  %vm5714_vm12 = vcmp.ne.f32.partialorder %v8128_v21, %v8128_v21 }
 0xed5   :  { %v8390_v59 = vpop.eup %6938  ;;  %v6254_v38 = vadd.f32 %v6142_v42, %v5998_v33  ;;  %6956 = vlog2.f32 %v6161_v8  ;;  %v6052_v33 = vand.u32 2147483647, %v8380_v37  ;;  %v6148_v42 = vmul.f32 %v8324_v29, %v6147_v48 }
 0xed6   :  { %v8397_v54 = vpop.eup %6940  ;;  %6958 = vlog2.f32 %v5875_v36  ;;  %v5952_v24 = vadd.f32 %v5856_v46, %v5696_v3  ;;  %vm6018_vm15 = vcmp.ne.f32.partialorder %v8312_v50, %v8312_v50 }
 0xed7   :  { %v8406_v63 = vpop.eup %6942  ;;  %v6270_v7 = vsel %vm6014_vm14, %v8246_v45, %v6254_v38  ;;  %v6068_v20 = vsub.f32 0.0, %v6052_v33  ;;  %v5951_v45 = vadd.f32 %v5847_v0, %v5695_v25  ;;  %v6156_v38 = vadd.f32 1.0, %v6155_v43 }
 0xed8   :  { %v6945_v23 = vpop.eup %6944  ;;  %v6286_v5 = vadd.f32 %v6270_v7, %v5966_v49  ;;  %v6164_v25 = vmul.f32 -0.5, %v8376_v4  ;;  %v5872_v33 = vand.u32 2147483647, %v8331_v53  ;;  %v5884_v49 = vadd.f32 1.0, %v8343_v57 }
 0xed9   :  { %v6947_v6 = vpop.eup %6946  ;;  %v6093_v62 = vmul.f32 1.442695, %v6068_v20  ;;  %v5859_v36 = vmul.f32 0.6931472, %v6945_v23  ;;  %v5967_v48 = vsel %vm5711_vm2, %v8099_v9, %v5951_v45  ;;  %v8450_v7 = vsub.f32 0.0, %v8166_v39 }
 0xeda   :  { %v8430_v61 = vpop.eup %6948  ;;  %v6302_v34 = vsub.f32 0.0, %v6286_v5  ;;  %v6145_v8 = vmul.f32 0.6931472, %v6947_v6  ;;  %v6157_v26 = vmul.f32 %v8350_v1, %v6156_v38  ;;  %v6165_v43 = vadd.f32 1.0, %v6164_v25 }
 0xedb   :  { %v6170_v44 = vadd.f32 1.0, %v8430_v61  ;;  %6960 = vpow2.f32 %v6093_v62  ;;  %v6951_v0 = vpop.eup %6950  ;;  %v6167_v5 = vand.u32 2147483647, %v8376_v4  ;;  %v5870_v20 = vadd.f32 1.0, %v5869_v35 }
 0xedc   :  { %6850 = vmatmul.mubr.f32.gmra.mxu0 %v6302_v34  ;;  %v6151_v11 = vsel %vm6150_vm6, %v6148_v42, %v6145_v8  ;;  %v6154_v3 = vmul.f32 0.6931472, %v6951_v0  ;;  %v6953_v9 = vpop.eup %6952  ;;  %v5865_v1 = vsel %vm8420_vm5, %v5862_v13, %v5859_v36  ;;  %v6053_v46 = vand.u32 2147483647, %v8450_v7 }
 0xedd   :  { %v6255_v29 = vadd.f32 %v6151_v11, %v5999_v41  ;;  %6962 = vlog2.f32 %v6170_v44  ;;  %v8460_v6 = vpop.eup %6954  ;;  %v6166_v25 = vmul.f32 %v8376_v4, %v6165_v43  ;;  %v6173_v44 = vmul.f32 -0.5, %v8430_v61 }
 0xede   :  { %v6160_v45 = vsel %vm6159_vm9, %v6157_v26, %v6154_v3  ;;  %v6179_v62 = vadd.f32 1.0, %v8460_v6  ;;  %6964 = vlog2.f32 %v5884_v49  ;;  %v5953_v13 = vadd.f32 %v5865_v1, %v5697_v56 }
 0xedf   :  { %v6271_v41 = vsel %vm6015_vm3, %v8283_v2, %v6255_v29  ;;  %v5968_v2 = vsel %vm5712_vm4, %v8105_v28, %v5952_v24  ;;  %v6256_v42 = vadd.f32 %v6160_v45, %v6000_v10  ;;  %v6069_v28 = vsub.f32 0.0, %v6053_v46 }
 0xee0   :  { %v6287_v23 = vadd.f32 %v6271_v41, %v5967_v48  ;;  %vm6168_vm10 = vcmp.lt.f32.partialorder %v6167_v5, 0.0004427343  ;;  %6966 = vlog2.f32 %v6179_v62  ;;  %v5868_v12 = vmul.f32 0.6931472, %v6953_v9 }
 0xee1   :  { %v6272_v51 = vsel %vm6016_vm7, %v8290_v14, %v6256_v42  ;;  %v6095_v35 = vmul.f32 1.442695, %v6069_v28  ;;  %v5699_v24 = vmax.f32 %v8138_v40, 0.0  ;;  %v5878_v14 = vmul.f32 -0.5, %v8335_v19 }
 0xee2   :  { %v6957_v34 = vpop.eup %6956  ;;  %v6303_v8 = vsub.f32 0.0, %v6287_v23  ;;  %v6288_v10 = vadd.f32 %v6272_v51, %v5968_v2  ;;  %v5871_v56 = vmul.f32 %v8331_v53, %v5870_v20  ;;  %v6174_v0 = vadd.f32 1.0, %v6173_v44 }
 0xee3   :  { %v6163_v38 = vmul.f32 0.6931472, %v6957_v34  ;;  %v6959_v29 = vpop.eup %6958  ;;  %6968 = vpow2.f32 %v6095_v35  ;;  %v5969_v48 = vsel %vm5713_vm8, %v8117_v47, %v5953_v13  ;;  %vm8494_vm13 = vcmp.lt.f32.partialorder %v5872_v33, 0.0004427343 }
 0xee4   :  { %6852 = vmatprep.mubr.f32.mxu0 %v6303_v8  ;;  %v6304_v36 = vsub.f32 0.0, %v6288_v10  ;;  %v6176_v41 = vand.u32 2147483647, %v8430_v61  ;;  %v5874_v53 = vsel %vm8494_vm13, %v5871_v56, %v5868_v12  ;;  %v6002_v43 = vmax.f32 %v8312_v50, 0.0 }
 0xee5   :  { %v6169_v11 = vsel %vm6168_vm10, %v6166_v25, %v6163_v38  ;;  %v8505_v9 = vsub.f32 0.0, %v8192_v58  ;;  %v5881_v33 = vand.u32 2147483647, %v8335_v19  ;;  %v6182_v23 = vmul.f32 -0.5, %v8460_v6 }
 0xee6   :  { %v6257_v4 = vadd.f32 %v6169_v11, %v6001_v15  ;;  %6853 = vmatmul.mubr.f32.gmra.mxu0 %v6304_v36  ;;  %v6175_v45 = vmul.f32 %v8430_v61, %v6174_v0  ;;  %v5893_v1 = vadd.f32 1.0, %v8382_v18  ;;  %v5954_v46 = vadd.f32 %v5874_v53, %v5698_v55 }
 0xee7   :  { %vm6177_vm14 = vcmp.lt.f32.partialorder %v6176_v41, 0.0004427343  ;;  %v5877_v34 = vmul.f32 0.6931472, %v6959_v29  ;;  %v5887_v42 = vmul.f32 -0.5, %v8343_v57  ;;  %v6183_v55 = vadd.f32 1.0, %v6182_v23 }
 0xee8   :  { %v6273_v49 = vsel %vm6017_vm11, %v8302_v32, %v6257_v4  ;;  %v8499_v3 = vpop.eup %6960  ;;  %v5879_v32 = vadd.f32 1.0, %v5878_v14  ;;  %v6054_v62 = vand.u32 2147483647, %v8505_v9  ;;  %vm8519_vm0 = vcmp.lt.f32.partialorder %v5881_v33, 0.0004427343 }
 0xee9   :  { %v6289_v26 = vadd.f32 %v6273_v49, %v5969_v48  ;;  %v6188_v5 = vadd.f32 1.0, %v8499_v3  ;;  %v6185_v28 = vand.u32 2147483647, %v8460_v6  ;;  %v8525_v13 = vsub.f32 0.0, %v8210_v31 }
 0xeea   :  { %v6963_v47 = vpop.eup %6962  ;;  %v5880_v61 = vmul.f32 %v8335_v19, %v5879_v32  ;;  %v6070_v51 = vsub.f32 0.0, %v6054_v62  ;;  %v5970_v10 = vsel %vm5714_vm12, %v8128_v21, %v5954_v46  ;;  %v6003_v12 = vmax.f32 %v8329_v16, 0.0 }
 0xeeb   :  { %v6305_v20 = vsub.f32 0.0, %v6289_v26  ;;  %v6172_v2 = vmul.f32 0.6931472, %v6963_v47  ;;  %6970 = vlog2.f32 %v6188_v5  ;;  %v6965_v44 = vpop.eup %6964  ;;  %v5888_v4 = vadd.f32 1.0, %v5887_v42 }
 0xeec   :  { %6972 = vlog2.f32 %v5893_v1  ;;  %v5883_v11 = vsel %vm8519_vm0, %v5880_v61, %v5877_v34  ;;  %v5890_v14 = vand.u32 2147483647, %v8343_v57  ;;  %v6097_v36 = vmul.f32 1.442695, %v6070_v51 }
 0xeed   :  { %6855 = vmatprep.mubr.f32.mxu0 %v6305_v20  ;;  %v6178_v8 = vsel %vm6177_vm14, %v6175_v45, %v6172_v2  ;;  %v6967_v35 = vpop.eup %6966  ;;  %v6184_v0 = vmul.f32 %v8460_v6, %v6183_v55  ;;  %v6191_v48 = vmul.f32 -0.5, %v8499_v3  ;;  %v6055_v21 = vand.u32 2147483647, %v8525_v13 }
 0xeee   :  { %v6258_v38 = vadd.f32 %v6178_v8, %v6002_v43  ;;  %v6181_v56 = vmul.f32 0.6931472, %v6967_v35  ;;  %vm6186_vm1 = vcmp.lt.f32.partialorder %v6185_v28, 0.0004427343  ;;  %6974 = vpow2.f32 %v6097_v36 }
 0xeef   :  { %vm5715_vm2 = vcmp.ne.f32.partialorder %v8138_v40, %v8138_v40  ;;  %v5886_v26 = vmul.f32 0.6931472, %v6965_v44  ;;  %v6071_v53 = vsub.f32 0.0, %v6055_v21  ;;  %vm6019_vm3 = vcmp.ne.f32.partialorder %v8329_v16, %v8329_v16 }
 0xef0   :  { %v6274_v19 = vsel %vm6018_vm15, %v8312_v50, %v6258_v38  ;;  %v5955_v50 = vadd.f32 %v5883_v11, %v5699_v24  ;;  %v8539_v15 = vpop.eup %6968  ;;  %v6187_v41 = vsel %vm6186_vm1, %v6184_v0, %v6181_v56  ;;  %v5889_v43 = vmul.f32 %v8343_v57, %v5888_v4 }
 0xef1   :  { %v6290_v29 = vadd.f32 %v6274_v19, %v5970_v10  ;;  %v6259_v6 = vadd.f32 %v6187_v41, %v6003_v12  ;;  %v6197_v47 = vadd.f32 1.0, %v8539_v15  ;;  %vm8547_vm4 = vcmp.lt.f32.partialorder %v5890_v14, 0.0004427343 }
 0xef2   :  { %v6192_v32 = vadd.f32 1.0, %v6191_v48  ;;  %v5902_v33 = vadd.f32 1.0, %v8387_v22  ;;  %v6099_v23 = vmul.f32 1.442695, %v6071_v53  ;;  %v5971_v5 = vsel %vm5715_vm2, %v8138_v40, %v5955_v50 }
 0xef3   :  { %v6306_v49 = vsub.f32 0.0, %v6290_v29  ;;  %v6275_v20 = vsel %vm6019_vm3, %v8329_v16, %v6259_v6  ;;  %v6194_v2 = vand.u32 2147483647, %v8499_v3  ;;  %6976 = vlog2.f32 %v6197_v47 }
 0xef4   :  { %v6291_v45 = vadd.f32 %v6275_v20, %v5971_v5  ;;  %v5892_v57 = vsel %vm8547_vm4, %v5889_v43, %v5886_v26  ;;  %v5896_v1 = vmul.f32 -0.5, %v8382_v18  ;;  %6978 = vpow2.f32 %v6099_v23 }
 0xef5   :  { %6856 = vmatmul.mubr.f32.gmra.mxu0 %v6306_v49  ;;  %v5770_v34 = vsub.f32 0.0, %v5754_v30  ;;  %v5700_v8 = vmax.f32 %v8154_v27, 0.0  ;;  %v8562_v40 = vsub.f32 0.0, %v8233_v52  ;;  %v6193_v62 = vmul.f32 %v8499_v3, %v6192_v32 }
 0xef6   :  { %v6307_v16 = vsub.f32 0.0, %v6291_v45  ;;  %6980 = vlog2.f32 %v5902_v33  ;;  %v6004_v61 = vmax.f32 %v8380_v37, 0.0  ;;  %vm6195_vm5 = vcmp.lt.f32.partialorder %v6194_v2, 0.0004427343 }
 0xef7   :  { %v5956_v38 = vadd.f32 %v5892_v57, %v5700_v8  ;;  %v6056_v25 = vand.u32 2147483647, %v8562_v40  ;;  %v5897_v30 = vadd.f32 1.0, %v5896_v1  ;;  %v5911_v28 = vadd.f32 1.0, %v8390_v59 }
 0xef8   :  { %v6971_v46 = vpop.eup %6970  ;;  %6858 = vmatprep.mubr.f32.mxu0 %v6307_v16  ;;  %v8569_v51 = vsub.f32 0.0, %v8261_v17  ;;  %v5899_v19 = vand.u32 2147483647, %v8382_v18  ;;  %v6200_v3 = vmul.f32 -0.5, %v8539_v15  ;;  %v5801_v12 = vmul.f32 1.442695, %v5770_v34 }
 0xef9   :  { %v6190_v42 = vmul.f32 0.6931472, %v6971_v46  ;;  %v6973_v55 = vpop.eup %6972  ;;  %v6072_v11 = vsub.f32 0.0, %v6056_v25  ;;  %vm5716_vm6 = vcmp.ne.f32.partialorder %v8154_v27, %v8154_v27  ;;  %vm6020_vm7 = vcmp.ne.f32.partialorder %v8380_v37, %v8380_v37 }
 0xefa   :  { %v6057_v35 = vand.u32 2147483647, %v8569_v51  ;;  %v5972_v29 = vsel %vm5716_vm6, %v8154_v27, %v5956_v38  ;;  %v5895_v14 = vmul.f32 0.6931472, %v6973_v55  ;;  %v5898_v48 = vmul.f32 %v8382_v18, %v5897_v30 }
 0xefb   :  { %v6196_v44 = vsel %vm6195_vm5, %v6193_v62, %v6190_v42  ;;  %v6101_v36 = vmul.f32 1.442695, %v6072_v11  ;;  %v8580_v56 = vpop.eup %6974  ;;  %6982 = vlog2.f32 %v5911_v28  ;;  %vm8583_vm8 = vcmp.lt.f32.partialorder %v5899_v19, 0.0004427343 }
 0xefc   :  { %v6260_v10 = vadd.f32 %v6196_v44, %v6004_v61  ;;  %v6073_v21 = vsub.f32 0.0, %v6057_v35  ;;  %v6201_v50 = vadd.f32 1.0, %v6200_v3  ;;  %v6206_v41 = vadd.f32 1.0, %v8580_v56 }
 0xefd   :  { %6984 = vpow2.f32 %v6101_v36  ;;  %v5901_v53 = vsel %vm8583_vm8, %v5898_v48, %v5895_v14  ;;  %v5905_v6 = vmul.f32 -0.5, %v8387_v22  ;;  %v5701_v43 = vmax.f32 %v8166_v39, 0.0 }
 0xefe   :  { %v6276_v4 = vsel %vm6020_vm7, %v8380_v37, %v6260_v10  ;;  %v6203_v37 = vand.u32 2147483647, %v8539_v15  ;;  %v6103_v26 = vmul.f32 1.442695, %v6073_v21  ;;  %6986 = vlog2.f32 %v6206_v41 }
 0xeff   :  { %v6292_v0 = vadd.f32 %v6276_v4, %v5972_v29  ;;  %v6202_v32 = vmul.f32 %v8539_v15, %v6201_v50  ;;  %v5920_v33 = vadd.f32 1.0, %v8397_v54  ;;  %v5957_v23 = vadd.f32 %v5901_v53, %v5701_v43 }
 0xf00   :  { %v6977_v18 = vpop.eup %6976  ;;  %6988 = vpow2.f32 %v6103_v26  ;;  %v6005_v5 = vmax.f32 %v8450_v7, 0.0  ;;  %vm6204_vm9 = vcmp.lt.f32.partialorder %v6203_v37, 0.0004427343  ;;  %vm5717_vm10 = vcmp.ne.f32.partialorder %v8166_v39, %v8166_v39 }
 0xf01   :  { %v6308_v27 = vsub.f32 0.0, %v6292_v0  ;;  %v8593_v47 = vpop.eup %6978  ;;  %6990 = vpow2.f32 %v5801_v12  ;;  %v6199_v24 = vmul.f32 0.6931472, %v6977_v18  ;;  %vm6021_vm11 = vcmp.ne.f32.partialorder %v8450_v7, %v8450_v7 }
 0xf02   :  { %v6215_v20 = vadd.f32 1.0, %v8593_v47  ;;  %v5906_v57 = vadd.f32 1.0, %v5905_v6  ;;  %v5914_v15 = vmul.f32 -0.5, %v8390_v59  ;;  %v5929_v46 = vadd.f32 1.0, %v8406_v63 }
 0xf03   :  { %6859 = vmatmul.mubr.f32.gmra.mxu0 %v6308_v27  ;;  %v6981_v2 = vpop.eup %6980  ;;  %v6205_v45 = vsel %vm6204_vm9, %v6202_v32, %v6199_v24  ;;  %v5908_v34 = vand.u32 2147483647, %v8387_v22  ;;  %v6209_v8 = vmul.f32 -0.5, %v8580_v56  ;;  %v8608_v16 = vsub.f32 0.0, %v8270_v60  ;;  %v7024_v32 = vld [vmem:[#allocation8 + $0x58] sm:$0xff] }
 0xf04   :  { %v6261_v1 = vadd.f32 %v6205_v45, %v6005_v5  ;;  %6992 = vlog2.f32 %v6215_v20  ;;  %v5973_v42 = vsel %vm5717_vm10, %v8166_v39, %v5957_v23  ;;  %v5904_v38 = vmul.f32 0.6931472, %v6981_v2 }
 0xf05   :  { %6994 = vlog2.f32 %v5920_v33  ;;  %v6058_v25 = vand.u32 2147483647, %v8608_v16  ;;  %v5907_v55 = vmul.f32 %v8387_v22, %v5906_v57  ;;  %v5915_v44 = vadd.f32 1.0, %v5914_v15 }
 0xf06   :  { %v6277_v62 = vsel %vm6021_vm11, %v8450_v7, %v6261_v1  ;;  %6996 = vlog2.f32 %v5929_v46  ;;  %vm8614_vm12 = vcmp.lt.f32.partialorder %v5908_v34, 0.0004427343  ;;  %v6210_v60 = vadd.f32 1.0, %v6209_v8 }
 0xf07   :  { %v6293_v61 = vadd.f32 %v6277_v62, %v5973_v42  ;;  %v6074_v19 = vsub.f32 0.0, %v6058_v25  ;;  %v5702_v39 = vmax.f32 %v8192_v58, 0.0  ;;  %v5910_v7 = vsel %vm8614_vm12, %v5907_v55, %v5904_v38 }
 0xf08   :  { %v6983_v30 = vpop.eup %6982  ;;  %v6212_v11 = vand.u32 2147483647, %v8580_v56  ;;  %v6218_v22 = vmul.f32 -0.5, %v8593_v47  ;;  %vm5718_vm13 = vcmp.ne.f32.partialorder %v8192_v58, %v8192_v58  ;;  %v6006_v12 = vmax.f32 %v8505_v9, 0.0 }
 0xf09   :  { %v6309_v28 = vsub.f32 0.0, %v6293_v61  ;;  %v5917_v35 = vand.u32 2147483647, %v8390_v59  ;;  %v5913_v14 = vmul.f32 0.6931472, %v6983_v30  ;;  %v5916_v36 = vmul.f32 %v8390_v59, %v5915_v44  ;;  %v7025_v44 = vld [vmem:[#allocation8 + $0x60] sm:$0xff] }
 0xf0a   :  { %v8618_v3 = vpop.eup %6984  ;;  %v5923_v0 = vmul.f32 -0.5, %v8397_v54  ;;  %v6105_v48 = vmul.f32 1.442695, %v6074_v19  ;;  %v5958_v49 = vadd.f32 %v5910_v7, %v5702_v39  ;;  %v6211_v41 = vmul.f32 %v8580_v56, %v6210_v60 }
 0xf0b   :  { %6861 = vmatprep.mubr.f32.mxu0 %v6309_v28  ;;  %v6224_v29 = vadd.f32 1.0, %v8618_v3  ;;  %v6987_v4 = vpop.eup %6986  ;;  %vm6213_vm14 = vcmp.lt.f32.partialorder %v6212_v11, 0.0004427343  ;;  %v6219_v37 = vadd.f32 1.0, %v6218_v22  ;;  %v5703_v59 = vmax.f32 %v8210_v31, 0.0 }
 0xf0c   :  { %v6208_v50 = vmul.f32 0.6931472, %v6987_v4  ;;  %vm8639_vm15 = vcmp.lt.f32.partialorder %v5917_v35, 0.0004427343  ;;  %v6221_v18 = vand.u32 2147483647, %v8593_v47  ;;  %vm6022_vm0 = vcmp.ne.f32.partialorder %v8505_v9, %v8505_v9 }
 0xf0d   :  { %v8632_v21 = vpop.eup %6988  ;;  %6998 = vlog2.f32 %v6224_v29  ;;  %v5919_v43 = vsel %vm8639_vm15, %v5916_v36, %v5913_v14  ;;  %v5974_v33 = vsel %vm5718_vm13, %v7024_v32, %v5958_v49  ;;  %v6007_v23 = vmax.f32 %v8525_v13, 0.0 }
 0xf0e   :  { %v8635_v27 = vpop.eup %6990  ;;  %v6233_v26 = vadd.f32 1.0, %v8632_v21  ;;  %7000 = vpow2.f32 %v6105_v48  ;;  %v6214_v53 = vsel %vm6213_vm14, %v6211_v41, %v6208_v50  ;;  %v5924_v5 = vadd.f32 1.0, %v5923_v0 }
 0xf0f   :  { %v6262_v56 = vadd.f32 %v6214_v53, %v6006_v12  ;;  %v5932_v20 = vmul.f32 -0.5, %v8406_v63  ;;  %v6220_v1 = vmul.f32 %v8593_v47, %v6219_v37  ;;  %v5938_v15 = vadd.f32 1.0, %v8635_v27 }
 0xf10   :  { %7002 = vlog2.f32 %v6233_v26  ;;  %v5959_v34 = vadd.f32 %v5919_v43, %v5703_v59  ;;  %vm6222_vm1 = vcmp.lt.f32.partialorder %v6221_v18, 0.0004427343  ;;  %v6227_v8 = vmul.f32 -0.5, %v8618_v3 }
 0xf11   :  { %v6993_v24 = vpop.eup %6992  ;;  %v6278_v45 = vsel %vm6022_vm0, %v8505_v9, %v6262_v56  ;;  %vm5719_vm2 = vcmp.ne.f32.partialorder %v8210_v31, %v8210_v31  ;;  %v5926_v42 = vand.u32 2147483647, %v8397_v54  ;;  %vm6023_vm3 = vcmp.ne.f32.partialorder %v8525_v13, %v8525_v13 }
 0xf12   :  { %v6995_v2 = vpop.eup %6994  ;;  %v6217_v57 = vmul.f32 0.6931472, %v6993_v24  ;;  %v6294_v46 = vadd.f32 %v6278_v45, %v5974_v33  ;;  %v5925_v61 = vmul.f32 %v8397_v54, %v5924_v5  ;;  %v5933_v25 = vadd.f32 1.0, %v5932_v20 }
 0xf13   :  { %v6997_v62 = vpop.eup %6996  ;;  %v5922_v47 = vmul.f32 0.6931472, %v6995_v2  ;;  %v6236_v55 = vmul.f32 -0.5, %v8632_v21  ;;  %7004 = vlog2.f32 %v5938_v15  ;;  %v5975_v30 = vsel %vm5719_vm2, %v7025_v44, %v5959_v34 }
 0xf14   :  { %v6223_v58 = vsel %vm6222_vm1, %v6220_v1, %v6217_v57  ;;  %v6310_v38 = vsub.f32 0.0, %v6294_v46  ;;  %v6228_v28 = vadd.f32 1.0, %v6227_v8  ;;  %v5935_v10 = vand.u32 2147483647, %v8406_v63 }
 0xf15   :  { %v6263_v9 = vadd.f32 %v6223_v58, %v6007_v23  ;;  %vm8666_vm4 = vcmp.lt.f32.partialorder %v5926_v42, 0.0004427343  ;;  %v6230_v39 = vand.u32 2147483647, %v8618_v3  ;;  %v5931_v54 = vmul.f32 0.6931472, %v6997_v62 }
 0xf16   :  { %6862 = vmatmul.mubr.f32.gmra.mxu0 %v6310_v38  ;;  %v5704_v7 = vmax.f32 %v8233_v52, 0.0  ;;  %v5928_v11 = vsel %vm8666_vm4, %v5925_v61, %v5922_v47  ;;  %v5934_v35 = vmul.f32 %v8406_v63, %v5933_v25  ;;  %v6237_v29 = vadd.f32 1.0, %v6236_v55  ;;  %v7026_v63 = vld [vmem:[#allocation8 + $0x68] sm:$0xff]  ;;  %v7027_v23 = vld [vmem:[#allocation8 + $0x70] sm:$0xff]  ;;  %v7028_v38 = vld [vmem:[#allocation8 + $0x78] sm:$0xff] }
 0xf17   :  { %v6279_v31 = vsel %vm6023_vm3, %v8525_v13, %v6263_v9  ;;  %v6008_v13 = vmax.f32 %v8562_v40, 0.0  ;;  %v6229_v36 = vmul.f32 %v8618_v3, %v6228_v28  ;;  %vm8677_vm5 = vcmp.lt.f32.partialorder %v5935_v10, 0.0004427343  ;;  %v5674_v10 = vld [vmem:[#allocation7 + $0x31] ss:$0 sm:$0xff] }
 0xf18   :  { %v6295_v60 = vadd.f32 %v6279_v31, %v5975_v30  ;;  %v6239_v52 = vand.u32 2147483647, %v8632_v21  ;;  %v5960_v48 = vadd.f32 %v5928_v11, %v5704_v7  ;;  %vm6231_vm6 = vcmp.lt.f32.partialorder %v6230_v39, 0.0004427343 }
 0xf19   :  { %v5937_v49 = vsel %vm8677_vm5, %v5934_v35, %v5931_v54  ;;  %vm5720_vm7 = vcmp.ne.f32.partialorder %v7026_v63, %v7026_v63  ;;  %v5705_v26 = vmax.f32 %v8261_v17, 0.0  ;;  %v6238_v59 = vmul.f32 %v8632_v21, %v6237_v29 }
 0xf1a   :  { %v6999_v22 = vpop.eup %6998  ;;  %v6311_v12 = vsub.f32 0.0, %v6295_v60  ;;  %vm6024_vm8 = vcmp.ne.f32.partialorder %v8562_v40, %v8562_v40  ;;  %v6009_v18 = vmax.f32 %v8569_v51, 0.0  ;;  %vm6240_vm9 = vcmp.lt.f32.partialorder %v6239_v52, 0.0004427343 }
 0xf1b   :  { %v7001_v4 = vpop.eup %7000  ;;  %v6226_v14 = vmul.f32 0.6931472, %v6999_v22  ;;  %v5961_v6 = vadd.f32 %v5937_v49, %v5705_v26  ;;  %v5976_v56 = vsel %vm5720_vm7, %v7026_v63, %v5960_v48  ;;  %v5941_v32 = vmul.f32 -0.5, %v8635_v27 }
 0xf1c   :  { %6864 = vmatprep.mubr.f32.mxu0 %v6311_v12  ;;  %v6242_v50 = vadd.f32 1.0, %v7001_v4  ;;  %vm5721_vm10 = vcmp.ne.f32.partialorder %v7027_v23, %v7027_v23  ;;  %vm6025_vm11 = vcmp.ne.f32.partialorder %v8569_v51, %v8569_v51  ;;  %v6245_v1 = vmul.f32 -0.5, %v7001_v4 }
 0xf1d   :  { %v7003_v41 = vpop.eup %7002  ;;  %v6232_v37 = vsel %vm6231_vm6, %v6229_v36, %v6226_v14  ;;  %v5977_v20 = vsel %vm5721_vm10, %v7027_v23, %v5961_v6  ;;  %v5942_v57 = vadd.f32 1.0, %v5941_v32  ;;  %v6248_v58 = vand.u32 2147483647, %v7001_v4 }
 0xf1e   :  { %v6264_v3 = vadd.f32 %v6232_v37, %v6008_v13  ;;  %v6235_v53 = vmul.f32 0.6931472, %v7003_v41  ;;  %7006 = vlog2.f32 %v6242_v50  ;;  %v6246_v8 = vadd.f32 1.0, %v6245_v1 }
 0xf1f   :  { %v5943_v34 = vmul.f32 %v8635_v27, %v5942_v57  ;;  %v5706_v9 = vmax.f32 %v7028_v38, 0.0  ;;  %v6010_v25 = vmax.f32 %v8608_v16, 0.0  ;;  %vm6249_vm13 = vcmp.lt.f32.partialorder %v6248_v58, 0.0004427343 }
 0xf20   :  { %v6280_v43 = vsel %vm6024_vm8, %v8562_v40, %v6264_v3  ;;  %v6241_v24 = vsel %vm6240_vm9, %v6238_v59, %v6235_v53  ;;  %v7005_v21 = vpop.eup %7004  ;;  %v5944_v40 = vand.u32 2147483647, %v8635_v27  ;;  %vm5722_vm14 = vcmp.ne.f32.partialorder %v7028_v38, %v7028_v38 }
 0xf21   :  { %v6296_v33 = vadd.f32 %v6280_v43, %v5976_v56  ;;  %v6265_v17 = vadd.f32 %v6241_v24, %v6009_v18  ;;  %v5940_v46 = vmul.f32 0.6931472, %v7005_v21  ;;  %vm6026_vm15 = vcmp.ne.f32.partialorder %v8608_v16, %v8608_v16 }
 0xf22   :  { %vm5945_vm12 = vcmp.lt.f32.partialorder %v5944_v40, 0.0004427343 }
 0xf23   :  { %v6312_v5 = vsub.f32 0.0, %v6296_v33  ;;  %v6281_v2 = vsel %vm6025_vm11, %v8569_v51, %v6265_v17  ;;  %v5946_v42 = vsel %vm5945_vm12, %v5943_v34, %v5940_v46  ;;  %v6247_v51 = vmul.f32 %v7001_v4, %v6246_v8 }
 0xf24   :  { %v6297_v45 = vadd.f32 %v6281_v2, %v5977_v20  ;;  %v5962_v61 = vadd.f32 %v5946_v42, %v5706_v9 }
 0xf25   :  { %6865 = vmatmul.mubr.f32.gmra.mxu0 %v6312_v5 }
 0xf26   :  { %v6313_v15 = vsub.f32 0.0, %v6297_v45  ;;  %v5978_v27 = vsel %vm5722_vm14, %v7028_v38, %v5962_v61 }
 0xf28   :  { %6867 = vmatprep.mubr.f32.mxu0 %v6313_v15 }
 0xf2b   :  { %v7007_v62 = vpop.eup %7006 }
 0xf2c   :  { %v6244_v47 = vmul.f32 0.6931472, %v7007_v62 }
 0xf2e   :  { %v6250_v55 = vsel %vm6249_vm13, %v6247_v51, %v6244_v47 }
 0xf2f   :  { %v6266_v44 = vadd.f32 %v6250_v55, %v6010_v25 }
 0xf31   :  { %v6282_v30 = vsel %vm6026_vm15, %v8608_v16, %v6266_v44 }
 0xf32   :  { %v6298_v31 = vadd.f32 %v6282_v30, %v5978_v27 }
 0xf34   :  { %v6314_v28 = vsub.f32 0.0, %v6298_v31 }
 0xf36   :  { %6868 = vmatmul.mubr.f32.gmra.mxu0 %v6314_v28 }
 0xf70   :  { %v6848_v60 = vpop.f32.mrf.mxu0 }
 0xf71   :  { %v6403_v19 = vadd.f32 %v6848_v60, %v5674_v10 }
 0xf72   :  { %v6397_v39 = vpop.f32.mrf.mxu0 }
 0xf73   :  { %6493 = vst [vmem:[#allocation9 + $0x8] sm:$0xff] %v6403_v19  ;;  %v6398_v54 = vadd.f32 %v6397_v39, %v5674_v10 }
 0xf75   :  { %6492 = vst [vmem:[#allocation9] sm:$0xff] %v6398_v54 }
 0xf76   :  { %7100 = shalt.err (!%p7097_p5)
}
 0xf77   :  { %6519 = dma.vmem_to_hbm [thread:$0]  %s6514_s2, 2048, %s8715_s3, [#allocation4], %s7141_s25, %s7141_s25, %s7142_s26  }
 0xf78   :  { %s7146_s3 = smov [#allocation9]  }
 0xf79   :  { %s6525_s10 = sshll.u32 %s7146_s3, 4  ;;  %s6526_s10 = int_to_ptr.vmem [resolvable:$true] %s6525_s10 }
 0xf7a   :  { %s7109_s11 = scalar_lea.vmem %s6526_s10, 2048  ;;  %p7114_p7 = scmp.lt.s32.totalorder %s6526_s10, %s6526_s10 }
 0xf7b   :  { %p7110_p6 = scmp.ne.s32.totalorder %s6526_s10, %s7109_s11  ;;  %p7115_p8 = scmp.lt.s32.totalorder %s7109_s11, %s7109_s11 }
 0xf7d   :  { %p7116_p9 = por %p7115_p8, %p7114_p7 }
 0xf7f   :  { %p7117_p10 = pnand %p7116_p9, %p7110_p6 }
 0xf9c   :  { %v6851_v16 = vpop.f32.mrf.mxu0 }
 0xf9d   :  { %v6413_v7 = vadd.f32 %v6851_v16, %v5674_v10 }
 0xf9e   :  { %v6407_v11 = vpop.f32.mrf.mxu0 }
 0xf9f   :  { %6495 = vst [vmem:[#allocation9 + $0x18] sm:$0xff] %v6413_v7  ;;  %v6408_v22 = vadd.f32 %v6407_v11, %v5674_v10 }
 0xfa1   :  { %6494 = vst [vmem:[#allocation9 + $0x10] sm:$0xff] %v6408_v22 }
 0xfa6   :  { %v6854_v12 = vpop.f32.mrf.mxu0 }
 0xfa7   :  { %v6423_v13 = vadd.f32 %v6854_v12, %v5674_v10 }
 0xfa8   :  { %v6417_v35 = vpop.f32.mrf.mxu0 }
 0xfa9   :  { %6497 = vst [vmem:[#allocation9 + $0x28] sm:$0xff] %v6423_v13  ;;  %v6418_v29 = vadd.f32 %v6417_v35, %v5674_v10 }
 0xfab   :  { %6496 = vst [vmem:[#allocation9 + $0x20] sm:$0xff] %v6418_v29 }
 0xfb5   :  { %v6857_v4 = vpop.f32.mrf.mxu0 }
 0xfb6   :  { %v6433_v14 = vadd.f32 %v6857_v4, %v5674_v10 }
 0xfb7   :  { %v6427_v36 = vpop.f32.mrf.mxu0 }
 0xfb8   :  { %6499 = vst [vmem:[#allocation9 + $0x38] sm:$0xff] %v6433_v14  ;;  %v6428_v0 = vadd.f32 %v6427_v36, %v5674_v10 }
 0xfba   :  { %6498 = vst [vmem:[#allocation9 + $0x30] sm:$0xff] %v6428_v0 }
 0xfc3   :  { %v6860_v52 = vpop.f32.mrf.mxu0 }
 0xfc4   :  { %v6443_v48 = vadd.f32 %v6860_v52, %v5674_v10 }
 0xfc5   :  { %v6437_v49 = vpop.f32.mrf.mxu0 }
 0xfc6   :  { %6501 = vst [vmem:[#allocation9 + $0x48] sm:$0xff] %v6443_v48  ;;  %v6438_v50 = vadd.f32 %v6437_v49, %v5674_v10 }
 0xfc8   :  { %6500 = vst [vmem:[#allocation9 + $0x40] sm:$0xff] %v6438_v50 }
 0xfd6   :  { %v6863_v41 = vpop.f32.mrf.mxu0 }
 0xfd7   :  { %v6453_v63 = vadd.f32 %v6863_v41, %v5674_v10 }
 0xfd8   :  { %v6447_v37 = vpop.f32.mrf.mxu0 }
 0xfd9   :  { %6503 = vst [vmem:[#allocation9 + $0x58] sm:$0xff] %v6453_v63  ;;  %v6448_v26 = vadd.f32 %v6447_v37, %v5674_v10 }
 0xfdb   :  { %6502 = vst [vmem:[#allocation9 + $0x50] sm:$0xff] %v6448_v26 }
 0xfe5   :  { %v6866_v3 = vpop.f32.mrf.mxu0 }
 0xfe6   :  { %v6463_v53 = vadd.f32 %v6866_v3, %v5674_v10 }
 0xfe7   :  { %v6457_v59 = vpop.f32.mrf.mxu0 }
 0xfe8   :  { %6505 = vst [vmem:[#allocation9 + $0x68] sm:$0xff] %v6463_v53  ;;  %v6458_v6 = vadd.f32 %v6457_v59, %v5674_v10 }
 0xfea   :  { %6504 = vst [vmem:[#allocation9 + $0x60] sm:$0xff] %v6458_v6 }
 0xff6   :  { %v6869_v18 = vpop.f32.mrf.mxu0 }
 0xff7   :  { %v6473_v56 = vadd.f32 %v6869_v18, %v5674_v10 }
 0xff8   :  { %v6467_v43 = vpop.f32.mrf.mxu0 }
 0xff9   :  { %6507 = vst [vmem:[#allocation9 + $0x78] sm:$0xff] %v6473_v56  ;;  %v6468_v24 = vadd.f32 %v6467_v43, %v5674_v10 }
 0xffb   :  { %6506 = vst [vmem:[#allocation9 + $0x70] sm:$0xff] %v6468_v24 }
 0xffc   :  { %7120 = shalt.err (!%p7117_p10)
}
 0xffd   :  { %6531 = dma.vmem_to_hbm [thread:$0]  %s6526_s10, 2048, %s8716_s4, [#allocation10], %s7141_s25, %s7141_s25, %s7142_s26  }
 0xffe   :  { %7133 = dma.done.wait [#allocation4], 2048  }
 0xfff   :  { %7134 = vsyncadd [#allocation4], 4294965248 }
0x1000   :  { %7135 = dma.done.wait [#allocation10], 2048  }
0x1001   :  { %7136 = vsyncadd [#allocation10], 4294965248 }
0x1002   :  { %6538 = vsyncpa [#allocation3], 1 }
0x1003   :  { %6539 = vsyncpa [#allocation6], 1 }
0x1004   :  { %6540 = vsyncpa [#allocation4], 1 }
0x1005   :  { %6541 = vsyncpa [#allocation10], 1 }

</bundles_post_ra>
